<compile_context>
chip_gen: v7x
topology: tpu7x:2x2x1
jax: 0.10.0
libtpu: 0.0.40
codegen_flags: <defaults>
</compile_context>

<pallas_src>
import jax
import jax.numpy as jnp
from jax import lax
from jax.experimental import pallas as pl
from jax.experimental.pallas import tpu as pltpu

K = 11    # conv kernel size along time
PAD = 5   # time padding
C1 = 8    # conv1_out_n
C2 = 32   # conv1_out_n * 4

# Set to jnp.bfloat16 on v6e/v7x for 2-4x MXU rate (accumulation stays f32 via
# preferred_element_type).  Kept f32 by default for bit-faithful numerics and
# because v5e has no bf16 VPU/EUP path for the surrounding elementwise math.
MXU_DTYPE = jnp.float32


def _mdot(a, b):
    return jnp.dot(a.astype(MXU_DTYPE), b.astype(MXU_DTYPE),
                   preferred_element_type=jnp.float32)


def _time_shift(h, s, B):
    """h rows are time-major (row = t*B + b).  Return h shifted so row t*B+b
    holds the original row (t+s)*B+b, zero-filled outside [0, L)."""
    if s == 0:
        return h
    rows, cols = h.shape
    z = jnp.zeros((abs(s) * B, cols), h.dtype)
    if s > 0:
        return jnp.concatenate([h[s * B:, :], z], axis=0)
    return jnp.concatenate([z, h[:rows + s * B, :]], axis=0)


def _im2col(h, B):
    """(L*B, C) -> (L*B, K*C); tap k holds the features at time t + (k - PAD)."""
    return jnp.concatenate([_time_shift(h, k - PAD, B) for k in range(K)],
                           axis=-1)


# --------------------------------------------------------------------------
# Fused kernel factory (conv stack + stacked biLSTM + head in one kernel).
# --------------------------------------------------------------------------
def make_fused_kernel(L, B, H, num_layers, n_dir, inv_tmax):
    G = 4 * H
    R = n_dir * B

    def kernel(*refs):
        x_ref, mask_ref = refs[0], refs[1]
        (w1_ref, b1_ref, s1_ref, t1_ref,
         wr1_ref, br1_ref, sr1_ref, tr1_ref,
         wr2_ref, br2_ref, sr2_ref, tr2_ref,
         wd_ref, sd_ref, td_ref) = refs[2:17]
        lstm_refs = [refs[17 + 3 * l: 20 + 3 * l] for l in range(num_layers)]
        n_in = 19 + 3 * num_layers
        fcw_ref, fcb_ref = refs[n_in - 2], refs[n_in - 1]
        out_ref = refs[n_in]
        yf_ref = refs[n_in + 1]
        yb_ref = refs[n_in + 2] if n_dir == 2 else None

        # ------------- conv1 + BN + ReLU + ResidualBlock (im2col matmuls) ----
        x2d = x_ref[...]                                          # (L*B, D)
        h1 = _mdot(_im2col(x2d, B), w1_ref[...]) + b1_ref[...]    # conv1
        h1 = jnp.maximum(h1 * s1_ref[...] + t1_ref[...], 0.0)     # bn + relu
        h2 = _mdot(_im2col(h1, B), wr1_ref[...]) + br1_ref[...]   # res conv1
        h2 = jnp.maximum(h2 * sr1_ref[...] + tr1_ref[...], 0.0)
        h3 = _mdot(_im2col(h2, B), wr2_ref[...]) + br2_ref[...]   # res conv2
        h3 = h3 * sr2_ref[...] + tr2_ref[...]
        res = _mdot(h1, wd_ref[...]) * sd_ref[...] + td_ref[...]  # 1x1 + bn
        inp2d = jnp.maximum(h3 + res, 0.0)                        # (L*B, C2)

        # ------------- stacked (bi)LSTM layers --------------------------------
        if n_dir == 2:
            row = lax.broadcasted_iota(jnp.int32, (R, 1), 0)
            rmf = (row < B).astype(jnp.float32)                   # fwd rows
            rmb = 1.0 - rmf                                       # bwd rows

        for layer in range(num_layers):
            wih_ref, b_ref, whh_ref = lstm_refs[layer]
            # Hoisted input projection for every timestep & both directions.
            xw = _mdot(inp2d, wih_ref[...]) + b_ref[...]          # (L*B, n_dir*4H)
            whh = whh_ref[...]                                    # (n_dir*H, 4H)

            h = jnp.zeros((R, H), jnp.float32)
            c = jnp.zeros((R, H), jnp.float32)
            for s in range(L):                                    # static unroll
                tb = L - 1 - s
                if n_dir == 2:
                    xw_t = jnp.concatenate(
                        [xw[s * B:(s + 1) * B, :G],
                         xw[tb * B:(tb + 1) * B, G:]], axis=0)    # (2B, 4H)
                    m_t = jnp.concatenate([mask_ref[s], mask_ref[tb]], axis=0)
                    # block-diagonal LHS so one matmul serves both directions
                    h_ext = jnp.concatenate([h * rmf, h * rmb], axis=-1)
                else:
                    xw_t = xw[s * B:(s + 1) * B, :]
                    m_t = mask_ref[s]
                    h_ext = h
                gates = xw_t + _mdot(h_ext, whh)                  # (R, 4H) i|f|g|o
                sg = jax.nn.sigmoid(gates)                        # full-vreg EUP
                th = jnp.tanh(gates)
                i_g = sg[:, 0 * H:1 * H]
                f_g = sg[:, 1 * H:2 * H]
                g_g = th[:, 2 * H:3 * H]
                o_g = sg[:, 3 * H:4 * H]
                c = (f_g * c + i_g * g_g) * m_t                   # packing mask
                h = (o_g * jnp.tanh(c)) * m_t
                yf_ref[s] = h[:B]
                if n_dir == 2:
                    yb_ref[tb] = h[B:]

            if layer + 1 < num_layers:
                yf2d = jnp.concatenate([yf_ref[t] for t in range(L)], axis=0)
                if n_dir == 2:
                    yb2d = jnp.concatenate([yb_ref[t] for t in range(L)], axis=0)
                    inp2d = jnp.concatenate([yf2d, yb2d], axis=-1)
                else:
                    inp2d = yf2d
            # TODO(synk): inter-layer LSTM dropout omitted (eval-mode forward).

        # ------------- head: mean over time + Linear + Sigmoid ---------------
        sum_f = jnp.sum(yf_ref[...], axis=0)                      # (B, H)
        if n_dir == 2:
            sum_b = jnp.sum(yb_ref[...], axis=0)
            mean = jnp.concatenate([sum_f, sum_b], axis=-1) * inv_tmax
        else:
            mean = sum_f * inv_tmax
        out_ref[...] = jax.nn.sigmoid(_mdot(mean, fcw_ref[...]) + fcb_ref[...])

    return kernel


# --------------------------------------------------------------------------
# Parameter initialization (deterministic, matches nn.Module shapes), stored
# directly in the fused-kernel layouts.
# --------------------------------------------------------------------------
def init_params(key, D, H, O, num_layers, bi):
    it = iter(jax.random.split(key, 64))

    def nrm(shape, scale=0.1):
        return (scale * jax.random.normal(next(it), shape)).astype(jnp.float32)

    def bn_fold(c, eps=1e-5):
        gamma = 1.0 + nrm((c,), 0.1)
        beta = nrm((c,), 0.1)
        mean = nrm((c,), 0.05)
        var = 1.0 + jnp.abs(nrm((c,), 0.1))
        s = gamma / jnp.sqrt(var + eps)
        t = beta - mean * s
        return s.reshape(1, c), t.reshape(1, c)

    # conv1: Conv2d(1, C1, kernel=(11, D), padding=(5, 0)) + BN
    w_conv1 = nrm((C1, 1, K, D))
    b_conv1 = nrm((C1,), 0.05)
    s1, t1 = bn_fold(C1)
    # residual block conv1/conv2 (kernel (11, 1)) + BNs
    w_r1 = nrm((C2, C1, K, 1))
    b_r1 = nrm((C2,), 0.05)
    sr1, tr1 = bn_fold(C2)
    w_r2 = nrm((C2, C2, K, 1), 0.05)
    b_r2 = nrm((C2,), 0.05)
    sr2, tr2 = bn_fold(C2)
    # downsample: Conv2d(C1, C2, 1, bias=False) + BN
    w_d = nrm((C2, C1, 1, 1))
    sd, td = bn_fold(C2)

    conv = dict(
        w1=jnp.transpose(w_conv1[:, 0], (1, 2, 0)).reshape(K * D, C1),
        b1=b_conv1.reshape(1, C1), s1=s1, t1=t1,
        wr1=jnp.transpose(w_r1[:, :, :, 0], (2, 1, 0)).reshape(K * C1, C2),
        br1=b_r1.reshape(1, C2), sr1=sr1, tr1=tr1,
        wr2=jnp.transpose(w_r2[:, :, :, 0], (2, 1, 0)).reshape(K * C2, C2),
        br2=b_r2.reshape(1, C2), sr2=sr2, tr2=tr2,
        wd=jnp.transpose(w_d[:, :, 0, 0], (1, 0)),
        sd=sd, td=td,
    )

    n_dir = 2 if bi else 1
    lstm = []
    for layer in range(num_layers):
        in_dim = C2 if layer == 0 else H * n_dir
        wih_cols, b_cols, whh_rows = [], [], []
        for _ in range(n_dir):
            w_ih = nrm((4 * H, in_dim), 0.15)
            w_hh = nrm((4 * H, H), 0.15)
            b_ih = nrm((4 * H,), 0.05)
            b_hh = nrm((4 * H,), 0.05)
            wih_cols.append(w_ih.T)                            # (in_dim, 4H)
            b_cols.append((b_ih + b_hh).reshape(1, 4 * H))
            whh_rows.append(w_hh.T)                            # (H, 4H)
        lstm.append(dict(
            wih=jnp.concatenate(wih_cols, axis=1),             # (in, n_dir*4H)
            b=jnp.concatenate(b_cols, axis=1),                 # (1,  n_dir*4H)
            whh=jnp.concatenate(whh_rows, axis=0)))            # (n_dir*H, 4H)

    fc_w = nrm((O, H * n_dir), 0.15)
    fc_b = nrm((O,), 0.05)
    return dict(conv=conv, lstm=lstm, fc_wT=fc_w.T, fc_b=fc_b.reshape(1, O))


# --------------------------------------------------------------------------
# Full forward (mirrors ResRNANet.forward2) -- one fused pallas_call.
# --------------------------------------------------------------------------
def resrnanet_forward(x, lengths, y, params, num_layers=2, bi=True):
    B, L, _D = x.shape
    H = params['lstm'][0]['whh'].shape[1] // 4
    O = params['fc_b'].shape[1]
    n_dir = 2 if bi else 1

    # Only layout prep in XLA: batch-first input -> time-major rows, plus the
    # pack_padded_sequence length mask.  Both are a few hundred bytes.
    x_tm = jnp.transpose(x, (1, 0, 2)).reshape(L * B, _D).astype(jnp.float32)
    lens = jnp.asarray(lengths, jnp.int32)
    mask = (jnp.arange(L, dtype=jnp.int32)[:, None] < lens[None, :])
    mask = mask.astype(jnp.float32).reshape(L, B, 1)

    # pad_packed_sequence pads to max(lengths); torch.mean divides by it.
    # TODO(synk): requires concrete lengths (would break for traced lengths).
    t_max = int(max(lengths))

    kernel = make_fused_kernel(L, B, H, num_layers, n_dir, 1.0 / float(t_max))

    cp = params['conv']
    args = [x_tm, mask,
            cp['w1'], cp['b1'], cp['s1'], cp['t1'],
            cp['wr1'], cp['br1'], cp['sr1'], cp['tr1'],
            cp['wr2'], cp['br2'], cp['sr2'], cp['tr2'],
            cp['wd'], cp['sd'], cp['td']]
    for layer in range(num_layers):
        lp = params['lstm'][layer]
        args += [lp['wih'], lp['b'], lp['whh']]
    args += [params['fc_wT'], params['fc_b']]

    vmem = pl.BlockSpec(memory_space=pltpu.MemorySpace.VMEM)
    scratch = [pltpu.VMEM((L, B, H), jnp.float32)]             # fwd outputs
    if n_dir == 2:
        scratch.append(pltpu.VMEM((L, B, H), jnp.float32))     # bwd outputs

    # TODO(synk): on v7x the second TensorCore stays idle; a core_map split of
    # the two LSTM directions would roughly 2x the recurrent portion.
    out = pl.pallas_call(
        kernel,
        in_specs=[vmem] * len(args),
        out_specs=vmem,
        out_shape=jax.ShapeDtypeStruct((B, O), jnp.float32),
        scratch_shapes=scratch,
    )(*args)
    return out, y


if __name__ == "__main__":
    # ResRNANet(input_dim=4, hidden_dim=32, output_dim=4, num_layers=2, biFlag=True)
    D_IN, HID, OUT, NLAYERS, BIFLAG = 4, 32, 4, 2, True
    B, L = 2, 16

    key = jax.random.PRNGKey(0)
    kx, ky, kp = jax.random.split(key, 3)
    x = jax.random.normal(kx, (B, L, D_IN), jnp.float32)    # (batch, length, input_dim)
    y = jax.random.randint(ky, (B,), 0, OUT)
    x_lengths = [16, 12]                                    # sorted descending (pack requirement)

    params = init_params(kp, D_IN, HID, OUT, NLAYERS, BIFLAG)
    out, y_out = resrnanet_forward(x, x_lengths, y, params,
                                   num_layers=NLAYERS, bi=BIFLAG)
    out = jax.block_until_ready(out)
    assert out.shape == (B, OUT)
    assert bool(jnp.all(jnp.isfinite(out)))
    assert bool(jnp.all((out >= 0.0) & (out <= 1.0)))       # sigmoid output
    print("KERNEL_OK")
</pallas_src>

<mosaic_0001>
module attributes {stable_mosaic.version = 11 : i64} {
  func.func @kernel(%arg0: memref<32x4xf32, #tpu.memory_space<vmem>>, %arg1: memref<16x2x1xf32, #tpu.memory_space<vmem>>, %arg2: memref<44x8xf32, #tpu.memory_space<vmem>>, %arg3: memref<1x8xf32, #tpu.memory_space<vmem>>, %arg4: memref<1x8xf32, #tpu.memory_space<vmem>>, %arg5: memref<1x8xf32, #tpu.memory_space<vmem>>, %arg6: memref<88x32xf32, #tpu.memory_space<vmem>>, %arg7: memref<1x32xf32, #tpu.memory_space<vmem>>, %arg8: memref<1x32xf32, #tpu.memory_space<vmem>>, %arg9: memref<1x32xf32, #tpu.memory_space<vmem>>, %arg10: memref<352x32xf32, #tpu.memory_space<vmem>>, %arg11: memref<1x32xf32, #tpu.memory_space<vmem>>, %arg12: memref<1x32xf32, #tpu.memory_space<vmem>>, %arg13: memref<1x32xf32, #tpu.memory_space<vmem>>, %arg14: memref<8x32xf32, #tpu.memory_space<vmem>>, %arg15: memref<1x32xf32, #tpu.memory_space<vmem>>, %arg16: memref<1x32xf32, #tpu.memory_space<vmem>>, %arg17: memref<32x256xf32, #tpu.memory_space<vmem>>, %arg18: memref<1x256xf32, #tpu.memory_space<vmem>>, %arg19: memref<64x128xf32, #tpu.memory_space<vmem>>, %arg20: memref<64x256xf32, #tpu.memory_space<vmem>>, %arg21: memref<1x256xf32, #tpu.memory_space<vmem>>, %arg22: memref<64x128xf32, #tpu.memory_space<vmem>>, %arg23: memref<64x4xf32, #tpu.memory_space<vmem>>, %arg24: memref<1x4xf32, #tpu.memory_space<vmem>>, %arg25: memref<2x4xf32, #tpu.memory_space<vmem>>, %arg26: memref<16x2x32xf32, #tpu.memory_space<vmem>>, %arg27: memref<16x2x32xf32, #tpu.memory_space<vmem>>) attributes {dimension_semantics = [], scalar_prefetch = 0 : i64, scratch_operands = 2 : i64, tpu.core_type = #tpu.core_type<tc>} {
    %c0 = arith.constant 0 : index
    %c0_0 = arith.constant 0 : index
    %0 = vector.load %arg0[%c0, %c0_0] : memref<32x4xf32, #tpu.memory_space<vmem>>, vector<32x4xf32>
    %cst = arith.constant 0.000000e+00 : f32
    %1 = vector.broadcast %cst : f32 to vector<10x4xf32>
    %2 = vector.extract_strided_slice %0 {offsets = [0, 0], sizes = [22, 4], strides = [1, 1]} : vector<32x4xf32> to vector<22x4xf32>
    %3 = tpu.concatenate %1, %2 in 0 : vector<10x4xf32>, vector<22x4xf32> -> vector<32x4xf32>
    %cst_1 = arith.constant 0.000000e+00 : f32
    %4 = vector.broadcast %cst_1 : f32 to vector<8x4xf32>
    %5 = vector.extract_strided_slice %0 {offsets = [0, 0], sizes = [24, 4], strides = [1, 1]} : vector<32x4xf32> to vector<24x4xf32>
    %6 = tpu.concatenate %4, %5 in 0 : vector<8x4xf32>, vector<24x4xf32> -> vector<32x4xf32>
    %cst_2 = arith.constant 0.000000e+00 : f32
    %7 = vector.broadcast %cst_2 : f32 to vector<6x4xf32>
    %8 = vector.extract_strided_slice %0 {offsets = [0, 0], sizes = [26, 4], strides = [1, 1]} : vector<32x4xf32> to vector<26x4xf32>
    %9 = tpu.concatenate %7, %8 in 0 : vector<6x4xf32>, vector<26x4xf32> -> vector<32x4xf32>
    %cst_3 = arith.constant 0.000000e+00 : f32
    %10 = vector.broadcast %cst_3 : f32 to vector<4x4xf32>
    %11 = vector.extract_strided_slice %0 {offsets = [0, 0], sizes = [28, 4], strides = [1, 1]} : vector<32x4xf32> to vector<28x4xf32>
    %12 = tpu.concatenate %10, %11 in 0 : vector<4x4xf32>, vector<28x4xf32> -> vector<32x4xf32>
    %cst_4 = arith.constant 0.000000e+00 : f32
    %13 = vector.broadcast %cst_4 : f32 to vector<2x4xf32>
    %14 = vector.extract_strided_slice %0 {offsets = [0, 0], sizes = [30, 4], strides = [1, 1]} : vector<32x4xf32> to vector<30x4xf32>
    %15 = tpu.concatenate %13, %14 in 0 : vector<2x4xf32>, vector<30x4xf32> -> vector<32x4xf32>
    %cst_5 = arith.constant 0.000000e+00 : f32
    %16 = vector.broadcast %cst_5 : f32 to vector<2x4xf32>
    %17 = vector.extract_strided_slice %0 {offsets = [2, 0], sizes = [30, 4], strides = [1, 1]} : vector<32x4xf32> to vector<30x4xf32>
    %18 = tpu.concatenate %17, %16 in 0 : vector<30x4xf32>, vector<2x4xf32> -> vector<32x4xf32>
    %cst_6 = arith.constant 0.000000e+00 : f32
    %19 = vector.broadcast %cst_6 : f32 to vector<4x4xf32>
    %20 = vector.extract_strided_slice %0 {offsets = [4, 0], sizes = [28, 4], strides = [1, 1]} : vector<32x4xf32> to vector<28x4xf32>
    %21 = tpu.concatenate %20, %19 in 0 : vector<28x4xf32>, vector<4x4xf32> -> vector<32x4xf32>
    %cst_7 = arith.constant 0.000000e+00 : f32
    %22 = vector.broadcast %cst_7 : f32 to vector<6x4xf32>
    %23 = vector.extract_strided_slice %0 {offsets = [6, 0], sizes = [26, 4], strides = [1, 1]} : vector<32x4xf32> to vector<26x4xf32>
    %24 = tpu.concatenate %23, %22 in 0 : vector<26x4xf32>, vector<6x4xf32> -> vector<32x4xf32>
    %cst_8 = arith.constant 0.000000e+00 : f32
    %25 = vector.broadcast %cst_8 : f32 to vector<8x4xf32>
    %26 = vector.extract_strided_slice %0 {offsets = [8, 0], sizes = [24, 4], strides = [1, 1]} : vector<32x4xf32> to vector<24x4xf32>
    %27 = tpu.concatenate %26, %25 in 0 : vector<24x4xf32>, vector<8x4xf32> -> vector<32x4xf32>
    %cst_9 = arith.constant 0.000000e+00 : f32
    %28 = vector.broadcast %cst_9 : f32 to vector<10x4xf32>
    %29 = vector.extract_strided_slice %0 {offsets = [10, 0], sizes = [22, 4], strides = [1, 1]} : vector<32x4xf32> to vector<22x4xf32>
    %30 = tpu.concatenate %29, %28 in 0 : vector<22x4xf32>, vector<10x4xf32> -> vector<32x4xf32>
    %31 = tpu.concatenate %3, %6, %9, %12, %15, %0, %18, %21, %24, %27, %30 in 1 : vector<32x4xf32>, vector<32x4xf32>, vector<32x4xf32>, vector<32x4xf32>, vector<32x4xf32>, vector<32x4xf32>, vector<32x4xf32>, vector<32x4xf32>, vector<32x4xf32>, vector<32x4xf32>, vector<32x4xf32> -> vector<32x44xf32>
    %c0_10 = arith.constant 0 : index
    %c0_11 = arith.constant 0 : index
    %32 = vector.load %arg2[%c0_10, %c0_11] : memref<44x8xf32, #tpu.memory_space<vmem>>, vector<44x8xf32>
    %cst_12 = arith.constant dense<0.000000e+00> : vector<32x8xf32>
    %33 = tpu.matmul %31, %32, %cst_12 {dimension_numbers = #tpu.dot_dimension_numbers<[1], [0], [0], [1], [0, 0, 1, 1], [], []>} : vector<32x44xf32>, vector<44x8xf32>, vector<32x8xf32> -> vector<32x8xf32>
    %c0_13 = arith.constant 0 : index
    %c0_14 = arith.constant 0 : index
    %34 = vector.load %arg3[%c0_13, %c0_14] : memref<1x8xf32, #tpu.memory_space<vmem>>, vector<1x8xf32>
    %35 = vector.broadcast %34 : vector<1x8xf32> to vector<32x8xf32>
    %36 = arith.addf %33, %35 : vector<32x8xf32>
    %c0_15 = arith.constant 0 : index
    %c0_16 = arith.constant 0 : index
    %37 = vector.load %arg4[%c0_15, %c0_16] : memref<1x8xf32, #tpu.memory_space<vmem>>, vector<1x8xf32>
    %38 = vector.broadcast %37 : vector<1x8xf32> to vector<32x8xf32>
    %39 = arith.mulf %36, %38 : vector<32x8xf32>
    %c0_17 = arith.constant 0 : index
    %c0_18 = arith.constant 0 : index
    %40 = vector.load %arg5[%c0_17, %c0_18] : memref<1x8xf32, #tpu.memory_space<vmem>>, vector<1x8xf32>
    %41 = vector.broadcast %40 : vector<1x8xf32> to vector<32x8xf32>
    %42 = arith.addf %39, %41 : vector<32x8xf32>
    %cst_19 = arith.constant 0.000000e+00 : f32
    %43 = vector.broadcast %cst_19 : f32 to vector<32x8xf32>
    %44 = arith.maximumf %42, %43 : vector<32x8xf32>
    %cst_20 = arith.constant 0.000000e+00 : f32
    %45 = vector.broadcast %cst_20 : f32 to vector<10x8xf32>
    %46 = vector.extract_strided_slice %44 {offsets = [0, 0], sizes = [22, 8], strides = [1, 1]} : vector<32x8xf32> to vector<22x8xf32>
    %47 = tpu.concatenate %45, %46 in 0 : vector<10x8xf32>, vector<22x8xf32> -> vector<32x8xf32>
    %cst_21 = arith.constant 0.000000e+00 : f32
    %48 = vector.broadcast %cst_21 : f32 to vector<8x8xf32>
    %49 = vector.extract_strided_slice %44 {offsets = [0, 0], sizes = [24, 8], strides = [1, 1]} : vector<32x8xf32> to vector<24x8xf32>
    %50 = tpu.concatenate %48, %49 in 0 : vector<8x8xf32>, vector<24x8xf32> -> vector<32x8xf32>
    %cst_22 = arith.constant 0.000000e+00 : f32
    %51 = vector.broadcast %cst_22 : f32 to vector<6x8xf32>
    %52 = vector.extract_strided_slice %44 {offsets = [0, 0], sizes = [26, 8], strides = [1, 1]} : vector<32x8xf32> to vector<26x8xf32>
    %53 = tpu.concatenate %51, %52 in 0 : vector<6x8xf32>, vector<26x8xf32> -> vector<32x8xf32>
    %cst_23 = arith.constant 0.000000e+00 : f32
    %54 = vector.broadcast %cst_23 : f32 to vector<4x8xf32>
    %55 = vector.extract_strided_slice %44 {offsets = [0, 0], sizes = [28, 8], strides = [1, 1]} : vector<32x8xf32> to vector<28x8xf32>
    %56 = tpu.concatenate %54, %55 in 0 : vector<4x8xf32>, vector<28x8xf32> -> vector<32x8xf32>
    %cst_24 = arith.constant 0.000000e+00 : f32
    %57 = vector.broadcast %cst_24 : f32 to vector<2x8xf32>
    %58 = vector.extract_strided_slice %44 {offsets = [0, 0], sizes = [30, 8], strides = [1, 1]} : vector<32x8xf32> to vector<30x8xf32>
    %59 = tpu.concatenate %57, %58 in 0 : vector<2x8xf32>, vector<30x8xf32> -> vector<32x8xf32>
    %cst_25 = arith.constant 0.000000e+00 : f32
    %60 = vector.broadcast %cst_25 : f32 to vector<2x8xf32>
    %61 = vector.extract_strided_slice %44 {offsets = [2, 0], sizes = [30, 8], strides = [1, 1]} : vector<32x8xf32> to vector<30x8xf32>
    %62 = tpu.concatenate %61, %60 in 0 : vector<30x8xf32>, vector<2x8xf32> -> vector<32x8xf32>
    %cst_26 = arith.constant 0.000000e+00 : f32
    %63 = vector.broadcast %cst_26 : f32 to vector<4x8xf32>
    %64 = vector.extract_strided_slice %44 {offsets = [4, 0], sizes = [28, 8], strides = [1, 1]} : vector<32x8xf32> to vector<28x8xf32>
    %65 = tpu.concatenate %64, %63 in 0 : vector<28x8xf32>, vector<4x8xf32> -> vector<32x8xf32>
    %cst_27 = arith.constant 0.000000e+00 : f32
    %66 = vector.broadcast %cst_27 : f32 to vector<6x8xf32>
    %67 = vector.extract_strided_slice %44 {offsets = [6, 0], sizes = [26, 8], strides = [1, 1]} : vector<32x8xf32> to vector<26x8xf32>
    %68 = tpu.concatenate %67, %66 in 0 : vector<26x8xf32>, vector<6x8xf32> -> vector<32x8xf32>
    %cst_28 = arith.constant 0.000000e+00 : f32
    %69 = vector.broadcast %cst_28 : f32 to vector<8x8xf32>
    %70 = vector.extract_strided_slice %44 {offsets = [8, 0], sizes = [24, 8], strides = [1, 1]} : vector<32x8xf32> to vector<24x8xf32>
    %71 = tpu.concatenate %70, %69 in 0 : vector<24x8xf32>, vector<8x8xf32> -> vector<32x8xf32>
    %cst_29 = arith.constant 0.000000e+00 : f32
    %72 = vector.broadcast %cst_29 : f32 to vector<10x8xf32>
    %73 = vector.extract_strided_slice %44 {offsets = [10, 0], sizes = [22, 8], strides = [1, 1]} : vector<32x8xf32> to vector<22x8xf32>
    %74 = tpu.concatenate %73, %72 in 0 : vector<22x8xf32>, vector<10x8xf32> -> vector<32x8xf32>
    %75 = tpu.concatenate %47, %50, %53, %56, %59, %44, %62, %65, %68, %71, %74 in 1 : vector<32x8xf32>, vector<32x8xf32>, vector<32x8xf32>, vector<32x8xf32>, vector<32x8xf32>, vector<32x8xf32>, vector<32x8xf32>, vector<32x8xf32>, vector<32x8xf32>, vector<32x8xf32>, vector<32x8xf32> -> vector<32x88xf32>
    %c0_30 = arith.constant 0 : index
    %c0_31 = arith.constant 0 : index
    %76 = vector.load %arg6[%c0_30, %c0_31] : memref<88x32xf32, #tpu.memory_space<vmem>>, vector<88x32xf32>
    %cst_32 = arith.constant dense<0.000000e+00> : vector<32x32xf32>
    %77 = tpu.matmul %75, %76, %cst_32 {dimension_numbers = #tpu.dot_dimension_numbers<[1], [0], [0], [1], [0, 0, 1, 1], [], []>} : vector<32x88xf32>, vector<88x32xf32>, vector<32x32xf32> -> vector<32x32xf32>
    %c0_33 = arith.constant 0 : index
    %c0_34 = arith.constant 0 : index
    %78 = vector.load %arg7[%c0_33, %c0_34] : memref<1x32xf32, #tpu.memory_space<vmem>>, vector<1x32xf32>
    %79 = vector.broadcast %78 : vector<1x32xf32> to vector<32x32xf32>
    %80 = arith.addf %77, %79 : vector<32x32xf32>
    %c0_35 = arith.constant 0 : index
    %c0_36 = arith.constant 0 : index
    %81 = vector.load %arg8[%c0_35, %c0_36] : memref<1x32xf32, #tpu.memory_space<vmem>>, vector<1x32xf32>
    %82 = vector.broadcast %81 : vector<1x32xf32> to vector<32x32xf32>
    %83 = arith.mulf %80, %82 : vector<32x32xf32>
    %c0_37 = arith.constant 0 : index
    %c0_38 = arith.constant 0 : index
    %84 = vector.load %arg9[%c0_37, %c0_38] : memref<1x32xf32, #tpu.memory_space<vmem>>, vector<1x32xf32>
    %85 = vector.broadcast %84 : vector<1x32xf32> to vector<32x32xf32>
    %86 = arith.addf %83, %85 : vector<32x32xf32>
    %cst_39 = arith.constant 0.000000e+00 : f32
    %87 = vector.broadcast %cst_39 : f32 to vector<32x32xf32>
    %88 = arith.maximumf %86, %87 : vector<32x32xf32>
    %cst_40 = arith.constant 0.000000e+00 : f32
    %89 = vector.broadcast %cst_40 : f32 to vector<10x32xf32>
    %90 = vector.extract_strided_slice %88 {offsets = [0, 0], sizes = [22, 32], strides = [1, 1]} : vector<32x32xf32> to vector<22x32xf32>
    %91 = tpu.concatenate %89, %90 in 0 : vector<10x32xf32>, vector<22x32xf32> -> vector<32x32xf32>
    %cst_41 = arith.constant 0.000000e+00 : f32
    %92 = vector.broadcast %cst_41 : f32 to vector<8x32xf32>
    %93 = vector.extract_strided_slice %88 {offsets = [0, 0], sizes = [24, 32], strides = [1, 1]} : vector<32x32xf32> to vector<24x32xf32>
    %94 = tpu.concatenate %92, %93 in 0 : vector<8x32xf32>, vector<24x32xf32> -> vector<32x32xf32>
    %cst_42 = arith.constant 0.000000e+00 : f32
    %95 = vector.broadcast %cst_42 : f32 to vector<6x32xf32>
    %96 = vector.extract_strided_slice %88 {offsets = [0, 0], sizes = [26, 32], strides = [1, 1]} : vector<32x32xf32> to vector<26x32xf32>
    %97 = tpu.concatenate %95, %96 in 0 : vector<6x32xf32>, vector<26x32xf32> -> vector<32x32xf32>
    %cst_43 = arith.constant 0.000000e+00 : f32
    %98 = vector.broadcast %cst_43 : f32 to vector<4x32xf32>
    %99 = vector.extract_strided_slice %88 {offsets = [0, 0], sizes = [28, 32], strides = [1, 1]} : vector<32x32xf32> to vector<28x32xf32>
    %100 = tpu.concatenate %98, %99 in 0 : vector<4x32xf32>, vector<28x32xf32> -> vector<32x32xf32>
    %cst_44 = arith.constant 0.000000e+00 : f32
    %101 = vector.broadcast %cst_44 : f32 to vector<2x32xf32>
    %102 = vector.extract_strided_slice %88 {offsets = [0, 0], sizes = [30, 32], strides = [1, 1]} : vector<32x32xf32> to vector<30x32xf32>
    %103 = tpu.concatenate %101, %102 in 0 : vector<2x32xf32>, vector<30x32xf32> -> vector<32x32xf32>
    %cst_45 = arith.constant 0.000000e+00 : f32
    %104 = vector.broadcast %cst_45 : f32 to vector<2x32xf32>
    %105 = vector.extract_strided_slice %88 {offsets = [2, 0], sizes = [30, 32], strides = [1, 1]} : vector<32x32xf32> to vector<30x32xf32>
    %106 = tpu.concatenate %105, %104 in 0 : vector<30x32xf32>, vector<2x32xf32> -> vector<32x32xf32>
    %cst_46 = arith.constant 0.000000e+00 : f32
    %107 = vector.broadcast %cst_46 : f32 to vector<4x32xf32>
    %108 = vector.extract_strided_slice %88 {offsets = [4, 0], sizes = [28, 32], strides = [1, 1]} : vector<32x32xf32> to vector<28x32xf32>
    %109 = tpu.concatenate %108, %107 in 0 : vector<28x32xf32>, vector<4x32xf32> -> vector<32x32xf32>
    %cst_47 = arith.constant 0.000000e+00 : f32
    %110 = vector.broadcast %cst_47 : f32 to vector<6x32xf32>
    %111 = vector.extract_strided_slice %88 {offsets = [6, 0], sizes = [26, 32], strides = [1, 1]} : vector<32x32xf32> to vector<26x32xf32>
    %112 = tpu.concatenate %111, %110 in 0 : vector<26x32xf32>, vector<6x32xf32> -> vector<32x32xf32>
    %cst_48 = arith.constant 0.000000e+00 : f32
    %113 = vector.broadcast %cst_48 : f32 to vector<8x32xf32>
    %114 = vector.extract_strided_slice %88 {offsets = [8, 0], sizes = [24, 32], strides = [1, 1]} : vector<32x32xf32> to vector<24x32xf32>
    %115 = tpu.concatenate %114, %113 in 0 : vector<24x32xf32>, vector<8x32xf32> -> vector<32x32xf32>
    %cst_49 = arith.constant 0.000000e+00 : f32
    %116 = vector.broadcast %cst_49 : f32 to vector<10x32xf32>
    %117 = vector.extract_strided_slice %88 {offsets = [10, 0], sizes = [22, 32], strides = [1, 1]} : vector<32x32xf32> to vector<22x32xf32>
    %118 = tpu.concatenate %117, %116 in 0 : vector<22x32xf32>, vector<10x32xf32> -> vector<32x32xf32>
    %119 = tpu.concatenate %91, %94, %97, %100, %103, %88, %106, %109, %112, %115, %118 in 1 : vector<32x32xf32>, vector<32x32xf32>, vector<32x32xf32>, vector<32x32xf32>, vector<32x32xf32>, vector<32x32xf32>, vector<32x32xf32>, vector<32x32xf32>, vector<32x32xf32>, vector<32x32xf32>, vector<32x32xf32> -> vector<32x352xf32>
    %c0_50 = arith.constant 0 : index
    %c0_51 = arith.constant 0 : index
    %120 = vector.load %arg10[%c0_50, %c0_51] : memref<352x32xf32, #tpu.memory_space<vmem>>, vector<352x32xf32>
    %cst_52 = arith.constant dense<0.000000e+00> : vector<32x32xf32>
    %121 = tpu.matmul %119, %120, %cst_52 {dimension_numbers = #tpu.dot_dimension_numbers<[1], [0], [0], [1], [0, 0, 1, 1], [], []>} : vector<32x352xf32>, vector<352x32xf32>, vector<32x32xf32> -> vector<32x32xf32>
    %c0_53 = arith.constant 0 : index
    %c0_54 = arith.constant 0 : index
    %122 = vector.load %arg11[%c0_53, %c0_54] : memref<1x32xf32, #tpu.memory_space<vmem>>, vector<1x32xf32>
    %123 = vector.broadcast %122 : vector<1x32xf32> to vector<32x32xf32>
    %124 = arith.addf %121, %123 : vector<32x32xf32>
    %c0_55 = arith.constant 0 : index
    %c0_56 = arith.constant 0 : index
    %125 = vector.load %arg12[%c0_55, %c0_56] : memref<1x32xf32, #tpu.memory_space<vmem>>, vector<1x32xf32>
    %126 = vector.broadcast %125 : vector<1x32xf32> to vector<32x32xf32>
    %127 = arith.mulf %124, %126 : vector<32x32xf32>
    %c0_57 = arith.constant 0 : index
    %c0_58 = arith.constant 0 : index
    %128 = vector.load %arg13[%c0_57, %c0_58] : memref<1x32xf32, #tpu.memory_space<vmem>>, vector<1x32xf32>
    %129 = vector.broadcast %128 : vector<1x32xf32> to vector<32x32xf32>
    %130 = arith.addf %127, %129 : vector<32x32xf32>
    %c0_59 = arith.constant 0 : index
    %c0_60 = arith.constant 0 : index
    %131 = vector.load %arg14[%c0_59, %c0_60] : memref<8x32xf32, #tpu.memory_space<vmem>>, vector<8x32xf32>
    %cst_61 = arith.constant dense<0.000000e+00> : vector<32x32xf32>
    %132 = tpu.matmul %44, %131, %cst_61 {dimension_numbers = #tpu.dot_dimension_numbers<[1], [0], [0], [1], [0, 0, 1, 1], [], []>} : vector<32x8xf32>, vector<8x32xf32>, vector<32x32xf32> -> vector<32x32xf32>
    %c0_62 = arith.constant 0 : index
    %c0_63 = arith.constant 0 : index
    %133 = vector.load %arg15[%c0_62, %c0_63] : memref<1x32xf32, #tpu.memory_space<vmem>>, vector<1x32xf32>
    %134 = vector.broadcast %133 : vector<1x32xf32> to vector<32x32xf32>
    %135 = arith.mulf %132, %134 : vector<32x32xf32>
    %c0_64 = arith.constant 0 : index
    %c0_65 = arith.constant 0 : index
    %136 = vector.load %arg16[%c0_64, %c0_65] : memref<1x32xf32, #tpu.memory_space<vmem>>, vector<1x32xf32>
    %137 = vector.broadcast %136 : vector<1x32xf32> to vector<32x32xf32>
    %138 = arith.addf %135, %137 : vector<32x32xf32>
    %139 = arith.addf %130, %138 : vector<32x32xf32>
    %cst_66 = arith.constant 0.000000e+00 : f32
    %140 = vector.broadcast %cst_66 : f32 to vector<32x32xf32>
    %141 = arith.maximumf %139, %140 : vector<32x32xf32>
    %142 = tpu.iota {dimensions = array<i32: 0>} : vector<4x1xi32>
    %c2_i32 = arith.constant 2 : i32
    %143 = vector.broadcast %c2_i32 : i32 to vector<4x1xi32>
    %144 = arith.cmpi slt, %142, %143 : vector<4x1xi32>
    %145 = arith.extui %144 : vector<4x1xi1> to vector<4x1xi32>
    %146 = arith.sitofp %145 : vector<4x1xi32> to vector<4x1xf32>
    %cst_67 = arith.constant 1.000000e+00 : f32
    %147 = vector.broadcast %cst_67 : f32 to vector<4x1xf32>
    %148 = arith.subf %147, %146 : vector<4x1xf32>
    %c0_68 = arith.constant 0 : index
    %c0_69 = arith.constant 0 : index
    %149 = vector.load %arg17[%c0_68, %c0_69] : memref<32x256xf32, #tpu.memory_space<vmem>>, vector<32x256xf32>
    %cst_70 = arith.constant dense<0.000000e+00> : vector<32x256xf32>
    %150 = tpu.matmul %141, %149, %cst_70 {dimension_numbers = #tpu.dot_dimension_numbers<[1], [0], [0], [1], [0, 0, 1, 1], [], []>} : vector<32x32xf32>, vector<32x256xf32>, vector<32x256xf32> -> vector<32x256xf32>
    %c0_71 = arith.constant 0 : index
    %c0_72 = arith.constant 0 : index
    %151 = vector.load %arg18[%c0_71, %c0_72] : memref<1x256xf32, #tpu.memory_space<vmem>>, vector<1x256xf32>
    %152 = vector.broadcast %151 : vector<1x256xf32> to vector<32x256xf32>
    %153 = arith.addf %150, %152 : vector<32x256xf32>
    %c0_73 = arith.constant 0 : index
    %c0_74 = arith.constant 0 : index
    %154 = vector.load %arg19[%c0_73, %c0_74] : memref<64x128xf32, #tpu.memory_space<vmem>>, vector<64x128xf32>
    %cst_75 = arith.constant 0.000000e+00 : f32
    %155 = vector.broadcast %cst_75 : f32 to vector<4x32xf32>
    %cst_76 = arith.constant 0.000000e+00 : f32
    %156 = vector.broadcast %cst_76 : f32 to vector<4x32xf32>
    %157 = vector.extract_strided_slice %153 {offsets = [0, 0], sizes = [2, 128], strides = [1, 1]} : vector<32x256xf32> to vector<2x128xf32>
    %158 = vector.extract_strided_slice %153 {offsets = [30, 128], sizes = [2, 128], strides = [1, 1]} : vector<32x256xf32> to vector<2x128xf32>
    %159 = tpu.concatenate %157, %158 in 0 : vector<2x128xf32>, vector<2x128xf32> -> vector<4x128xf32>
    %c0_77 = arith.constant 0 : index
    %c0_78 = arith.constant 0 : index
    %c0_79 = arith.constant 0 : index
    %160 = vector.load %arg1[%c0_77, %c0_78, %c0_79] : memref<16x2x1xf32, #tpu.memory_space<vmem>>, vector<1x2x1xf32>
    %161 = vector.shape_cast %160 : vector<1x2x1xf32> to vector<2x1xf32>
    %c15 = arith.constant 15 : index
    %c0_80 = arith.constant 0 : index
    %c0_81 = arith.constant 0 : index
    %162 = vector.load %arg1[%c15, %c0_80, %c0_81] : memref<16x2x1xf32, #tpu.memory_space<vmem>>, vector<1x2x1xf32>
    %163 = vector.shape_cast %162 : vector<1x2x1xf32> to vector<2x1xf32>
    %164 = tpu.concatenate %161, %163 in 0 : vector<2x1xf32>, vector<2x1xf32> -> vector<4x1xf32>
    %165 = vector.broadcast %146 : vector<4x1xf32> to vector<4x32xf32>
    %166 = arith.mulf %155, %165 : vector<4x32xf32>
    %167 = vector.broadcast %148 : vector<4x1xf32> to vector<4x32xf32>
    %168 = arith.mulf %155, %167 : vector<4x32xf32>
    %169 = tpu.concatenate %166, %168 in 1 : vector<4x32xf32>, vector<4x32xf32> -> vector<4x64xf32>
    %cst_82 = arith.constant dense<0.000000e+00> : vector<4x128xf32>
    %170 = tpu.matmul %169, %154, %cst_82 {dimension_numbers = #tpu.dot_dimension_numbers<[1], [0], [0], [1], [0, 0, 1, 1], [], []>} : vector<4x64xf32>, vector<64x128xf32>, vector<4x128xf32> -> vector<4x128xf32>
    %171 = arith.addf %159, %170 : vector<4x128xf32>
    %172 = arith.negf %171 : vector<4x128xf32>
    %173 = math.exp %172 : vector<4x128xf32>
    %cst_83 = arith.constant 1.000000e+00 : f32
    %174 = vector.broadcast %cst_83 : f32 to vector<4x128xf32>
    %175 = arith.addf %174, %173 : vector<4x128xf32>
    %176 = arith.divf %174, %175 : vector<4x128xf32>
    %177 = math.tanh %171 : vector<4x128xf32>
    %178 = vector.extract_strided_slice %176 {offsets = [0, 0], sizes = [4, 32], strides = [1, 1]} : vector<4x128xf32> to vector<4x32xf32>
    %179 = vector.extract_strided_slice %176 {offsets = [0, 32], sizes = [4, 32], strides = [1, 1]} : vector<4x128xf32> to vector<4x32xf32>
    %180 = vector.extract_strided_slice %177 {offsets = [0, 64], sizes = [4, 32], strides = [1, 1]} : vector<4x128xf32> to vector<4x32xf32>
    %181 = vector.extract_strided_slice %176 {offsets = [0, 96], sizes = [4, 32], strides = [1, 1]} : vector<4x128xf32> to vector<4x32xf32>
    %182 = arith.mulf %179, %156 : vector<4x32xf32>
    %183 = arith.mulf %178, %180 : vector<4x32xf32>
    %184 = arith.addf %182, %183 : vector<4x32xf32>
    %185 = vector.broadcast %164 : vector<4x1xf32> to vector<4x32xf32>
    %186 = arith.mulf %184, %185 : vector<4x32xf32>
    %187 = math.tanh %186 : vector<4x32xf32>
    %188 = arith.mulf %181, %187 : vector<4x32xf32>
    %189 = vector.broadcast %164 : vector<4x1xf32> to vector<4x32xf32>
    %190 = arith.mulf %188, %189 : vector<4x32xf32>
    %191 = vector.extract_strided_slice %190 {offsets = [0, 0], sizes = [2, 32], strides = [1, 1]} : vector<4x32xf32> to vector<2x32xf32>
    %c0_84 = arith.constant 0 : index
    %c0_85 = arith.constant 0 : index
    %c0_86 = arith.constant 0 : index
    %192 = vector.load %arg26[%c0_84, %c0_85, %c0_86] : memref<16x2x32xf32, #tpu.memory_space<vmem>>, vector<1x2x32xf32>
    %193 = vector.shape_cast %192 : vector<1x2x32xf32> to vector<2x32xf32>
    %194 = vector.shape_cast %191 : vector<2x32xf32> to vector<1x2x32xf32>
    tpu.vector_store %arg26[%c0_84, %c0_85, %c0_86], %194 {strides = array<i32>} : memref<16x2x32xf32, #tpu.memory_space<vmem>>, vector<1x2x32xf32>,
    %195 = vector.extract_strided_slice %190 {offsets = [2, 0], sizes = [2, 32], strides = [1, 1]} : vector<4x32xf32> to vector<2x32xf32>
    %c15_87 = arith.constant 15 : index
    %c0_88 = arith.constant 0 : index
    %c0_89 = arith.constant 0 : index
    %196 = vector.load %arg27[%c15_87, %c0_88, %c0_89] : memref<16x2x32xf32, #tpu.memory_space<vmem>>, vector<1x2x32xf32>
    %197 = vector.shape_cast %196 : vector<1x2x32xf32> to vector<2x32xf32>
    %198 = vector.shape_cast %195 : vector<2x32xf32> to vector<1x2x32xf32>
    tpu.vector_store %arg27[%c15_87, %c0_88, %c0_89], %198 {strides = array<i32>} : memref<16x2x32xf32, #tpu.memory_space<vmem>>, vector<1x2x32xf32>,
    %199 = vector.extract_strided_slice %153 {offsets = [2, 0], sizes = [2, 128], strides = [1, 1]} : vector<32x256xf32> to vector<2x128xf32>
    %200 = vector.extract_strided_slice %153 {offsets = [28, 128], sizes = [2, 128], strides = [1, 1]} : vector<32x256xf32> to vector<2x128xf32>
    %201 = tpu.concatenate %199, %200 in 0 : vector<2x128xf32>, vector<2x128xf32> -> vector<4x128xf32>
    %c1 = arith.constant 1 : index
    %c0_90 = arith.constant 0 : index
    %c0_91 = arith.constant 0 : index
    %202 = vector.load %arg1[%c1, %c0_90, %c0_91] : memref<16x2x1xf32, #tpu.memory_space<vmem>>, vector<1x2x1xf32>
    %203 = vector.shape_cast %202 : vector<1x2x1xf32> to vector<2x1xf32>
    %c14 = arith.constant 14 : index
    %c0_92 = arith.constant 0 : index
    %c0_93 = arith.constant 0 : index
    %204 = vector.load %arg1[%c14, %c0_92, %c0_93] : memref<16x2x1xf32, #tpu.memory_space<vmem>>, vector<1x2x1xf32>
    %205 = vector.shape_cast %204 : vector<1x2x1xf32> to vector<2x1xf32>
    %206 = tpu.concatenate %203, %205 in 0 : vector<2x1xf32>, vector<2x1xf32> -> vector<4x1xf32>
    %207 = vector.broadcast %146 : vector<4x1xf32> to vector<4x32xf32>
    %208 = arith.mulf %190, %207 : vector<4x32xf32>
    %209 = vector.broadcast %148 : vector<4x1xf32> to vector<4x32xf32>
    %210 = arith.mulf %190, %209 : vector<4x32xf32>
    %211 = tpu.concatenate %208, %210 in 1 : vector<4x32xf32>, vector<4x32xf32> -> vector<4x64xf32>
    %cst_94 = arith.constant dense<0.000000e+00> : vector<4x128xf32>
    %212 = tpu.matmul %211, %154, %cst_94 {dimension_numbers = #tpu.dot_dimension_numbers<[1], [0], [0], [1], [0, 0, 1, 1], [], []>} : vector<4x64xf32>, vector<64x128xf32>, vector<4x128xf32> -> vector<4x128xf32>
    %213 = arith.addf %201, %212 : vector<4x128xf32>
    %214 = arith.negf %213 : vector<4x128xf32>
    %215 = math.exp %214 : vector<4x128xf32>
    %cst_95 = arith.constant 1.000000e+00 : f32
    %216 = vector.broadcast %cst_95 : f32 to vector<4x128xf32>
    %217 = arith.addf %216, %215 : vector<4x128xf32>
    %218 = arith.divf %216, %217 : vector<4x128xf32>
    %219 = math.tanh %213 : vector<4x128xf32>
    %220 = vector.extract_strided_slice %218 {offsets = [0, 0], sizes = [4, 32], strides = [1, 1]} : vector<4x128xf32> to vector<4x32xf32>
    %221 = vector.extract_strided_slice %218 {offsets = [0, 32], sizes = [4, 32], strides = [1, 1]} : vector<4x128xf32> to vector<4x32xf32>
    %222 = vector.extract_strided_slice %219 {offsets = [0, 64], sizes = [4, 32], strides = [1, 1]} : vector<4x128xf32> to vector<4x32xf32>
    %223 = vector.extract_strided_slice %218 {offsets = [0, 96], sizes = [4, 32], strides = [1, 1]} : vector<4x128xf32> to vector<4x32xf32>
    %224 = arith.mulf %221, %186 : vector<4x32xf32>
    %225 = arith.mulf %220, %222 : vector<4x32xf32>
    %226 = arith.addf %224, %225 : vector<4x32xf32>
    %227 = vector.broadcast %206 : vector<4x1xf32> to vector<4x32xf32>
    %228 = arith.mulf %226, %227 : vector<4x32xf32>
    %229 = math.tanh %228 : vector<4x32xf32>
    %230 = arith.mulf %223, %229 : vector<4x32xf32>
    %231 = vector.broadcast %206 : vector<4x1xf32> to vector<4x32xf32>
    %232 = arith.mulf %230, %231 : vector<4x32xf32>
    %233 = vector.extract_strided_slice %232 {offsets = [0, 0], sizes = [2, 32], strides = [1, 1]} : vector<4x32xf32> to vector<2x32xf32>
    %c1_96 = arith.constant 1 : index
    %c0_97 = arith.constant 0 : index
    %c0_98 = arith.constant 0 : index
    %234 = vector.load %arg26[%c1_96, %c0_97, %c0_98] : memref<16x2x32xf32, #tpu.memory_space<vmem>>, vector<1x2x32xf32>
    %235 = vector.shape_cast %234 : vector<1x2x32xf32> to vector<2x32xf32>
    %236 = vector.shape_cast %233 : vector<2x32xf32> to vector<1x2x32xf32>
    tpu.vector_store %arg26[%c1_96, %c0_97, %c0_98], %236 {strides = array<i32>} : memref<16x2x32xf32, #tpu.memory_space<vmem>>, vector<1x2x32xf32>,
    %237 = vector.extract_strided_slice %232 {offsets = [2, 0], sizes = [2, 32], strides = [1, 1]} : vector<4x32xf32> to vector<2x32xf32>
    %c14_99 = arith.constant 14 : index
    %c0_100 = arith.constant 0 : index
    %c0_101 = arith.constant 0 : index
    %238 = vector.load %arg27[%c14_99, %c0_100, %c0_101] : memref<16x2x32xf32, #tpu.memory_space<vmem>>, vector<1x2x32xf32>
    %239 = vector.shape_cast %238 : vector<1x2x32xf32> to vector<2x32xf32>
    %240 = vector.shape_cast %237 : vector<2x32xf32> to vector<1x2x32xf32>
    tpu.vector_store %arg27[%c14_99, %c0_100, %c0_101], %240 {strides = array<i32>} : memref<16x2x32xf32, #tpu.memory_space<vmem>>, vector<1x2x32xf32>,
    %241 = vector.extract_strided_slice %153 {offsets = [4, 0], sizes = [2, 128], strides = [1, 1]} : vector<32x256xf32> to vector<2x128xf32>
    %242 = vector.extract_strided_slice %153 {offsets = [26, 128], sizes = [2, 128], strides = [1, 1]} : vector<32x256xf32> to vector<2x128xf32>
    %243 = tpu.concatenate %241, %242 in 0 : vector<2x128xf32>, vector<2x128xf32> -> vector<4x128xf32>
    %c2 = arith.constant 2 : index
    %c0_102 = arith.constant 0 : index
    %c0_103 = arith.constant 0 : index
    %244 = vector.load %arg1[%c2, %c0_102, %c0_103] : memref<16x2x1xf32, #tpu.memory_space<vmem>>, vector<1x2x1xf32>
    %245 = vector.shape_cast %244 : vector<1x2x1xf32> to vector<2x1xf32>
    %c13 = arith.constant 13 : index
    %c0_104 = arith.constant 0 : index
    %c0_105 = arith.constant 0 : index
    %246 = vector.load %arg1[%c13, %c0_104, %c0_105] : memref<16x2x1xf32, #tpu.memory_space<vmem>>, vector<1x2x1xf32>
    %247 = vector.shape_cast %246 : vector<1x2x1xf32> to vector<2x1xf32>
    %248 = tpu.concatenate %245, %247 in 0 : vector<2x1xf32>, vector<2x1xf32> -> vector<4x1xf32>
    %249 = vector.broadcast %146 : vector<4x1xf32> to vector<4x32xf32>
    %250 = arith.mulf %232, %249 : vector<4x32xf32>
    %251 = vector.broadcast %148 : vector<4x1xf32> to vector<4x32xf32>
    %252 = arith.mulf %232, %251 : vector<4x32xf32>
    %253 = tpu.concatenate %250, %252 in 1 : vector<4x32xf32>, vector<4x32xf32> -> vector<4x64xf32>
    %cst_106 = arith.constant dense<0.000000e+00> : vector<4x128xf32>
    %254 = tpu.matmul %253, %154, %cst_106 {dimension_numbers = #tpu.dot_dimension_numbers<[1], [0], [0], [1], [0, 0, 1, 1], [], []>} : vector<4x64xf32>, vector<64x128xf32>, vector<4x128xf32> -> vector<4x128xf32>
    %255 = arith.addf %243, %254 : vector<4x128xf32>
    %256 = arith.negf %255 : vector<4x128xf32>
    %257 = math.exp %256 : vector<4x128xf32>
    %cst_107 = arith.constant 1.000000e+00 : f32
    %258 = vector.broadcast %cst_107 : f32 to vector<4x128xf32>
    %259 = arith.addf %258, %257 : vector<4x128xf32>
    %260 = arith.divf %258, %259 : vector<4x128xf32>
    %261 = math.tanh %255 : vector<4x128xf32>
    %262 = vector.extract_strided_slice %260 {offsets = [0, 0], sizes = [4, 32], strides = [1, 1]} : vector<4x128xf32> to vector<4x32xf32>
    %263 = vector.extract_strided_slice %260 {offsets = [0, 32], sizes = [4, 32], strides = [1, 1]} : vector<4x128xf32> to vector<4x32xf32>
    %264 = vector.extract_strided_slice %261 {offsets = [0, 64], sizes = [4, 32], strides = [1, 1]} : vector<4x128xf32> to vector<4x32xf32>
    %265 = vector.extract_strided_slice %260 {offsets = [0, 96], sizes = [4, 32], strides = [1, 1]} : vector<4x128xf32> to vector<4x32xf32>
    %266 = arith.mulf %263, %228 : vector<4x32xf32>
    %267 = arith.mulf %262, %264 : vector<4x32xf32>
    %268 = arith.addf %266, %267 : vector<4x32xf32>
    %269 = vector.broadcast %248 : vector<4x1xf32> to vector<4x32xf32>
    %270 = arith.mulf %268, %269 : vector<4x32xf32>
    %271 = math.tanh %270 : vector<4x32xf32>
    %272 = arith.mulf %265, %271 : vector<4x32xf32>
    %273 = vector.broadcast %248 : vector<4x1xf32> to vector<4x32xf32>
    %274 = arith.mulf %272, %273 : vector<4x32xf32>
    %275 = vector.extract_strided_slice %274 {offsets = [0, 0], sizes = [2, 32], strides = [1, 1]} : vector<4x32xf32> to vector<2x32xf32>
    %c2_108 = arith.constant 2 : index
    %c0_109 = arith.constant 0 : index
    %c0_110 = arith.constant 0 : index
    %276 = vector.load %arg26[%c2_108, %c0_109, %c0_110] : memref<16x2x32xf32, #tpu.memory_space<vmem>>, vector<1x2x32xf32>
    %277 = vector.shape_cast %276 : vector<1x2x32xf32> to vector<2x32xf32>
    %278 = vector.shape_cast %275 : vector<2x32xf32> to vector<1x2x32xf32>
    tpu.vector_store %arg26[%c2_108, %c0_109, %c0_110], %278 {strides = array<i32>} : memref<16x2x32xf32, #tpu.memory_space<vmem>>, vector<1x2x32xf32>,
    %279 = vector.extract_strided_slice %274 {offsets = [2, 0], sizes = [2, 32], strides = [1, 1]} : vector<4x32xf32> to vector<2x32xf32>
    %c13_111 = arith.constant 13 : index
    %c0_112 = arith.constant 0 : index
    %c0_113 = arith.constant 0 : index
    %280 = vector.load %arg27[%c13_111, %c0_112, %c0_113] : memref<16x2x32xf32, #tpu.memory_space<vmem>>, vector<1x2x32xf32>
    %281 = vector.shape_cast %280 : vector<1x2x32xf32> to vector<2x32xf32>
    %282 = vector.shape_cast %279 : vector<2x32xf32> to vector<1x2x32xf32>
    tpu.vector_store %arg27[%c13_111, %c0_112, %c0_113], %282 {strides = array<i32>} : memref<16x2x32xf32, #tpu.memory_space<vmem>>, vector<1x2x32xf32>,
    %283 = vector.extract_strided_slice %153 {offsets = [6, 0], sizes = [2, 128], strides = [1, 1]} : vector<32x256xf32> to vector<2x128xf32>
    %284 = vector.extract_strided_slice %153 {offsets = [24, 128], sizes = [2, 128], strides = [1, 1]} : vector<32x256xf32> to vector<2x128xf32>
    %285 = tpu.concatenate %283, %284 in 0 : vector<2x128xf32>, vector<2x128xf32> -> vector<4x128xf32>
    %c3 = arith.constant 3 : index
    %c0_114 = arith.constant 0 : index
    %c0_115 = arith.constant 0 : index
    %286 = vector.load %arg1[%c3, %c0_114, %c0_115] : memref<16x2x1xf32, #tpu.memory_space<vmem>>, vector<1x2x1xf32>
    %287 = vector.shape_cast %286 : vector<1x2x1xf32> to vector<2x1xf32>
    %c12 = arith.constant 12 : index
    %c0_116 = arith.constant 0 : index
    %c0_117 = arith.constant 0 : index
    %288 = vector.load %arg1[%c12, %c0_116, %c0_117] : memref<16x2x1xf32, #tpu.memory_space<vmem>>, vector<1x2x1xf32>
    %289 = vector.shape_cast %288 : vector<1x2x1xf32> to vector<2x1xf32>
    %290 = tpu.concatenate %287, %289 in 0 : vector<2x1xf32>, vector<2x1xf32> -> vector<4x1xf32>
    %291 = vector.broadcast %146 : vector<4x1xf32> to vector<4x32xf32>
    %292 = arith.mulf %274, %291 : vector<4x32xf32>
    %293 = vector.broadcast %148 : vector<4x1xf32> to vector<4x32xf32>
    %294 = arith.mulf %274, %293 : vector<4x32xf32>
    %295 = tpu.concatenate %292, %294 in 1 : vector<4x32xf32>, vector<4x32xf32> -> vector<4x64xf32>
    %cst_118 = arith.constant dense<0.000000e+00> : vector<4x128xf32>
    %296 = tpu.matmul %295, %154, %cst_118 {dimension_numbers = #tpu.dot_dimension_numbers<[1], [0], [0], [1], [0, 0, 1, 1], [], []>} : vector<4x64xf32>, vector<64x128xf32>, vector<4x128xf32> -> vector<4x128xf32>
    %297 = arith.addf %285, %296 : vector<4x128xf32>
    %298 = arith.negf %297 : vector<4x128xf32>
    %299 = math.exp %298 : vector<4x128xf32>
    %cst_119 = arith.constant 1.000000e+00 : f32
    %300 = vector.broadcast %cst_119 : f32 to vector<4x128xf32>
    %301 = arith.addf %300, %299 : vector<4x128xf32>
    %302 = arith.divf %300, %301 : vector<4x128xf32>
    %303 = math.tanh %297 : vector<4x128xf32>
    %304 = vector.extract_strided_slice %302 {offsets = [0, 0], sizes = [4, 32], strides = [1, 1]} : vector<4x128xf32> to vector<4x32xf32>
    %305 = vector.extract_strided_slice %302 {offsets = [0, 32], sizes = [4, 32], strides = [1, 1]} : vector<4x128xf32> to vector<4x32xf32>
    %306 = vector.extract_strided_slice %303 {offsets = [0, 64], sizes = [4, 32], strides = [1, 1]} : vector<4x128xf32> to vector<4x32xf32>
    %307 = vector.extract_strided_slice %302 {offsets = [0, 96], sizes = [4, 32], strides = [1, 1]} : vector<4x128xf32> to vector<4x32xf32>
    %308 = arith.mulf %305, %270 : vector<4x32xf32>
    %309 = arith.mulf %304, %306 : vector<4x32xf32>
    %310 = arith.addf %308, %309 : vector<4x32xf32>
    %311 = vector.broadcast %290 : vector<4x1xf32> to vector<4x32xf32>
    %312 = arith.mulf %310, %311 : vector<4x32xf32>
    %313 = math.tanh %312 : vector<4x32xf32>
    %314 = arith.mulf %307, %313 : vector<4x32xf32>
    %315 = vector.broadcast %290 : vector<4x1xf32> to vector<4x32xf32>
    %316 = arith.mulf %314, %315 : vector<4x32xf32>
    %317 = vector.extract_strided_slice %316 {offsets = [0, 0], sizes = [2, 32], strides = [1, 1]} : vector<4x32xf32> to vector<2x32xf32>
    %c3_120 = arith.constant 3 : index
    %c0_121 = arith.constant 0 : index
    %c0_122 = arith.constant 0 : index
    %318 = vector.load %arg26[%c3_120, %c0_121, %c0_122] : memref<16x2x32xf32, #tpu.memory_space<vmem>>, vector<1x2x32xf32>
    %319 = vector.shape_cast %318 : vector<1x2x32xf32> to vector<2x32xf32>
    %320 = vector.shape_cast %317 : vector<2x32xf32> to vector<1x2x32xf32>
    tpu.vector_store %arg26[%c3_120, %c0_121, %c0_122], %320 {strides = array<i32>} : memref<16x2x32xf32, #tpu.memory_space<vmem>>, vector<1x2x32xf32>,
    %321 = vector.extract_strided_slice %316 {offsets = [2, 0], sizes = [2, 32], strides = [1, 1]} : vector<4x32xf32> to vector<2x32xf32>
    %c12_123 = arith.constant 12 : index
    %c0_124 = arith.constant 0 : index
    %c0_125 = arith.constant 0 : index
    %322 = vector.load %arg27[%c12_123, %c0_124, %c0_125] : memref<16x2x32xf32, #tpu.memory_space<vmem>>, vector<1x2x32xf32>
    %323 = vector.shape_cast %322 : vector<1x2x32xf32> to vector<2x32xf32>
    %324 = vector.shape_cast %321 : vector<2x32xf32> to vector<1x2x32xf32>
    tpu.vector_store %arg27[%c12_123, %c0_124, %c0_125], %324 {strides = array<i32>} : memref<16x2x32xf32, #tpu.memory_space<vmem>>, vector<1x2x32xf32>,
    %325 = vector.extract_strided_slice %153 {offsets = [8, 0], sizes = [2, 128], strides = [1, 1]} : vector<32x256xf32> to vector<2x128xf32>
    %326 = vector.extract_strided_slice %153 {offsets = [22, 128], sizes = [2, 128], strides = [1, 1]} : vector<32x256xf32> to vector<2x128xf32>
    %327 = tpu.concatenate %325, %326 in 0 : vector<2x128xf32>, vector<2x128xf32> -> vector<4x128xf32>
    %c4 = arith.constant 4 : index
    %c0_126 = arith.constant 0 : index
    %c0_127 = arith.constant 0 : index
    %328 = vector.load %arg1[%c4, %c0_126, %c0_127] : memref<16x2x1xf32, #tpu.memory_space<vmem>>, vector<1x2x1xf32>
    %329 = vector.shape_cast %328 : vector<1x2x1xf32> to vector<2x1xf32>
    %c11 = arith.constant 11 : index
    %c0_128 = arith.constant 0 : index
    %c0_129 = arith.constant 0 : index
    %330 = vector.load %arg1[%c11, %c0_128, %c0_129] : memref<16x2x1xf32, #tpu.memory_space<vmem>>, vector<1x2x1xf32>
    %331 = vector.shape_cast %330 : vector<1x2x1xf32> to vector<2x1xf32>
    %332 = tpu.concatenate %329, %331 in 0 : vector<2x1xf32>, vector<2x1xf32> -> vector<4x1xf32>
    %333 = vector.broadcast %146 : vector<4x1xf32> to vector<4x32xf32>
    %334 = arith.mulf %316, %333 : vector<4x32xf32>
    %335 = vector.broadcast %148 : vector<4x1xf32> to vector<4x32xf32>
    %336 = arith.mulf %316, %335 : vector<4x32xf32>
    %337 = tpu.concatenate %334, %336 in 1 : vector<4x32xf32>, vector<4x32xf32> -> vector<4x64xf32>
    %cst_130 = arith.constant dense<0.000000e+00> : vector<4x128xf32>
    %338 = tpu.matmul %337, %154, %cst_130 {dimension_numbers = #tpu.dot_dimension_numbers<[1], [0], [0], [1], [0, 0, 1, 1], [], []>} : vector<4x64xf32>, vector<64x128xf32>, vector<4x128xf32> -> vector<4x128xf32>
    %339 = arith.addf %327, %338 : vector<4x128xf32>
    %340 = arith.negf %339 : vector<4x128xf32>
    %341 = math.exp %340 : vector<4x128xf32>
    %cst_131 = arith.constant 1.000000e+00 : f32
    %342 = vector.broadcast %cst_131 : f32 to vector<4x128xf32>
    %343 = arith.addf %342, %341 : vector<4x128xf32>
    %344 = arith.divf %342, %343 : vector<4x128xf32>
    %345 = math.tanh %339 : vector<4x128xf32>
    %346 = vector.extract_strided_slice %344 {offsets = [0, 0], sizes = [4, 32], strides = [1, 1]} : vector<4x128xf32> to vector<4x32xf32>
    %347 = vector.extract_strided_slice %344 {offsets = [0, 32], sizes = [4, 32], strides = [1, 1]} : vector<4x128xf32> to vector<4x32xf32>
    %348 = vector.extract_strided_slice %345 {offsets = [0, 64], sizes = [4, 32], strides = [1, 1]} : vector<4x128xf32> to vector<4x32xf32>
    %349 = vector.extract_strided_slice %344 {offsets = [0, 96], sizes = [4, 32], strides = [1, 1]} : vector<4x128xf32> to vector<4x32xf32>
    %350 = arith.mulf %347, %312 : vector<4x32xf32>
    %351 = arith.mulf %346, %348 : vector<4x32xf32>
    %352 = arith.addf %350, %351 : vector<4x32xf32>
    %353 = vector.broadcast %332 : vector<4x1xf32> to vector<4x32xf32>
    %354 = arith.mulf %352, %353 : vector<4x32xf32>
    %355 = math.tanh %354 : vector<4x32xf32>
    %356 = arith.mulf %349, %355 : vector<4x32xf32>
    %357 = vector.broadcast %332 : vector<4x1xf32> to vector<4x32xf32>
    %358 = arith.mulf %356, %357 : vector<4x32xf32>
    %359 = vector.extract_strided_slice %358 {offsets = [0, 0], sizes = [2, 32], strides = [1, 1]} : vector<4x32xf32> to vector<2x32xf32>
    %c4_132 = arith.constant 4 : index
    %c0_133 = arith.constant 0 : index
    %c0_134 = arith.constant 0 : index
    %360 = vector.load %arg26[%c4_132, %c0_133, %c0_134] : memref<16x2x32xf32, #tpu.memory_space<vmem>>, vector<1x2x32xf32>
    %361 = vector.shape_cast %360 : vector<1x2x32xf32> to vector<2x32xf32>
    %362 = vector.shape_cast %359 : vector<2x32xf32> to vector<1x2x32xf32>
    tpu.vector_store %arg26[%c4_132, %c0_133, %c0_134], %362 {strides = array<i32>} : memref<16x2x32xf32, #tpu.memory_space<vmem>>, vector<1x2x32xf32>,
    %363 = vector.extract_strided_slice %358 {offsets = [2, 0], sizes = [2, 32], strides = [1, 1]} : vector<4x32xf32> to vector<2x32xf32>
    %c11_135 = arith.constant 11 : index
    %c0_136 = arith.constant 0 : index
    %c0_137 = arith.constant 0 : index
    %364 = vector.load %arg27[%c11_135, %c0_136, %c0_137] : memref<16x2x32xf32, #tpu.memory_space<vmem>>, vector<1x2x32xf32>
    %365 = vector.shape_cast %364 : vector<1x2x32xf32> to vector<2x32xf32>
    %366 = vector.shape_cast %363 : vector<2x32xf32> to vector<1x2x32xf32>
    tpu.vector_store %arg27[%c11_135, %c0_136, %c0_137], %366 {strides = array<i32>} : memref<16x2x32xf32, #tpu.memory_space<vmem>>, vector<1x2x32xf32>,
    %367 = vector.extract_strided_slice %153 {offsets = [10, 0], sizes = [2, 128], strides = [1, 1]} : vector<32x256xf32> to vector<2x128xf32>
    %368 = vector.extract_strided_slice %153 {offsets = [20, 128], sizes = [2, 128], strides = [1, 1]} : vector<32x256xf32> to vector<2x128xf32>
    %369 = tpu.concatenate %367, %368 in 0 : vector<2x128xf32>, vector<2x128xf32> -> vector<4x128xf32>
    %c5 = arith.constant 5 : index
    %c0_138 = arith.constant 0 : index
    %c0_139 = arith.constant 0 : index
    %370 = vector.load %arg1[%c5, %c0_138, %c0_139] : memref<16x2x1xf32, #tpu.memory_space<vmem>>, vector<1x2x1xf32>
    %371 = vector.shape_cast %370 : vector<1x2x1xf32> to vector<2x1xf32>
    %c10 = arith.constant 10 : index
    %c0_140 = arith.constant 0 : index
    %c0_141 = arith.constant 0 : index
    %372 = vector.load %arg1[%c10, %c0_140, %c0_141] : memref<16x2x1xf32, #tpu.memory_space<vmem>>, vector<1x2x1xf32>
    %373 = vector.shape_cast %372 : vector<1x2x1xf32> to vector<2x1xf32>
    %374 = tpu.concatenate %371, %373 in 0 : vector<2x1xf32>, vector<2x1xf32> -> vector<4x1xf32>
    %375 = vector.broadcast %146 : vector<4x1xf32> to vector<4x32xf32>
    %376 = arith.mulf %358, %375 : vector<4x32xf32>
    %377 = vector.broadcast %148 : vector<4x1xf32> to vector<4x32xf32>
    %378 = arith.mulf %358, %377 : vector<4x32xf32>
    %379 = tpu.concatenate %376, %378 in 1 : vector<4x32xf32>, vector<4x32xf32> -> vector<4x64xf32>
    %cst_142 = arith.constant dense<0.000000e+00> : vector<4x128xf32>
    %380 = tpu.matmul %379, %154, %cst_142 {dimension_numbers = #tpu.dot_dimension_numbers<[1], [0], [0], [1], [0, 0, 1, 1], [], []>} : vector<4x64xf32>, vector<64x128xf32>, vector<4x128xf32> -> vector<4x128xf32>
    %381 = arith.addf %369, %380 : vector<4x128xf32>
    %382 = arith.negf %381 : vector<4x128xf32>
    %383 = math.exp %382 : vector<4x128xf32>
    %cst_143 = arith.constant 1.000000e+00 : f32
    %384 = vector.broadcast %cst_143 : f32 to vector<4x128xf32>
    %385 = arith.addf %384, %383 : vector<4x128xf32>
    %386 = arith.divf %384, %385 : vector<4x128xf32>
    %387 = math.tanh %381 : vector<4x128xf32>
    %388 = vector.extract_strided_slice %386 {offsets = [0, 0], sizes = [4, 32], strides = [1, 1]} : vector<4x128xf32> to vector<4x32xf32>
    %389 = vector.extract_strided_slice %386 {offsets = [0, 32], sizes = [4, 32], strides = [1, 1]} : vector<4x128xf32> to vector<4x32xf32>
    %390 = vector.extract_strided_slice %387 {offsets = [0, 64], sizes = [4, 32], strides = [1, 1]} : vector<4x128xf32> to vector<4x32xf32>
    %391 = vector.extract_strided_slice %386 {offsets = [0, 96], sizes = [4, 32], strides = [1, 1]} : vector<4x128xf32> to vector<4x32xf32>
    %392 = arith.mulf %389, %354 : vector<4x32xf32>
    %393 = arith.mulf %388, %390 : vector<4x32xf32>
    %394 = arith.addf %392, %393 : vector<4x32xf32>
    %395 = vector.broadcast %374 : vector<4x1xf32> to vector<4x32xf32>
    %396 = arith.mulf %394, %395 : vector<4x32xf32>
    %397 = math.tanh %396 : vector<4x32xf32>
    %398 = arith.mulf %391, %397 : vector<4x32xf32>
    %399 = vector.broadcast %374 : vector<4x1xf32> to vector<4x32xf32>
    %400 = arith.mulf %398, %399 : vector<4x32xf32>
    %401 = vector.extract_strided_slice %400 {offsets = [0, 0], sizes = [2, 32], strides = [1, 1]} : vector<4x32xf32> to vector<2x32xf32>
    %c5_144 = arith.constant 5 : index
    %c0_145 = arith.constant 0 : index
    %c0_146 = arith.constant 0 : index
    %402 = vector.load %arg26[%c5_144, %c0_145, %c0_146] : memref<16x2x32xf32, #tpu.memory_space<vmem>>, vector<1x2x32xf32>
    %403 = vector.shape_cast %402 : vector<1x2x32xf32> to vector<2x32xf32>
    %404 = vector.shape_cast %401 : vector<2x32xf32> to vector<1x2x32xf32>
    tpu.vector_store %arg26[%c5_144, %c0_145, %c0_146], %404 {strides = array<i32>} : memref<16x2x32xf32, #tpu.memory_space<vmem>>, vector<1x2x32xf32>,
    %405 = vector.extract_strided_slice %400 {offsets = [2, 0], sizes = [2, 32], strides = [1, 1]} : vector<4x32xf32> to vector<2x32xf32>
    %c10_147 = arith.constant 10 : index
    %c0_148 = arith.constant 0 : index
    %c0_149 = arith.constant 0 : index
    %406 = vector.load %arg27[%c10_147, %c0_148, %c0_149] : memref<16x2x32xf32, #tpu.memory_space<vmem>>, vector<1x2x32xf32>
    %407 = vector.shape_cast %406 : vector<1x2x32xf32> to vector<2x32xf32>
    %408 = vector.shape_cast %405 : vector<2x32xf32> to vector<1x2x32xf32>
    tpu.vector_store %arg27[%c10_147, %c0_148, %c0_149], %408 {strides = array<i32>} : memref<16x2x32xf32, #tpu.memory_space<vmem>>, vector<1x2x32xf32>,
    %409 = vector.extract_strided_slice %153 {offsets = [12, 0], sizes = [2, 128], strides = [1, 1]} : vector<32x256xf32> to vector<2x128xf32>
    %410 = vector.extract_strided_slice %153 {offsets = [18, 128], sizes = [2, 128], strides = [1, 1]} : vector<32x256xf32> to vector<2x128xf32>
    %411 = tpu.concatenate %409, %410 in 0 : vector<2x128xf32>, vector<2x128xf32> -> vector<4x128xf32>
    %c6 = arith.constant 6 : index
    %c0_150 = arith.constant 0 : index
    %c0_151 = arith.constant 0 : index
    %412 = vector.load %arg1[%c6, %c0_150, %c0_151] : memref<16x2x1xf32, #tpu.memory_space<vmem>>, vector<1x2x1xf32>
    %413 = vector.shape_cast %412 : vector<1x2x1xf32> to vector<2x1xf32>
    %c9 = arith.constant 9 : index
    %c0_152 = arith.constant 0 : index
    %c0_153 = arith.constant 0 : index
    %414 = vector.load %arg1[%c9, %c0_152, %c0_153] : memref<16x2x1xf32, #tpu.memory_space<vmem>>, vector<1x2x1xf32>
    %415 = vector.shape_cast %414 : vector<1x2x1xf32> to vector<2x1xf32>
    %416 = tpu.concatenate %413, %415 in 0 : vector<2x1xf32>, vector<2x1xf32> -> vector<4x1xf32>
    %417 = vector.broadcast %146 : vector<4x1xf32> to vector<4x32xf32>
    %418 = arith.mulf %400, %417 : vector<4x32xf32>
    %419 = vector.broadcast %148 : vector<4x1xf32> to vector<4x32xf32>
    %420 = arith.mulf %400, %419 : vector<4x32xf32>
    %421 = tpu.concatenate %418, %420 in 1 : vector<4x32xf32>, vector<4x32xf32> -> vector<4x64xf32>
    %cst_154 = arith.constant dense<0.000000e+00> : vector<4x128xf32>
    %422 = tpu.matmul %421, %154, %cst_154 {dimension_numbers = #tpu.dot_dimension_numbers<[1], [0], [0], [1], [0, 0, 1, 1], [], []>} : vector<4x64xf32>, vector<64x128xf32>, vector<4x128xf32> -> vector<4x128xf32>
    %423 = arith.addf %411, %422 : vector<4x128xf32>
    %424 = arith.negf %423 : vector<4x128xf32>
    %425 = math.exp %424 : vector<4x128xf32>
    %cst_155 = arith.constant 1.000000e+00 : f32
    %426 = vector.broadcast %cst_155 : f32 to vector<4x128xf32>
    %427 = arith.addf %426, %425 : vector<4x128xf32>
    %428 = arith.divf %426, %427 : vector<4x128xf32>
    %429 = math.tanh %423 : vector<4x128xf32>
    %430 = vector.extract_strided_slice %428 {offsets = [0, 0], sizes = [4, 32], strides = [1, 1]} : vector<4x128xf32> to vector<4x32xf32>
    %431 = vector.extract_strided_slice %428 {offsets = [0, 32], sizes = [4, 32], strides = [1, 1]} : vector<4x128xf32> to vector<4x32xf32>
    %432 = vector.extract_strided_slice %429 {offsets = [0, 64], sizes = [4, 32], strides = [1, 1]} : vector<4x128xf32> to vector<4x32xf32>
    %433 = vector.extract_strided_slice %428 {offsets = [0, 96], sizes = [4, 32], strides = [1, 1]} : vector<4x128xf32> to vector<4x32xf32>
    %434 = arith.mulf %431, %396 : vector<4x32xf32>
    %435 = arith.mulf %430, %432 : vector<4x32xf32>
    %436 = arith.addf %434, %435 : vector<4x32xf32>
    %437 = vector.broadcast %416 : vector<4x1xf32> to vector<4x32xf32>
    %438 = arith.mulf %436, %437 : vector<4x32xf32>
    %439 = math.tanh %438 : vector<4x32xf32>
    %440 = arith.mulf %433, %439 : vector<4x32xf32>
    %441 = vector.broadcast %416 : vector<4x1xf32> to vector<4x32xf32>
    %442 = arith.mulf %440, %441 : vector<4x32xf32>
    %443 = vector.extract_strided_slice %442 {offsets = [0, 0], sizes = [2, 32], strides = [1, 1]} : vector<4x32xf32> to vector<2x32xf32>
    %c6_156 = arith.constant 6 : index
    %c0_157 = arith.constant 0 : index
    %c0_158 = arith.constant 0 : index
    %444 = vector.load %arg26[%c6_156, %c0_157, %c0_158] : memref<16x2x32xf32, #tpu.memory_space<vmem>>, vector<1x2x32xf32>
    %445 = vector.shape_cast %444 : vector<1x2x32xf32> to vector<2x32xf32>
    %446 = vector.shape_cast %443 : vector<2x32xf32> to vector<1x2x32xf32>
    tpu.vector_store %arg26[%c6_156, %c0_157, %c0_158], %446 {strides = array<i32>} : memref<16x2x32xf32, #tpu.memory_space<vmem>>, vector<1x2x32xf32>,
    %447 = vector.extract_strided_slice %442 {offsets = [2, 0], sizes = [2, 32], strides = [1, 1]} : vector<4x32xf32> to vector<2x32xf32>
    %c9_159 = arith.constant 9 : index
    %c0_160 = arith.constant 0 : index
    %c0_161 = arith.constant 0 : index
    %448 = vector.load %arg27[%c9_159, %c0_160, %c0_161] : memref<16x2x32xf32, #tpu.memory_space<vmem>>, vector<1x2x32xf32>
    %449 = vector.shape_cast %448 : vector<1x2x32xf32> to vector<2x32xf32>
    %450 = vector.shape_cast %447 : vector<2x32xf32> to vector<1x2x32xf32>
    tpu.vector_store %arg27[%c9_159, %c0_160, %c0_161], %450 {strides = array<i32>} : memref<16x2x32xf32, #tpu.memory_space<vmem>>, vector<1x2x32xf32>,
    %451 = vector.extract_strided_slice %153 {offsets = [14, 0], sizes = [2, 128], strides = [1, 1]} : vector<32x256xf32> to vector<2x128xf32>
    %452 = vector.extract_strided_slice %153 {offsets = [16, 128], sizes = [2, 128], strides = [1, 1]} : vector<32x256xf32> to vector<2x128xf32>
    %453 = tpu.concatenate %451, %452 in 0 : vector<2x128xf32>, vector<2x128xf32> -> vector<4x128xf32>
    %c7 = arith.constant 7 : index
    %c0_162 = arith.constant 0 : index
    %c0_163 = arith.constant 0 : index
    %454 = vector.load %arg1[%c7, %c0_162, %c0_163] : memref<16x2x1xf32, #tpu.memory_space<vmem>>, vector<1x2x1xf32>
    %455 = vector.shape_cast %454 : vector<1x2x1xf32> to vector<2x1xf32>
    %c8 = arith.constant 8 : index
    %c0_164 = arith.constant 0 : index
    %c0_165 = arith.constant 0 : index
    %456 = vector.load %arg1[%c8, %c0_164, %c0_165] : memref<16x2x1xf32, #tpu.memory_space<vmem>>, vector<1x2x1xf32>
    %457 = vector.shape_cast %456 : vector<1x2x1xf32> to vector<2x1xf32>
    %458 = tpu.concatenate %455, %457 in 0 : vector<2x1xf32>, vector<2x1xf32> -> vector<4x1xf32>
    %459 = vector.broadcast %146 : vector<4x1xf32> to vector<4x32xf32>
    %460 = arith.mulf %442, %459 : vector<4x32xf32>
    %461 = vector.broadcast %148 : vector<4x1xf32> to vector<4x32xf32>
    %462 = arith.mulf %442, %461 : vector<4x32xf32>
    %463 = tpu.concatenate %460, %462 in 1 : vector<4x32xf32>, vector<4x32xf32> -> vector<4x64xf32>
    %cst_166 = arith.constant dense<0.000000e+00> : vector<4x128xf32>
    %464 = tpu.matmul %463, %154, %cst_166 {dimension_numbers = #tpu.dot_dimension_numbers<[1], [0], [0], [1], [0, 0, 1, 1], [], []>} : vector<4x64xf32>, vector<64x128xf32>, vector<4x128xf32> -> vector<4x128xf32>
    %465 = arith.addf %453, %464 : vector<4x128xf32>
    %466 = arith.negf %465 : vector<4x128xf32>
    %467 = math.exp %466 : vector<4x128xf32>
    %cst_167 = arith.constant 1.000000e+00 : f32
    %468 = vector.broadcast %cst_167 : f32 to vector<4x128xf32>
    %469 = arith.addf %468, %467 : vector<4x128xf32>
    %470 = arith.divf %468, %469 : vector<4x128xf32>
    %471 = math.tanh %465 : vector<4x128xf32>
    %472 = vector.extract_strided_slice %470 {offsets = [0, 0], sizes = [4, 32], strides = [1, 1]} : vector<4x128xf32> to vector<4x32xf32>
    %473 = vector.extract_strided_slice %470 {offsets = [0, 32], sizes = [4, 32], strides = [1, 1]} : vector<4x128xf32> to vector<4x32xf32>
    %474 = vector.extract_strided_slice %471 {offsets = [0, 64], sizes = [4, 32], strides = [1, 1]} : vector<4x128xf32> to vector<4x32xf32>
    %475 = vector.extract_strided_slice %470 {offsets = [0, 96], sizes = [4, 32], strides = [1, 1]} : vector<4x128xf32> to vector<4x32xf32>
    %476 = arith.mulf %473, %438 : vector<4x32xf32>
    %477 = arith.mulf %472, %474 : vector<4x32xf32>
    %478 = arith.addf %476, %477 : vector<4x32xf32>
    %479 = vector.broadcast %458 : vector<4x1xf32> to vector<4x32xf32>
    %480 = arith.mulf %478, %479 : vector<4x32xf32>
    %481 = math.tanh %480 : vector<4x32xf32>
    %482 = arith.mulf %475, %481 : vector<4x32xf32>
    %483 = vector.broadcast %458 : vector<4x1xf32> to vector<4x32xf32>
    %484 = arith.mulf %482, %483 : vector<4x32xf32>
    %485 = vector.extract_strided_slice %484 {offsets = [0, 0], sizes = [2, 32], strides = [1, 1]} : vector<4x32xf32> to vector<2x32xf32>
    %c7_168 = arith.constant 7 : index
    %c0_169 = arith.constant 0 : index
    %c0_170 = arith.constant 0 : index
    %486 = vector.load %arg26[%c7_168, %c0_169, %c0_170] : memref<16x2x32xf32, #tpu.memory_space<vmem>>, vector<1x2x32xf32>
    %487 = vector.shape_cast %486 : vector<1x2x32xf32> to vector<2x32xf32>
    %488 = vector.shape_cast %485 : vector<2x32xf32> to vector<1x2x32xf32>
    tpu.vector_store %arg26[%c7_168, %c0_169, %c0_170], %488 {strides = array<i32>} : memref<16x2x32xf32, #tpu.memory_space<vmem>>, vector<1x2x32xf32>,
    %489 = vector.extract_strided_slice %484 {offsets = [2, 0], sizes = [2, 32], strides = [1, 1]} : vector<4x32xf32> to vector<2x32xf32>
    %c8_171 = arith.constant 8 : index
    %c0_172 = arith.constant 0 : index
    %c0_173 = arith.constant 0 : index
    %490 = vector.load %arg27[%c8_171, %c0_172, %c0_173] : memref<16x2x32xf32, #tpu.memory_space<vmem>>, vector<1x2x32xf32>
    %491 = vector.shape_cast %490 : vector<1x2x32xf32> to vector<2x32xf32>
    %492 = vector.shape_cast %489 : vector<2x32xf32> to vector<1x2x32xf32>
    tpu.vector_store %arg27[%c8_171, %c0_172, %c0_173], %492 {strides = array<i32>} : memref<16x2x32xf32, #tpu.memory_space<vmem>>, vector<1x2x32xf32>,
    %493 = vector.extract_strided_slice %153 {offsets = [16, 0], sizes = [2, 128], strides = [1, 1]} : vector<32x256xf32> to vector<2x128xf32>
    %494 = vector.extract_strided_slice %153 {offsets = [14, 128], sizes = [2, 128], strides = [1, 1]} : vector<32x256xf32> to vector<2x128xf32>
    %495 = tpu.concatenate %493, %494 in 0 : vector<2x128xf32>, vector<2x128xf32> -> vector<4x128xf32>
    %c8_174 = arith.constant 8 : index
    %c0_175 = arith.constant 0 : index
    %c0_176 = arith.constant 0 : index
    %496 = vector.load %arg1[%c8_174, %c0_175, %c0_176] : memref<16x2x1xf32, #tpu.memory_space<vmem>>, vector<1x2x1xf32>
    %497 = vector.shape_cast %496 : vector<1x2x1xf32> to vector<2x1xf32>
    %c7_177 = arith.constant 7 : index
    %c0_178 = arith.constant 0 : index
    %c0_179 = arith.constant 0 : index
    %498 = vector.load %arg1[%c7_177, %c0_178, %c0_179] : memref<16x2x1xf32, #tpu.memory_space<vmem>>, vector<1x2x1xf32>
    %499 = vector.shape_cast %498 : vector<1x2x1xf32> to vector<2x1xf32>
    %500 = tpu.concatenate %497, %499 in 0 : vector<2x1xf32>, vector<2x1xf32> -> vector<4x1xf32>
    %501 = vector.broadcast %146 : vector<4x1xf32> to vector<4x32xf32>
    %502 = arith.mulf %484, %501 : vector<4x32xf32>
    %503 = vector.broadcast %148 : vector<4x1xf32> to vector<4x32xf32>
    %504 = arith.mulf %484, %503 : vector<4x32xf32>
    %505 = tpu.concatenate %502, %504 in 1 : vector<4x32xf32>, vector<4x32xf32> -> vector<4x64xf32>
    %cst_180 = arith.constant dense<0.000000e+00> : vector<4x128xf32>
    %506 = tpu.matmul %505, %154, %cst_180 {dimension_numbers = #tpu.dot_dimension_numbers<[1], [0], [0], [1], [0, 0, 1, 1], [], []>} : vector<4x64xf32>, vector<64x128xf32>, vector<4x128xf32> -> vector<4x128xf32>
    %507 = arith.addf %495, %506 : vector<4x128xf32>
    %508 = arith.negf %507 : vector<4x128xf32>
    %509 = math.exp %508 : vector<4x128xf32>
    %cst_181 = arith.constant 1.000000e+00 : f32
    %510 = vector.broadcast %cst_181 : f32 to vector<4x128xf32>
    %511 = arith.addf %510, %509 : vector<4x128xf32>
    %512 = arith.divf %510, %511 : vector<4x128xf32>
    %513 = math.tanh %507 : vector<4x128xf32>
    %514 = vector.extract_strided_slice %512 {offsets = [0, 0], sizes = [4, 32], strides = [1, 1]} : vector<4x128xf32> to vector<4x32xf32>
    %515 = vector.extract_strided_slice %512 {offsets = [0, 32], sizes = [4, 32], strides = [1, 1]} : vector<4x128xf32> to vector<4x32xf32>
    %516 = vector.extract_strided_slice %513 {offsets = [0, 64], sizes = [4, 32], strides = [1, 1]} : vector<4x128xf32> to vector<4x32xf32>
    %517 = vector.extract_strided_slice %512 {offsets = [0, 96], sizes = [4, 32], strides = [1, 1]} : vector<4x128xf32> to vector<4x32xf32>
    %518 = arith.mulf %515, %480 : vector<4x32xf32>
    %519 = arith.mulf %514, %516 : vector<4x32xf32>
    %520 = arith.addf %518, %519 : vector<4x32xf32>
    %521 = vector.broadcast %500 : vector<4x1xf32> to vector<4x32xf32>
    %522 = arith.mulf %520, %521 : vector<4x32xf32>
    %523 = math.tanh %522 : vector<4x32xf32>
    %524 = arith.mulf %517, %523 : vector<4x32xf32>
    %525 = vector.broadcast %500 : vector<4x1xf32> to vector<4x32xf32>
    %526 = arith.mulf %524, %525 : vector<4x32xf32>
    %527 = vector.extract_strided_slice %526 {offsets = [0, 0], sizes = [2, 32], strides = [1, 1]} : vector<4x32xf32> to vector<2x32xf32>
    %c8_182 = arith.constant 8 : index
    %c0_183 = arith.constant 0 : index
    %c0_184 = arith.constant 0 : index
    %528 = vector.load %arg26[%c8_182, %c0_183, %c0_184] : memref<16x2x32xf32, #tpu.memory_space<vmem>>, vector<1x2x32xf32>
    %529 = vector.shape_cast %528 : vector<1x2x32xf32> to vector<2x32xf32>
    %530 = vector.shape_cast %527 : vector<2x32xf32> to vector<1x2x32xf32>
    tpu.vector_store %arg26[%c8_182, %c0_183, %c0_184], %530 {strides = array<i32>} : memref<16x2x32xf32, #tpu.memory_space<vmem>>, vector<1x2x32xf32>,
    %531 = vector.extract_strided_slice %526 {offsets = [2, 0], sizes = [2, 32], strides = [1, 1]} : vector<4x32xf32> to vector<2x32xf32>
    %c7_185 = arith.constant 7 : index
    %c0_186 = arith.constant 0 : index
    %c0_187 = arith.constant 0 : index
    %532 = vector.load %arg27[%c7_185, %c0_186, %c0_187] : memref<16x2x32xf32, #tpu.memory_space<vmem>>, vector<1x2x32xf32>
    %533 = vector.shape_cast %532 : vector<1x2x32xf32> to vector<2x32xf32>
    %534 = vector.shape_cast %531 : vector<2x32xf32> to vector<1x2x32xf32>
    tpu.vector_store %arg27[%c7_185, %c0_186, %c0_187], %534 {strides = array<i32>} : memref<16x2x32xf32, #tpu.memory_space<vmem>>, vector<1x2x32xf32>,
    %535 = vector.extract_strided_slice %153 {offsets = [18, 0], sizes = [2, 128], strides = [1, 1]} : vector<32x256xf32> to vector<2x128xf32>
    %536 = vector.extract_strided_slice %153 {offsets = [12, 128], sizes = [2, 128], strides = [1, 1]} : vector<32x256xf32> to vector<2x128xf32>
    %537 = tpu.concatenate %535, %536 in 0 : vector<2x128xf32>, vector<2x128xf32> -> vector<4x128xf32>
    %c9_188 = arith.constant 9 : index
    %c0_189 = arith.constant 0 : index
    %c0_190 = arith.constant 0 : index
    %538 = vector.load %arg1[%c9_188, %c0_189, %c0_190] : memref<16x2x1xf32, #tpu.memory_space<vmem>>, vector<1x2x1xf32>
    %539 = vector.shape_cast %538 : vector<1x2x1xf32> to vector<2x1xf32>
    %c6_191 = arith.constant 6 : index
    %c0_192 = arith.constant 0 : index
    %c0_193 = arith.constant 0 : index
    %540 = vector.load %arg1[%c6_191, %c0_192, %c0_193] : memref<16x2x1xf32, #tpu.memory_space<vmem>>, vector<1x2x1xf32>
    %541 = vector.shape_cast %540 : vector<1x2x1xf32> to vector<2x1xf32>
    %542 = tpu.concatenate %539, %541 in 0 : vector<2x1xf32>, vector<2x1xf32> -> vector<4x1xf32>
    %543 = vector.broadcast %146 : vector<4x1xf32> to vector<4x32xf32>
    %544 = arith.mulf %526, %543 : vector<4x32xf32>
    %545 = vector.broadcast %148 : vector<4x1xf32> to vector<4x32xf32>
    %546 = arith.mulf %526, %545 : vector<4x32xf32>
    %547 = tpu.concatenate %544, %546 in 1 : vector<4x32xf32>, vector<4x32xf32> -> vector<4x64xf32>
    %cst_194 = arith.constant dense<0.000000e+00> : vector<4x128xf32>
    %548 = tpu.matmul %547, %154, %cst_194 {dimension_numbers = #tpu.dot_dimension_numbers<[1], [0], [0], [1], [0, 0, 1, 1], [], []>} : vector<4x64xf32>, vector<64x128xf32>, vector<4x128xf32> -> vector<4x128xf32>
    %549 = arith.addf %537, %548 : vector<4x128xf32>
    %550 = arith.negf %549 : vector<4x128xf32>
    %551 = math.exp %550 : vector<4x128xf32>
    %cst_195 = arith.constant 1.000000e+00 : f32
    %552 = vector.broadcast %cst_195 : f32 to vector<4x128xf32>
    %553 = arith.addf %552, %551 : vector<4x128xf32>
    %554 = arith.divf %552, %553 : vector<4x128xf32>
    %555 = math.tanh %549 : vector<4x128xf32>
    %556 = vector.extract_strided_slice %554 {offsets = [0, 0], sizes = [4, 32], strides = [1, 1]} : vector<4x128xf32> to vector<4x32xf32>
    %557 = vector.extract_strided_slice %554 {offsets = [0, 32], sizes = [4, 32], strides = [1, 1]} : vector<4x128xf32> to vector<4x32xf32>
    %558 = vector.extract_strided_slice %555 {offsets = [0, 64], sizes = [4, 32], strides = [1, 1]} : vector<4x128xf32> to vector<4x32xf32>
    %559 = vector.extract_strided_slice %554 {offsets = [0, 96], sizes = [4, 32], strides = [1, 1]} : vector<4x128xf32> to vector<4x32xf32>
    %560 = arith.mulf %557, %522 : vector<4x32xf32>
    %561 = arith.mulf %556, %558 : vector<4x32xf32>
    %562 = arith.addf %560, %561 : vector<4x32xf32>
    %563 = vector.broadcast %542 : vector<4x1xf32> to vector<4x32xf32>
    %564 = arith.mulf %562, %563 : vector<4x32xf32>
    %565 = math.tanh %564 : vector<4x32xf32>
    %566 = arith.mulf %559, %565 : vector<4x32xf32>
    %567 = vector.broadcast %542 : vector<4x1xf32> to vector<4x32xf32>
    %568 = arith.mulf %566, %567 : vector<4x32xf32>
    %569 = vector.extract_strided_slice %568 {offsets = [0, 0], sizes = [2, 32], strides = [1, 1]} : vector<4x32xf32> to vector<2x32xf32>
    %c9_196 = arith.constant 9 : index
    %c0_197 = arith.constant 0 : index
    %c0_198 = arith.constant 0 : index
    %570 = vector.load %arg26[%c9_196, %c0_197, %c0_198] : memref<16x2x32xf32, #tpu.memory_space<vmem>>, vector<1x2x32xf32>
    %571 = vector.shape_cast %570 : vector<1x2x32xf32> to vector<2x32xf32>
    %572 = vector.shape_cast %569 : vector<2x32xf32> to vector<1x2x32xf32>
    tpu.vector_store %arg26[%c9_196, %c0_197, %c0_198], %572 {strides = array<i32>} : memref<16x2x32xf32, #tpu.memory_space<vmem>>, vector<1x2x32xf32>,
    %573 = vector.extract_strided_slice %568 {offsets = [2, 0], sizes = [2, 32], strides = [1, 1]} : vector<4x32xf32> to vector<2x32xf32>
    %c6_199 = arith.constant 6 : index
    %c0_200 = arith.constant 0 : index
    %c0_201 = arith.constant 0 : index
    %574 = vector.load %arg27[%c6_199, %c0_200, %c0_201] : memref<16x2x32xf32, #tpu.memory_space<vmem>>, vector<1x2x32xf32>
    %575 = vector.shape_cast %574 : vector<1x2x32xf32> to vector<2x32xf32>
    %576 = vector.shape_cast %573 : vector<2x32xf32> to vector<1x2x32xf32>
    tpu.vector_store %arg27[%c6_199, %c0_200, %c0_201], %576 {strides = array<i32>} : memref<16x2x32xf32, #tpu.memory_space<vmem>>, vector<1x2x32xf32>,
    %577 = vector.extract_strided_slice %153 {offsets = [20, 0], sizes = [2, 128], strides = [1, 1]} : vector<32x256xf32> to vector<2x128xf32>
    %578 = vector.extract_strided_slice %153 {offsets = [10, 128], sizes = [2, 128], strides = [1, 1]} : vector<32x256xf32> to vector<2x128xf32>
    %579 = tpu.concatenate %577, %578 in 0 : vector<2x128xf32>, vector<2x128xf32> -> vector<4x128xf32>
    %c10_202 = arith.constant 10 : index
    %c0_203 = arith.constant 0 : index
    %c0_204 = arith.constant 0 : index
    %580 = vector.load %arg1[%c10_202, %c0_203, %c0_204] : memref<16x2x1xf32, #tpu.memory_space<vmem>>, vector<1x2x1xf32>
    %581 = vector.shape_cast %580 : vector<1x2x1xf32> to vector<2x1xf32>
    %c5_205 = arith.constant 5 : index
    %c0_206 = arith.constant 0 : index
    %c0_207 = arith.constant 0 : index
    %582 = vector.load %arg1[%c5_205, %c0_206, %c0_207] : memref<16x2x1xf32, #tpu.memory_space<vmem>>, vector<1x2x1xf32>
    %583 = vector.shape_cast %582 : vector<1x2x1xf32> to vector<2x1xf32>
    %584 = tpu.concatenate %581, %583 in 0 : vector<2x1xf32>, vector<2x1xf32> -> vector<4x1xf32>
    %585 = vector.broadcast %146 : vector<4x1xf32> to vector<4x32xf32>
    %586 = arith.mulf %568, %585 : vector<4x32xf32>
    %587 = vector.broadcast %148 : vector<4x1xf32> to vector<4x32xf32>
    %588 = arith.mulf %568, %587 : vector<4x32xf32>
    %589 = tpu.concatenate %586, %588 in 1 : vector<4x32xf32>, vector<4x32xf32> -> vector<4x64xf32>
    %cst_208 = arith.constant dense<0.000000e+00> : vector<4x128xf32>
    %590 = tpu.matmul %589, %154, %cst_208 {dimension_numbers = #tpu.dot_dimension_numbers<[1], [0], [0], [1], [0, 0, 1, 1], [], []>} : vector<4x64xf32>, vector<64x128xf32>, vector<4x128xf32> -> vector<4x128xf32>
    %591 = arith.addf %579, %590 : vector<4x128xf32>
    %592 = arith.negf %591 : vector<4x128xf32>
    %593 = math.exp %592 : vector<4x128xf32>
    %cst_209 = arith.constant 1.000000e+00 : f32
    %594 = vector.broadcast %cst_209 : f32 to vector<4x128xf32>
    %595 = arith.addf %594, %593 : vector<4x128xf32>
    %596 = arith.divf %594, %595 : vector<4x128xf32>
    %597 = math.tanh %591 : vector<4x128xf32>
    %598 = vector.extract_strided_slice %596 {offsets = [0, 0], sizes = [4, 32], strides = [1, 1]} : vector<4x128xf32> to vector<4x32xf32>
    %599 = vector.extract_strided_slice %596 {offsets = [0, 32], sizes = [4, 32], strides = [1, 1]} : vector<4x128xf32> to vector<4x32xf32>
    %600 = vector.extract_strided_slice %597 {offsets = [0, 64], sizes = [4, 32], strides = [1, 1]} : vector<4x128xf32> to vector<4x32xf32>
    %601 = vector.extract_strided_slice %596 {offsets = [0, 96], sizes = [4, 32], strides = [1, 1]} : vector<4x128xf32> to vector<4x32xf32>
    %602 = arith.mulf %599, %564 : vector<4x32xf32>
    %603 = arith.mulf %598, %600 : vector<4x32xf32>
    %604 = arith.addf %602, %603 : vector<4x32xf32>
    %605 = vector.broadcast %584 : vector<4x1xf32> to vector<4x32xf32>
    %606 = arith.mulf %604, %605 : vector<4x32xf32>
    %607 = math.tanh %606 : vector<4x32xf32>
    %608 = arith.mulf %601, %607 : vector<4x32xf32>
    %609 = vector.broadcast %584 : vector<4x1xf32> to vector<4x32xf32>
    %610 = arith.mulf %608, %609 : vector<4x32xf32>
    %611 = vector.extract_strided_slice %610 {offsets = [0, 0], sizes = [2, 32], strides = [1, 1]} : vector<4x32xf32> to vector<2x32xf32>
    %c10_210 = arith.constant 10 : index
    %c0_211 = arith.constant 0 : index
    %c0_212 = arith.constant 0 : index
    %612 = vector.load %arg26[%c10_210, %c0_211, %c0_212] : memref<16x2x32xf32, #tpu.memory_space<vmem>>, vector<1x2x32xf32>
    %613 = vector.shape_cast %612 : vector<1x2x32xf32> to vector<2x32xf32>
    %614 = vector.shape_cast %611 : vector<2x32xf32> to vector<1x2x32xf32>
    tpu.vector_store %arg26[%c10_210, %c0_211, %c0_212], %614 {strides = array<i32>} : memref<16x2x32xf32, #tpu.memory_space<vmem>>, vector<1x2x32xf32>,
    %615 = vector.extract_strided_slice %610 {offsets = [2, 0], sizes = [2, 32], strides = [1, 1]} : vector<4x32xf32> to vector<2x32xf32>
    %c5_213 = arith.constant 5 : index
    %c0_214 = arith.constant 0 : index
    %c0_215 = arith.constant 0 : index
    %616 = vector.load %arg27[%c5_213, %c0_214, %c0_215] : memref<16x2x32xf32, #tpu.memory_space<vmem>>, vector<1x2x32xf32>
    %617 = vector.shape_cast %616 : vector<1x2x32xf32> to vector<2x32xf32>
    %618 = vector.shape_cast %615 : vector<2x32xf32> to vector<1x2x32xf32>
    tpu.vector_store %arg27[%c5_213, %c0_214, %c0_215], %618 {strides = array<i32>} : memref<16x2x32xf32, #tpu.memory_space<vmem>>, vector<1x2x32xf32>,
    %619 = vector.extract_strided_slice %153 {offsets = [22, 0], sizes = [2, 128], strides = [1, 1]} : vector<32x256xf32> to vector<2x128xf32>
    %620 = vector.extract_strided_slice %153 {offsets = [8, 128], sizes = [2, 128], strides = [1, 1]} : vector<32x256xf32> to vector<2x128xf32>
    %621 = tpu.concatenate %619, %620 in 0 : vector<2x128xf32>, vector<2x128xf32> -> vector<4x128xf32>
    %c11_216 = arith.constant 11 : index
    %c0_217 = arith.constant 0 : index
    %c0_218 = arith.constant 0 : index
    %622 = vector.load %arg1[%c11_216, %c0_217, %c0_218] : memref<16x2x1xf32, #tpu.memory_space<vmem>>, vector<1x2x1xf32>
    %623 = vector.shape_cast %622 : vector<1x2x1xf32> to vector<2x1xf32>
    %c4_219 = arith.constant 4 : index
    %c0_220 = arith.constant 0 : index
    %c0_221 = arith.constant 0 : index
    %624 = vector.load %arg1[%c4_219, %c0_220, %c0_221] : memref<16x2x1xf32, #tpu.memory_space<vmem>>, vector<1x2x1xf32>
    %625 = vector.shape_cast %624 : vector<1x2x1xf32> to vector<2x1xf32>
    %626 = tpu.concatenate %623, %625 in 0 : vector<2x1xf32>, vector<2x1xf32> -> vector<4x1xf32>
    %627 = vector.broadcast %146 : vector<4x1xf32> to vector<4x32xf32>
    %628 = arith.mulf %610, %627 : vector<4x32xf32>
    %629 = vector.broadcast %148 : vector<4x1xf32> to vector<4x32xf32>
    %630 = arith.mulf %610, %629 : vector<4x32xf32>
    %631 = tpu.concatenate %628, %630 in 1 : vector<4x32xf32>, vector<4x32xf32> -> vector<4x64xf32>
    %cst_222 = arith.constant dense<0.000000e+00> : vector<4x128xf32>
    %632 = tpu.matmul %631, %154, %cst_222 {dimension_numbers = #tpu.dot_dimension_numbers<[1], [0], [0], [1], [0, 0, 1, 1], [], []>} : vector<4x64xf32>, vector<64x128xf32>, vector<4x128xf32> -> vector<4x128xf32>
    %633 = arith.addf %621, %632 : vector<4x128xf32>
    %634 = arith.negf %633 : vector<4x128xf32>
    %635 = math.exp %634 : vector<4x128xf32>
    %cst_223 = arith.constant 1.000000e+00 : f32
    %636 = vector.broadcast %cst_223 : f32 to vector<4x128xf32>
    %637 = arith.addf %636, %635 : vector<4x128xf32>
    %638 = arith.divf %636, %637 : vector<4x128xf32>
    %639 = math.tanh %633 : vector<4x128xf32>
    %640 = vector.extract_strided_slice %638 {offsets = [0, 0], sizes = [4, 32], strides = [1, 1]} : vector<4x128xf32> to vector<4x32xf32>
    %641 = vector.extract_strided_slice %638 {offsets = [0, 32], sizes = [4, 32], strides = [1, 1]} : vector<4x128xf32> to vector<4x32xf32>
    %642 = vector.extract_strided_slice %639 {offsets = [0, 64], sizes = [4, 32], strides = [1, 1]} : vector<4x128xf32> to vector<4x32xf32>
    %643 = vector.extract_strided_slice %638 {offsets = [0, 96], sizes = [4, 32], strides = [1, 1]} : vector<4x128xf32> to vector<4x32xf32>
    %644 = arith.mulf %641, %606 : vector<4x32xf32>
    %645 = arith.mulf %640, %642 : vector<4x32xf32>
    %646 = arith.addf %644, %645 : vector<4x32xf32>
    %647 = vector.broadcast %626 : vector<4x1xf32> to vector<4x32xf32>
    %648 = arith.mulf %646, %647 : vector<4x32xf32>
    %649 = math.tanh %648 : vector<4x32xf32>
    %650 = arith.mulf %643, %649 : vector<4x32xf32>
    %651 = vector.broadcast %626 : vector<4x1xf32> to vector<4x32xf32>
    %652 = arith.mulf %650, %651 : vector<4x32xf32>
    %653 = vector.extract_strided_slice %652 {offsets = [0, 0], sizes = [2, 32], strides = [1, 1]} : vector<4x32xf32> to vector<2x32xf32>
    %c11_224 = arith.constant 11 : index
    %c0_225 = arith.constant 0 : index
    %c0_226 = arith.constant 0 : index
    %654 = vector.load %arg26[%c11_224, %c0_225, %c0_226] : memref<16x2x32xf32, #tpu.memory_space<vmem>>, vector<1x2x32xf32>
    %655 = vector.shape_cast %654 : vector<1x2x32xf32> to vector<2x32xf32>
    %656 = vector.shape_cast %653 : vector<2x32xf32> to vector<1x2x32xf32>
    tpu.vector_store %arg26[%c11_224, %c0_225, %c0_226], %656 {strides = array<i32>} : memref<16x2x32xf32, #tpu.memory_space<vmem>>, vector<1x2x32xf32>,
    %657 = vector.extract_strided_slice %652 {offsets = [2, 0], sizes = [2, 32], strides = [1, 1]} : vector<4x32xf32> to vector<2x32xf32>
    %c4_227 = arith.constant 4 : index
    %c0_228 = arith.constant 0 : index
    %c0_229 = arith.constant 0 : index
    %658 = vector.load %arg27[%c4_227, %c0_228, %c0_229] : memref<16x2x32xf32, #tpu.memory_space<vmem>>, vector<1x2x32xf32>
    %659 = vector.shape_cast %658 : vector<1x2x32xf32> to vector<2x32xf32>
    %660 = vector.shape_cast %657 : vector<2x32xf32> to vector<1x2x32xf32>
    tpu.vector_store %arg27[%c4_227, %c0_228, %c0_229], %660 {strides = array<i32>} : memref<16x2x32xf32, #tpu.memory_space<vmem>>, vector<1x2x32xf32>,
    %661 = vector.extract_strided_slice %153 {offsets = [24, 0], sizes = [2, 128], strides = [1, 1]} : vector<32x256xf32> to vector<2x128xf32>
    %662 = vector.extract_strided_slice %153 {offsets = [6, 128], sizes = [2, 128], strides = [1, 1]} : vector<32x256xf32> to vector<2x128xf32>
    %663 = tpu.concatenate %661, %662 in 0 : vector<2x128xf32>, vector<2x128xf32> -> vector<4x128xf32>
    %c12_230 = arith.constant 12 : index
    %c0_231 = arith.constant 0 : index
    %c0_232 = arith.constant 0 : index
    %664 = vector.load %arg1[%c12_230, %c0_231, %c0_232] : memref<16x2x1xf32, #tpu.memory_space<vmem>>, vector<1x2x1xf32>
    %665 = vector.shape_cast %664 : vector<1x2x1xf32> to vector<2x1xf32>
    %c3_233 = arith.constant 3 : index
    %c0_234 = arith.constant 0 : index
    %c0_235 = arith.constant 0 : index
    %666 = vector.load %arg1[%c3_233, %c0_234, %c0_235] : memref<16x2x1xf32, #tpu.memory_space<vmem>>, vector<1x2x1xf32>
    %667 = vector.shape_cast %666 : vector<1x2x1xf32> to vector<2x1xf32>
    %668 = tpu.concatenate %665, %667 in 0 : vector<2x1xf32>, vector<2x1xf32> -> vector<4x1xf32>
    %669 = vector.broadcast %146 : vector<4x1xf32> to vector<4x32xf32>
    %670 = arith.mulf %652, %669 : vector<4x32xf32>
    %671 = vector.broadcast %148 : vector<4x1xf32> to vector<4x32xf32>
    %672 = arith.mulf %652, %671 : vector<4x32xf32>
    %673 = tpu.concatenate %670, %672 in 1 : vector<4x32xf32>, vector<4x32xf32> -> vector<4x64xf32>
    %cst_236 = arith.constant dense<0.000000e+00> : vector<4x128xf32>
    %674 = tpu.matmul %673, %154, %cst_236 {dimension_numbers = #tpu.dot_dimension_numbers<[1], [0], [0], [1], [0, 0, 1, 1], [], []>} : vector<4x64xf32>, vector<64x128xf32>, vector<4x128xf32> -> vector<4x128xf32>
    %675 = arith.addf %663, %674 : vector<4x128xf32>
    %676 = arith.negf %675 : vector<4x128xf32>
    %677 = math.exp %676 : vector<4x128xf32>
    %cst_237 = arith.constant 1.000000e+00 : f32
    %678 = vector.broadcast %cst_237 : f32 to vector<4x128xf32>
    %679 = arith.addf %678, %677 : vector<4x128xf32>
    %680 = arith.divf %678, %679 : vector<4x128xf32>
    %681 = math.tanh %675 : vector<4x128xf32>
    %682 = vector.extract_strided_slice %680 {offsets = [0, 0], sizes = [4, 32], strides = [1, 1]} : vector<4x128xf32> to vector<4x32xf32>
    %683 = vector.extract_strided_slice %680 {offsets = [0, 32], sizes = [4, 32], strides = [1, 1]} : vector<4x128xf32> to vector<4x32xf32>
    %684 = vector.extract_strided_slice %681 {offsets = [0, 64], sizes = [4, 32], strides = [1, 1]} : vector<4x128xf32> to vector<4x32xf32>
    %685 = vector.extract_strided_slice %680 {offsets = [0, 96], sizes = [4, 32], strides = [1, 1]} : vector<4x128xf32> to vector<4x32xf32>
    %686 = arith.mulf %683, %648 : vector<4x32xf32>
    %687 = arith.mulf %682, %684 : vector<4x32xf32>
    %688 = arith.addf %686, %687 : vector<4x32xf32>
    %689 = vector.broadcast %668 : vector<4x1xf32> to vector<4x32xf32>
    %690 = arith.mulf %688, %689 : vector<4x32xf32>
    %691 = math.tanh %690 : vector<4x32xf32>
    %692 = arith.mulf %685, %691 : vector<4x32xf32>
    %693 = vector.broadcast %668 : vector<4x1xf32> to vector<4x32xf32>
    %694 = arith.mulf %692, %693 : vector<4x32xf32>
    %695 = vector.extract_strided_slice %694 {offsets = [0, 0], sizes = [2, 32], strides = [1, 1]} : vector<4x32xf32> to vector<2x32xf32>
    %c12_238 = arith.constant 12 : index
    %c0_239 = arith.constant 0 : index
    %c0_240 = arith.constant 0 : index
    %696 = vector.load %arg26[%c12_238, %c0_239, %c0_240] : memref<16x2x32xf32, #tpu.memory_space<vmem>>, vector<1x2x32xf32>
    %697 = vector.shape_cast %696 : vector<1x2x32xf32> to vector<2x32xf32>
    %698 = vector.shape_cast %695 : vector<2x32xf32> to vector<1x2x32xf32>
    tpu.vector_store %arg26[%c12_238, %c0_239, %c0_240], %698 {strides = array<i32>} : memref<16x2x32xf32, #tpu.memory_space<vmem>>, vector<1x2x32xf32>,
    %699 = vector.extract_strided_slice %694 {offsets = [2, 0], sizes = [2, 32], strides = [1, 1]} : vector<4x32xf32> to vector<2x32xf32>
    %c3_241 = arith.constant 3 : index
    %c0_242 = arith.constant 0 : index
    %c0_243 = arith.constant 0 : index
    %700 = vector.load %arg27[%c3_241, %c0_242, %c0_243] : memref<16x2x32xf32, #tpu.memory_space<vmem>>, vector<1x2x32xf32>
    %701 = vector.shape_cast %700 : vector<1x2x32xf32> to vector<2x32xf32>
    %702 = vector.shape_cast %699 : vector<2x32xf32> to vector<1x2x32xf32>
    tpu.vector_store %arg27[%c3_241, %c0_242, %c0_243], %702 {strides = array<i32>} : memref<16x2x32xf32, #tpu.memory_space<vmem>>, vector<1x2x32xf32>,
    %703 = vector.extract_strided_slice %153 {offsets = [26, 0], sizes = [2, 128], strides = [1, 1]} : vector<32x256xf32> to vector<2x128xf32>
    %704 = vector.extract_strided_slice %153 {offsets = [4, 128], sizes = [2, 128], strides = [1, 1]} : vector<32x256xf32> to vector<2x128xf32>
    %705 = tpu.concatenate %703, %704 in 0 : vector<2x128xf32>, vector<2x128xf32> -> vector<4x128xf32>
    %c13_244 = arith.constant 13 : index
    %c0_245 = arith.constant 0 : index
    %c0_246 = arith.constant 0 : index
    %706 = vector.load %arg1[%c13_244, %c0_245, %c0_246] : memref<16x2x1xf32, #tpu.memory_space<vmem>>, vector<1x2x1xf32>
    %707 = vector.shape_cast %706 : vector<1x2x1xf32> to vector<2x1xf32>
    %c2_247 = arith.constant 2 : index
    %c0_248 = arith.constant 0 : index
    %c0_249 = arith.constant 0 : index
    %708 = vector.load %arg1[%c2_247, %c0_248, %c0_249] : memref<16x2x1xf32, #tpu.memory_space<vmem>>, vector<1x2x1xf32>
    %709 = vector.shape_cast %708 : vector<1x2x1xf32> to vector<2x1xf32>
    %710 = tpu.concatenate %707, %709 in 0 : vector<2x1xf32>, vector<2x1xf32> -> vector<4x1xf32>
    %711 = vector.broadcast %146 : vector<4x1xf32> to vector<4x32xf32>
    %712 = arith.mulf %694, %711 : vector<4x32xf32>
    %713 = vector.broadcast %148 : vector<4x1xf32> to vector<4x32xf32>
    %714 = arith.mulf %694, %713 : vector<4x32xf32>
    %715 = tpu.concatenate %712, %714 in 1 : vector<4x32xf32>, vector<4x32xf32> -> vector<4x64xf32>
    %cst_250 = arith.constant dense<0.000000e+00> : vector<4x128xf32>
    %716 = tpu.matmul %715, %154, %cst_250 {dimension_numbers = #tpu.dot_dimension_numbers<[1], [0], [0], [1], [0, 0, 1, 1], [], []>} : vector<4x64xf32>, vector<64x128xf32>, vector<4x128xf32> -> vector<4x128xf32>
    %717 = arith.addf %705, %716 : vector<4x128xf32>
    %718 = arith.negf %717 : vector<4x128xf32>
    %719 = math.exp %718 : vector<4x128xf32>
    %cst_251 = arith.constant 1.000000e+00 : f32
    %720 = vector.broadcast %cst_251 : f32 to vector<4x128xf32>
    %721 = arith.addf %720, %719 : vector<4x128xf32>
    %722 = arith.divf %720, %721 : vector<4x128xf32>
    %723 = math.tanh %717 : vector<4x128xf32>
    %724 = vector.extract_strided_slice %722 {offsets = [0, 0], sizes = [4, 32], strides = [1, 1]} : vector<4x128xf32> to vector<4x32xf32>
    %725 = vector.extract_strided_slice %722 {offsets = [0, 32], sizes = [4, 32], strides = [1, 1]} : vector<4x128xf32> to vector<4x32xf32>
    %726 = vector.extract_strided_slice %723 {offsets = [0, 64], sizes = [4, 32], strides = [1, 1]} : vector<4x128xf32> to vector<4x32xf32>
    %727 = vector.extract_strided_slice %722 {offsets = [0, 96], sizes = [4, 32], strides = [1, 1]} : vector<4x128xf32> to vector<4x32xf32>
    %728 = arith.mulf %725, %690 : vector<4x32xf32>
    %729 = arith.mulf %724, %726 : vector<4x32xf32>
    %730 = arith.addf %728, %729 : vector<4x32xf32>
    %731 = vector.broadcast %710 : vector<4x1xf32> to vector<4x32xf32>
    %732 = arith.mulf %730, %731 : vector<4x32xf32>
    %733 = math.tanh %732 : vector<4x32xf32>
    %734 = arith.mulf %727, %733 : vector<4x32xf32>
    %735 = vector.broadcast %710 : vector<4x1xf32> to vector<4x32xf32>
    %736 = arith.mulf %734, %735 : vector<4x32xf32>
    %737 = vector.extract_strided_slice %736 {offsets = [0, 0], sizes = [2, 32], strides = [1, 1]} : vector<4x32xf32> to vector<2x32xf32>
    %c13_252 = arith.constant 13 : index
    %c0_253 = arith.constant 0 : index
    %c0_254 = arith.constant 0 : index
    %738 = vector.load %arg26[%c13_252, %c0_253, %c0_254] : memref<16x2x32xf32, #tpu.memory_space<vmem>>, vector<1x2x32xf32>
    %739 = vector.shape_cast %738 : vector<1x2x32xf32> to vector<2x32xf32>
    %740 = vector.shape_cast %737 : vector<2x32xf32> to vector<1x2x32xf32>
    tpu.vector_store %arg26[%c13_252, %c0_253, %c0_254], %740 {strides = array<i32>} : memref<16x2x32xf32, #tpu.memory_space<vmem>>, vector<1x2x32xf32>,
    %741 = vector.extract_strided_slice %736 {offsets = [2, 0], sizes = [2, 32], strides = [1, 1]} : vector<4x32xf32> to vector<2x32xf32>
    %c2_255 = arith.constant 2 : index
    %c0_256 = arith.constant 0 : index
    %c0_257 = arith.constant 0 : index
    %742 = vector.load %arg27[%c2_255, %c0_256, %c0_257] : memref<16x2x32xf32, #tpu.memory_space<vmem>>, vector<1x2x32xf32>
    %743 = vector.shape_cast %742 : vector<1x2x32xf32> to vector<2x32xf32>
    %744 = vector.shape_cast %741 : vector<2x32xf32> to vector<1x2x32xf32>
    tpu.vector_store %arg27[%c2_255, %c0_256, %c0_257], %744 {strides = array<i32>} : memref<16x2x32xf32, #tpu.memory_space<vmem>>, vector<1x2x32xf32>,
    %745 = vector.extract_strided_slice %153 {offsets = [28, 0], sizes = [2, 128], strides = [1, 1]} : vector<32x256xf32> to vector<2x128xf32>
    %746 = vector.extract_strided_slice %153 {offsets = [2, 128], sizes = [2, 128], strides = [1, 1]} : vector<32x256xf32> to vector<2x128xf32>
    %747 = tpu.concatenate %745, %746 in 0 : vector<2x128xf32>, vector<2x128xf32> -> vector<4x128xf32>
    %c14_258 = arith.constant 14 : index
    %c0_259 = arith.constant 0 : index
    %c0_260 = arith.constant 0 : index
    %748 = vector.load %arg1[%c14_258, %c0_259, %c0_260] : memref<16x2x1xf32, #tpu.memory_space<vmem>>, vector<1x2x1xf32>
    %749 = vector.shape_cast %748 : vector<1x2x1xf32> to vector<2x1xf32>
    %c1_261 = arith.constant 1 : index
    %c0_262 = arith.constant 0 : index
    %c0_263 = arith.constant 0 : index
    %750 = vector.load %arg1[%c1_261, %c0_262, %c0_263] : memref<16x2x1xf32, #tpu.memory_space<vmem>>, vector<1x2x1xf32>
    %751 = vector.shape_cast %750 : vector<1x2x1xf32> to vector<2x1xf32>
    %752 = tpu.concatenate %749, %751 in 0 : vector<2x1xf32>, vector<2x1xf32> -> vector<4x1xf32>
    %753 = vector.broadcast %146 : vector<4x1xf32> to vector<4x32xf32>
    %754 = arith.mulf %736, %753 : vector<4x32xf32>
    %755 = vector.broadcast %148 : vector<4x1xf32> to vector<4x32xf32>
    %756 = arith.mulf %736, %755 : vector<4x32xf32>
    %757 = tpu.concatenate %754, %756 in 1 : vector<4x32xf32>, vector<4x32xf32> -> vector<4x64xf32>
    %cst_264 = arith.constant dense<0.000000e+00> : vector<4x128xf32>
    %758 = tpu.matmul %757, %154, %cst_264 {dimension_numbers = #tpu.dot_dimension_numbers<[1], [0], [0], [1], [0, 0, 1, 1], [], []>} : vector<4x64xf32>, vector<64x128xf32>, vector<4x128xf32> -> vector<4x128xf32>
    %759 = arith.addf %747, %758 : vector<4x128xf32>
    %760 = arith.negf %759 : vector<4x128xf32>
    %761 = math.exp %760 : vector<4x128xf32>
    %cst_265 = arith.constant 1.000000e+00 : f32
    %762 = vector.broadcast %cst_265 : f32 to vector<4x128xf32>
    %763 = arith.addf %762, %761 : vector<4x128xf32>
    %764 = arith.divf %762, %763 : vector<4x128xf32>
    %765 = math.tanh %759 : vector<4x128xf32>
    %766 = vector.extract_strided_slice %764 {offsets = [0, 0], sizes = [4, 32], strides = [1, 1]} : vector<4x128xf32> to vector<4x32xf32>
    %767 = vector.extract_strided_slice %764 {offsets = [0, 32], sizes = [4, 32], strides = [1, 1]} : vector<4x128xf32> to vector<4x32xf32>
    %768 = vector.extract_strided_slice %765 {offsets = [0, 64], sizes = [4, 32], strides = [1, 1]} : vector<4x128xf32> to vector<4x32xf32>
    %769 = vector.extract_strided_slice %764 {offsets = [0, 96], sizes = [4, 32], strides = [1, 1]} : vector<4x128xf32> to vector<4x32xf32>
    %770 = arith.mulf %767, %732 : vector<4x32xf32>
    %771 = arith.mulf %766, %768 : vector<4x32xf32>
    %772 = arith.addf %770, %771 : vector<4x32xf32>
    %773 = vector.broadcast %752 : vector<4x1xf32> to vector<4x32xf32>
    %774 = arith.mulf %772, %773 : vector<4x32xf32>
    %775 = math.tanh %774 : vector<4x32xf32>
    %776 = arith.mulf %769, %775 : vector<4x32xf32>
    %777 = vector.broadcast %752 : vector<4x1xf32> to vector<4x32xf32>
    %778 = arith.mulf %776, %777 : vector<4x32xf32>
    %779 = vector.extract_strided_slice %778 {offsets = [0, 0], sizes = [2, 32], strides = [1, 1]} : vector<4x32xf32> to vector<2x32xf32>
    %c14_266 = arith.constant 14 : index
    %c0_267 = arith.constant 0 : index
    %c0_268 = arith.constant 0 : index
    %780 = vector.load %arg26[%c14_266, %c0_267, %c0_268] : memref<16x2x32xf32, #tpu.memory_space<vmem>>, vector<1x2x32xf32>
    %781 = vector.shape_cast %780 : vector<1x2x32xf32> to vector<2x32xf32>
    %782 = vector.shape_cast %779 : vector<2x32xf32> to vector<1x2x32xf32>
    tpu.vector_store %arg26[%c14_266, %c0_267, %c0_268], %782 {strides = array<i32>} : memref<16x2x32xf32, #tpu.memory_space<vmem>>, vector<1x2x32xf32>,
    %783 = vector.extract_strided_slice %778 {offsets = [2, 0], sizes = [2, 32], strides = [1, 1]} : vector<4x32xf32> to vector<2x32xf32>
    %c1_269 = arith.constant 1 : index
    %c0_270 = arith.constant 0 : index
    %c0_271 = arith.constant 0 : index
    %784 = vector.load %arg27[%c1_269, %c0_270, %c0_271] : memref<16x2x32xf32, #tpu.memory_space<vmem>>, vector<1x2x32xf32>
    %785 = vector.shape_cast %784 : vector<1x2x32xf32> to vector<2x32xf32>
    %786 = vector.shape_cast %783 : vector<2x32xf32> to vector<1x2x32xf32>
    tpu.vector_store %arg27[%c1_269, %c0_270, %c0_271], %786 {strides = array<i32>} : memref<16x2x32xf32, #tpu.memory_space<vmem>>, vector<1x2x32xf32>,
    %787 = vector.extract_strided_slice %153 {offsets = [30, 0], sizes = [2, 128], strides = [1, 1]} : vector<32x256xf32> to vector<2x128xf32>
    %788 = vector.extract_strided_slice %153 {offsets = [0, 128], sizes = [2, 128], strides = [1, 1]} : vector<32x256xf32> to vector<2x128xf32>
    %789 = tpu.concatenate %787, %788 in 0 : vector<2x128xf32>, vector<2x128xf32> -> vector<4x128xf32>
    %c15_272 = arith.constant 15 : index
    %c0_273 = arith.constant 0 : index
    %c0_274 = arith.constant 0 : index
    %790 = vector.load %arg1[%c15_272, %c0_273, %c0_274] : memref<16x2x1xf32, #tpu.memory_space<vmem>>, vector<1x2x1xf32>
    %791 = vector.shape_cast %790 : vector<1x2x1xf32> to vector<2x1xf32>
    %c0_275 = arith.constant 0 : index
    %c0_276 = arith.constant 0 : index
    %c0_277 = arith.constant 0 : index
    %792 = vector.load %arg1[%c0_275, %c0_276, %c0_277] : memref<16x2x1xf32, #tpu.memory_space<vmem>>, vector<1x2x1xf32>
    %793 = vector.shape_cast %792 : vector<1x2x1xf32> to vector<2x1xf32>
    %794 = tpu.concatenate %791, %793 in 0 : vector<2x1xf32>, vector<2x1xf32> -> vector<4x1xf32>
    %795 = vector.broadcast %146 : vector<4x1xf32> to vector<4x32xf32>
    %796 = arith.mulf %778, %795 : vector<4x32xf32>
    %797 = vector.broadcast %148 : vector<4x1xf32> to vector<4x32xf32>
    %798 = arith.mulf %778, %797 : vector<4x32xf32>
    %799 = tpu.concatenate %796, %798 in 1 : vector<4x32xf32>, vector<4x32xf32> -> vector<4x64xf32>
    %cst_278 = arith.constant dense<0.000000e+00> : vector<4x128xf32>
    %800 = tpu.matmul %799, %154, %cst_278 {dimension_numbers = #tpu.dot_dimension_numbers<[1], [0], [0], [1], [0, 0, 1, 1], [], []>} : vector<4x64xf32>, vector<64x128xf32>, vector<4x128xf32> -> vector<4x128xf32>
    %801 = arith.addf %789, %800 : vector<4x128xf32>
    %802 = arith.negf %801 : vector<4x128xf32>
    %803 = math.exp %802 : vector<4x128xf32>
    %cst_279 = arith.constant 1.000000e+00 : f32
    %804 = vector.broadcast %cst_279 : f32 to vector<4x128xf32>
    %805 = arith.addf %804, %803 : vector<4x128xf32>
    %806 = arith.divf %804, %805 : vector<4x128xf32>
    %807 = math.tanh %801 : vector<4x128xf32>
    %808 = vector.extract_strided_slice %806 {offsets = [0, 0], sizes = [4, 32], strides = [1, 1]} : vector<4x128xf32> to vector<4x32xf32>
    %809 = vector.extract_strided_slice %806 {offsets = [0, 32], sizes = [4, 32], strides = [1, 1]} : vector<4x128xf32> to vector<4x32xf32>
    %810 = vector.extract_strided_slice %807 {offsets = [0, 64], sizes = [4, 32], strides = [1, 1]} : vector<4x128xf32> to vector<4x32xf32>
    %811 = vector.extract_strided_slice %806 {offsets = [0, 96], sizes = [4, 32], strides = [1, 1]} : vector<4x128xf32> to vector<4x32xf32>
    %812 = arith.mulf %809, %774 : vector<4x32xf32>
    %813 = arith.mulf %808, %810 : vector<4x32xf32>
    %814 = arith.addf %812, %813 : vector<4x32xf32>
    %815 = vector.broadcast %794 : vector<4x1xf32> to vector<4x32xf32>
    %816 = arith.mulf %814, %815 : vector<4x32xf32>
    %817 = math.tanh %816 : vector<4x32xf32>
    %818 = arith.mulf %811, %817 : vector<4x32xf32>
    %819 = vector.broadcast %794 : vector<4x1xf32> to vector<4x32xf32>
    %820 = arith.mulf %818, %819 : vector<4x32xf32>
    %821 = vector.extract_strided_slice %820 {offsets = [0, 0], sizes = [2, 32], strides = [1, 1]} : vector<4x32xf32> to vector<2x32xf32>
    %c15_280 = arith.constant 15 : index
    %c0_281 = arith.constant 0 : index
    %c0_282 = arith.constant 0 : index
    %822 = vector.load %arg26[%c15_280, %c0_281, %c0_282] : memref<16x2x32xf32, #tpu.memory_space<vmem>>, vector<1x2x32xf32>
    %823 = vector.shape_cast %822 : vector<1x2x32xf32> to vector<2x32xf32>
    %824 = vector.shape_cast %821 : vector<2x32xf32> to vector<1x2x32xf32>
    tpu.vector_store %arg26[%c15_280, %c0_281, %c0_282], %824 {strides = array<i32>} : memref<16x2x32xf32, #tpu.memory_space<vmem>>, vector<1x2x32xf32>,
    %825 = vector.extract_strided_slice %820 {offsets = [2, 0], sizes = [2, 32], strides = [1, 1]} : vector<4x32xf32> to vector<2x32xf32>
    %c0_283 = arith.constant 0 : index
    %c0_284 = arith.constant 0 : index
    %c0_285 = arith.constant 0 : index
    %826 = vector.load %arg27[%c0_283, %c0_284, %c0_285] : memref<16x2x32xf32, #tpu.memory_space<vmem>>, vector<1x2x32xf32>
    %827 = vector.shape_cast %826 : vector<1x2x32xf32> to vector<2x32xf32>
    %828 = vector.shape_cast %825 : vector<2x32xf32> to vector<1x2x32xf32>
    tpu.vector_store %arg27[%c0_283, %c0_284, %c0_285], %828 {strides = array<i32>} : memref<16x2x32xf32, #tpu.memory_space<vmem>>, vector<1x2x32xf32>,
    %c0_286 = arith.constant 0 : index
    %c0_287 = arith.constant 0 : index
    %c0_288 = arith.constant 0 : index
    %829 = vector.load %arg26[%c0_286, %c0_287, %c0_288] : memref<16x2x32xf32, #tpu.memory_space<vmem>>, vector<1x2x32xf32>
    %830 = vector.shape_cast %829 : vector<1x2x32xf32> to vector<2x32xf32>
    %c1_289 = arith.constant 1 : index
    %c0_290 = arith.constant 0 : index
    %c0_291 = arith.constant 0 : index
    %831 = vector.load %arg26[%c1_289, %c0_290, %c0_291] : memref<16x2x32xf32, #tpu.memory_space<vmem>>, vector<1x2x32xf32>
    %832 = vector.shape_cast %831 : vector<1x2x32xf32> to vector<2x32xf32>
    %c2_292 = arith.constant 2 : index
    %c0_293 = arith.constant 0 : index
    %c0_294 = arith.constant 0 : index
    %833 = vector.load %arg26[%c2_292, %c0_293, %c0_294] : memref<16x2x32xf32, #tpu.memory_space<vmem>>, vector<1x2x32xf32>
    %834 = vector.shape_cast %833 : vector<1x2x32xf32> to vector<2x32xf32>
    %c3_295 = arith.constant 3 : index
    %c0_296 = arith.constant 0 : index
    %c0_297 = arith.constant 0 : index
    %835 = vector.load %arg26[%c3_295, %c0_296, %c0_297] : memref<16x2x32xf32, #tpu.memory_space<vmem>>, vector<1x2x32xf32>
    %836 = vector.shape_cast %835 : vector<1x2x32xf32> to vector<2x32xf32>
    %c4_298 = arith.constant 4 : index
    %c0_299 = arith.constant 0 : index
    %c0_300 = arith.constant 0 : index
    %837 = vector.load %arg26[%c4_298, %c0_299, %c0_300] : memref<16x2x32xf32, #tpu.memory_space<vmem>>, vector<1x2x32xf32>
    %838 = vector.shape_cast %837 : vector<1x2x32xf32> to vector<2x32xf32>
    %c5_301 = arith.constant 5 : index
    %c0_302 = arith.constant 0 : index
    %c0_303 = arith.constant 0 : index
    %839 = vector.load %arg26[%c5_301, %c0_302, %c0_303] : memref<16x2x32xf32, #tpu.memory_space<vmem>>, vector<1x2x32xf32>
    %840 = vector.shape_cast %839 : vector<1x2x32xf32> to vector<2x32xf32>
    %c6_304 = arith.constant 6 : index
    %c0_305 = arith.constant 0 : index
    %c0_306 = arith.constant 0 : index
    %841 = vector.load %arg26[%c6_304, %c0_305, %c0_306] : memref<16x2x32xf32, #tpu.memory_space<vmem>>, vector<1x2x32xf32>
    %842 = vector.shape_cast %841 : vector<1x2x32xf32> to vector<2x32xf32>
    %c7_307 = arith.constant 7 : index
    %c0_308 = arith.constant 0 : index
    %c0_309 = arith.constant 0 : index
    %843 = vector.load %arg26[%c7_307, %c0_308, %c0_309] : memref<16x2x32xf32, #tpu.memory_space<vmem>>, vector<1x2x32xf32>
    %844 = vector.shape_cast %843 : vector<1x2x32xf32> to vector<2x32xf32>
    %c8_310 = arith.constant 8 : index
    %c0_311 = arith.constant 0 : index
    %c0_312 = arith.constant 0 : index
    %845 = vector.load %arg26[%c8_310, %c0_311, %c0_312] : memref<16x2x32xf32, #tpu.memory_space<vmem>>, vector<1x2x32xf32>
    %846 = vector.shape_cast %845 : vector<1x2x32xf32> to vector<2x32xf32>
    %c9_313 = arith.constant 9 : index
    %c0_314 = arith.constant 0 : index
    %c0_315 = arith.constant 0 : index
    %847 = vector.load %arg26[%c9_313, %c0_314, %c0_315] : memref<16x2x32xf32, #tpu.memory_space<vmem>>, vector<1x2x32xf32>
    %848 = vector.shape_cast %847 : vector<1x2x32xf32> to vector<2x32xf32>
    %c10_316 = arith.constant 10 : index
    %c0_317 = arith.constant 0 : index
    %c0_318 = arith.constant 0 : index
    %849 = vector.load %arg26[%c10_316, %c0_317, %c0_318] : memref<16x2x32xf32, #tpu.memory_space<vmem>>, vector<1x2x32xf32>
    %850 = vector.shape_cast %849 : vector<1x2x32xf32> to vector<2x32xf32>
    %c11_319 = arith.constant 11 : index
    %c0_320 = arith.constant 0 : index
    %c0_321 = arith.constant 0 : index
    %851 = vector.load %arg26[%c11_319, %c0_320, %c0_321] : memref<16x2x32xf32, #tpu.memory_space<vmem>>, vector<1x2x32xf32>
    %852 = vector.shape_cast %851 : vector<1x2x32xf32> to vector<2x32xf32>
    %c12_322 = arith.constant 12 : index
    %c0_323 = arith.constant 0 : index
    %c0_324 = arith.constant 0 : index
    %853 = vector.load %arg26[%c12_322, %c0_323, %c0_324] : memref<16x2x32xf32, #tpu.memory_space<vmem>>, vector<1x2x32xf32>
    %854 = vector.shape_cast %853 : vector<1x2x32xf32> to vector<2x32xf32>
    %c13_325 = arith.constant 13 : index
    %c0_326 = arith.constant 0 : index
    %c0_327 = arith.constant 0 : index
    %855 = vector.load %arg26[%c13_325, %c0_326, %c0_327] : memref<16x2x32xf32, #tpu.memory_space<vmem>>, vector<1x2x32xf32>
    %856 = vector.shape_cast %855 : vector<1x2x32xf32> to vector<2x32xf32>
    %c14_328 = arith.constant 14 : index
    %c0_329 = arith.constant 0 : index
    %c0_330 = arith.constant 0 : index
    %857 = vector.load %arg26[%c14_328, %c0_329, %c0_330] : memref<16x2x32xf32, #tpu.memory_space<vmem>>, vector<1x2x32xf32>
    %858 = vector.shape_cast %857 : vector<1x2x32xf32> to vector<2x32xf32>
    %c15_331 = arith.constant 15 : index
    %c0_332 = arith.constant 0 : index
    %c0_333 = arith.constant 0 : index
    %859 = vector.load %arg26[%c15_331, %c0_332, %c0_333] : memref<16x2x32xf32, #tpu.memory_space<vmem>>, vector<1x2x32xf32>
    %860 = vector.shape_cast %859 : vector<1x2x32xf32> to vector<2x32xf32>
    %861 = tpu.concatenate %830, %832, %834, %836, %838, %840, %842, %844, %846, %848, %850, %852, %854, %856, %858, %860 in 0 : vector<2x32xf32>, vector<2x32xf32>, vector<2x32xf32>, vector<2x32xf32>, vector<2x32xf32>, vector<2x32xf32>, vector<2x32xf32>, vector<2x32xf32>, vector<2x32xf32>, vector<2x32xf32>, vector<2x32xf32>, vector<2x32xf32>, vector<2x32xf32>, vector<2x32xf32>, vector<2x32xf32>, vector<2x32xf32> -> vector<32x32xf32>
    %c0_334 = arith.constant 0 : index
    %c0_335 = arith.constant 0 : index
    %c0_336 = arith.constant 0 : index
    %862 = vector.load %arg27[%c0_334, %c0_335, %c0_336] : memref<16x2x32xf32, #tpu.memory_space<vmem>>, vector<1x2x32xf32>
    %863 = vector.shape_cast %862 : vector<1x2x32xf32> to vector<2x32xf32>
    %c1_337 = arith.constant 1 : index
    %c0_338 = arith.constant 0 : index
    %c0_339 = arith.constant 0 : index
    %864 = vector.load %arg27[%c1_337, %c0_338, %c0_339] : memref<16x2x32xf32, #tpu.memory_space<vmem>>, vector<1x2x32xf32>
    %865 = vector.shape_cast %864 : vector<1x2x32xf32> to vector<2x32xf32>
    %c2_340 = arith.constant 2 : index
    %c0_341 = arith.constant 0 : index
    %c0_342 = arith.constant 0 : index
    %866 = vector.load %arg27[%c2_340, %c0_341, %c0_342] : memref<16x2x32xf32, #tpu.memory_space<vmem>>, vector<1x2x32xf32>
    %867 = vector.shape_cast %866 : vector<1x2x32xf32> to vector<2x32xf32>
    %c3_343 = arith.constant 3 : index
    %c0_344 = arith.constant 0 : index
    %c0_345 = arith.constant 0 : index
    %868 = vector.load %arg27[%c3_343, %c0_344, %c0_345] : memref<16x2x32xf32, #tpu.memory_space<vmem>>, vector<1x2x32xf32>
    %869 = vector.shape_cast %868 : vector<1x2x32xf32> to vector<2x32xf32>
    %c4_346 = arith.constant 4 : index
    %c0_347 = arith.constant 0 : index
    %c0_348 = arith.constant 0 : index
    %870 = vector.load %arg27[%c4_346, %c0_347, %c0_348] : memref<16x2x32xf32, #tpu.memory_space<vmem>>, vector<1x2x32xf32>
    %871 = vector.shape_cast %870 : vector<1x2x32xf32> to vector<2x32xf32>
    %c5_349 = arith.constant 5 : index
    %c0_350 = arith.constant 0 : index
    %c0_351 = arith.constant 0 : index
    %872 = vector.load %arg27[%c5_349, %c0_350, %c0_351] : memref<16x2x32xf32, #tpu.memory_space<vmem>>, vector<1x2x32xf32>
    %873 = vector.shape_cast %872 : vector<1x2x32xf32> to vector<2x32xf32>
    %c6_352 = arith.constant 6 : index
    %c0_353 = arith.constant 0 : index
    %c0_354 = arith.constant 0 : index
    %874 = vector.load %arg27[%c6_352, %c0_353, %c0_354] : memref<16x2x32xf32, #tpu.memory_space<vmem>>, vector<1x2x32xf32>
    %875 = vector.shape_cast %874 : vector<1x2x32xf32> to vector<2x32xf32>
    %c7_355 = arith.constant 7 : index
    %c0_356 = arith.constant 0 : index
    %c0_357 = arith.constant 0 : index
    %876 = vector.load %arg27[%c7_355, %c0_356, %c0_357] : memref<16x2x32xf32, #tpu.memory_space<vmem>>, vector<1x2x32xf32>
    %877 = vector.shape_cast %876 : vector<1x2x32xf32> to vector<2x32xf32>
    %c8_358 = arith.constant 8 : index
    %c0_359 = arith.constant 0 : index
    %c0_360 = arith.constant 0 : index
    %878 = vector.load %arg27[%c8_358, %c0_359, %c0_360] : memref<16x2x32xf32, #tpu.memory_space<vmem>>, vector<1x2x32xf32>
    %879 = vector.shape_cast %878 : vector<1x2x32xf32> to vector<2x32xf32>
    %c9_361 = arith.constant 9 : index
    %c0_362 = arith.constant 0 : index
    %c0_363 = arith.constant 0 : index
    %880 = vector.load %arg27[%c9_361, %c0_362, %c0_363] : memref<16x2x32xf32, #tpu.memory_space<vmem>>, vector<1x2x32xf32>
    %881 = vector.shape_cast %880 : vector<1x2x32xf32> to vector<2x32xf32>
    %c10_364 = arith.constant 10 : index
    %c0_365 = arith.constant 0 : index
    %c0_366 = arith.constant 0 : index
    %882 = vector.load %arg27[%c10_364, %c0_365, %c0_366] : memref<16x2x32xf32, #tpu.memory_space<vmem>>, vector<1x2x32xf32>
    %883 = vector.shape_cast %882 : vector<1x2x32xf32> to vector<2x32xf32>
    %c11_367 = arith.constant 11 : index
    %c0_368 = arith.constant 0 : index
    %c0_369 = arith.constant 0 : index
    %884 = vector.load %arg27[%c11_367, %c0_368, %c0_369] : memref<16x2x32xf32, #tpu.memory_space<vmem>>, vector<1x2x32xf32>
    %885 = vector.shape_cast %884 : vector<1x2x32xf32> to vector<2x32xf32>
    %c12_370 = arith.constant 12 : index
    %c0_371 = arith.constant 0 : index
    %c0_372 = arith.constant 0 : index
    %886 = vector.load %arg27[%c12_370, %c0_371, %c0_372] : memref<16x2x32xf32, #tpu.memory_space<vmem>>, vector<1x2x32xf32>
    %887 = vector.shape_cast %886 : vector<1x2x32xf32> to vector<2x32xf32>
    %c13_373 = arith.constant 13 : index
    %c0_374 = arith.constant 0 : index
    %c0_375 = arith.constant 0 : index
    %888 = vector.load %arg27[%c13_373, %c0_374, %c0_375] : memref<16x2x32xf32, #tpu.memory_space<vmem>>, vector<1x2x32xf32>
    %889 = vector.shape_cast %888 : vector<1x2x32xf32> to vector<2x32xf32>
    %c14_376 = arith.constant 14 : index
    %c0_377 = arith.constant 0 : index
    %c0_378 = arith.constant 0 : index
    %890 = vector.load %arg27[%c14_376, %c0_377, %c0_378] : memref<16x2x32xf32, #tpu.memory_space<vmem>>, vector<1x2x32xf32>
    %891 = vector.shape_cast %890 : vector<1x2x32xf32> to vector<2x32xf32>
    %c15_379 = arith.constant 15 : index
    %c0_380 = arith.constant 0 : index
    %c0_381 = arith.constant 0 : index
    %892 = vector.load %arg27[%c15_379, %c0_380, %c0_381] : memref<16x2x32xf32, #tpu.memory_space<vmem>>, vector<1x2x32xf32>
    %893 = vector.shape_cast %892 : vector<1x2x32xf32> to vector<2x32xf32>
    %894 = tpu.concatenate %863, %865, %867, %869, %871, %873, %875, %877, %879, %881, %883, %885, %887, %889, %891, %893 in 0 : vector<2x32xf32>, vector<2x32xf32>, vector<2x32xf32>, vector<2x32xf32>, vector<2x32xf32>, vector<2x32xf32>, vector<2x32xf32>, vector<2x32xf32>, vector<2x32xf32>, vector<2x32xf32>, vector<2x32xf32>, vector<2x32xf32>, vector<2x32xf32>, vector<2x32xf32>, vector<2x32xf32>, vector<2x32xf32> -> vector<32x32xf32>
    %895 = tpu.concatenate %861, %894 in 1 : vector<32x32xf32>, vector<32x32xf32> -> vector<32x64xf32>
    %c0_382 = arith.constant 0 : index
    %c0_383 = arith.constant 0 : index
    %896 = vector.load %arg20[%c0_382, %c0_383] : memref<64x256xf32, #tpu.memory_space<vmem>>, vector<64x256xf32>
    %cst_384 = arith.constant dense<0.000000e+00> : vector<32x256xf32>
    %897 = tpu.matmul %895, %896, %cst_384 {dimension_numbers = #tpu.dot_dimension_numbers<[1], [0], [0], [1], [0, 0, 1, 1], [], []>} : vector<32x64xf32>, vector<64x256xf32>, vector<32x256xf32> -> vector<32x256xf32>
    %c0_385 = arith.constant 0 : index
    %c0_386 = arith.constant 0 : index
    %898 = vector.load %arg21[%c0_385, %c0_386] : memref<1x256xf32, #tpu.memory_space<vmem>>, vector<1x256xf32>
    %899 = vector.broadcast %898 : vector<1x256xf32> to vector<32x256xf32>
    %900 = arith.addf %897, %899 : vector<32x256xf32>
    %c0_387 = arith.constant 0 : index
    %c0_388 = arith.constant 0 : index
    %901 = vector.load %arg22[%c0_387, %c0_388] : memref<64x128xf32, #tpu.memory_space<vmem>>, vector<64x128xf32>
    %cst_389 = arith.constant 0.000000e+00 : f32
    %902 = vector.broadcast %cst_389 : f32 to vector<4x32xf32>
    %cst_390 = arith.constant 0.000000e+00 : f32
    %903 = vector.broadcast %cst_390 : f32 to vector<4x32xf32>
    %904 = vector.extract_strided_slice %900 {offsets = [0, 0], sizes = [2, 128], strides = [1, 1]} : vector<32x256xf32> to vector<2x128xf32>
    %905 = vector.extract_strided_slice %900 {offsets = [30, 128], sizes = [2, 128], strides = [1, 1]} : vector<32x256xf32> to vector<2x128xf32>
    %906 = tpu.concatenate %904, %905 in 0 : vector<2x128xf32>, vector<2x128xf32> -> vector<4x128xf32>
    %c0_391 = arith.constant 0 : index
    %c0_392 = arith.constant 0 : index
    %c0_393 = arith.constant 0 : index
    %907 = vector.load %arg1[%c0_391, %c0_392, %c0_393] : memref<16x2x1xf32, #tpu.memory_space<vmem>>, vector<1x2x1xf32>
    %908 = vector.shape_cast %907 : vector<1x2x1xf32> to vector<2x1xf32>
    %c15_394 = arith.constant 15 : index
    %c0_395 = arith.constant 0 : index
    %c0_396 = arith.constant 0 : index
    %909 = vector.load %arg1[%c15_394, %c0_395, %c0_396] : memref<16x2x1xf32, #tpu.memory_space<vmem>>, vector<1x2x1xf32>
    %910 = vector.shape_cast %909 : vector<1x2x1xf32> to vector<2x1xf32>
    %911 = tpu.concatenate %908, %910 in 0 : vector<2x1xf32>, vector<2x1xf32> -> vector<4x1xf32>
    %912 = vector.broadcast %146 : vector<4x1xf32> to vector<4x32xf32>
    %913 = arith.mulf %902, %912 : vector<4x32xf32>
    %914 = vector.broadcast %148 : vector<4x1xf32> to vector<4x32xf32>
    %915 = arith.mulf %902, %914 : vector<4x32xf32>
    %916 = tpu.concatenate %913, %915 in 1 : vector<4x32xf32>, vector<4x32xf32> -> vector<4x64xf32>
    %cst_397 = arith.constant dense<0.000000e+00> : vector<4x128xf32>
    %917 = tpu.matmul %916, %901, %cst_397 {dimension_numbers = #tpu.dot_dimension_numbers<[1], [0], [0], [1], [0, 0, 1, 1], [], []>} : vector<4x64xf32>, vector<64x128xf32>, vector<4x128xf32> -> vector<4x128xf32>
    %918 = arith.addf %906, %917 : vector<4x128xf32>
    %919 = arith.negf %918 : vector<4x128xf32>
    %920 = math.exp %919 : vector<4x128xf32>
    %cst_398 = arith.constant 1.000000e+00 : f32
    %921 = vector.broadcast %cst_398 : f32 to vector<4x128xf32>
    %922 = arith.addf %921, %920 : vector<4x128xf32>
    %923 = arith.divf %921, %922 : vector<4x128xf32>
    %924 = math.tanh %918 : vector<4x128xf32>
    %925 = vector.extract_strided_slice %923 {offsets = [0, 0], sizes = [4, 32], strides = [1, 1]} : vector<4x128xf32> to vector<4x32xf32>
    %926 = vector.extract_strided_slice %923 {offsets = [0, 32], sizes = [4, 32], strides = [1, 1]} : vector<4x128xf32> to vector<4x32xf32>
    %927 = vector.extract_strided_slice %924 {offsets = [0, 64], sizes = [4, 32], strides = [1, 1]} : vector<4x128xf32> to vector<4x32xf32>
    %928 = vector.extract_strided_slice %923 {offsets = [0, 96], sizes = [4, 32], strides = [1, 1]} : vector<4x128xf32> to vector<4x32xf32>
    %929 = arith.mulf %926, %903 : vector<4x32xf32>
    %930 = arith.mulf %925, %927 : vector<4x32xf32>
    %931 = arith.addf %929, %930 : vector<4x32xf32>
    %932 = vector.broadcast %911 : vector<4x1xf32> to vector<4x32xf32>
    %933 = arith.mulf %931, %932 : vector<4x32xf32>
    %934 = math.tanh %933 : vector<4x32xf32>
    %935 = arith.mulf %928, %934 : vector<4x32xf32>
    %936 = vector.broadcast %911 : vector<4x1xf32> to vector<4x32xf32>
    %937 = arith.mulf %935, %936 : vector<4x32xf32>
    %938 = vector.extract_strided_slice %937 {offsets = [0, 0], sizes = [2, 32], strides = [1, 1]} : vector<4x32xf32> to vector<2x32xf32>
    %c0_399 = arith.constant 0 : index
    %c0_400 = arith.constant 0 : index
    %c0_401 = arith.constant 0 : index
    %939 = vector.load %arg26[%c0_399, %c0_400, %c0_401] : memref<16x2x32xf32, #tpu.memory_space<vmem>>, vector<1x2x32xf32>
    %940 = vector.shape_cast %939 : vector<1x2x32xf32> to vector<2x32xf32>
    %941 = vector.shape_cast %938 : vector<2x32xf32> to vector<1x2x32xf32>
    tpu.vector_store %arg26[%c0_399, %c0_400, %c0_401], %941 {strides = array<i32>} : memref<16x2x32xf32, #tpu.memory_space<vmem>>, vector<1x2x32xf32>,
    %942 = vector.extract_strided_slice %937 {offsets = [2, 0], sizes = [2, 32], strides = [1, 1]} : vector<4x32xf32> to vector<2x32xf32>
    %c15_402 = arith.constant 15 : index
    %c0_403 = arith.constant 0 : index
    %c0_404 = arith.constant 0 : index
    %943 = vector.load %arg27[%c15_402, %c0_403, %c0_404] : memref<16x2x32xf32, #tpu.memory_space<vmem>>, vector<1x2x32xf32>
    %944 = vector.shape_cast %943 : vector<1x2x32xf32> to vector<2x32xf32>
    %945 = vector.shape_cast %942 : vector<2x32xf32> to vector<1x2x32xf32>
    tpu.vector_store %arg27[%c15_402, %c0_403, %c0_404], %945 {strides = array<i32>} : memref<16x2x32xf32, #tpu.memory_space<vmem>>, vector<1x2x32xf32>,
    %946 = vector.extract_strided_slice %900 {offsets = [2, 0], sizes = [2, 128], strides = [1, 1]} : vector<32x256xf32> to vector<2x128xf32>
    %947 = vector.extract_strided_slice %900 {offsets = [28, 128], sizes = [2, 128], strides = [1, 1]} : vector<32x256xf32> to vector<2x128xf32>
    %948 = tpu.concatenate %946, %947 in 0 : vector<2x128xf32>, vector<2x128xf32> -> vector<4x128xf32>
    %c1_405 = arith.constant 1 : index
    %c0_406 = arith.constant 0 : index
    %c0_407 = arith.constant 0 : index
    %949 = vector.load %arg1[%c1_405, %c0_406, %c0_407] : memref<16x2x1xf32, #tpu.memory_space<vmem>>, vector<1x2x1xf32>
    %950 = vector.shape_cast %949 : vector<1x2x1xf32> to vector<2x1xf32>
    %c14_408 = arith.constant 14 : index
    %c0_409 = arith.constant 0 : index
    %c0_410 = arith.constant 0 : index
    %951 = vector.load %arg1[%c14_408, %c0_409, %c0_410] : memref<16x2x1xf32, #tpu.memory_space<vmem>>, vector<1x2x1xf32>
    %952 = vector.shape_cast %951 : vector<1x2x1xf32> to vector<2x1xf32>
    %953 = tpu.concatenate %950, %952 in 0 : vector<2x1xf32>, vector<2x1xf32> -> vector<4x1xf32>
    %954 = vector.broadcast %146 : vector<4x1xf32> to vector<4x32xf32>
    %955 = arith.mulf %937, %954 : vector<4x32xf32>
    %956 = vector.broadcast %148 : vector<4x1xf32> to vector<4x32xf32>
    %957 = arith.mulf %937, %956 : vector<4x32xf32>
    %958 = tpu.concatenate %955, %957 in 1 : vector<4x32xf32>, vector<4x32xf32> -> vector<4x64xf32>
    %cst_411 = arith.constant dense<0.000000e+00> : vector<4x128xf32>
    %959 = tpu.matmul %958, %901, %cst_411 {dimension_numbers = #tpu.dot_dimension_numbers<[1], [0], [0], [1], [0, 0, 1, 1], [], []>} : vector<4x64xf32>, vector<64x128xf32>, vector<4x128xf32> -> vector<4x128xf32>
    %960 = arith.addf %948, %959 : vector<4x128xf32>
    %961 = arith.negf %960 : vector<4x128xf32>
    %962 = math.exp %961 : vector<4x128xf32>
    %cst_412 = arith.constant 1.000000e+00 : f32
    %963 = vector.broadcast %cst_412 : f32 to vector<4x128xf32>
    %964 = arith.addf %963, %962 : vector<4x128xf32>
    %965 = arith.divf %963, %964 : vector<4x128xf32>
    %966 = math.tanh %960 : vector<4x128xf32>
    %967 = vector.extract_strided_slice %965 {offsets = [0, 0], sizes = [4, 32], strides = [1, 1]} : vector<4x128xf32> to vector<4x32xf32>
    %968 = vector.extract_strided_slice %965 {offsets = [0, 32], sizes = [4, 32], strides = [1, 1]} : vector<4x128xf32> to vector<4x32xf32>
    %969 = vector.extract_strided_slice %966 {offsets = [0, 64], sizes = [4, 32], strides = [1, 1]} : vector<4x128xf32> to vector<4x32xf32>
    %970 = vector.extract_strided_slice %965 {offsets = [0, 96], sizes = [4, 32], strides = [1, 1]} : vector<4x128xf32> to vector<4x32xf32>
    %971 = arith.mulf %968, %933 : vector<4x32xf32>
    %972 = arith.mulf %967, %969 : vector<4x32xf32>
    %973 = arith.addf %971, %972 : vector<4x32xf32>
    %974 = vector.broadcast %953 : vector<4x1xf32> to vector<4x32xf32>
    %975 = arith.mulf %973, %974 : vector<4x32xf32>
    %976 = math.tanh %975 : vector<4x32xf32>
    %977 = arith.mulf %970, %976 : vector<4x32xf32>
    %978 = vector.broadcast %953 : vector<4x1xf32> to vector<4x32xf32>
    %979 = arith.mulf %977, %978 : vector<4x32xf32>
    %980 = vector.extract_strided_slice %979 {offsets = [0, 0], sizes = [2, 32], strides = [1, 1]} : vector<4x32xf32> to vector<2x32xf32>
    %c1_413 = arith.constant 1 : index
    %c0_414 = arith.constant 0 : index
    %c0_415 = arith.constant 0 : index
    %981 = vector.load %arg26[%c1_413, %c0_414, %c0_415] : memref<16x2x32xf32, #tpu.memory_space<vmem>>, vector<1x2x32xf32>
    %982 = vector.shape_cast %981 : vector<1x2x32xf32> to vector<2x32xf32>
    %983 = vector.shape_cast %980 : vector<2x32xf32> to vector<1x2x32xf32>
    tpu.vector_store %arg26[%c1_413, %c0_414, %c0_415], %983 {strides = array<i32>} : memref<16x2x32xf32, #tpu.memory_space<vmem>>, vector<1x2x32xf32>,
    %984 = vector.extract_strided_slice %979 {offsets = [2, 0], sizes = [2, 32], strides = [1, 1]} : vector<4x32xf32> to vector<2x32xf32>
    %c14_416 = arith.constant 14 : index
    %c0_417 = arith.constant 0 : index
    %c0_418 = arith.constant 0 : index
    %985 = vector.load %arg27[%c14_416, %c0_417, %c0_418] : memref<16x2x32xf32, #tpu.memory_space<vmem>>, vector<1x2x32xf32>
    %986 = vector.shape_cast %985 : vector<1x2x32xf32> to vector<2x32xf32>
    %987 = vector.shape_cast %984 : vector<2x32xf32> to vector<1x2x32xf32>
    tpu.vector_store %arg27[%c14_416, %c0_417, %c0_418], %987 {strides = array<i32>} : memref<16x2x32xf32, #tpu.memory_space<vmem>>, vector<1x2x32xf32>,
    %988 = vector.extract_strided_slice %900 {offsets = [4, 0], sizes = [2, 128], strides = [1, 1]} : vector<32x256xf32> to vector<2x128xf32>
    %989 = vector.extract_strided_slice %900 {offsets = [26, 128], sizes = [2, 128], strides = [1, 1]} : vector<32x256xf32> to vector<2x128xf32>
    %990 = tpu.concatenate %988, %989 in 0 : vector<2x128xf32>, vector<2x128xf32> -> vector<4x128xf32>
    %c2_419 = arith.constant 2 : index
    %c0_420 = arith.constant 0 : index
    %c0_421 = arith.constant 0 : index
    %991 = vector.load %arg1[%c2_419, %c0_420, %c0_421] : memref<16x2x1xf32, #tpu.memory_space<vmem>>, vector<1x2x1xf32>
    %992 = vector.shape_cast %991 : vector<1x2x1xf32> to vector<2x1xf32>
    %c13_422 = arith.constant 13 : index
    %c0_423 = arith.constant 0 : index
    %c0_424 = arith.constant 0 : index
    %993 = vector.load %arg1[%c13_422, %c0_423, %c0_424] : memref<16x2x1xf32, #tpu.memory_space<vmem>>, vector<1x2x1xf32>
    %994 = vector.shape_cast %993 : vector<1x2x1xf32> to vector<2x1xf32>
    %995 = tpu.concatenate %992, %994 in 0 : vector<2x1xf32>, vector<2x1xf32> -> vector<4x1xf32>
    %996 = vector.broadcast %146 : vector<4x1xf32> to vector<4x32xf32>
    %997 = arith.mulf %979, %996 : vector<4x32xf32>
    %998 = vector.broadcast %148 : vector<4x1xf32> to vector<4x32xf32>
    %999 = arith.mulf %979, %998 : vector<4x32xf32>
    %1000 = tpu.concatenate %997, %999 in 1 : vector<4x32xf32>, vector<4x32xf32> -> vector<4x64xf32>
    %cst_425 = arith.constant dense<0.000000e+00> : vector<4x128xf32>
    %1001 = tpu.matmul %1000, %901, %cst_425 {dimension_numbers = #tpu.dot_dimension_numbers<[1], [0], [0], [1], [0, 0, 1, 1], [], []>} : vector<4x64xf32>, vector<64x128xf32>, vector<4x128xf32> -> vector<4x128xf32>
    %1002 = arith.addf %990, %1001 : vector<4x128xf32>
    %1003 = arith.negf %1002 : vector<4x128xf32>
    %1004 = math.exp %1003 : vector<4x128xf32>
    %cst_426 = arith.constant 1.000000e+00 : f32
    %1005 = vector.broadcast %cst_426 : f32 to vector<4x128xf32>
    %1006 = arith.addf %1005, %1004 : vector<4x128xf32>
    %1007 = arith.divf %1005, %1006 : vector<4x128xf32>
    %1008 = math.tanh %1002 : vector<4x128xf32>
    %1009 = vector.extract_strided_slice %1007 {offsets = [0, 0], sizes = [4, 32], strides = [1, 1]} : vector<4x128xf32> to vector<4x32xf32>
    %1010 = vector.extract_strided_slice %1007 {offsets = [0, 32], sizes = [4, 32], strides = [1, 1]} : vector<4x128xf32> to vector<4x32xf32>
    %1011 = vector.extract_strided_slice %1008 {offsets = [0, 64], sizes = [4, 32], strides = [1, 1]} : vector<4x128xf32> to vector<4x32xf32>
    %1012 = vector.extract_strided_slice %1007 {offsets = [0, 96], sizes = [4, 32], strides = [1, 1]} : vector<4x128xf32> to vector<4x32xf32>
    %1013 = arith.mulf %1010, %975 : vector<4x32xf32>
    %1014 = arith.mulf %1009, %1011 : vector<4x32xf32>
    %1015 = arith.addf %1013, %1014 : vector<4x32xf32>
    %1016 = vector.broadcast %995 : vector<4x1xf32> to vector<4x32xf32>
    %1017 = arith.mulf %1015, %1016 : vector<4x32xf32>
    %1018 = math.tanh %1017 : vector<4x32xf32>
    %1019 = arith.mulf %1012, %1018 : vector<4x32xf32>
    %1020 = vector.broadcast %995 : vector<4x1xf32> to vector<4x32xf32>
    %1021 = arith.mulf %1019, %1020 : vector<4x32xf32>
    %1022 = vector.extract_strided_slice %1021 {offsets = [0, 0], sizes = [2, 32], strides = [1, 1]} : vector<4x32xf32> to vector<2x32xf32>
    %c2_427 = arith.constant 2 : index
    %c0_428 = arith.constant 0 : index
    %c0_429 = arith.constant 0 : index
    %1023 = vector.load %arg26[%c2_427, %c0_428, %c0_429] : memref<16x2x32xf32, #tpu.memory_space<vmem>>, vector<1x2x32xf32>
    %1024 = vector.shape_cast %1023 : vector<1x2x32xf32> to vector<2x32xf32>
    %1025 = vector.shape_cast %1022 : vector<2x32xf32> to vector<1x2x32xf32>
    tpu.vector_store %arg26[%c2_427, %c0_428, %c0_429], %1025 {strides = array<i32>} : memref<16x2x32xf32, #tpu.memory_space<vmem>>, vector<1x2x32xf32>,
    %1026 = vector.extract_strided_slice %1021 {offsets = [2, 0], sizes = [2, 32], strides = [1, 1]} : vector<4x32xf32> to vector<2x32xf32>
    %c13_430 = arith.constant 13 : index
    %c0_431 = arith.constant 0 : index
    %c0_432 = arith.constant 0 : index
    %1027 = vector.load %arg27[%c13_430, %c0_431, %c0_432] : memref<16x2x32xf32, #tpu.memory_space<vmem>>, vector<1x2x32xf32>
    %1028 = vector.shape_cast %1027 : vector<1x2x32xf32> to vector<2x32xf32>
    %1029 = vector.shape_cast %1026 : vector<2x32xf32> to vector<1x2x32xf32>
    tpu.vector_store %arg27[%c13_430, %c0_431, %c0_432], %1029 {strides = array<i32>} : memref<16x2x32xf32, #tpu.memory_space<vmem>>, vector<1x2x32xf32>,
    %1030 = vector.extract_strided_slice %900 {offsets = [6, 0], sizes = [2, 128], strides = [1, 1]} : vector<32x256xf32> to vector<2x128xf32>
    %1031 = vector.extract_strided_slice %900 {offsets = [24, 128], sizes = [2, 128], strides = [1, 1]} : vector<32x256xf32> to vector<2x128xf32>
    %1032 = tpu.concatenate %1030, %1031 in 0 : vector<2x128xf32>, vector<2x128xf32> -> vector<4x128xf32>
    %c3_433 = arith.constant 3 : index
    %c0_434 = arith.constant 0 : index
    %c0_435 = arith.constant 0 : index
    %1033 = vector.load %arg1[%c3_433, %c0_434, %c0_435] : memref<16x2x1xf32, #tpu.memory_space<vmem>>, vector<1x2x1xf32>
    %1034 = vector.shape_cast %1033 : vector<1x2x1xf32> to vector<2x1xf32>
    %c12_436 = arith.constant 12 : index
    %c0_437 = arith.constant 0 : index
    %c0_438 = arith.constant 0 : index
    %1035 = vector.load %arg1[%c12_436, %c0_437, %c0_438] : memref<16x2x1xf32, #tpu.memory_space<vmem>>, vector<1x2x1xf32>
    %1036 = vector.shape_cast %1035 : vector<1x2x1xf32> to vector<2x1xf32>
    %1037 = tpu.concatenate %1034, %1036 in 0 : vector<2x1xf32>, vector<2x1xf32> -> vector<4x1xf32>
    %1038 = vector.broadcast %146 : vector<4x1xf32> to vector<4x32xf32>
    %1039 = arith.mulf %1021, %1038 : vector<4x32xf32>
    %1040 = vector.broadcast %148 : vector<4x1xf32> to vector<4x32xf32>
    %1041 = arith.mulf %1021, %1040 : vector<4x32xf32>
    %1042 = tpu.concatenate %1039, %1041 in 1 : vector<4x32xf32>, vector<4x32xf32> -> vector<4x64xf32>
    %cst_439 = arith.constant dense<0.000000e+00> : vector<4x128xf32>
    %1043 = tpu.matmul %1042, %901, %cst_439 {dimension_numbers = #tpu.dot_dimension_numbers<[1], [0], [0], [1], [0, 0, 1, 1], [], []>} : vector<4x64xf32>, vector<64x128xf32>, vector<4x128xf32> -> vector<4x128xf32>
    %1044 = arith.addf %1032, %1043 : vector<4x128xf32>
    %1045 = arith.negf %1044 : vector<4x128xf32>
    %1046 = math.exp %1045 : vector<4x128xf32>
    %cst_440 = arith.constant 1.000000e+00 : f32
    %1047 = vector.broadcast %cst_440 : f32 to vector<4x128xf32>
    %1048 = arith.addf %1047, %1046 : vector<4x128xf32>
    %1049 = arith.divf %1047, %1048 : vector<4x128xf32>
    %1050 = math.tanh %1044 : vector<4x128xf32>
    %1051 = vector.extract_strided_slice %1049 {offsets = [0, 0], sizes = [4, 32], strides = [1, 1]} : vector<4x128xf32> to vector<4x32xf32>
    %1052 = vector.extract_strided_slice %1049 {offsets = [0, 32], sizes = [4, 32], strides = [1, 1]} : vector<4x128xf32> to vector<4x32xf32>
    %1053 = vector.extract_strided_slice %1050 {offsets = [0, 64], sizes = [4, 32], strides = [1, 1]} : vector<4x128xf32> to vector<4x32xf32>
    %1054 = vector.extract_strided_slice %1049 {offsets = [0, 96], sizes = [4, 32], strides = [1, 1]} : vector<4x128xf32> to vector<4x32xf32>
    %1055 = arith.mulf %1052, %1017 : vector<4x32xf32>
    %1056 = arith.mulf %1051, %1053 : vector<4x32xf32>
    %1057 = arith.addf %1055, %1056 : vector<4x32xf32>
    %1058 = vector.broadcast %1037 : vector<4x1xf32> to vector<4x32xf32>
    %1059 = arith.mulf %1057, %1058 : vector<4x32xf32>
    %1060 = math.tanh %1059 : vector<4x32xf32>
    %1061 = arith.mulf %1054, %1060 : vector<4x32xf32>
    %1062 = vector.broadcast %1037 : vector<4x1xf32> to vector<4x32xf32>
    %1063 = arith.mulf %1061, %1062 : vector<4x32xf32>
    %1064 = vector.extract_strided_slice %1063 {offsets = [0, 0], sizes = [2, 32], strides = [1, 1]} : vector<4x32xf32> to vector<2x32xf32>
    %c3_441 = arith.constant 3 : index
    %c0_442 = arith.constant 0 : index
    %c0_443 = arith.constant 0 : index
    %1065 = vector.load %arg26[%c3_441, %c0_442, %c0_443] : memref<16x2x32xf32, #tpu.memory_space<vmem>>, vector<1x2x32xf32>
    %1066 = vector.shape_cast %1065 : vector<1x2x32xf32> to vector<2x32xf32>
    %1067 = vector.shape_cast %1064 : vector<2x32xf32> to vector<1x2x32xf32>
    tpu.vector_store %arg26[%c3_441, %c0_442, %c0_443], %1067 {strides = array<i32>} : memref<16x2x32xf32, #tpu.memory_space<vmem>>, vector<1x2x32xf32>,
    %1068 = vector.extract_strided_slice %1063 {offsets = [2, 0], sizes = [2, 32], strides = [1, 1]} : vector<4x32xf32> to vector<2x32xf32>
    %c12_444 = arith.constant 12 : index
    %c0_445 = arith.constant 0 : index
    %c0_446 = arith.constant 0 : index
    %1069 = vector.load %arg27[%c12_444, %c0_445, %c0_446] : memref<16x2x32xf32, #tpu.memory_space<vmem>>, vector<1x2x32xf32>
    %1070 = vector.shape_cast %1069 : vector<1x2x32xf32> to vector<2x32xf32>
    %1071 = vector.shape_cast %1068 : vector<2x32xf32> to vector<1x2x32xf32>
    tpu.vector_store %arg27[%c12_444, %c0_445, %c0_446], %1071 {strides = array<i32>} : memref<16x2x32xf32, #tpu.memory_space<vmem>>, vector<1x2x32xf32>,
    %1072 = vector.extract_strided_slice %900 {offsets = [8, 0], sizes = [2, 128], strides = [1, 1]} : vector<32x256xf32> to vector<2x128xf32>
    %1073 = vector.extract_strided_slice %900 {offsets = [22, 128], sizes = [2, 128], strides = [1, 1]} : vector<32x256xf32> to vector<2x128xf32>
    %1074 = tpu.concatenate %1072, %1073 in 0 : vector<2x128xf32>, vector<2x128xf32> -> vector<4x128xf32>
    %c4_447 = arith.constant 4 : index
    %c0_448 = arith.constant 0 : index
    %c0_449 = arith.constant 0 : index
    %1075 = vector.load %arg1[%c4_447, %c0_448, %c0_449] : memref<16x2x1xf32, #tpu.memory_space<vmem>>, vector<1x2x1xf32>
    %1076 = vector.shape_cast %1075 : vector<1x2x1xf32> to vector<2x1xf32>
    %c11_450 = arith.constant 11 : index
    %c0_451 = arith.constant 0 : index
    %c0_452 = arith.constant 0 : index
    %1077 = vector.load %arg1[%c11_450, %c0_451, %c0_452] : memref<16x2x1xf32, #tpu.memory_space<vmem>>, vector<1x2x1xf32>
    %1078 = vector.shape_cast %1077 : vector<1x2x1xf32> to vector<2x1xf32>
    %1079 = tpu.concatenate %1076, %1078 in 0 : vector<2x1xf32>, vector<2x1xf32> -> vector<4x1xf32>
    %1080 = vector.broadcast %146 : vector<4x1xf32> to vector<4x32xf32>
    %1081 = arith.mulf %1063, %1080 : vector<4x32xf32>
    %1082 = vector.broadcast %148 : vector<4x1xf32> to vector<4x32xf32>
    %1083 = arith.mulf %1063, %1082 : vector<4x32xf32>
    %1084 = tpu.concatenate %1081, %1083 in 1 : vector<4x32xf32>, vector<4x32xf32> -> vector<4x64xf32>
    %cst_453 = arith.constant dense<0.000000e+00> : vector<4x128xf32>
    %1085 = tpu.matmul %1084, %901, %cst_453 {dimension_numbers = #tpu.dot_dimension_numbers<[1], [0], [0], [1], [0, 0, 1, 1], [], []>} : vector<4x64xf32>, vector<64x128xf32>, vector<4x128xf32> -> vector<4x128xf32>
    %1086 = arith.addf %1074, %1085 : vector<4x128xf32>
    %1087 = arith.negf %1086 : vector<4x128xf32>
    %1088 = math.exp %1087 : vector<4x128xf32>
    %cst_454 = arith.constant 1.000000e+00 : f32
    %1089 = vector.broadcast %cst_454 : f32 to vector<4x128xf32>
    %1090 = arith.addf %1089, %1088 : vector<4x128xf32>
    %1091 = arith.divf %1089, %1090 : vector<4x128xf32>
    %1092 = math.tanh %1086 : vector<4x128xf32>
    %1093 = vector.extract_strided_slice %1091 {offsets = [0, 0], sizes = [4, 32], strides = [1, 1]} : vector<4x128xf32> to vector<4x32xf32>
    %1094 = vector.extract_strided_slice %1091 {offsets = [0, 32], sizes = [4, 32], strides = [1, 1]} : vector<4x128xf32> to vector<4x32xf32>
    %1095 = vector.extract_strided_slice %1092 {offsets = [0, 64], sizes = [4, 32], strides = [1, 1]} : vector<4x128xf32> to vector<4x32xf32>
    %1096 = vector.extract_strided_slice %1091 {offsets = [0, 96], sizes = [4, 32], strides = [1, 1]} : vector<4x128xf32> to vector<4x32xf32>
    %1097 = arith.mulf %1094, %1059 : vector<4x32xf32>
    %1098 = arith.mulf %1093, %1095 : vector<4x32xf32>
    %1099 = arith.addf %1097, %1098 : vector<4x32xf32>
    %1100 = vector.broadcast %1079 : vector<4x1xf32> to vector<4x32xf32>
    %1101 = arith.mulf %1099, %1100 : vector<4x32xf32>
    %1102 = math.tanh %1101 : vector<4x32xf32>
    %1103 = arith.mulf %1096, %1102 : vector<4x32xf32>
    %1104 = vector.broadcast %1079 : vector<4x1xf32> to vector<4x32xf32>
    %1105 = arith.mulf %1103, %1104 : vector<4x32xf32>
    %1106 = vector.extract_strided_slice %1105 {offsets = [0, 0], sizes = [2, 32], strides = [1, 1]} : vector<4x32xf32> to vector<2x32xf32>
    %c4_455 = arith.constant 4 : index
    %c0_456 = arith.constant 0 : index
    %c0_457 = arith.constant 0 : index
    %1107 = vector.load %arg26[%c4_455, %c0_456, %c0_457] : memref<16x2x32xf32, #tpu.memory_space<vmem>>, vector<1x2x32xf32>
    %1108 = vector.shape_cast %1107 : vector<1x2x32xf32> to vector<2x32xf32>
    %1109 = vector.shape_cast %1106 : vector<2x32xf32> to vector<1x2x32xf32>
    tpu.vector_store %arg26[%c4_455, %c0_456, %c0_457], %1109 {strides = array<i32>} : memref<16x2x32xf32, #tpu.memory_space<vmem>>, vector<1x2x32xf32>,
    %1110 = vector.extract_strided_slice %1105 {offsets = [2, 0], sizes = [2, 32], strides = [1, 1]} : vector<4x32xf32> to vector<2x32xf32>
    %c11_458 = arith.constant 11 : index
    %c0_459 = arith.constant 0 : index
    %c0_460 = arith.constant 0 : index
    %1111 = vector.load %arg27[%c11_458, %c0_459, %c0_460] : memref<16x2x32xf32, #tpu.memory_space<vmem>>, vector<1x2x32xf32>
    %1112 = vector.shape_cast %1111 : vector<1x2x32xf32> to vector<2x32xf32>
    %1113 = vector.shape_cast %1110 : vector<2x32xf32> to vector<1x2x32xf32>
    tpu.vector_store %arg27[%c11_458, %c0_459, %c0_460], %1113 {strides = array<i32>} : memref<16x2x32xf32, #tpu.memory_space<vmem>>, vector<1x2x32xf32>,
    %1114 = vector.extract_strided_slice %900 {offsets = [10, 0], sizes = [2, 128], strides = [1, 1]} : vector<32x256xf32> to vector<2x128xf32>
    %1115 = vector.extract_strided_slice %900 {offsets = [20, 128], sizes = [2, 128], strides = [1, 1]} : vector<32x256xf32> to vector<2x128xf32>
    %1116 = tpu.concatenate %1114, %1115 in 0 : vector<2x128xf32>, vector<2x128xf32> -> vector<4x128xf32>
    %c5_461 = arith.constant 5 : index
    %c0_462 = arith.constant 0 : index
    %c0_463 = arith.constant 0 : index
    %1117 = vector.load %arg1[%c5_461, %c0_462, %c0_463] : memref<16x2x1xf32, #tpu.memory_space<vmem>>, vector<1x2x1xf32>
    %1118 = vector.shape_cast %1117 : vector<1x2x1xf32> to vector<2x1xf32>
    %c10_464 = arith.constant 10 : index
    %c0_465 = arith.constant 0 : index
    %c0_466 = arith.constant 0 : index
    %1119 = vector.load %arg1[%c10_464, %c0_465, %c0_466] : memref<16x2x1xf32, #tpu.memory_space<vmem>>, vector<1x2x1xf32>
    %1120 = vector.shape_cast %1119 : vector<1x2x1xf32> to vector<2x1xf32>
    %1121 = tpu.concatenate %1118, %1120 in 0 : vector<2x1xf32>, vector<2x1xf32> -> vector<4x1xf32>
    %1122 = vector.broadcast %146 : vector<4x1xf32> to vector<4x32xf32>
    %1123 = arith.mulf %1105, %1122 : vector<4x32xf32>
    %1124 = vector.broadcast %148 : vector<4x1xf32> to vector<4x32xf32>
    %1125 = arith.mulf %1105, %1124 : vector<4x32xf32>
    %1126 = tpu.concatenate %1123, %1125 in 1 : vector<4x32xf32>, vector<4x32xf32> -> vector<4x64xf32>
    %cst_467 = arith.constant dense<0.000000e+00> : vector<4x128xf32>
    %1127 = tpu.matmul %1126, %901, %cst_467 {dimension_numbers = #tpu.dot_dimension_numbers<[1], [0], [0], [1], [0, 0, 1, 1], [], []>} : vector<4x64xf32>, vector<64x128xf32>, vector<4x128xf32> -> vector<4x128xf32>
    %1128 = arith.addf %1116, %1127 : vector<4x128xf32>
    %1129 = arith.negf %1128 : vector<4x128xf32>
    %1130 = math.exp %1129 : vector<4x128xf32>
    %cst_468 = arith.constant 1.000000e+00 : f32
    %1131 = vector.broadcast %cst_468 : f32 to vector<4x128xf32>
    %1132 = arith.addf %1131, %1130 : vector<4x128xf32>
    %1133 = arith.divf %1131, %1132 : vector<4x128xf32>
    %1134 = math.tanh %1128 : vector<4x128xf32>
    %1135 = vector.extract_strided_slice %1133 {offsets = [0, 0], sizes = [4, 32], strides = [1, 1]} : vector<4x128xf32> to vector<4x32xf32>
    %1136 = vector.extract_strided_slice %1133 {offsets = [0, 32], sizes = [4, 32], strides = [1, 1]} : vector<4x128xf32> to vector<4x32xf32>
    %1137 = vector.extract_strided_slice %1134 {offsets = [0, 64], sizes = [4, 32], strides = [1, 1]} : vector<4x128xf32> to vector<4x32xf32>
    %1138 = vector.extract_strided_slice %1133 {offsets = [0, 96], sizes = [4, 32], strides = [1, 1]} : vector<4x128xf32> to vector<4x32xf32>
    %1139 = arith.mulf %1136, %1101 : vector<4x32xf32>
    %1140 = arith.mulf %1135, %1137 : vector<4x32xf32>
    %1141 = arith.addf %1139, %1140 : vector<4x32xf32>
    %1142 = vector.broadcast %1121 : vector<4x1xf32> to vector<4x32xf32>
    %1143 = arith.mulf %1141, %1142 : vector<4x32xf32>
    %1144 = math.tanh %1143 : vector<4x32xf32>
    %1145 = arith.mulf %1138, %1144 : vector<4x32xf32>
    %1146 = vector.broadcast %1121 : vector<4x1xf32> to vector<4x32xf32>
    %1147 = arith.mulf %1145, %1146 : vector<4x32xf32>
    %1148 = vector.extract_strided_slice %1147 {offsets = [0, 0], sizes = [2, 32], strides = [1, 1]} : vector<4x32xf32> to vector<2x32xf32>
    %c5_469 = arith.constant 5 : index
    %c0_470 = arith.constant 0 : index
    %c0_471 = arith.constant 0 : index
    %1149 = vector.load %arg26[%c5_469, %c0_470, %c0_471] : memref<16x2x32xf32, #tpu.memory_space<vmem>>, vector<1x2x32xf32>
    %1150 = vector.shape_cast %1149 : vector<1x2x32xf32> to vector<2x32xf32>
    %1151 = vector.shape_cast %1148 : vector<2x32xf32> to vector<1x2x32xf32>
    tpu.vector_store %arg26[%c5_469, %c0_470, %c0_471], %1151 {strides = array<i32>} : memref<16x2x32xf32, #tpu.memory_space<vmem>>, vector<1x2x32xf32>,
    %1152 = vector.extract_strided_slice %1147 {offsets = [2, 0], sizes = [2, 32], strides = [1, 1]} : vector<4x32xf32> to vector<2x32xf32>
    %c10_472 = arith.constant 10 : index
    %c0_473 = arith.constant 0 : index
    %c0_474 = arith.constant 0 : index
    %1153 = vector.load %arg27[%c10_472, %c0_473, %c0_474] : memref<16x2x32xf32, #tpu.memory_space<vmem>>, vector<1x2x32xf32>
    %1154 = vector.shape_cast %1153 : vector<1x2x32xf32> to vector<2x32xf32>
    %1155 = vector.shape_cast %1152 : vector<2x32xf32> to vector<1x2x32xf32>
    tpu.vector_store %arg27[%c10_472, %c0_473, %c0_474], %1155 {strides = array<i32>} : memref<16x2x32xf32, #tpu.memory_space<vmem>>, vector<1x2x32xf32>,
    %1156 = vector.extract_strided_slice %900 {offsets = [12, 0], sizes = [2, 128], strides = [1, 1]} : vector<32x256xf32> to vector<2x128xf32>
    %1157 = vector.extract_strided_slice %900 {offsets = [18, 128], sizes = [2, 128], strides = [1, 1]} : vector<32x256xf32> to vector<2x128xf32>
    %1158 = tpu.concatenate %1156, %1157 in 0 : vector<2x128xf32>, vector<2x128xf32> -> vector<4x128xf32>
    %c6_475 = arith.constant 6 : index
    %c0_476 = arith.constant 0 : index
    %c0_477 = arith.constant 0 : index
    %1159 = vector.load %arg1[%c6_475, %c0_476, %c0_477] : memref<16x2x1xf32, #tpu.memory_space<vmem>>, vector<1x2x1xf32>
    %1160 = vector.shape_cast %1159 : vector<1x2x1xf32> to vector<2x1xf32>
    %c9_478 = arith.constant 9 : index
    %c0_479 = arith.constant 0 : index
    %c0_480 = arith.constant 0 : index
    %1161 = vector.load %arg1[%c9_478, %c0_479, %c0_480] : memref<16x2x1xf32, #tpu.memory_space<vmem>>, vector<1x2x1xf32>
    %1162 = vector.shape_cast %1161 : vector<1x2x1xf32> to vector<2x1xf32>
    %1163 = tpu.concatenate %1160, %1162 in 0 : vector<2x1xf32>, vector<2x1xf32> -> vector<4x1xf32>
    %1164 = vector.broadcast %146 : vector<4x1xf32> to vector<4x32xf32>
    %1165 = arith.mulf %1147, %1164 : vector<4x32xf32>
    %1166 = vector.broadcast %148 : vector<4x1xf32> to vector<4x32xf32>
    %1167 = arith.mulf %1147, %1166 : vector<4x32xf32>
    %1168 = tpu.concatenate %1165, %1167 in 1 : vector<4x32xf32>, vector<4x32xf32> -> vector<4x64xf32>
    %cst_481 = arith.constant dense<0.000000e+00> : vector<4x128xf32>
    %1169 = tpu.matmul %1168, %901, %cst_481 {dimension_numbers = #tpu.dot_dimension_numbers<[1], [0], [0], [1], [0, 0, 1, 1], [], []>} : vector<4x64xf32>, vector<64x128xf32>, vector<4x128xf32> -> vector<4x128xf32>
    %1170 = arith.addf %1158, %1169 : vector<4x128xf32>
    %1171 = arith.negf %1170 : vector<4x128xf32>
    %1172 = math.exp %1171 : vector<4x128xf32>
    %cst_482 = arith.constant 1.000000e+00 : f32
    %1173 = vector.broadcast %cst_482 : f32 to vector<4x128xf32>
    %1174 = arith.addf %1173, %1172 : vector<4x128xf32>
    %1175 = arith.divf %1173, %1174 : vector<4x128xf32>
    %1176 = math.tanh %1170 : vector<4x128xf32>
    %1177 = vector.extract_strided_slice %1175 {offsets = [0, 0], sizes = [4, 32], strides = [1, 1]} : vector<4x128xf32> to vector<4x32xf32>
    %1178 = vector.extract_strided_slice %1175 {offsets = [0, 32], sizes = [4, 32], strides = [1, 1]} : vector<4x128xf32> to vector<4x32xf32>
    %1179 = vector.extract_strided_slice %1176 {offsets = [0, 64], sizes = [4, 32], strides = [1, 1]} : vector<4x128xf32> to vector<4x32xf32>
    %1180 = vector.extract_strided_slice %1175 {offsets = [0, 96], sizes = [4, 32], strides = [1, 1]} : vector<4x128xf32> to vector<4x32xf32>
    %1181 = arith.mulf %1178, %1143 : vector<4x32xf32>
    %1182 = arith.mulf %1177, %1179 : vector<4x32xf32>
    %1183 = arith.addf %1181, %1182 : vector<4x32xf32>
    %1184 = vector.broadcast %1163 : vector<4x1xf32> to vector<4x32xf32>
    %1185 = arith.mulf %1183, %1184 : vector<4x32xf32>
    %1186 = math.tanh %1185 : vector<4x32xf32>
    %1187 = arith.mulf %1180, %1186 : vector<4x32xf32>
    %1188 = vector.broadcast %1163 : vector<4x1xf32> to vector<4x32xf32>
    %1189 = arith.mulf %1187, %1188 : vector<4x32xf32>
    %1190 = vector.extract_strided_slice %1189 {offsets = [0, 0], sizes = [2, 32], strides = [1, 1]} : vector<4x32xf32> to vector<2x32xf32>
    %c6_483 = arith.constant 6 : index
    %c0_484 = arith.constant 0 : index
    %c0_485 = arith.constant 0 : index
    %1191 = vector.load %arg26[%c6_483, %c0_484, %c0_485] : memref<16x2x32xf32, #tpu.memory_space<vmem>>, vector<1x2x32xf32>
    %1192 = vector.shape_cast %1191 : vector<1x2x32xf32> to vector<2x32xf32>
    %1193 = vector.shape_cast %1190 : vector<2x32xf32> to vector<1x2x32xf32>
    tpu.vector_store %arg26[%c6_483, %c0_484, %c0_485], %1193 {strides = array<i32>} : memref<16x2x32xf32, #tpu.memory_space<vmem>>, vector<1x2x32xf32>,
    %1194 = vector.extract_strided_slice %1189 {offsets = [2, 0], sizes = [2, 32], strides = [1, 1]} : vector<4x32xf32> to vector<2x32xf32>
    %c9_486 = arith.constant 9 : index
    %c0_487 = arith.constant 0 : index
    %c0_488 = arith.constant 0 : index
    %1195 = vector.load %arg27[%c9_486, %c0_487, %c0_488] : memref<16x2x32xf32, #tpu.memory_space<vmem>>, vector<1x2x32xf32>
    %1196 = vector.shape_cast %1195 : vector<1x2x32xf32> to vector<2x32xf32>
    %1197 = vector.shape_cast %1194 : vector<2x32xf32> to vector<1x2x32xf32>
    tpu.vector_store %arg27[%c9_486, %c0_487, %c0_488], %1197 {strides = array<i32>} : memref<16x2x32xf32, #tpu.memory_space<vmem>>, vector<1x2x32xf32>,
    %1198 = vector.extract_strided_slice %900 {offsets = [14, 0], sizes = [2, 128], strides = [1, 1]} : vector<32x256xf32> to vector<2x128xf32>
    %1199 = vector.extract_strided_slice %900 {offsets = [16, 128], sizes = [2, 128], strides = [1, 1]} : vector<32x256xf32> to vector<2x128xf32>
    %1200 = tpu.concatenate %1198, %1199 in 0 : vector<2x128xf32>, vector<2x128xf32> -> vector<4x128xf32>
    %c7_489 = arith.constant 7 : index
    %c0_490 = arith.constant 0 : index
    %c0_491 = arith.constant 0 : index
    %1201 = vector.load %arg1[%c7_489, %c0_490, %c0_491] : memref<16x2x1xf32, #tpu.memory_space<vmem>>, vector<1x2x1xf32>
    %1202 = vector.shape_cast %1201 : vector<1x2x1xf32> to vector<2x1xf32>
    %c8_492 = arith.constant 8 : index
    %c0_493 = arith.constant 0 : index
    %c0_494 = arith.constant 0 : index
    %1203 = vector.load %arg1[%c8_492, %c0_493, %c0_494] : memref<16x2x1xf32, #tpu.memory_space<vmem>>, vector<1x2x1xf32>
    %1204 = vector.shape_cast %1203 : vector<1x2x1xf32> to vector<2x1xf32>
    %1205 = tpu.concatenate %1202, %1204 in 0 : vector<2x1xf32>, vector<2x1xf32> -> vector<4x1xf32>
    %1206 = vector.broadcast %146 : vector<4x1xf32> to vector<4x32xf32>
    %1207 = arith.mulf %1189, %1206 : vector<4x32xf32>
    %1208 = vector.broadcast %148 : vector<4x1xf32> to vector<4x32xf32>
    %1209 = arith.mulf %1189, %1208 : vector<4x32xf32>
    %1210 = tpu.concatenate %1207, %1209 in 1 : vector<4x32xf32>, vector<4x32xf32> -> vector<4x64xf32>
    %cst_495 = arith.constant dense<0.000000e+00> : vector<4x128xf32>
    %1211 = tpu.matmul %1210, %901, %cst_495 {dimension_numbers = #tpu.dot_dimension_numbers<[1], [0], [0], [1], [0, 0, 1, 1], [], []>} : vector<4x64xf32>, vector<64x128xf32>, vector<4x128xf32> -> vector<4x128xf32>
    %1212 = arith.addf %1200, %1211 : vector<4x128xf32>
    %1213 = arith.negf %1212 : vector<4x128xf32>
    %1214 = math.exp %1213 : vector<4x128xf32>
    %cst_496 = arith.constant 1.000000e+00 : f32
    %1215 = vector.broadcast %cst_496 : f32 to vector<4x128xf32>
    %1216 = arith.addf %1215, %1214 : vector<4x128xf32>
    %1217 = arith.divf %1215, %1216 : vector<4x128xf32>
    %1218 = math.tanh %1212 : vector<4x128xf32>
    %1219 = vector.extract_strided_slice %1217 {offsets = [0, 0], sizes = [4, 32], strides = [1, 1]} : vector<4x128xf32> to vector<4x32xf32>
    %1220 = vector.extract_strided_slice %1217 {offsets = [0, 32], sizes = [4, 32], strides = [1, 1]} : vector<4x128xf32> to vector<4x32xf32>
    %1221 = vector.extract_strided_slice %1218 {offsets = [0, 64], sizes = [4, 32], strides = [1, 1]} : vector<4x128xf32> to vector<4x32xf32>
    %1222 = vector.extract_strided_slice %1217 {offsets = [0, 96], sizes = [4, 32], strides = [1, 1]} : vector<4x128xf32> to vector<4x32xf32>
    %1223 = arith.mulf %1220, %1185 : vector<4x32xf32>
    %1224 = arith.mulf %1219, %1221 : vector<4x32xf32>
    %1225 = arith.addf %1223, %1224 : vector<4x32xf32>
    %1226 = vector.broadcast %1205 : vector<4x1xf32> to vector<4x32xf32>
    %1227 = arith.mulf %1225, %1226 : vector<4x32xf32>
    %1228 = math.tanh %1227 : vector<4x32xf32>
    %1229 = arith.mulf %1222, %1228 : vector<4x32xf32>
    %1230 = vector.broadcast %1205 : vector<4x1xf32> to vector<4x32xf32>
    %1231 = arith.mulf %1229, %1230 : vector<4x32xf32>
    %1232 = vector.extract_strided_slice %1231 {offsets = [0, 0], sizes = [2, 32], strides = [1, 1]} : vector<4x32xf32> to vector<2x32xf32>
    %c7_497 = arith.constant 7 : index
    %c0_498 = arith.constant 0 : index
    %c0_499 = arith.constant 0 : index
    %1233 = vector.load %arg26[%c7_497, %c0_498, %c0_499] : memref<16x2x32xf32, #tpu.memory_space<vmem>>, vector<1x2x32xf32>
    %1234 = vector.shape_cast %1233 : vector<1x2x32xf32> to vector<2x32xf32>
    %1235 = vector.shape_cast %1232 : vector<2x32xf32> to vector<1x2x32xf32>
    tpu.vector_store %arg26[%c7_497, %c0_498, %c0_499], %1235 {strides = array<i32>} : memref<16x2x32xf32, #tpu.memory_space<vmem>>, vector<1x2x32xf32>,
    %1236 = vector.extract_strided_slice %1231 {offsets = [2, 0], sizes = [2, 32], strides = [1, 1]} : vector<4x32xf32> to vector<2x32xf32>
    %c8_500 = arith.constant 8 : index
    %c0_501 = arith.constant 0 : index
    %c0_502 = arith.constant 0 : index
    %1237 = vector.load %arg27[%c8_500, %c0_501, %c0_502] : memref<16x2x32xf32, #tpu.memory_space<vmem>>, vector<1x2x32xf32>
    %1238 = vector.shape_cast %1237 : vector<1x2x32xf32> to vector<2x32xf32>
    %1239 = vector.shape_cast %1236 : vector<2x32xf32> to vector<1x2x32xf32>
    tpu.vector_store %arg27[%c8_500, %c0_501, %c0_502], %1239 {strides = array<i32>} : memref<16x2x32xf32, #tpu.memory_space<vmem>>, vector<1x2x32xf32>,
    %1240 = vector.extract_strided_slice %900 {offsets = [16, 0], sizes = [2, 128], strides = [1, 1]} : vector<32x256xf32> to vector<2x128xf32>
    %1241 = vector.extract_strided_slice %900 {offsets = [14, 128], sizes = [2, 128], strides = [1, 1]} : vector<32x256xf32> to vector<2x128xf32>
    %1242 = tpu.concatenate %1240, %1241 in 0 : vector<2x128xf32>, vector<2x128xf32> -> vector<4x128xf32>
    %c8_503 = arith.constant 8 : index
    %c0_504 = arith.constant 0 : index
    %c0_505 = arith.constant 0 : index
    %1243 = vector.load %arg1[%c8_503, %c0_504, %c0_505] : memref<16x2x1xf32, #tpu.memory_space<vmem>>, vector<1x2x1xf32>
    %1244 = vector.shape_cast %1243 : vector<1x2x1xf32> to vector<2x1xf32>
    %c7_506 = arith.constant 7 : index
    %c0_507 = arith.constant 0 : index
    %c0_508 = arith.constant 0 : index
    %1245 = vector.load %arg1[%c7_506, %c0_507, %c0_508] : memref<16x2x1xf32, #tpu.memory_space<vmem>>, vector<1x2x1xf32>
    %1246 = vector.shape_cast %1245 : vector<1x2x1xf32> to vector<2x1xf32>
    %1247 = tpu.concatenate %1244, %1246 in 0 : vector<2x1xf32>, vector<2x1xf32> -> vector<4x1xf32>
    %1248 = vector.broadcast %146 : vector<4x1xf32> to vector<4x32xf32>
    %1249 = arith.mulf %1231, %1248 : vector<4x32xf32>
    %1250 = vector.broadcast %148 : vector<4x1xf32> to vector<4x32xf32>
    %1251 = arith.mulf %1231, %1250 : vector<4x32xf32>
    %1252 = tpu.concatenate %1249, %1251 in 1 : vector<4x32xf32>, vector<4x32xf32> -> vector<4x64xf32>
    %cst_509 = arith.constant dense<0.000000e+00> : vector<4x128xf32>
    %1253 = tpu.matmul %1252, %901, %cst_509 {dimension_numbers = #tpu.dot_dimension_numbers<[1], [0], [0], [1], [0, 0, 1, 1], [], []>} : vector<4x64xf32>, vector<64x128xf32>, vector<4x128xf32> -> vector<4x128xf32>
    %1254 = arith.addf %1242, %1253 : vector<4x128xf32>
    %1255 = arith.negf %1254 : vector<4x128xf32>
    %1256 = math.exp %1255 : vector<4x128xf32>
    %cst_510 = arith.constant 1.000000e+00 : f32
    %1257 = vector.broadcast %cst_510 : f32 to vector<4x128xf32>
    %1258 = arith.addf %1257, %1256 : vector<4x128xf32>
    %1259 = arith.divf %1257, %1258 : vector<4x128xf32>
    %1260 = math.tanh %1254 : vector<4x128xf32>
    %1261 = vector.extract_strided_slice %1259 {offsets = [0, 0], sizes = [4, 32], strides = [1, 1]} : vector<4x128xf32> to vector<4x32xf32>
    %1262 = vector.extract_strided_slice %1259 {offsets = [0, 32], sizes = [4, 32], strides = [1, 1]} : vector<4x128xf32> to vector<4x32xf32>
    %1263 = vector.extract_strided_slice %1260 {offsets = [0, 64], sizes = [4, 32], strides = [1, 1]} : vector<4x128xf32> to vector<4x32xf32>
    %1264 = vector.extract_strided_slice %1259 {offsets = [0, 96], sizes = [4, 32], strides = [1, 1]} : vector<4x128xf32> to vector<4x32xf32>
    %1265 = arith.mulf %1262, %1227 : vector<4x32xf32>
    %1266 = arith.mulf %1261, %1263 : vector<4x32xf32>
    %1267 = arith.addf %1265, %1266 : vector<4x32xf32>
    %1268 = vector.broadcast %1247 : vector<4x1xf32> to vector<4x32xf32>
    %1269 = arith.mulf %1267, %1268 : vector<4x32xf32>
    %1270 = math.tanh %1269 : vector<4x32xf32>
    %1271 = arith.mulf %1264, %1270 : vector<4x32xf32>
    %1272 = vector.broadcast %1247 : vector<4x1xf32> to vector<4x32xf32>
    %1273 = arith.mulf %1271, %1272 : vector<4x32xf32>
    %1274 = vector.extract_strided_slice %1273 {offsets = [0, 0], sizes = [2, 32], strides = [1, 1]} : vector<4x32xf32> to vector<2x32xf32>
    %c8_511 = arith.constant 8 : index
    %c0_512 = arith.constant 0 : index
    %c0_513 = arith.constant 0 : index
    %1275 = vector.load %arg26[%c8_511, %c0_512, %c0_513] : memref<16x2x32xf32, #tpu.memory_space<vmem>>, vector<1x2x32xf32>
    %1276 = vector.shape_cast %1275 : vector<1x2x32xf32> to vector<2x32xf32>
    %1277 = vector.shape_cast %1274 : vector<2x32xf32> to vector<1x2x32xf32>
    tpu.vector_store %arg26[%c8_511, %c0_512, %c0_513], %1277 {strides = array<i32>} : memref<16x2x32xf32, #tpu.memory_space<vmem>>, vector<1x2x32xf32>,
    %1278 = vector.extract_strided_slice %1273 {offsets = [2, 0], sizes = [2, 32], strides = [1, 1]} : vector<4x32xf32> to vector<2x32xf32>
    %c7_514 = arith.constant 7 : index
    %c0_515 = arith.constant 0 : index
    %c0_516 = arith.constant 0 : index
    %1279 = vector.load %arg27[%c7_514, %c0_515, %c0_516] : memref<16x2x32xf32, #tpu.memory_space<vmem>>, vector<1x2x32xf32>
    %1280 = vector.shape_cast %1279 : vector<1x2x32xf32> to vector<2x32xf32>
    %1281 = vector.shape_cast %1278 : vector<2x32xf32> to vector<1x2x32xf32>
    tpu.vector_store %arg27[%c7_514, %c0_515, %c0_516], %1281 {strides = array<i32>} : memref<16x2x32xf32, #tpu.memory_space<vmem>>, vector<1x2x32xf32>,
    %1282 = vector.extract_strided_slice %900 {offsets = [18, 0], sizes = [2, 128], strides = [1, 1]} : vector<32x256xf32> to vector<2x128xf32>
    %1283 = vector.extract_strided_slice %900 {offsets = [12, 128], sizes = [2, 128], strides = [1, 1]} : vector<32x256xf32> to vector<2x128xf32>
    %1284 = tpu.concatenate %1282, %1283 in 0 : vector<2x128xf32>, vector<2x128xf32> -> vector<4x128xf32>
    %c9_517 = arith.constant 9 : index
    %c0_518 = arith.constant 0 : index
    %c0_519 = arith.constant 0 : index
    %1285 = vector.load %arg1[%c9_517, %c0_518, %c0_519] : memref<16x2x1xf32, #tpu.memory_space<vmem>>, vector<1x2x1xf32>
    %1286 = vector.shape_cast %1285 : vector<1x2x1xf32> to vector<2x1xf32>
    %c6_520 = arith.constant 6 : index
    %c0_521 = arith.constant 0 : index
    %c0_522 = arith.constant 0 : index
    %1287 = vector.load %arg1[%c6_520, %c0_521, %c0_522] : memref<16x2x1xf32, #tpu.memory_space<vmem>>, vector<1x2x1xf32>
    %1288 = vector.shape_cast %1287 : vector<1x2x1xf32> to vector<2x1xf32>
    %1289 = tpu.concatenate %1286, %1288 in 0 : vector<2x1xf32>, vector<2x1xf32> -> vector<4x1xf32>
    %1290 = vector.broadcast %146 : vector<4x1xf32> to vector<4x32xf32>
    %1291 = arith.mulf %1273, %1290 : vector<4x32xf32>
    %1292 = vector.broadcast %148 : vector<4x1xf32> to vector<4x32xf32>
    %1293 = arith.mulf %1273, %1292 : vector<4x32xf32>
    %1294 = tpu.concatenate %1291, %1293 in 1 : vector<4x32xf32>, vector<4x32xf32> -> vector<4x64xf32>
    %cst_523 = arith.constant dense<0.000000e+00> : vector<4x128xf32>
    %1295 = tpu.matmul %1294, %901, %cst_523 {dimension_numbers = #tpu.dot_dimension_numbers<[1], [0], [0], [1], [0, 0, 1, 1], [], []>} : vector<4x64xf32>, vector<64x128xf32>, vector<4x128xf32> -> vector<4x128xf32>
    %1296 = arith.addf %1284, %1295 : vector<4x128xf32>
    %1297 = arith.negf %1296 : vector<4x128xf32>
    %1298 = math.exp %1297 : vector<4x128xf32>
    %cst_524 = arith.constant 1.000000e+00 : f32
    %1299 = vector.broadcast %cst_524 : f32 to vector<4x128xf32>
    %1300 = arith.addf %1299, %1298 : vector<4x128xf32>
    %1301 = arith.divf %1299, %1300 : vector<4x128xf32>
    %1302 = math.tanh %1296 : vector<4x128xf32>
    %1303 = vector.extract_strided_slice %1301 {offsets = [0, 0], sizes = [4, 32], strides = [1, 1]} : vector<4x128xf32> to vector<4x32xf32>
    %1304 = vector.extract_strided_slice %1301 {offsets = [0, 32], sizes = [4, 32], strides = [1, 1]} : vector<4x128xf32> to vector<4x32xf32>
    %1305 = vector.extract_strided_slice %1302 {offsets = [0, 64], sizes = [4, 32], strides = [1, 1]} : vector<4x128xf32> to vector<4x32xf32>
    %1306 = vector.extract_strided_slice %1301 {offsets = [0, 96], sizes = [4, 32], strides = [1, 1]} : vector<4x128xf32> to vector<4x32xf32>
    %1307 = arith.mulf %1304, %1269 : vector<4x32xf32>
    %1308 = arith.mulf %1303, %1305 : vector<4x32xf32>
    %1309 = arith.addf %1307, %1308 : vector<4x32xf32>
    %1310 = vector.broadcast %1289 : vector<4x1xf32> to vector<4x32xf32>
    %1311 = arith.mulf %1309, %1310 : vector<4x32xf32>
    %1312 = math.tanh %1311 : vector<4x32xf32>
    %1313 = arith.mulf %1306, %1312 : vector<4x32xf32>
    %1314 = vector.broadcast %1289 : vector<4x1xf32> to vector<4x32xf32>
    %1315 = arith.mulf %1313, %1314 : vector<4x32xf32>
    %1316 = vector.extract_strided_slice %1315 {offsets = [0, 0], sizes = [2, 32], strides = [1, 1]} : vector<4x32xf32> to vector<2x32xf32>
    %c9_525 = arith.constant 9 : index
    %c0_526 = arith.constant 0 : index
    %c0_527 = arith.constant 0 : index
    %1317 = vector.load %arg26[%c9_525, %c0_526, %c0_527] : memref<16x2x32xf32, #tpu.memory_space<vmem>>, vector<1x2x32xf32>
    %1318 = vector.shape_cast %1317 : vector<1x2x32xf32> to vector<2x32xf32>
    %1319 = vector.shape_cast %1316 : vector<2x32xf32> to vector<1x2x32xf32>
    tpu.vector_store %arg26[%c9_525, %c0_526, %c0_527], %1319 {strides = array<i32>} : memref<16x2x32xf32, #tpu.memory_space<vmem>>, vector<1x2x32xf32>,
    %1320 = vector.extract_strided_slice %1315 {offsets = [2, 0], sizes = [2, 32], strides = [1, 1]} : vector<4x32xf32> to vector<2x32xf32>
    %c6_528 = arith.constant 6 : index
    %c0_529 = arith.constant 0 : index
    %c0_530 = arith.constant 0 : index
    %1321 = vector.load %arg27[%c6_528, %c0_529, %c0_530] : memref<16x2x32xf32, #tpu.memory_space<vmem>>, vector<1x2x32xf32>
    %1322 = vector.shape_cast %1321 : vector<1x2x32xf32> to vector<2x32xf32>
    %1323 = vector.shape_cast %1320 : vector<2x32xf32> to vector<1x2x32xf32>
    tpu.vector_store %arg27[%c6_528, %c0_529, %c0_530], %1323 {strides = array<i32>} : memref<16x2x32xf32, #tpu.memory_space<vmem>>, vector<1x2x32xf32>,
    %1324 = vector.extract_strided_slice %900 {offsets = [20, 0], sizes = [2, 128], strides = [1, 1]} : vector<32x256xf32> to vector<2x128xf32>
    %1325 = vector.extract_strided_slice %900 {offsets = [10, 128], sizes = [2, 128], strides = [1, 1]} : vector<32x256xf32> to vector<2x128xf32>
    %1326 = tpu.concatenate %1324, %1325 in 0 : vector<2x128xf32>, vector<2x128xf32> -> vector<4x128xf32>
    %c10_531 = arith.constant 10 : index
    %c0_532 = arith.constant 0 : index
    %c0_533 = arith.constant 0 : index
    %1327 = vector.load %arg1[%c10_531, %c0_532, %c0_533] : memref<16x2x1xf32, #tpu.memory_space<vmem>>, vector<1x2x1xf32>
    %1328 = vector.shape_cast %1327 : vector<1x2x1xf32> to vector<2x1xf32>
    %c5_534 = arith.constant 5 : index
    %c0_535 = arith.constant 0 : index
    %c0_536 = arith.constant 0 : index
    %1329 = vector.load %arg1[%c5_534, %c0_535, %c0_536] : memref<16x2x1xf32, #tpu.memory_space<vmem>>, vector<1x2x1xf32>
    %1330 = vector.shape_cast %1329 : vector<1x2x1xf32> to vector<2x1xf32>
    %1331 = tpu.concatenate %1328, %1330 in 0 : vector<2x1xf32>, vector<2x1xf32> -> vector<4x1xf32>
    %1332 = vector.broadcast %146 : vector<4x1xf32> to vector<4x32xf32>
    %1333 = arith.mulf %1315, %1332 : vector<4x32xf32>
    %1334 = vector.broadcast %148 : vector<4x1xf32> to vector<4x32xf32>
    %1335 = arith.mulf %1315, %1334 : vector<4x32xf32>
    %1336 = tpu.concatenate %1333, %1335 in 1 : vector<4x32xf32>, vector<4x32xf32> -> vector<4x64xf32>
    %cst_537 = arith.constant dense<0.000000e+00> : vector<4x128xf32>
    %1337 = tpu.matmul %1336, %901, %cst_537 {dimension_numbers = #tpu.dot_dimension_numbers<[1], [0], [0], [1], [0, 0, 1, 1], [], []>} : vector<4x64xf32>, vector<64x128xf32>, vector<4x128xf32> -> vector<4x128xf32>
    %1338 = arith.addf %1326, %1337 : vector<4x128xf32>
    %1339 = arith.negf %1338 : vector<4x128xf32>
    %1340 = math.exp %1339 : vector<4x128xf32>
    %cst_538 = arith.constant 1.000000e+00 : f32
    %1341 = vector.broadcast %cst_538 : f32 to vector<4x128xf32>
    %1342 = arith.addf %1341, %1340 : vector<4x128xf32>
    %1343 = arith.divf %1341, %1342 : vector<4x128xf32>
    %1344 = math.tanh %1338 : vector<4x128xf32>
    %1345 = vector.extract_strided_slice %1343 {offsets = [0, 0], sizes = [4, 32], strides = [1, 1]} : vector<4x128xf32> to vector<4x32xf32>
    %1346 = vector.extract_strided_slice %1343 {offsets = [0, 32], sizes = [4, 32], strides = [1, 1]} : vector<4x128xf32> to vector<4x32xf32>
    %1347 = vector.extract_strided_slice %1344 {offsets = [0, 64], sizes = [4, 32], strides = [1, 1]} : vector<4x128xf32> to vector<4x32xf32>
    %1348 = vector.extract_strided_slice %1343 {offsets = [0, 96], sizes = [4, 32], strides = [1, 1]} : vector<4x128xf32> to vector<4x32xf32>
    %1349 = arith.mulf %1346, %1311 : vector<4x32xf32>
    %1350 = arith.mulf %1345, %1347 : vector<4x32xf32>
    %1351 = arith.addf %1349, %1350 : vector<4x32xf32>
    %1352 = vector.broadcast %1331 : vector<4x1xf32> to vector<4x32xf32>
    %1353 = arith.mulf %1351, %1352 : vector<4x32xf32>
    %1354 = math.tanh %1353 : vector<4x32xf32>
    %1355 = arith.mulf %1348, %1354 : vector<4x32xf32>
    %1356 = vector.broadcast %1331 : vector<4x1xf32> to vector<4x32xf32>
    %1357 = arith.mulf %1355, %1356 : vector<4x32xf32>
    %1358 = vector.extract_strided_slice %1357 {offsets = [0, 0], sizes = [2, 32], strides = [1, 1]} : vector<4x32xf32> to vector<2x32xf32>
    %c10_539 = arith.constant 10 : index
    %c0_540 = arith.constant 0 : index
    %c0_541 = arith.constant 0 : index
    %1359 = vector.load %arg26[%c10_539, %c0_540, %c0_541] : memref<16x2x32xf32, #tpu.memory_space<vmem>>, vector<1x2x32xf32>
    %1360 = vector.shape_cast %1359 : vector<1x2x32xf32> to vector<2x32xf32>
    %1361 = vector.shape_cast %1358 : vector<2x32xf32> to vector<1x2x32xf32>
    tpu.vector_store %arg26[%c10_539, %c0_540, %c0_541], %1361 {strides = array<i32>} : memref<16x2x32xf32, #tpu.memory_space<vmem>>, vector<1x2x32xf32>,
    %1362 = vector.extract_strided_slice %1357 {offsets = [2, 0], sizes = [2, 32], strides = [1, 1]} : vector<4x32xf32> to vector<2x32xf32>
    %c5_542 = arith.constant 5 : index
    %c0_543 = arith.constant 0 : index
    %c0_544 = arith.constant 0 : index
    %1363 = vector.load %arg27[%c5_542, %c0_543, %c0_544] : memref<16x2x32xf32, #tpu.memory_space<vmem>>, vector<1x2x32xf32>
    %1364 = vector.shape_cast %1363 : vector<1x2x32xf32> to vector<2x32xf32>
    %1365 = vector.shape_cast %1362 : vector<2x32xf32> to vector<1x2x32xf32>
    tpu.vector_store %arg27[%c5_542, %c0_543, %c0_544], %1365 {strides = array<i32>} : memref<16x2x32xf32, #tpu.memory_space<vmem>>, vector<1x2x32xf32>,
    %1366 = vector.extract_strided_slice %900 {offsets = [22, 0], sizes = [2, 128], strides = [1, 1]} : vector<32x256xf32> to vector<2x128xf32>
    %1367 = vector.extract_strided_slice %900 {offsets = [8, 128], sizes = [2, 128], strides = [1, 1]} : vector<32x256xf32> to vector<2x128xf32>
    %1368 = tpu.concatenate %1366, %1367 in 0 : vector<2x128xf32>, vector<2x128xf32> -> vector<4x128xf32>
    %c11_545 = arith.constant 11 : index
    %c0_546 = arith.constant 0 : index
    %c0_547 = arith.constant 0 : index
    %1369 = vector.load %arg1[%c11_545, %c0_546, %c0_547] : memref<16x2x1xf32, #tpu.memory_space<vmem>>, vector<1x2x1xf32>
    %1370 = vector.shape_cast %1369 : vector<1x2x1xf32> to vector<2x1xf32>
    %c4_548 = arith.constant 4 : index
    %c0_549 = arith.constant 0 : index
    %c0_550 = arith.constant 0 : index
    %1371 = vector.load %arg1[%c4_548, %c0_549, %c0_550] : memref<16x2x1xf32, #tpu.memory_space<vmem>>, vector<1x2x1xf32>
    %1372 = vector.shape_cast %1371 : vector<1x2x1xf32> to vector<2x1xf32>
    %1373 = tpu.concatenate %1370, %1372 in 0 : vector<2x1xf32>, vector<2x1xf32> -> vector<4x1xf32>
    %1374 = vector.broadcast %146 : vector<4x1xf32> to vector<4x32xf32>
    %1375 = arith.mulf %1357, %1374 : vector<4x32xf32>
    %1376 = vector.broadcast %148 : vector<4x1xf32> to vector<4x32xf32>
    %1377 = arith.mulf %1357, %1376 : vector<4x32xf32>
    %1378 = tpu.concatenate %1375, %1377 in 1 : vector<4x32xf32>, vector<4x32xf32> -> vector<4x64xf32>
    %cst_551 = arith.constant dense<0.000000e+00> : vector<4x128xf32>
    %1379 = tpu.matmul %1378, %901, %cst_551 {dimension_numbers = #tpu.dot_dimension_numbers<[1], [0], [0], [1], [0, 0, 1, 1], [], []>} : vector<4x64xf32>, vector<64x128xf32>, vector<4x128xf32> -> vector<4x128xf32>
    %1380 = arith.addf %1368, %1379 : vector<4x128xf32>
    %1381 = arith.negf %1380 : vector<4x128xf32>
    %1382 = math.exp %1381 : vector<4x128xf32>
    %cst_552 = arith.constant 1.000000e+00 : f32
    %1383 = vector.broadcast %cst_552 : f32 to vector<4x128xf32>
    %1384 = arith.addf %1383, %1382 : vector<4x128xf32>
    %1385 = arith.divf %1383, %1384 : vector<4x128xf32>
    %1386 = math.tanh %1380 : vector<4x128xf32>
    %1387 = vector.extract_strided_slice %1385 {offsets = [0, 0], sizes = [4, 32], strides = [1, 1]} : vector<4x128xf32> to vector<4x32xf32>
    %1388 = vector.extract_strided_slice %1385 {offsets = [0, 32], sizes = [4, 32], strides = [1, 1]} : vector<4x128xf32> to vector<4x32xf32>
    %1389 = vector.extract_strided_slice %1386 {offsets = [0, 64], sizes = [4, 32], strides = [1, 1]} : vector<4x128xf32> to vector<4x32xf32>
    %1390 = vector.extract_strided_slice %1385 {offsets = [0, 96], sizes = [4, 32], strides = [1, 1]} : vector<4x128xf32> to vector<4x32xf32>
    %1391 = arith.mulf %1388, %1353 : vector<4x32xf32>
    %1392 = arith.mulf %1387, %1389 : vector<4x32xf32>
    %1393 = arith.addf %1391, %1392 : vector<4x32xf32>
    %1394 = vector.broadcast %1373 : vector<4x1xf32> to vector<4x32xf32>
    %1395 = arith.mulf %1393, %1394 : vector<4x32xf32>
    %1396 = math.tanh %1395 : vector<4x32xf32>
    %1397 = arith.mulf %1390, %1396 : vector<4x32xf32>
    %1398 = vector.broadcast %1373 : vector<4x1xf32> to vector<4x32xf32>
    %1399 = arith.mulf %1397, %1398 : vector<4x32xf32>
    %1400 = vector.extract_strided_slice %1399 {offsets = [0, 0], sizes = [2, 32], strides = [1, 1]} : vector<4x32xf32> to vector<2x32xf32>
    %c11_553 = arith.constant 11 : index
    %c0_554 = arith.constant 0 : index
    %c0_555 = arith.constant 0 : index
    %1401 = vector.load %arg26[%c11_553, %c0_554, %c0_555] : memref<16x2x32xf32, #tpu.memory_space<vmem>>, vector<1x2x32xf32>
    %1402 = vector.shape_cast %1401 : vector<1x2x32xf32> to vector<2x32xf32>
    %1403 = vector.shape_cast %1400 : vector<2x32xf32> to vector<1x2x32xf32>
    tpu.vector_store %arg26[%c11_553, %c0_554, %c0_555], %1403 {strides = array<i32>} : memref<16x2x32xf32, #tpu.memory_space<vmem>>, vector<1x2x32xf32>,
    %1404 = vector.extract_strided_slice %1399 {offsets = [2, 0], sizes = [2, 32], strides = [1, 1]} : vector<4x32xf32> to vector<2x32xf32>
    %c4_556 = arith.constant 4 : index
    %c0_557 = arith.constant 0 : index
    %c0_558 = arith.constant 0 : index
    %1405 = vector.load %arg27[%c4_556, %c0_557, %c0_558] : memref<16x2x32xf32, #tpu.memory_space<vmem>>, vector<1x2x32xf32>
    %1406 = vector.shape_cast %1405 : vector<1x2x32xf32> to vector<2x32xf32>
    %1407 = vector.shape_cast %1404 : vector<2x32xf32> to vector<1x2x32xf32>
    tpu.vector_store %arg27[%c4_556, %c0_557, %c0_558], %1407 {strides = array<i32>} : memref<16x2x32xf32, #tpu.memory_space<vmem>>, vector<1x2x32xf32>,
    %1408 = vector.extract_strided_slice %900 {offsets = [24, 0], sizes = [2, 128], strides = [1, 1]} : vector<32x256xf32> to vector<2x128xf32>
    %1409 = vector.extract_strided_slice %900 {offsets = [6, 128], sizes = [2, 128], strides = [1, 1]} : vector<32x256xf32> to vector<2x128xf32>
    %1410 = tpu.concatenate %1408, %1409 in 0 : vector<2x128xf32>, vector<2x128xf32> -> vector<4x128xf32>
    %c12_559 = arith.constant 12 : index
    %c0_560 = arith.constant 0 : index
    %c0_561 = arith.constant 0 : index
    %1411 = vector.load %arg1[%c12_559, %c0_560, %c0_561] : memref<16x2x1xf32, #tpu.memory_space<vmem>>, vector<1x2x1xf32>
    %1412 = vector.shape_cast %1411 : vector<1x2x1xf32> to vector<2x1xf32>
    %c3_562 = arith.constant 3 : index
    %c0_563 = arith.constant 0 : index
    %c0_564 = arith.constant 0 : index
    %1413 = vector.load %arg1[%c3_562, %c0_563, %c0_564] : memref<16x2x1xf32, #tpu.memory_space<vmem>>, vector<1x2x1xf32>
    %1414 = vector.shape_cast %1413 : vector<1x2x1xf32> to vector<2x1xf32>
    %1415 = tpu.concatenate %1412, %1414 in 0 : vector<2x1xf32>, vector<2x1xf32> -> vector<4x1xf32>
    %1416 = vector.broadcast %146 : vector<4x1xf32> to vector<4x32xf32>
    %1417 = arith.mulf %1399, %1416 : vector<4x32xf32>
    %1418 = vector.broadcast %148 : vector<4x1xf32> to vector<4x32xf32>
    %1419 = arith.mulf %1399, %1418 : vector<4x32xf32>
    %1420 = tpu.concatenate %1417, %1419 in 1 : vector<4x32xf32>, vector<4x32xf32> -> vector<4x64xf32>
    %cst_565 = arith.constant dense<0.000000e+00> : vector<4x128xf32>
    %1421 = tpu.matmul %1420, %901, %cst_565 {dimension_numbers = #tpu.dot_dimension_numbers<[1], [0], [0], [1], [0, 0, 1, 1], [], []>} : vector<4x64xf32>, vector<64x128xf32>, vector<4x128xf32> -> vector<4x128xf32>
    %1422 = arith.addf %1410, %1421 : vector<4x128xf32>
    %1423 = arith.negf %1422 : vector<4x128xf32>
    %1424 = math.exp %1423 : vector<4x128xf32>
    %cst_566 = arith.constant 1.000000e+00 : f32
    %1425 = vector.broadcast %cst_566 : f32 to vector<4x128xf32>
    %1426 = arith.addf %1425, %1424 : vector<4x128xf32>
    %1427 = arith.divf %1425, %1426 : vector<4x128xf32>
    %1428 = math.tanh %1422 : vector<4x128xf32>
    %1429 = vector.extract_strided_slice %1427 {offsets = [0, 0], sizes = [4, 32], strides = [1, 1]} : vector<4x128xf32> to vector<4x32xf32>
    %1430 = vector.extract_strided_slice %1427 {offsets = [0, 32], sizes = [4, 32], strides = [1, 1]} : vector<4x128xf32> to vector<4x32xf32>
    %1431 = vector.extract_strided_slice %1428 {offsets = [0, 64], sizes = [4, 32], strides = [1, 1]} : vector<4x128xf32> to vector<4x32xf32>
    %1432 = vector.extract_strided_slice %1427 {offsets = [0, 96], sizes = [4, 32], strides = [1, 1]} : vector<4x128xf32> to vector<4x32xf32>
    %1433 = arith.mulf %1430, %1395 : vector<4x32xf32>
    %1434 = arith.mulf %1429, %1431 : vector<4x32xf32>
    %1435 = arith.addf %1433, %1434 : vector<4x32xf32>
    %1436 = vector.broadcast %1415 : vector<4x1xf32> to vector<4x32xf32>
    %1437 = arith.mulf %1435, %1436 : vector<4x32xf32>
    %1438 = math.tanh %1437 : vector<4x32xf32>
    %1439 = arith.mulf %1432, %1438 : vector<4x32xf32>
    %1440 = vector.broadcast %1415 : vector<4x1xf32> to vector<4x32xf32>
    %1441 = arith.mulf %1439, %1440 : vector<4x32xf32>
    %1442 = vector.extract_strided_slice %1441 {offsets = [0, 0], sizes = [2, 32], strides = [1, 1]} : vector<4x32xf32> to vector<2x32xf32>
    %c12_567 = arith.constant 12 : index
    %c0_568 = arith.constant 0 : index
    %c0_569 = arith.constant 0 : index
    %1443 = vector.load %arg26[%c12_567, %c0_568, %c0_569] : memref<16x2x32xf32, #tpu.memory_space<vmem>>, vector<1x2x32xf32>
    %1444 = vector.shape_cast %1443 : vector<1x2x32xf32> to vector<2x32xf32>
    %1445 = vector.shape_cast %1442 : vector<2x32xf32> to vector<1x2x32xf32>
    tpu.vector_store %arg26[%c12_567, %c0_568, %c0_569], %1445 {strides = array<i32>} : memref<16x2x32xf32, #tpu.memory_space<vmem>>, vector<1x2x32xf32>,
    %1446 = vector.extract_strided_slice %1441 {offsets = [2, 0], sizes = [2, 32], strides = [1, 1]} : vector<4x32xf32> to vector<2x32xf32>
    %c3_570 = arith.constant 3 : index
    %c0_571 = arith.constant 0 : index
    %c0_572 = arith.constant 0 : index
    %1447 = vector.load %arg27[%c3_570, %c0_571, %c0_572] : memref<16x2x32xf32, #tpu.memory_space<vmem>>, vector<1x2x32xf32>
    %1448 = vector.shape_cast %1447 : vector<1x2x32xf32> to vector<2x32xf32>
    %1449 = vector.shape_cast %1446 : vector<2x32xf32> to vector<1x2x32xf32>
    tpu.vector_store %arg27[%c3_570, %c0_571, %c0_572], %1449 {strides = array<i32>} : memref<16x2x32xf32, #tpu.memory_space<vmem>>, vector<1x2x32xf32>,
    %1450 = vector.extract_strided_slice %900 {offsets = [26, 0], sizes = [2, 128], strides = [1, 1]} : vector<32x256xf32> to vector<2x128xf32>
    %1451 = vector.extract_strided_slice %900 {offsets = [4, 128], sizes = [2, 128], strides = [1, 1]} : vector<32x256xf32> to vector<2x128xf32>
    %1452 = tpu.concatenate %1450, %1451 in 0 : vector<2x128xf32>, vector<2x128xf32> -> vector<4x128xf32>
    %c13_573 = arith.constant 13 : index
    %c0_574 = arith.constant 0 : index
    %c0_575 = arith.constant 0 : index
    %1453 = vector.load %arg1[%c13_573, %c0_574, %c0_575] : memref<16x2x1xf32, #tpu.memory_space<vmem>>, vector<1x2x1xf32>
    %1454 = vector.shape_cast %1453 : vector<1x2x1xf32> to vector<2x1xf32>
    %c2_576 = arith.constant 2 : index
    %c0_577 = arith.constant 0 : index
    %c0_578 = arith.constant 0 : index
    %1455 = vector.load %arg1[%c2_576, %c0_577, %c0_578] : memref<16x2x1xf32, #tpu.memory_space<vmem>>, vector<1x2x1xf32>
    %1456 = vector.shape_cast %1455 : vector<1x2x1xf32> to vector<2x1xf32>
    %1457 = tpu.concatenate %1454, %1456 in 0 : vector<2x1xf32>, vector<2x1xf32> -> vector<4x1xf32>
    %1458 = vector.broadcast %146 : vector<4x1xf32> to vector<4x32xf32>
    %1459 = arith.mulf %1441, %1458 : vector<4x32xf32>
    %1460 = vector.broadcast %148 : vector<4x1xf32> to vector<4x32xf32>
    %1461 = arith.mulf %1441, %1460 : vector<4x32xf32>
    %1462 = tpu.concatenate %1459, %1461 in 1 : vector<4x32xf32>, vector<4x32xf32> -> vector<4x64xf32>
    %cst_579 = arith.constant dense<0.000000e+00> : vector<4x128xf32>
    %1463 = tpu.matmul %1462, %901, %cst_579 {dimension_numbers = #tpu.dot_dimension_numbers<[1], [0], [0], [1], [0, 0, 1, 1], [], []>} : vector<4x64xf32>, vector<64x128xf32>, vector<4x128xf32> -> vector<4x128xf32>
    %1464 = arith.addf %1452, %1463 : vector<4x128xf32>
    %1465 = arith.negf %1464 : vector<4x128xf32>
    %1466 = math.exp %1465 : vector<4x128xf32>
    %cst_580 = arith.constant 1.000000e+00 : f32
    %1467 = vector.broadcast %cst_580 : f32 to vector<4x128xf32>
    %1468 = arith.addf %1467, %1466 : vector<4x128xf32>
    %1469 = arith.divf %1467, %1468 : vector<4x128xf32>
    %1470 = math.tanh %1464 : vector<4x128xf32>
    %1471 = vector.extract_strided_slice %1469 {offsets = [0, 0], sizes = [4, 32], strides = [1, 1]} : vector<4x128xf32> to vector<4x32xf32>
    %1472 = vector.extract_strided_slice %1469 {offsets = [0, 32], sizes = [4, 32], strides = [1, 1]} : vector<4x128xf32> to vector<4x32xf32>
    %1473 = vector.extract_strided_slice %1470 {offsets = [0, 64], sizes = [4, 32], strides = [1, 1]} : vector<4x128xf32> to vector<4x32xf32>
    %1474 = vector.extract_strided_slice %1469 {offsets = [0, 96], sizes = [4, 32], strides = [1, 1]} : vector<4x128xf32> to vector<4x32xf32>
    %1475 = arith.mulf %1472, %1437 : vector<4x32xf32>
    %1476 = arith.mulf %1471, %1473 : vector<4x32xf32>
    %1477 = arith.addf %1475, %1476 : vector<4x32xf32>
    %1478 = vector.broadcast %1457 : vector<4x1xf32> to vector<4x32xf32>
    %1479 = arith.mulf %1477, %1478 : vector<4x32xf32>
    %1480 = math.tanh %1479 : vector<4x32xf32>
    %1481 = arith.mulf %1474, %1480 : vector<4x32xf32>
    %1482 = vector.broadcast %1457 : vector<4x1xf32> to vector<4x32xf32>
    %1483 = arith.mulf %1481, %1482 : vector<4x32xf32>
    %1484 = vector.extract_strided_slice %1483 {offsets = [0, 0], sizes = [2, 32], strides = [1, 1]} : vector<4x32xf32> to vector<2x32xf32>
    %c13_581 = arith.constant 13 : index
    %c0_582 = arith.constant 0 : index
    %c0_583 = arith.constant 0 : index
    %1485 = vector.load %arg26[%c13_581, %c0_582, %c0_583] : memref<16x2x32xf32, #tpu.memory_space<vmem>>, vector<1x2x32xf32>
    %1486 = vector.shape_cast %1485 : vector<1x2x32xf32> to vector<2x32xf32>
    %1487 = vector.shape_cast %1484 : vector<2x32xf32> to vector<1x2x32xf32>
    tpu.vector_store %arg26[%c13_581, %c0_582, %c0_583], %1487 {strides = array<i32>} : memref<16x2x32xf32, #tpu.memory_space<vmem>>, vector<1x2x32xf32>,
    %1488 = vector.extract_strided_slice %1483 {offsets = [2, 0], sizes = [2, 32], strides = [1, 1]} : vector<4x32xf32> to vector<2x32xf32>
    %c2_584 = arith.constant 2 : index
    %c0_585 = arith.constant 0 : index
    %c0_586 = arith.constant 0 : index
    %1489 = vector.load %arg27[%c2_584, %c0_585, %c0_586] : memref<16x2x32xf32, #tpu.memory_space<vmem>>, vector<1x2x32xf32>
    %1490 = vector.shape_cast %1489 : vector<1x2x32xf32> to vector<2x32xf32>
    %1491 = vector.shape_cast %1488 : vector<2x32xf32> to vector<1x2x32xf32>
    tpu.vector_store %arg27[%c2_584, %c0_585, %c0_586], %1491 {strides = array<i32>} : memref<16x2x32xf32, #tpu.memory_space<vmem>>, vector<1x2x32xf32>,
    %1492 = vector.extract_strided_slice %900 {offsets = [28, 0], sizes = [2, 128], strides = [1, 1]} : vector<32x256xf32> to vector<2x128xf32>
    %1493 = vector.extract_strided_slice %900 {offsets = [2, 128], sizes = [2, 128], strides = [1, 1]} : vector<32x256xf32> to vector<2x128xf32>
    %1494 = tpu.concatenate %1492, %1493 in 0 : vector<2x128xf32>, vector<2x128xf32> -> vector<4x128xf32>
    %c14_587 = arith.constant 14 : index
    %c0_588 = arith.constant 0 : index
    %c0_589 = arith.constant 0 : index
    %1495 = vector.load %arg1[%c14_587, %c0_588, %c0_589] : memref<16x2x1xf32, #tpu.memory_space<vmem>>, vector<1x2x1xf32>
    %1496 = vector.shape_cast %1495 : vector<1x2x1xf32> to vector<2x1xf32>
    %c1_590 = arith.constant 1 : index
    %c0_591 = arith.constant 0 : index
    %c0_592 = arith.constant 0 : index
    %1497 = vector.load %arg1[%c1_590, %c0_591, %c0_592] : memref<16x2x1xf32, #tpu.memory_space<vmem>>, vector<1x2x1xf32>
    %1498 = vector.shape_cast %1497 : vector<1x2x1xf32> to vector<2x1xf32>
    %1499 = tpu.concatenate %1496, %1498 in 0 : vector<2x1xf32>, vector<2x1xf32> -> vector<4x1xf32>
    %1500 = vector.broadcast %146 : vector<4x1xf32> to vector<4x32xf32>
    %1501 = arith.mulf %1483, %1500 : vector<4x32xf32>
    %1502 = vector.broadcast %148 : vector<4x1xf32> to vector<4x32xf32>
    %1503 = arith.mulf %1483, %1502 : vector<4x32xf32>
    %1504 = tpu.concatenate %1501, %1503 in 1 : vector<4x32xf32>, vector<4x32xf32> -> vector<4x64xf32>
    %cst_593 = arith.constant dense<0.000000e+00> : vector<4x128xf32>
    %1505 = tpu.matmul %1504, %901, %cst_593 {dimension_numbers = #tpu.dot_dimension_numbers<[1], [0], [0], [1], [0, 0, 1, 1], [], []>} : vector<4x64xf32>, vector<64x128xf32>, vector<4x128xf32> -> vector<4x128xf32>
    %1506 = arith.addf %1494, %1505 : vector<4x128xf32>
    %1507 = arith.negf %1506 : vector<4x128xf32>
    %1508 = math.exp %1507 : vector<4x128xf32>
    %cst_594 = arith.constant 1.000000e+00 : f32
    %1509 = vector.broadcast %cst_594 : f32 to vector<4x128xf32>
    %1510 = arith.addf %1509, %1508 : vector<4x128xf32>
    %1511 = arith.divf %1509, %1510 : vector<4x128xf32>
    %1512 = math.tanh %1506 : vector<4x128xf32>
    %1513 = vector.extract_strided_slice %1511 {offsets = [0, 0], sizes = [4, 32], strides = [1, 1]} : vector<4x128xf32> to vector<4x32xf32>
    %1514 = vector.extract_strided_slice %1511 {offsets = [0, 32], sizes = [4, 32], strides = [1, 1]} : vector<4x128xf32> to vector<4x32xf32>
    %1515 = vector.extract_strided_slice %1512 {offsets = [0, 64], sizes = [4, 32], strides = [1, 1]} : vector<4x128xf32> to vector<4x32xf32>
    %1516 = vector.extract_strided_slice %1511 {offsets = [0, 96], sizes = [4, 32], strides = [1, 1]} : vector<4x128xf32> to vector<4x32xf32>
    %1517 = arith.mulf %1514, %1479 : vector<4x32xf32>
    %1518 = arith.mulf %1513, %1515 : vector<4x32xf32>
    %1519 = arith.addf %1517, %1518 : vector<4x32xf32>
    %1520 = vector.broadcast %1499 : vector<4x1xf32> to vector<4x32xf32>
    %1521 = arith.mulf %1519, %1520 : vector<4x32xf32>
    %1522 = math.tanh %1521 : vector<4x32xf32>
    %1523 = arith.mulf %1516, %1522 : vector<4x32xf32>
    %1524 = vector.broadcast %1499 : vector<4x1xf32> to vector<4x32xf32>
    %1525 = arith.mulf %1523, %1524 : vector<4x32xf32>
    %1526 = vector.extract_strided_slice %1525 {offsets = [0, 0], sizes = [2, 32], strides = [1, 1]} : vector<4x32xf32> to vector<2x32xf32>
    %c14_595 = arith.constant 14 : index
    %c0_596 = arith.constant 0 : index
    %c0_597 = arith.constant 0 : index
    %1527 = vector.load %arg26[%c14_595, %c0_596, %c0_597] : memref<16x2x32xf32, #tpu.memory_space<vmem>>, vector<1x2x32xf32>
    %1528 = vector.shape_cast %1527 : vector<1x2x32xf32> to vector<2x32xf32>
    %1529 = vector.shape_cast %1526 : vector<2x32xf32> to vector<1x2x32xf32>
    tpu.vector_store %arg26[%c14_595, %c0_596, %c0_597], %1529 {strides = array<i32>} : memref<16x2x32xf32, #tpu.memory_space<vmem>>, vector<1x2x32xf32>,
    %1530 = vector.extract_strided_slice %1525 {offsets = [2, 0], sizes = [2, 32], strides = [1, 1]} : vector<4x32xf32> to vector<2x32xf32>
    %c1_598 = arith.constant 1 : index
    %c0_599 = arith.constant 0 : index
    %c0_600 = arith.constant 0 : index
    %1531 = vector.load %arg27[%c1_598, %c0_599, %c0_600] : memref<16x2x32xf32, #tpu.memory_space<vmem>>, vector<1x2x32xf32>
    %1532 = vector.shape_cast %1531 : vector<1x2x32xf32> to vector<2x32xf32>
    %1533 = vector.shape_cast %1530 : vector<2x32xf32> to vector<1x2x32xf32>
    tpu.vector_store %arg27[%c1_598, %c0_599, %c0_600], %1533 {strides = array<i32>} : memref<16x2x32xf32, #tpu.memory_space<vmem>>, vector<1x2x32xf32>,
    %1534 = vector.extract_strided_slice %900 {offsets = [30, 0], sizes = [2, 128], strides = [1, 1]} : vector<32x256xf32> to vector<2x128xf32>
    %1535 = vector.extract_strided_slice %900 {offsets = [0, 128], sizes = [2, 128], strides = [1, 1]} : vector<32x256xf32> to vector<2x128xf32>
    %1536 = tpu.concatenate %1534, %1535 in 0 : vector<2x128xf32>, vector<2x128xf32> -> vector<4x128xf32>
    %c15_601 = arith.constant 15 : index
    %c0_602 = arith.constant 0 : index
    %c0_603 = arith.constant 0 : index
    %1537 = vector.load %arg1[%c15_601, %c0_602, %c0_603] : memref<16x2x1xf32, #tpu.memory_space<vmem>>, vector<1x2x1xf32>
    %1538 = vector.shape_cast %1537 : vector<1x2x1xf32> to vector<2x1xf32>
    %c0_604 = arith.constant 0 : index
    %c0_605 = arith.constant 0 : index
    %c0_606 = arith.constant 0 : index
    %1539 = vector.load %arg1[%c0_604, %c0_605, %c0_606] : memref<16x2x1xf32, #tpu.memory_space<vmem>>, vector<1x2x1xf32>
    %1540 = vector.shape_cast %1539 : vector<1x2x1xf32> to vector<2x1xf32>
    %1541 = tpu.concatenate %1538, %1540 in 0 : vector<2x1xf32>, vector<2x1xf32> -> vector<4x1xf32>
    %1542 = vector.broadcast %146 : vector<4x1xf32> to vector<4x32xf32>
    %1543 = arith.mulf %1525, %1542 : vector<4x32xf32>
    %1544 = vector.broadcast %148 : vector<4x1xf32> to vector<4x32xf32>
    %1545 = arith.mulf %1525, %1544 : vector<4x32xf32>
    %1546 = tpu.concatenate %1543, %1545 in 1 : vector<4x32xf32>, vector<4x32xf32> -> vector<4x64xf32>
    %cst_607 = arith.constant dense<0.000000e+00> : vector<4x128xf32>
    %1547 = tpu.matmul %1546, %901, %cst_607 {dimension_numbers = #tpu.dot_dimension_numbers<[1], [0], [0], [1], [0, 0, 1, 1], [], []>} : vector<4x64xf32>, vector<64x128xf32>, vector<4x128xf32> -> vector<4x128xf32>
    %1548 = arith.addf %1536, %1547 : vector<4x128xf32>
    %1549 = arith.negf %1548 : vector<4x128xf32>
    %1550 = math.exp %1549 : vector<4x128xf32>
    %cst_608 = arith.constant 1.000000e+00 : f32
    %1551 = vector.broadcast %cst_608 : f32 to vector<4x128xf32>
    %1552 = arith.addf %1551, %1550 : vector<4x128xf32>
    %1553 = arith.divf %1551, %1552 : vector<4x128xf32>
    %1554 = math.tanh %1548 : vector<4x128xf32>
    %1555 = vector.extract_strided_slice %1553 {offsets = [0, 0], sizes = [4, 32], strides = [1, 1]} : vector<4x128xf32> to vector<4x32xf32>
    %1556 = vector.extract_strided_slice %1553 {offsets = [0, 32], sizes = [4, 32], strides = [1, 1]} : vector<4x128xf32> to vector<4x32xf32>
    %1557 = vector.extract_strided_slice %1554 {offsets = [0, 64], sizes = [4, 32], strides = [1, 1]} : vector<4x128xf32> to vector<4x32xf32>
    %1558 = vector.extract_strided_slice %1553 {offsets = [0, 96], sizes = [4, 32], strides = [1, 1]} : vector<4x128xf32> to vector<4x32xf32>
    %1559 = arith.mulf %1556, %1521 : vector<4x32xf32>
    %1560 = arith.mulf %1555, %1557 : vector<4x32xf32>
    %1561 = arith.addf %1559, %1560 : vector<4x32xf32>
    %1562 = vector.broadcast %1541 : vector<4x1xf32> to vector<4x32xf32>
    %1563 = arith.mulf %1561, %1562 : vector<4x32xf32>
    %1564 = math.tanh %1563 : vector<4x32xf32>
    %1565 = arith.mulf %1558, %1564 : vector<4x32xf32>
    %1566 = vector.broadcast %1541 : vector<4x1xf32> to vector<4x32xf32>
    %1567 = arith.mulf %1565, %1566 : vector<4x32xf32>
    %1568 = vector.extract_strided_slice %1567 {offsets = [0, 0], sizes = [2, 32], strides = [1, 1]} : vector<4x32xf32> to vector<2x32xf32>
    %c15_609 = arith.constant 15 : index
    %c0_610 = arith.constant 0 : index
    %c0_611 = arith.constant 0 : index
    %1569 = vector.load %arg26[%c15_609, %c0_610, %c0_611] : memref<16x2x32xf32, #tpu.memory_space<vmem>>, vector<1x2x32xf32>
    %1570 = vector.shape_cast %1569 : vector<1x2x32xf32> to vector<2x32xf32>
    %1571 = vector.shape_cast %1568 : vector<2x32xf32> to vector<1x2x32xf32>
    tpu.vector_store %arg26[%c15_609, %c0_610, %c0_611], %1571 {strides = array<i32>} : memref<16x2x32xf32, #tpu.memory_space<vmem>>, vector<1x2x32xf32>,
    %1572 = vector.extract_strided_slice %1567 {offsets = [2, 0], sizes = [2, 32], strides = [1, 1]} : vector<4x32xf32> to vector<2x32xf32>
    %c0_612 = arith.constant 0 : index
    %c0_613 = arith.constant 0 : index
    %c0_614 = arith.constant 0 : index
    %1573 = vector.load %arg27[%c0_612, %c0_613, %c0_614] : memref<16x2x32xf32, #tpu.memory_space<vmem>>, vector<1x2x32xf32>
    %1574 = vector.shape_cast %1573 : vector<1x2x32xf32> to vector<2x32xf32>
    %1575 = vector.shape_cast %1572 : vector<2x32xf32> to vector<1x2x32xf32>
    tpu.vector_store %arg27[%c0_612, %c0_613, %c0_614], %1575 {strides = array<i32>} : memref<16x2x32xf32, #tpu.memory_space<vmem>>, vector<1x2x32xf32>,
    %c0_615 = arith.constant 0 : index
    %c0_616 = arith.constant 0 : index
    %c0_617 = arith.constant 0 : index
    %1576 = vector.load %arg26[%c0_615, %c0_616, %c0_617] : memref<16x2x32xf32, #tpu.memory_space<vmem>>, vector<16x2x32xf32>
    %cst_618 = arith.constant dense<0.000000e+00> : vector<2x32xf32>
    %1577 = vector.multi_reduction <add>, %1576, %cst_618 [0] : vector<16x2x32xf32> to vector<2x32xf32>
    %c0_619 = arith.constant 0 : index
    %c0_620 = arith.constant 0 : index
    %c0_621 = arith.constant 0 : index
    %1578 = vector.load %arg27[%c0_619, %c0_620, %c0_621] : memref<16x2x32xf32, #tpu.memory_space<vmem>>, vector<16x2x32xf32>
    %cst_622 = arith.constant dense<0.000000e+00> : vector<2x32xf32>
    %1579 = vector.multi_reduction <add>, %1578, %cst_622 [0] : vector<16x2x32xf32> to vector<2x32xf32>
    %1580 = tpu.concatenate %1577, %1579 in 1 : vector<2x32xf32>, vector<2x32xf32> -> vector<2x64xf32>
    %cst_623 = arith.constant 6.250000e-02 : f32
    %1581 = vector.broadcast %cst_623 : f32 to vector<2x64xf32>
    %1582 = arith.mulf %1580, %1581 : vector<2x64xf32>
    %c0_624 = arith.constant 0 : index
    %c0_625 = arith.constant 0 : index
    %1583 = vector.load %arg23[%c0_624, %c0_625] : memref<64x4xf32, #tpu.memory_space<vmem>>, vector<64x4xf32>
    %cst_626 = arith.constant dense<0.000000e+00> : vector<2x4xf32>
    %1584 = tpu.matmul %1582, %1583, %cst_626 {dimension_numbers = #tpu.dot_dimension_numbers<[1], [0], [0], [1], [0, 0, 1, 1], [], []>} : vector<2x64xf32>, vector<64x4xf32>, vector<2x4xf32> -> vector<2x4xf32>
    %c0_627 = arith.constant 0 : index
    %c0_628 = arith.constant 0 : index
    %1585 = vector.load %arg24[%c0_627, %c0_628] : memref<1x4xf32, #tpu.memory_space<vmem>>, vector<1x4xf32>
    %1586 = vector.broadcast %1585 : vector<1x4xf32> to vector<2x4xf32>
    %1587 = arith.addf %1584, %1586 : vector<2x4xf32>
    %1588 = arith.negf %1587 : vector<2x4xf32>
    %1589 = math.exp %1588 : vector<2x4xf32>
    %cst_629 = arith.constant 1.000000e+00 : f32
    %1590 = vector.broadcast %cst_629 : f32 to vector<2x4xf32>
    %1591 = arith.addf %1590, %1589 : vector<2x4xf32>
    %1592 = arith.divf %1590, %1591 : vector<2x4xf32>
    %c0_630 = arith.constant 0 : index
    %c0_631 = arith.constant 0 : index
    %1593 = vector.load %arg25[%c0_630, %c0_631] : memref<2x4xf32, #tpu.memory_space<vmem>>, vector<2x4xf32>
    tpu.vector_store %arg25[%c0_630, %c0_631], %1592 {strides = array<i32>} : memref<2x4xf32, #tpu.memory_space<vmem>>, vector<2x4xf32>,
    return
  }
}

</mosaic_0001>

<bundles_post_ra>
// kernel: tpu_custom_call.1
= control target key start
LH: loop header
LB: loop body
LE: loop exit
PB: predicated region body
PF: predicated region fallthrough
CT: control target
= control target key end

     0   :  { %s10484_s0 = inlined_call_operand.vmem [shape: f32[32,4], index: 0, kind: input, shape index: {}]   ;;  %s10485_s1 = inlined_call_operand.vmem [shape: f32[16,2,1], index: 1, kind: input, shape index: {}]   ;;  %s10486_s2 = inlined_call_operand.vmem [shape: f32[44,8], index: 2, kind: input, shape index: {}]   ;;  %s10487_s3 = inlined_call_operand.vmem [shape: f32[1,8], index: 3, kind: input, shape index: {}]   ;;  %s10488_s4 = inlined_call_operand.vmem [shape: f32[1,8], index: 4, kind: input, shape index: {}]   ;;  %s10489_s5 = inlined_call_operand.vmem [shape: f32[1,8], index: 5, kind: input, shape index: {}]   ;;  %s10490_s6 = inlined_call_operand.vmem [shape: f32[88,32], index: 6, kind: input, shape index: {}]   ;;  %s10491_s7 = inlined_call_operand.vmem [shape: f32[1,32], index: 7, kind: input, shape index: {}]   ;;  %s10492_s8 = inlined_call_operand.vmem [shape: f32[1,32], index: 8, kind: input, shape index: {}]   ;;  %s10493_s9 = inlined_call_operand.vmem [shape: f32[1,32], index: 9, kind: input, shape index: {}]   ;;  %s10494_s10 = inlined_call_operand.vmem [shape: f32[352,32], index: 10, kind: input, shape index: {}]   ;;  %s10495_s11 = inlined_call_operand.vmem [shape: f32[1,32], index: 11, kind: input, shape index: {}]   ;;  %s10496_s12 = inlined_call_operand.vmem [shape: f32[1,32], index: 12, kind: input, shape index: {}]   ;;  %s10497_s13 = inlined_call_operand.vmem [shape: f32[1,32], index: 13, kind: input, shape index: {}]   ;;  %s10498_s14 = inlined_call_operand.vmem [shape: f32[8,32], index: 14, kind: input, shape index: {}]   ;;  %s10499_s15 = inlined_call_operand.vmem [shape: f32[1,32], index: 15, kind: input, shape index: {}]   ;;  %s10500_s16 = inlined_call_operand.vmem [shape: f32[1,32], index: 16, kind: input, shape index: {}]   ;;  %s10501_s17 = inlined_call_operand.vmem [shape: f32[32,256], index: 17, kind: input, shape index: {}]   ;;  %s10502_s18 = inlined_call_operand.vmem [shape: f32[1,256], index: 18, kind: input, shape index: {}]   ;;  %s10503_s19 = inlined_call_operand.vmem [shape: f32[64,128], index: 19, kind: input, shape index: {}]   ;;  %s10504_s20 = inlined_call_operand.vmem [shape: f32[64,256], index: 20, kind: input, shape index: {}]   ;;  %s10505_s21 = inlined_call_operand.vmem [shape: f32[1,256], index: 21, kind: input, shape index: {}]   ;;  %s10506_s22 = inlined_call_operand.vmem [shape: f32[64,128], index: 22, kind: input, shape index: {}]   ;;  %s10507_s23 = inlined_call_operand.vmem [shape: f32[64,4], index: 23, kind: input, shape index: {}]   ;;  %s10508_s24 = inlined_call_operand.vmem [shape: f32[1,4], index: 24, kind: input, shape index: {}]   ;;  %s10509_s25 = inlined_call_operand.hbm [shape: f32[2,4], index: 25, kind: output, shape index: {}]  }
   0x1   :  { %10514 = sst [smem:[#allocation7_spill]] %s10484_s0 }
   0x2   :  { %10515 = sst [smem:[#allocation8_spill]] %s10485_s1 }
   0x3   :  { %10516 = sst [smem:[#allocation9_spill]] %s10486_s2 }
   0x4   :  { %10517 = sst [smem:[#allocation10_spill]] %s10487_s3 }
   0x5   :  { %10518 = sst [smem:[#allocation11_spill]] %s10488_s4 }
   0x6   :  { %10519 = sst [smem:[#allocation12_spill]] %s10489_s5 }
   0x7   :  { %10520 = sst [smem:[#allocation13_spill]] %s10490_s6 }
   0x8   :  { %10521 = sst [smem:[#allocation14_spill]] %s10491_s7 }
   0x9   :  { %10522 = sst [smem:[#allocation15_spill]] %s10492_s8 }
   0xa   :  { %10523 = sst [smem:[#allocation16_spill]] %s10493_s9 }
   0xb   :  { %s10524_s6 = sld [smem:[#allocation7_spill]]  ;;  %vm99_vm0 = vcmask 1045504   ;;  %v8275_v2 = vmov 0.0   ;;  %s8276_s3 = smov 4   ;;  %vm109_vm1 = vcmask 1043456  }
   0xc   :  { %128 = vrot.lane.b32.xlu0 %v8275_v2, %s8276_s3  ;;  %s8277_s26 = smov 8  }
  0x11   :  { %v81_v0 = vld [vmem:[%s10524_s6] sm:$0xff]  ;;  %v8433_v1 = vld [vmem:[%s10524_s6 + $0x8] sm:$0xff] }
  0x12   :  { %v100_v3 = vrot.slane %v81_v0, 2  ;;  %v101_v4 = vrot.slane %v8433_v1, 2  ;;  %v110_v5 = vrot.slane %v81_v0, 4 }
  0x14   :  { %v108_v6 = vsel %vm99_vm0, 0.0, %v100_v3 }
  0x15   :  { %141 = vrot.lane.b32.xlu1 %v108_v6, %s8277_s26 }
  0x16   :  { %30 = vsyncpa [#allocation5], 0  ;;  %130 = vrot.lane.b32.xlu0 %v81_v0, %s8276_s3  ;;  %v102_v7 = vsel %vm99_vm0, %v100_v3, %v101_v4  ;;  %v111_v8 = vrot.slane %v8433_v1, 4  ;;  %v118_v9 = vsel %vm109_vm1, 0.0, %v110_v5  ;;  %v89_v10 = vrot.slane %v81_v0, 6  ;;  %s8278_s1 = smov 12  }
  0x17   :  { %vm88_vm2 = vcmask 1041408   ;;  %v90_v13 = vrot.slane %v8433_v1, 6  ;;  %s8279_s8 = smov 16   ;;  %v83_v15 = vld [vmem:[%s10524_s6 + $0x10] sm:$0xff]  ;;  %v8467_v17 = vld [vmem:[%s10524_s6 + $0x18] sm:$0xff]  ;;  %s8280_s5 = smov 20  }
  0x18   :  { %v112_v11 = vsel %vm109_vm1, %v110_v5, %v111_v8  ;;  %v8448_v12 = vsel %vm88_vm2, 0.0, %v89_v10  ;;  %v103_v16 = vrot.slane %v83_v15, 2  ;;  %v105_v19 = vrot.slane %v8467_v17, 2  ;;  %s8281_s0 = smov 24   ;;  %s8282_s29 = smov 28  }
  0x19   :  { %143 = vrot.lane.b32.xlu1 %v102_v7, %s8277_s26  ;;  %v8455_v14 = vsel %vm88_vm2, %v89_v10, %v90_v13  ;;  %v113_v20 = vrot.slane %v83_v15, 4  ;;  %v115_v23 = vrot.slane %v8467_v17, 4  ;;  %v92_v24 = vrot.slane %v83_v15, 6  ;;  %s10525_s30 = sld [smem:[#allocation9_spill]]  ;;  %s8283_s9 = smov 32  }
  0x1a   :  { %154 = vrot.lane.b32.xlu0 %v118_v9, %s8278_s1  ;;  %v104_v18 = vsel %vm99_vm0, %v101_v4, %v103_v16  ;;  %v106_v21 = vsel %vm99_vm0, %v103_v16, %v105_v19  ;;  %v119_v27 = vrot.slane %v8467_v17, 6  ;;  %vm8284_vm3 = vmmov 1   ;;  %s10526_s4 = sld [smem:[#allocation10_spill]]  ;;  %s10527_s6 = sld [smem:[#allocation11_spill]] }
  0x1b   :  { %v114_v22 = vsel %vm109_vm1, %v111_v8, %v113_v20  ;;  %v116_v25 = vsel %vm109_vm1, %v113_v20, %v115_v23  ;;  %v8487_v26 = vsel %vm88_vm2, %v90_v13, %v92_v24  ;;  %vm7451_vm4 = vmpackc.low %vm109_vm1, %vm8284_vm3  ;;  %v122_v38 = vsel %vm99_vm0, %v105_v19, 0.0  ;;  %s8289_s27 = smov 56   ;;  %s10529_s2 = sld [smem:[#allocation13_spill]] }
  0x1c   :  { %v120_v31 = vsel %vm88_vm2, %v92_v24, %v119_v27  ;;  %v124_v39 = vsel %vm109_vm1, %v115_v23, 0.0  ;;  %v126_v40 = vsel %vm88_vm2, %v119_v27, 0.0  ;;  %vm254_vm5 = vcmask 31744   ;;  %s8296_s28 = smov [#allocation4]  }
  0x1d   :  { %156 = vrot.lane.b32.xlu1 %v112_v11, %s8278_s1  ;;  %vm259_vm6 = vcmask 64512   ;;  %vm264_vm7 = vcmask 97280   ;;  %vm269_vm8 = vcmask 130048   ;;  %vm274_vm9 = vcmask 162816  }
  0x1e   :  { %167 = vrot.lane.b32.xlu0 %v8448_v12, %s8279_s8  ;;  %vm279_vm10 = vcmask 195584   ;;  %vm284_vm11 = vcmask 228352   ;;  %vm289_vm12 = vcmask 261120   ;;  %vm294_vm13 = vcmask 293888  }
  0x1f   :  { %v304_v28 = vld [vmem:[%s10525_s30] sm:$0xff]  ;;  %v305_v29 = vld [vmem:[%s10525_s30 + $0x8] sm:$0xff]  ;;  %v306_v32 = vld [vmem:[%s10525_s30 + $0x10] sm:$0xff]  ;;  %vm299_vm14 = vcmask 326656   ;;  %vm317_vm15 = vcmask 359424   ;;  %vm629_vm3 = vcmask 392192  }
  0x20   :  { %v7442_v30 = vpack.c.bf16 %v305_v29, %v304_v28  ;;  %v307_v33 = vld [vmem:[%s10525_s30 + $0x18] sm:$0xff]  ;;  %v308_v35 = vld [vmem:[%s10525_s30 + $0x20] sm:$0xff]  ;;  %v309_v36 = vld [vmem:[%s10525_s30 + $0x28] sm:$0xf]  ;;  %s8286_s30 = smov 40  }
  0x21   :  { %132 = vrot.lane.b32.xlu1 %v8433_v1, %s8276_s3  ;;  %v7446_v34 = vpack.c.bf16 %v307_v33, %v306_v32  ;;  %v7450_v37 = vpack.c.bf16 %v309_v36, %v308_v35 }
  0x22   :  { %169 = vrot.lane.b32.xlu0 %v8455_v14, %s8279_s8  ;;  %7443 = vmatprep.subr.bf16.mxu0 %v7442_v30 }
  0x23   :  { %7445 = vmatpush3.bf16.msra.mxu0 %v7442_v30 }
  0x24   :  { %7447 = vmatprep.subr.bf16.mxu0 %v7446_v34 }
  0x25   :  { %179 = vrot.lane.b32.xlu1 %v81_v0, %s8280_s5 }
  0x26   :  { %134 = vrot.lane.b32.xlu0 %v83_v15, %s8276_s3  ;;  %s8290_s3 = smov 64  }
  0x27   :  { %7449 = vmatpush3.bf16.msra.mxu0 %v7446_v34 }
  0x28   :  { %7452 = vmatprep.subr.msk.bf16.mxu0 %vm7451_vm4, %v7450_v37 }
  0x29   :  { %145 = vrot.lane.b32.xlu1 %v104_v18, %s8277_s26 }
  0x2a   :  { %181 = vrot.lane.b32.xlu0 %v8433_v1, %s8280_s5 }
  0x2b   :  { %7455 = vmatpush3.bf16.msk.msra.mxu0 %vm7451_vm4, %v7450_v37  ;;  %vm634_vm4 = vcmask 457728  }
  0x2d   :  { %192 = vrot.lane.b32.xlu1 %v102_v7, %s8281_s0 }
  0x2e   :  { %147 = vrot.lane.b32.xlu0 %v106_v21, %s8277_s26 }
  0x31   :  { %158 = vrot.lane.b32.xlu1 %v114_v22, %s8278_s1 }
  0x32   :  { %194 = vrot.lane.b32.xlu0 %v104_v18, %s8281_s0 }
  0x35   :  { %205 = vrot.lane.b32.xlu1 %v112_v11, %s8282_s29 }
  0x36   :  { %160 = vrot.lane.b32.xlu0 %v116_v25, %s8278_s1  ;;  %s8285_s1 = smov 36  }
  0x39   :  { %171 = vrot.lane.b32.xlu1 %v8487_v26, %s8279_s8 }
  0x3a   :  { %207 = vrot.lane.b32.xlu0 %v114_v22, %s8282_s29 }
  0x3d   :  { %218 = vrot.lane.b32.xlu1 %v8455_v14, %s8283_s9 }
  0x3e   :  { %173 = vrot.lane.b32.xlu0 %v120_v31, %s8279_s8 }
  0x41   :  { %183 = vrot.lane.b32.xlu1 %v83_v15, %s8280_s5 }
  0x42   :  { %220 = vrot.lane.b32.xlu0 %v8487_v26, %s8283_s9 }
  0x45   :  { %230 = vrot.lane.b32.xlu1 %v8433_v1, %s8285_s1 }
  0x46   :  { %185 = vrot.lane.b32.xlu0 %v8467_v17, %s8280_s5  ;;  %s8287_s5 = smov 72  }
  0x49   :  { %196 = vrot.lane.b32.xlu1 %v106_v21, %s8281_s0 }
  0x4a   :  { %232 = vrot.lane.b32.xlu0 %v83_v15, %s8285_s1 }
  0x4d   :  { %242 = vrot.lane.b32.xlu1 %v104_v18, %s8286_s30 }
  0x4e   :  { %198 = vrot.lane.b32.xlu0 %v122_v38, %s8281_s0 }
  0x51   :  { %209 = vrot.lane.b32.xlu1 %v116_v25, %s8282_s29 }
  0x52   :  { %244 = vrot.lane.b32.xlu0 %v106_v21, %s8286_s30 }
  0x55   :  { %211 = vrot.lane.b32.xlu1 %v124_v39, %s8282_s29  ;;  %s8288_s29 = smov 48  }
  0x56   :  { %222 = vrot.lane.b32.xlu0 %v120_v31, %s8283_s9 }
  0x59   :  { %224 = vrot.lane.b32.xlu1 %v126_v40, %s8283_s9 }
  0x5a   :  { %234 = vrot.lane.b32.xlu0 %v8467_v17, %s8285_s1 }
  0x5d   :  { %236 = vrot.lane.b32.xlu1 %v8275_v2, %s8285_s1  ;;  %s10528_s1 = sld [smem:[#allocation12_spill]] }
  0x5e   :  { %246 = vrot.lane.b32.xlu0 %v122_v38, %s8286_s30 }
  0x61   :  { %248 = vrot.lane.b32.xlu1 %v8275_v2, %s8286_s30 }
  0x62   :  { %483 = vrot.lane.b32.xlu0 %v8275_v2, %s8277_s26 }
  0x65   :  { %591 = vrot.lane.b32.xlu1 %v8275_v2, %s8287_s5 }
  0x7e   :  { %v129_v41 = vpop.permute.xlu0 %128 }
  0x7f   :  { %v255_v3 = vsel %vm254_vm5, 0.0, %v129_v41 }
  0x87   :  { %v142_v42 = vpop.permute.xlu1 %141 }
  0x88   :  { %v131_v43 = vpop.permute.xlu0 %130  ;;  %v260_v5 = vsel %vm259_vm6, %v255_v3, %v142_v42 }
  0x89   :  { %v256_v11 = vsel %vm254_vm5, %v8448_v12, %v131_v43 }
  0x8b   :  { %v144_v44 = vpop.permute.xlu1 %143 }
  0x8c   :  { %v155_v45 = vpop.permute.xlu0 %154  ;;  %v261_v16 = vsel %vm259_vm6, %v256_v11, %v144_v44 }
  0x8d   :  { %v265_v7 = vsel %vm264_vm7, %v260_v5, %v155_v45 }
  0x8f   :  { %v157_v46 = vpop.permute.xlu1 %156 }
  0x90   :  { %v168_v47 = vpop.permute.xlu0 %167  ;;  %v266_v18 = vsel %vm264_vm7, %v261_v16, %v157_v46 }
  0x91   :  { %v270_v8 = vsel %vm269_vm8, %v265_v7, %v168_v47 }
  0x93   :  { %v133_v48 = vpop.permute.xlu1 %132 }
  0x94   :  { %v170_v49 = vpop.permute.xlu0 %169  ;;  %v257_v34 = vsel %vm254_vm5, %v8455_v14, %v133_v48 }
  0x95   :  { %v271_v20 = vsel %vm269_vm8, %v266_v18, %v170_v49 }
  0x97   :  { %v180_v50 = vpop.permute.xlu1 %179 }
  0x98   :  { %v135_v51 = vpop.permute.xlu0 %134  ;;  %v275_v9 = vsel %vm274_vm9, %v270_v8, %v180_v50 }
  0x99   :  { %v258_v38 = vsel %vm254_vm5, %v8487_v26, %v135_v51  ;;  %vm639_vm5 = vcmask 523264  }
  0x9b   :  { %v146_v52 = vpop.permute.xlu1 %145 }
  0x9c   :  { %v182_v53 = vpop.permute.xlu0 %181  ;;  %v262_v36 = vsel %vm259_vm6, %v257_v34, %v146_v52 }
  0x9d   :  { %v276_v12 = vsel %vm274_vm9, %v271_v20, %v182_v53 }
  0x9f   :  { %v193_v54 = vpop.permute.xlu1 %192 }
  0xa0   :  { %v148_v55 = vpop.permute.xlu0 %147  ;;  %v280_v13 = vsel %vm279_vm10, %v275_v9, %v193_v54 }
  0xa1   :  { %v263_v41 = vsel %vm259_vm6, %v258_v38, %v148_v55 }
  0xa3   :  { %v159_v56 = vpop.permute.xlu1 %158 }
  0xa4   :  { %v195_v57 = vpop.permute.xlu0 %194  ;;  %v267_v37 = vsel %vm264_vm7, %v262_v36, %v159_v56  ;;  %v656_v36 = vld [vmem:[%s10529_s2 + $0x10] sm:$0xff] }
  0xa5   :  { %v281_v25 = vsel %vm279_vm10, %v276_v12, %v195_v57 }
  0xa7   :  { %v206_v58 = vpop.permute.xlu1 %205 }
  0xa8   :  { %v161_v59 = vpop.permute.xlu0 %160  ;;  %v285_v17 = vsel %vm284_vm11, %v280_v13, %v206_v58  ;;  %v6180_v58 = vld [vmem:[%s10526_s4] ss:$0 sm:$0xff]  ;;  %s10531_s4 = sld [smem:[#allocation15_spill]] }
  0xa9   :  { %v268_v44 = vsel %vm264_vm7, %v263_v41, %v161_v59  ;;  %vm644_vm7 = vcmask 588800  }
  0xab   :  { %v172_v60 = vpop.permute.xlu1 %171 }
  0xac   :  { %v208_v61 = vpop.permute.xlu0 %207  ;;  %v272_v39 = vsel %vm269_vm8, %v267_v37, %v172_v60  ;;  %v6186_v60 = vld [vmem:[%s10527_s6] ss:$0 sm:$0xff]  ;;  %v657_v37 = vld [vmem:[%s10529_s2 + $0x18] sm:$0xff] }
  0xad   :  { %v286_v27 = vsel %vm284_vm11, %v281_v25, %v208_v61  ;;  %v7460_v38 = vpack.c.bf16 %v657_v37, %v656_v36 }
  0xaf   :  { %v219_v62 = vpop.permute.xlu1 %218 }
  0xb0   :  { %v174_v63 = vpop.permute.xlu0 %173  ;;  %v290_v19 = vsel %vm289_vm12, %v285_v17, %v219_v62 }
  0xb1   :  { %v273_v45 = vsel %vm269_vm8, %v268_v44, %v174_v63  ;;  %v6187_v63 = vld [vmem:[%s10528_s1] ss:$0 sm:$0xff] }
  0xb3   :  { %v184_v0 = vpop.permute.xlu1 %183 }
  0xb4   :  { %v221_v1 = vpop.permute.xlu0 %220  ;;  %v277_v42 = vsel %vm274_vm9, %v272_v39, %v184_v0 }
  0xb5   :  { %v291_v28 = vsel %vm289_vm12, %v286_v27, %v221_v1 }
  0xb7   :  { %v231_v4 = vpop.permute.xlu1 %230 }
  0xb8   :  { %v186_v6 = vpop.permute.xlu0 %185  ;;  %v295_v21 = vsel %vm294_vm13, %v290_v19, %v231_v4 }
  0xb9   :  { %v278_v47 = vsel %vm274_vm9, %v273_v45, %v186_v6  ;;  %vm649_vm9 = vcmask 654336  }
  0xbb   :  { %v197_v10 = vpop.permute.xlu1 %196 }
  0xbc   :  { %v233_v15 = vpop.permute.xlu0 %232  ;;  %v282_v14 = vsel %vm279_vm10, %v277_v42, %v197_v10  ;;  %v658_v42 = vld [vmem:[%s10529_s2 + $0x20] sm:$0xff] }
  0xbd   :  { %v296_v30 = vsel %vm294_vm13, %v291_v28, %v233_v15 }
  0xbf   :  { %v243_v22 = vpop.permute.xlu1 %242 }
  0xc0   :  { %v199_v23 = vpop.permute.xlu0 %198  ;;  %v300_v24 = vsel %vm299_vm14, %v295_v21, %v243_v22 }
  0xc1   :  { %6743 = vmatprep.mubr.msk.f32.mxu0 %vm317_vm15, %v300_v24  ;;  %v283_v49 = vsel %vm279_vm10, %v278_v47, %v199_v23  ;;  %v660_v47 = vld [vmem:[%s10529_s2 + $0x30] sm:$0xff] }
  0xc3   :  { %v210_v29 = vpop.permute.xlu1 %209 }
  0xc4   :  { %v245_v31 = vpop.permute.xlu0 %244  ;;  %v287_v46 = vsel %vm284_vm11, %v282_v14, %v210_v29 }
  0xc5   :  { %v301_v32 = vsel %vm299_vm14, %v296_v30, %v245_v31 }
  0xc6   :  { %6744 = vmatmul.mubr.msk.f32.vlgmr.msra.gmra.mrb[0].mxu0 %vm317_vm15, %v301_v32  ;;  %v654_v32 = vld [vmem:[%s10529_s2] sm:$0xff] }
  0xc7   :  { %v212_v33 = vpop.permute.xlu1 %211 }
  0xc8   :  { %v223_v35 = vpop.permute.xlu0 %222  ;;  %v288_v52 = vsel %vm284_vm11, %v283_v49, %v212_v33  ;;  %v655_v33 = vld [vmem:[%s10529_s2 + $0x8] sm:$0xff]  ;;  %vm672_vm11 = vcmask 719872  }
  0xc9   :  { %v292_v26 = vsel %vm289_vm12, %v287_v46, %v223_v35  ;;  %v7456_v34 = vpack.c.bf16 %v655_v33, %v654_v32 }
  0xcb   :  { %v225_v40 = vpop.permute.xlu1 %224  ;;  %7457 = vmatprep.subr.bf16.mxu1 %v7456_v34 }
  0xcc   :  { %v235_v43 = vpop.permute.xlu0 %234  ;;  %v293_v54 = vsel %vm289_vm12, %v288_v52, %v225_v40  ;;  %7459 = vmatpush3.bf16.msra.mxu1 %v7456_v34  ;;  %v662_v52 = vld [vmem:[%s10529_s2 + $0x40] sm:$0xff] }
  0xcd   :  { %v297_v50 = vsel %vm294_vm13, %v292_v26, %v235_v43  ;;  %7461 = vmatprep.subr.bf16.mxu1 %v7460_v38  ;;  %v659_v43 = vld [vmem:[%s10529_s2 + $0x28] sm:$0xff]  ;;  %v661_v26 = vld [vmem:[%s10529_s2 + $0x38] sm:$0xff] }
  0xce   :  { %v7464_v44 = vpack.c.bf16 %v659_v43, %v658_v42 }
  0xcf   :  { %v237_v48 = vpop.permute.xlu1 %236 }
  0xd0   :  { %v247_v51 = vpop.permute.xlu0 %246  ;;  %v298_v55 = vsel %vm294_vm13, %v293_v54, %v237_v48  ;;  %7463 = vmatpush3.bf16.msra.mxu1 %v7460_v38  ;;  %v7468_v48 = vpack.c.bf16 %v661_v26, %v660_v47  ;;  %vm1543_vm13 = vcmask 254976  }
  0xd1   :  { %v302_v53 = vsel %vm299_vm14, %v297_v50, %v247_v51  ;;  %7465 = vmatprep.subr.bf16.mxu1 %v7464_v44 }
  0xd2   :  { %6746 = vmatprep.mubr.msk.f32.mxu0 %vm317_vm15, %v302_v53  ;;  %v663_v53 = vld [vmem:[%s10529_s2 + $0x48] sm:$0xff] }
  0xd3   :  { %v249_v56 = vpop.permute.xlu1 %248  ;;  %v7472_v54 = vpack.c.bf16 %v663_v53, %v662_v52 }
  0xd4   :  { %v303_v57 = vsel %vm299_vm14, %v298_v55, %v249_v56  ;;  %7467 = vmatpush3.bf16.msra.mxu1 %v7464_v44 }
  0xd5   :  { %6747 = vmatmul.mubr.msk.f32.gmra.mrb[2].mxu0 %vm317_vm15, %v303_v57  ;;  %7469 = vmatprep.subr.bf16.mxu1 %v7468_v48 }
  0xd8   :  { %7471 = vmatpush3.bf16.msra.mxu1 %v7468_v48 }
  0xd9   :  { %7473 = vmatprep.subr.bf16.mxu1 %v7472_v54 }
  0xdc   :  { %7475 = vmatpush3.bf16.msra.mxu1 %v7472_v54 }
 0x199   :  { %v6745_v59 = vpop.f32.mrb[0].mxu0 }
 0x19a   :  { %v405_v61 = vadd.f32 %v6745_v59, %v6180_v58  ;;  %v399_v62 = vpop.f32.mrb[1].mxu0 }
 0x19b   :  { %v400_v0 = vadd.f32 %v6180_v58, %v399_v62  ;;  %v484_v62 = vpop.permute.xlu0 %483 }
 0x19c   :  { %v426_v1 = vmul.f32 %v6186_v60, %v405_v61  ;;  %v8726_v61 = vpop.permute.xlu1 %591  ;;  %v609_v36 = vsel %vm259_vm6, 0.0, %v484_v62 }
 0x19d   :  { %v425_v3 = vmul.f32 %v6186_v60, %v400_v0 }
 0x19e   :  { %v437_v4 = vadd.f32 %v6187_v63, %v426_v1 }
 0x19f   :  { %v436_v5 = vadd.f32 %v6187_v63, %v425_v3 }
 0x1a0   :  { %v8598_v6 = vmax.f32 %v437_v4, 0.0 }
 0x1a1   :  { %v8600_v7 = vmax.f32 %v436_v5, 0.0 }
 0x1a2   :  { %536 = vrot.lane.b32.xlu0 %v8598_v6, %s8286_s30  ;;  %487 = vrot.lane.b32.xlu1 %v8598_v6, %s8277_s26  ;;  %v458_v20 = vrot.slane %v8598_v6, 2  ;;  %v448_v21 = vrot.slane %v8598_v6, 6  ;;  %v467_v25 = vrot.slane %v8598_v6, 4 }
 0x1a3   :  { %v457_v8 = vrot.slane %v8600_v7, 2  ;;  %v466_v10 = vrot.slane %v8600_v7, 4  ;;  %v447_v17 = vrot.slane %v8600_v7, 6 }
 0x1a5   :  { %v465_v9 = vsel %vm99_vm0, 0.0, %v457_v8  ;;  %v474_v16 = vsel %vm109_vm1, 0.0, %v466_v10  ;;  %v8618_v19 = vsel %vm88_vm2, 0.0, %v447_v17  ;;  %v459_v23 = vsel %vm99_vm0, %v457_v8, %v458_v20 }
 0x1a6   :  { %585 = vrot.lane.b32.xlu1 %v8598_v6, %s8287_s5  ;;  %496 = vrot.lane.b32.xlu0 %v465_v9, %s8279_s8  ;;  %v8630_v24 = vsel %vm88_vm2, %v447_v17, %v448_v21  ;;  %v468_v29 = vsel %vm109_vm1, %v466_v10, %v467_v25 }
 0x1a8   :  { %v6748_v11 = vpop.f32.mrb[2].mxu0 }
 0x1a9   :  { %v415_v13 = vadd.f32 %v6748_v11, %v6180_v58  ;;  %v409_v15 = vpop.f32.mrb[3].mxu0 }
 0x1aa   :  { %485 = vrot.lane.b32.xlu1 %v8600_v7, %s8277_s26  ;;  %509 = vrot.lane.b32.xlu0 %v474_v16, %s8281_s0  ;;  %v410_v12 = vadd.f32 %v6180_v58, %v409_v15  ;;  %v664_v58 = vld [vmem:[%s10529_s2 + $0x50] sm:$0xff] }
 0x1ab   :  { %v428_v18 = vmul.f32 %v6186_v60, %v415_v13  ;;  %6769 = vmatprep.subr.mxu1 %v664_v58 }
 0x1ac   :  { %v427_v28 = vmul.f32 %v6186_v60, %v410_v12  ;;  %6770 = vmatpush3.msra.mxu1 %v664_v58 }
 0x1ad   :  { %v439_v22 = vadd.f32 %v6187_v63, %v428_v18 }
 0x1ae   :  { %534 = vrot.lane.b32.xlu1 %v8600_v7, %s8286_s30  ;;  %522 = vrot.lane.b32.xlu0 %v8618_v19, %s8283_s9  ;;  %v438_v30 = vadd.f32 %v6187_v63, %v427_v28 }
 0x1af   :  { %v8636_v27 = vmax.f32 %v439_v22, 0.0 }
 0x1b0   :  { %v8647_v31 = vmax.f32 %v438_v30, 0.0 }
 0x1b1   :  { %v462_v35 = vrot.slane %v8636_v27, 2  ;;  %v471_v40 = vrot.slane %v8636_v27, 4  ;;  %v475_v46 = vrot.slane %v8636_v27, 6 }
 0x1b2   :  { %498 = vrot.lane.b32.xlu1 %v459_v23, %s8279_s8  ;;  %524 = vrot.lane.b32.xlu0 %v8630_v24, %s8283_s9  ;;  %v460_v41 = vrot.slane %v8647_v31, 2  ;;  %v469_v51 = vrot.slane %v8647_v31, 4  ;;  %v450_v57 = vrot.slane %v8647_v31, 6 }
 0x1b3   :  { %v478_v39 = vsel %vm99_vm0, %v462_v35, 0.0  ;;  %v480_v14 = vsel %vm109_vm1, %v471_v40, 0.0  ;;  %v482_v49 = vsel %vm88_vm2, %v475_v46, 0.0 }
 0x1b4   :  { %v463_v45 = vsel %vm99_vm0, %v460_v41, %v462_v35  ;;  %v461_v50 = vsel %vm99_vm0, %v458_v20, %v460_v41  ;;  %v472_v55 = vsel %vm109_vm1, %v469_v51, %v471_v40  ;;  %v470_v56 = vsel %vm109_vm1, %v467_v25, %v469_v51 }
 0x1b5   :  { %v476_v59 = vsel %vm88_vm2, %v450_v57, %v475_v46  ;;  %v451_v60 = vsel %vm88_vm2, %v448_v21, %v450_v57 }
 0x1b6   :  { %511 = vrot.lane.b32.xlu1 %v468_v29, %s8281_s0  ;;  %540 = vrot.lane.b32.xlu0 %v8636_v27, %s8286_s30 }
 0x1ba   :  { %547 = vrot.lane.b32.xlu1 %v459_v23, %s8288_s29  ;;  %589 = vrot.lane.b32.xlu0 %v8636_v27, %s8287_s5 }
 0x1be   :  { %560 = vrot.lane.b32.xlu1 %v468_v29, %s8289_s27  ;;  %489 = vrot.lane.b32.xlu0 %v8647_v31, %s8277_s26 }
 0x1c2   :  { %573 = vrot.lane.b32.xlu1 %v8630_v24, %s8290_s3  ;;  %587 = vrot.lane.b32.xlu0 %v8647_v31, %s8287_s5 }
 0x1c6   :  { %538 = vrot.lane.b32.xlu1 %v8647_v31, %s8286_s30  ;;  %553 = vrot.lane.b32.xlu0 %v478_v39, %s8288_s29  ;;  %s10530_s30 = sld [smem:[#allocation14_spill]] }
 0x1ca   :  { %566 = vrot.lane.b32.xlu1 %v480_v14, %s8289_s27  ;;  %502 = vrot.lane.b32.xlu0 %v463_v45, %s8279_s8 }
 0x1ce   :  { %579 = vrot.lane.b32.xlu1 %v482_v49, %s8290_s3  ;;  %549 = vrot.lane.b32.xlu0 %v461_v50, %s8288_s29 }
 0x1d2   :  { %515 = vrot.lane.b32.xlu0 %v472_v55, %s8281_s0  ;;  %500 = vrot.lane.b32.xlu1 %v461_v50, %s8279_s8  ;;  %s8291_s8 = smov 80  }
 0x1d6   :  { %562 = vrot.lane.b32.xlu0 %v470_v56, %s8289_s27  ;;  %513 = vrot.lane.b32.xlu1 %v470_v56, %s8281_s0 }
 0x1da   :  { %528 = vrot.lane.b32.xlu0 %v476_v59, %s8283_s9  ;;  %526 = vrot.lane.b32.xlu1 %v451_v60, %s8283_s9 }
 0x1de   :  { %575 = vrot.lane.b32.xlu0 %v451_v60, %s8290_s3  ;;  %551 = vrot.lane.b32.xlu1 %v463_v45, %s8288_s29 }
 0x1e2   :  { %599 = vrot.lane.b32.xlu0 %v463_v45, %s8291_s8  ;;  %597 = vrot.lane.b32.xlu1 %v461_v50, %s8291_s8 }
 0x1e6   :  { %577 = vrot.lane.b32.xlu0 %v476_v59, %s8290_s3  ;;  %564 = vrot.lane.b32.xlu1 %v472_v55, %s8289_s27  ;;  %s10532_s27 = sld [smem:[#allocation16_spill]] }
 0x1ea   :  { %601 = vrot.lane.b32.xlu0 %v478_v39, %s8291_s8  ;;  %603 = vrot.lane.b32.xlu1 %v8275_v2, %s8291_s8 }
 0x214   :  { %v488_v63 = vpop.permute.xlu1 %487  ;;  %v537_v0 = vpop.permute.xlu0 %536 }
 0x215   :  { %v611_v56 = vsel %vm259_vm6, %v8630_v24, %v488_v63 }
 0x218   :  { %v8728_v1 = vpop.permute.xlu1 %585  ;;  %v497_v3 = vpop.permute.xlu0 %496 }
 0x219   :  { %v613_v40 = vsel %vm269_vm8, %v609_v36, %v497_v3  ;;  %v908_v36 = vld [vmem:[%s10494_s10 + $0x10] sm:$0xff] }
 0x21c   :  { %v486_v4 = vpop.permute.xlu1 %485  ;;  %v510_v5 = vpop.permute.xlu0 %509 }
 0x21d   :  { %v610_v34 = vsel %vm259_vm6, %v8618_v19, %v486_v4  ;;  %v617_v41 = vsel %vm279_vm10, %v613_v40, %v510_v5 }
 0x220   :  { %v535_v8 = vpop.permute.xlu1 %534  ;;  %v523_v9 = vpop.permute.xlu0 %522 }
 0x221   :  { %v621_v43 = vsel %vm289_vm12, %v617_v41, %v523_v9  ;;  %v938_v41 = vld [vmem:[%s10494_s10 + $0x100] sm:$0xff] }
 0x222   :  { %v625_v26 = vsel %vm299_vm14, %v621_v43, %v535_v8 }
 0x224   :  { %v499_v10 = vpop.permute.xlu1 %498  ;;  %v525_v11 = vpop.permute.xlu0 %524 }
 0x225   :  { %v614_v35 = vsel %vm269_vm8, %v610_v34, %v499_v10 }
 0x228   :  { %v512_v13 = vpop.permute.xlu1 %511  ;;  %v541_v15 = vpop.permute.xlu0 %540 }
 0x229   :  { %v618_v37 = vsel %vm279_vm10, %v614_v35, %v512_v13 }
 0x22a   :  { %v622_v44 = vsel %vm289_vm12, %v618_v37, %v525_v11  ;;  %v909_v37 = vld [vmem:[%s10494_s10 + $0x18] sm:$0xff] }
 0x22b   :  { %v626_v48 = vsel %vm299_vm14, %v622_v44, %v537_v0  ;;  %v7482_v40 = vpack.c.bf16 %v909_v37, %v908_v36  ;;  %v910_v44 = vld [vmem:[%s10494_s10 + $0x20] sm:$0xff] }
 0x22c   :  { %v548_v16 = vpop.permute.xlu1 %547  ;;  %v8730_v17 = vpop.permute.xlu0 %589 }
 0x22d   :  { %v630_v49 = vsel %vm629_vm3, %v625_v26, %v548_v16  ;;  %v941_v26 = vld [vmem:[%s10494_s10 + $0x118] sm:$0xff] }
 0x230   :  { %v561_v18 = vpop.permute.xlu1 %560  ;;  %v490_v20 = vpop.permute.xlu0 %489 }
 0x231   :  { %v612_v42 = vsel %vm259_vm6, %v451_v60, %v490_v20  ;;  %v635_v51 = vsel %vm634_vm4, %v630_v49, %v561_v18 }
 0x234   :  { %v574_v21 = vpop.permute.xlu1 %573  ;;  %v588_v22 = vpop.permute.xlu0 %587 }
 0x235   :  { %v640_v57 = vsel %vm639_vm5, %v635_v51, %v574_v21  ;;  %v912_v51 = vld [vmem:[%s10494_s10 + $0x30] sm:$0xff] }
 0x236   :  { %v645_v24 = vsel %vm644_vm7, %v640_v57, %v8728_v1  ;;  %v914_v57 = vld [vmem:[%s10494_s10 + $0x40] sm:$0xff] }
 0x238   :  { %v539_v12 = vpop.permute.xlu1 %538  ;;  %v554_v23 = vpop.permute.xlu0 %553 }
 0x23c   :  { %v567_v25 = vpop.permute.xlu1 %566  ;;  %v503_v28 = vpop.permute.xlu0 %502 }
 0x23d   :  { %v616_v19 = vsel %vm269_vm8, %v612_v42, %v503_v28  ;;  %v922_v28 = vld [vmem:[%s10494_s10 + $0x80] sm:$0xff]  ;;  %v939_v42 = vld [vmem:[%s10494_s10 + $0x108] sm:$0xff] }
 0x240   :  { %v580_v29 = vpop.permute.xlu1 %579  ;;  %v550_v30 = vpop.permute.xlu0 %549 }
 0x241   :  { %v631_v50 = vsel %vm629_vm3, %v626_v48, %v550_v30  ;;  %v907_v30 = vld [vmem:[%s10494_s10 + $0x8] sm:$0xff] }
 0x244   :  { %v516_v32 = vpop.permute.xlu0 %515  ;;  %v501_v33 = vpop.permute.xlu1 %500 }
 0x245   :  { %v620_v14 = vsel %vm279_vm10, %v616_v19, %v516_v32  ;;  %v615_v59 = vsel %vm269_vm8, %v611_v56, %v501_v33  ;;  %v924_v32 = vld [vmem:[%s10494_s10 + $0x90] sm:$0xff]  ;;  %v925_v33 = vld [vmem:[%s10494_s10 + $0x98] sm:$0xff]  ;;  %v911_v19 = vld [vmem:[%s10494_s10 + $0x28] sm:$0xff]  ;;  %vm896_vm8 = vcmask 785408  }
 0x246   :  { %v7480_v35 = vpack.c.bf16 %v925_v33, %v924_v32  ;;  %v7486_v49 = vpack.c.bf16 %v911_v19, %v910_v44  ;;  %v948_v19 = vld [vmem:[%s10494_s10 + $0x150] sm:$0xff] }
 0x248   :  { %v563_v38 = vpop.permute.xlu0 %562  ;;  %v514_v39 = vpop.permute.xlu1 %513 }
 0x249   :  { %v636_v52 = vsel %vm634_vm4, %v631_v50, %v563_v38  ;;  %v619_v60 = vsel %vm279_vm10, %v615_v59, %v514_v39  ;;  %v926_v38 = vld [vmem:[%s10494_s10 + $0xa0] sm:$0xff]  ;;  %v927_v39 = vld [vmem:[%s10494_s10 + $0xa8] sm:$0xff]  ;;  %vm8294_vm10 = vmmov 0  }
 0x24a   :  { %v7484_v43 = vpack.c.bf16 %v927_v39, %v926_v38  ;;  %v920_v38 = vld [vmem:[%s10494_s10 + $0x70] sm:$0xff]  ;;  %v921_v39 = vld [vmem:[%s10494_s10 + $0x78] sm:$0xff] }
 0x24c   :  { %v529_v45 = vpop.permute.xlu0 %528  ;;  %v527_v46 = vpop.permute.xlu1 %526 }
 0x24d   :  { %v624_v47 = vsel %vm289_vm12, %v620_v14, %v529_v45  ;;  %v623_v0 = vsel %vm289_vm12, %v619_v60, %v527_v46  ;;  %v7508_v14 = vpack.c.bf16 %v939_v42, %v938_v41  ;;  %v928_v45 = vld [vmem:[%s10494_s10 + $0xb0] sm:$0xff]  ;;  %v929_v46 = vld [vmem:[%s10494_s10 + $0xb8] sm:$0xff]  ;;  %v942_v60 = vld [vmem:[%s10494_s10 + $0x120] sm:$0xff]  ;;  %v7506_v41 = vpack.c.bf16 %v921_v39, %v920_v38 }
 0x24e   :  { %v628_v53 = vsel %vm299_vm14, %v624_v47, %v541_v15  ;;  %v627_v10 = vsel %vm299_vm14, %v623_v0, %v539_v12  ;;  %v940_v47 = vld [vmem:[%s10494_s10 + $0x110] sm:$0xff]  ;;  %v7488_v50 = vpack.c.bf16 %v929_v46, %v928_v45  ;;  %vm1546_vm14 = vcmask 257026  }
 0x24f   :  { %v633_v62 = vsel %vm629_vm3, %v628_v53, %v554_v23  ;;  %7509 = vmatprep.subr.bf16.mxu1 %v7508_v14  ;;  %v7512_v48 = vpack.c.bf16 %v941_v26, %v940_v47  ;;  %v930_v53 = vld [vmem:[%s10494_s10 + $0xc0] sm:$0xff] }
 0x250   :  { %v576_v54 = vpop.permute.xlu0 %575  ;;  %v552_v55 = vpop.permute.xlu1 %551  ;;  %v638_v9 = vsel %vm634_vm4, %v633_v62, %v567_v25  ;;  %v943_v62 = vld [vmem:[%s10494_s10 + $0x128] sm:$0xff] }
 0x251   :  { %v641_v58 = vsel %vm639_vm5, %v636_v52, %v576_v54  ;;  %v632_v11 = vsel %vm629_vm3, %v627_v10, %v552_v55  ;;  %v643_v1 = vsel %vm639_vm5, %v638_v9, %v580_v29  ;;  %v913_v52 = vld [vmem:[%s10494_s10 + $0x38] sm:$0xff]  ;;  %v931_v54 = vld [vmem:[%s10494_s10 + $0xc8] sm:$0xff]  ;;  %v7516_v0 = vpack.c.bf16 %v943_v62, %v942_v60  ;;  %v944_v10 = vld [vmem:[%s10494_s10 + $0x130] sm:$0xff] }
 0x252   :  { %v646_v3 = vsel %vm644_vm7, %v641_v58, %v588_v22  ;;  %v648_v12 = vsel %vm644_vm7, %v643_v1, %v8726_v61  ;;  %v906_v61 = vld [vmem:[%s10494_s10] sm:$0xff]  ;;  %v7490_v55 = vpack.c.bf16 %v913_v52, %v912_v51  ;;  %v7492_v56 = vpack.c.bf16 %v931_v54, %v930_v53  ;;  %v915_v58 = vld [vmem:[%s10494_s10 + $0x48] sm:$0xff] }
 0x253   :  { %v7478_v34 = vpack.c.bf16 %v907_v30, %v906_v61  ;;  %v7494_v59 = vpack.c.bf16 %v915_v58, %v914_v57  ;;  %v934_v1 = vld [vmem:[%s10494_s10 + $0xe0] sm:$0xff]  ;;  %v947_v30 = vld [vmem:[%s10494_s10 + $0x148] sm:$0xff] }
 0x254   :  { %v600_v4 = vpop.permute.xlu0 %599  ;;  %v598_v5 = vpop.permute.xlu1 %597  ;;  %v8937_v60 = vld [vmem:[%s10498_s14] sm:$0xff]  ;;  %s8292_s14 = smov 96  }
 0x255   :  { %v651_v63 = vsel %vm649_vm9, %v646_v3, %v600_v4  ;;  %v650_v8 = vsel %vm649_vm9, %v645_v24, %v598_v5  ;;  %v932_v3 = vld [vmem:[%s10494_s10 + $0xd0] sm:$0xff]  ;;  %v933_v4 = vld [vmem:[%s10494_s10 + $0xd8] sm:$0xff] }
 0x256   :  { %6771 = vmatprep.mubr.msk.f32.mxu1 %vm672_vm11, %v650_v8  ;;  %v7496_v5 = vpack.c.bf16 %v933_v4, %v932_v3  ;;  %v916_v24 = vld [vmem:[%s10494_s10 + $0x50] sm:$0xff]  ;;  %v6188_v8 = vld [vmem:[%s10530_s30] ss:$0 sm:$0xff] }
 0x257   :  { %6772 = vmatmul.mubr.msk.f32.vlgmr.msra.gmra.mrb[0].mxu1 %vm672_vm11, %v651_v63  ;;  %v917_v63 = vld [vmem:[%s10494_s10 + $0x58] sm:$0xff] }
 0x258   :  { %v578_v13 = vpop.permute.xlu0 %577  ;;  %v565_v15 = vpop.permute.xlu1 %564  ;;  %7511 = vmatpush3.bf16.msra.mxu1 %v7508_v14  ;;  %v7498_v9 = vpack.c.bf16 %v917_v63, %v916_v24  ;;  %v949_v14 = vld [vmem:[%s10494_s10 + $0x158] sm:$0xff] }
 0x259   :  { %v637_v16 = vsel %vm634_vm4, %v632_v11, %v565_v15  ;;  %7513 = vmatprep.subr.bf16.mxu1 %v7512_v48  ;;  %v945_v11 = vld [vmem:[%s10494_s10 + $0x138] sm:$0xff]  ;;  %v6193_v15 = vld [vmem:[%s10531_s4] ss:$0 sm:$0xff] }
 0x25a   :  { %v642_v18 = vsel %vm639_vm5, %v637_v16, %v578_v13  ;;  %v7520_v16 = vpack.c.bf16 %v945_v11, %v944_v10 }
 0x25b   :  { %v647_v20 = vsel %vm644_vm7, %v642_v18, %v8730_v17  ;;  %v923_v17 = vld [vmem:[%s10494_s10 + $0x88] sm:$0xff] }
 0x25c   :  { %v602_v21 = vpop.permute.xlu0 %601  ;;  %v604_v22 = vpop.permute.xlu1 %603  ;;  %v7476_v29 = vpack.c.bf16 %v923_v17, %v922_v28  ;;  %7515 = vmatpush3.bf16.msra.mxu1 %v7512_v48  ;;  %v935_v18 = vld [vmem:[%s10494_s10 + $0xe8] sm:$0xff] }
 0x25d   :  { %v652_v23 = vsel %vm649_vm9, %v647_v20, %v602_v21  ;;  %v653_v25 = vsel %vm649_vm9, %v648_v12, %v604_v22  ;;  %7517 = vmatprep.subr.bf16.mxu1 %v7516_v0  ;;  %v7500_v22 = vpack.c.bf16 %v935_v18, %v934_v1  ;;  %v918_v12 = vld [vmem:[%s10494_s10 + $0x60] sm:$0xff] }
 0x25e   :  { %6774 = vmatprep.mubr.msk.f32.mxu1 %vm672_vm11, %v652_v23  ;;  %7477 = vmatprep.subr.bf16.mxu0 %v7476_v29  ;;  %v919_v23 = vld [vmem:[%s10494_s10 + $0x68] sm:$0xff]  ;;  %v946_v29 = vld [vmem:[%s10494_s10 + $0x140] sm:$0xff] }
 0x25f   :  { %6775 = vmatmul.mubr.msk.f32.gmra.mrb[2].mxu1 %vm672_vm11, %v653_v25  ;;  %7479 = vmatpush3.bf16.msra.mxu0 %v7478_v34  ;;  %v6194_v25 = vld [vmem:[%s10532_s27] ss:$0 sm:$0xff]  ;;  %v7502_v17 = vpack.c.bf16 %v919_v23, %v918_v12  ;;  %v7524_v33 = vpack.c.bf16 %v947_v30, %v946_v29  ;;  %v936_v34 = vld [vmem:[%s10494_s10 + $0xf0] sm:$0xff] }
 0x260   :  { %7481 = vmatprep.subr.bf16.mxu0 %v7480_v35  ;;  %7519 = vmatpush3.bf16.msra.mxu1 %v7516_v0  ;;  %v937_v35 = vld [vmem:[%s10494_s10 + $0xf8] sm:$0xff] }
 0x261   :  { %7521 = vmatprep.subr.bf16.mxu1 %v7520_v16  ;;  %v7504_v37 = vpack.c.bf16 %v937_v35, %v936_v34 }
 0x263   :  { %7483 = vmatpush3.bf16.msra.mxu0 %v7482_v40 }
 0x264   :  { %7485 = vmatprep.subr.bf16.mxu0 %v7484_v43  ;;  %7523 = vmatpush3.bf16.msra.mxu1 %v7520_v16 }
 0x265   :  { %7525 = vmatprep.subr.bf16.mxu1 %v7524_v33 }
 0x267   :  { %7487 = vmatpush3.bf16.msra.mxu0 %v7486_v49 }
 0x268   :  { %7489 = vmatprep.subr.bf16.mxu0 %v7488_v50  ;;  %7527 = vmatpush3.bf16.msra.mxu1 %v7524_v33 }
 0x26b   :  { %7491 = vmatpush3.bf16.msra.mxu0 %v7490_v55  ;;  %v7528_v55 = vpack.c.bf16 %v949_v14, %v948_v19 }
 0x26c   :  { %7493 = vmatprep.subr.bf16.mxu0 %v7492_v56 }
 0x26d   :  { %7529 = vmatprep.subr.bf16.mxu1 %v7528_v55 }
 0x26e   :  { %7531 = vmatpush3.bf16.msra.mxu1 %v7528_v55 }
 0x26f   :  { %7495 = vmatpush3.bf16.msra.mxu0 %v7494_v59  ;;  %6807 = vmatprep.subr.mxu1 %v8937_v60 }
 0x270   :  { %7497 = vmatprep.subr.bf16.mxu0 %v7496_v5 }
 0x273   :  { %7499 = vmatpush3.bf16.msra.mxu0 %v7498_v9 }
 0x274   :  { %7501 = vmatprep.subr.bf16.mxu0 %v7500_v22 }
 0x277   :  { %7503 = vmatpush3.bf16.msra.mxu0 %v7502_v17 }
 0x278   :  { %7505 = vmatprep.subr.bf16.mxu0 %v7504_v37 }
 0x27b   :  { %7507 = vmatpush3.bf16.msra.mxu0 %v7506_v41 }
 0x32a   :  { %v6773_v13 = vpop.f32.mrb[0].mxu1 }
 0x32b   :  { %v757_v20 = vadd.f32 %v6773_v13, %v6188_v8  ;;  %v751_v21 = vpop.f32.mrb[1].mxu1 }
 0x32c   :  { %v752_v28 = vadd.f32 %v6188_v8, %v751_v21 }
 0x32d   :  { %v778_v61 = vmul.f32 %v6193_v15, %v757_v20 }
 0x32e   :  { %v777_v32 = vmul.f32 %v6193_v15, %v752_v28 }
 0x32f   :  { %v789_v36 = vadd.f32 %v6194_v25, %v778_v61 }
 0x330   :  { %v788_v40 = vadd.f32 %v6194_v25, %v777_v32 }
 0x331   :  { %v793_v42 = vmax.f32 %v789_v36, 0.0 }
 0x332   :  { %v8916_v43 = vmax.f32 %v788_v40, 0.0  ;;  %v6776_v44 = vpop.f32.mrb[2].mxu1 }
 0x333   :  { %v767_v45 = vadd.f32 %v6776_v44, %v6188_v8  ;;  %840 = vrot.lane.b32.xlu0 %v793_v42, %s8283_s9  ;;  %v761_v46 = vpop.f32.mrb[3].mxu1  ;;  %v810_v47 = vrot.slane %v793_v42, 2  ;;  %v819_v26 = vrot.slane %v793_v42, 4  ;;  %v800_v48 = vrot.slane %v793_v42, 6 }
 0x334   :  { %v762_v49 = vadd.f32 %v6188_v8, %v761_v46  ;;  %v7974_v50 = vpack.i.bf16 %v8275_v2, %v8916_v43  ;;  %v809_v51 = vrot.slane %v8916_v43, 2  ;;  %v818_v52 = vrot.slane %v8916_v43, 4 }
 0x335   :  { %v780_v53 = vmul.f32 %v6193_v15, %v767_v45  ;;  %v799_v54 = vrot.slane %v8916_v43, 6 }
 0x336   :  { %v779_v56 = vmul.f32 %v6193_v15, %v762_v49  ;;  %7975 = vrot.lane.b32.xlu1 %v7974_v50, %s8283_s9  ;;  %v811_v57 = vsel %vm99_vm0, %v809_v51, %v810_v47  ;;  %v817_v58 = vsel %vm99_vm0, 0.0, %v809_v51  ;;  %v820_v59 = vsel %vm109_vm1, %v818_v52, %v819_v26 }
 0x337   :  { %v791_v62 = vadd.f32 %v6194_v25, %v780_v53  ;;  %v7979_v0 = vpack.i.bf16 %v817_v58, %v811_v57  ;;  %v826_v3 = vsel %vm109_vm1, 0.0, %v818_v52  ;;  %v801_v4 = vsel %vm88_vm2, %v799_v54, %v800_v48 }
 0x338   :  { %v790_v5 = vadd.f32 %v6194_v25, %v779_v56  ;;  %v7984_v24 = vpack.i.bf16 %v826_v3, %v820_v59  ;;  %v807_v36 = vsel %vm88_vm2, 0.0, %v799_v54 }
 0x339   :  { %v8941_v63 = vmax.f32 %v791_v62, 0.0  ;;  %7980 = vrot.lane.b32.xlu0 %v7979_v0, %s8290_s3 }
 0x33a   :  { %v794_v8 = vmax.f32 %v790_v5, 0.0  ;;  %v1298_v5 = vld [vmem:[%s10501_s17 + $0x38] sm:$0xff] }
 0x33b   :  { %874 = vrot.lane.b32.xlu1 %v8941_v63, %s8283_s9  ;;  %v814_v9 = vrot.slane %v8941_v63, 2  ;;  %v823_v10 = vrot.slane %v8941_v63, 4  ;;  %v827_v11 = vrot.slane %v8941_v63, 6  ;;  %v1295_v63 = vld [vmem:[%s10501_s17 + $0x20] sm:$0xff] }
 0x33c   :  { %v812_v13 = vrot.slane %v794_v8, 2  ;;  %v821_v15 = vrot.slane %v794_v8, 4  ;;  %v802_v16 = vrot.slane %v794_v8, 6 }
 0x33d   :  { %7985 = vrot.lane.b32.xlu0 %v7984_v24, %s8292_s14  ;;  %v831_v23 = vsel %vm99_vm0, %v814_v9, 0.0  ;;  %v833_v25 = vsel %vm109_vm1, %v823_v10, 0.0  ;;  %v835_v52 = vsel %vm88_vm2, %v827_v11, 0.0 }
 0x33e   :  { %v813_v1 = vsel %vm99_vm0, %v810_v47, %v812_v13  ;;  %v815_v18 = vsel %vm99_vm0, %v812_v13, %v814_v9  ;;  %v822_v20 = vsel %vm109_vm1, %v819_v26, %v821_v15  ;;  %v824_v21 = vsel %vm109_vm1, %v821_v15, %v823_v10  ;;  %v1412_v10 = vld [vmem:[%s10503_s19] sm:$0xff] }
 0x33f   :  { %853 = vrot.lane.b32.xlu1 %v813_v1, %s8290_s3  ;;  %v828_v22 = vsel %vm88_vm2, %v802_v16, %v827_v11  ;;  %v803_v12 = vsel %vm88_vm2, %v800_v48, %v802_v16  ;;  %v1413_v11 = vld [vmem:[%s10503_s19 + $0x8] sm:$0xff]  ;;  %v8293_v15 = vmov 0.0|0.0   ;;  %v1414_v16 = vld [vmem:[%s10503_s19 + $0x10] sm:$0xff]  ;;  %v1415_v1 = vld [vmem:[%s10503_s19 + $0x18] sm:$0xff] }
 0x340   :  { %v9027_v13 = vpack.c.bf16 %v1413_v11, %v1412_v10 }
 0x341   :  { %842 = vrot.lane.b32.xlu0 %v794_v8, %s8283_s9  ;;  %v1297_v8 = vld [vmem:[%s10501_s17 + $0x30] sm:$0xff] }
 0x342   :  { %v7538_v9 = vpack.c.bf16 %v1297_v8, %v1295_v63 }
 0x343   :  { %855 = vrot.lane.b32.xlu1 %v815_v18, %s8290_s3  ;;  %v9039_v18 = vpack.c.bf16 %v1415_v1, %v1414_v16 }
 0x345   :  { %878 = vrot.lane.b32.xlu0 %v831_v23, %s8290_s3 }
 0x347   :  { %885 = vrot.lane.b32.xlu1 %v8275_v2, %s8290_s3 }
 0x349   :  { %866 = vrot.lane.b32.xlu0 %v822_v20, %s8292_s14  ;;  %v1416_v20 = vld [vmem:[%s10503_s19 + $0x20] sm:$0xff] }
 0x34b   :  { %868 = vrot.lane.b32.xlu1 %v824_v21, %s8292_s14  ;;  %v1417_v21 = vld [vmem:[%s10503_s19 + $0x28] sm:$0xff] }
 0x34d   :  { %882 = vrot.lane.b32.xlu0 %v833_v25, %s8292_s14  ;;  %v1418_v25 = vld [vmem:[%s10503_s19 + $0x30] sm:$0xff] }
 0x3a5   :  { %v841_v28 = vpop.permute.xlu0 %840 }
 0x3a6   :  { %v890_v41 = vsel %vm289_vm12, %v801_v4, %v841_v28  ;;  %v1296_v4 = vld [vmem:[%s10501_s17 + $0x28] sm:$0xff]  ;;  %v1419_v28 = vld [vmem:[%s10503_s19 + $0x38] sm:$0xff] }
 0x3a7   :  { %v7536_v24 = vpack.c.bf16 %v1298_v5, %v1296_v4 }
 0x3a8   :  { %v7976_v17 = vpop.permute.xlu1 %7975 }
 0x3a9   :  { %v7978_v29 = vunpack.i.h.bf16 %v7976_v17  ;;  %v7977_v30 = vunpack.i.l.bf16 %v7976_v17  ;;  %v9062_v17 = vpack.c.bf16 %v1419_v28, %v1418_v25 }
 0x3ab   :  { %v7981_v61 = vpop.permute.xlu0 %7980  ;;  %v888_v37 = vsel %vm289_vm12, 0.0, %v7978_v29  ;;  %v889_v40 = vsel %vm289_vm12, %v807_v36, %v7977_v30  ;;  %v904_v53 = vsel %vm289_vm12, %v835_v52, %v7978_v29  ;;  %v6195_v36 = vld [vmem:[%s10495_s11] ss:$0 sm:$0xff] }
 0x3ac   :  { %v7983_v32 = vunpack.i.h.bf16 %v7981_v61  ;;  %v7982_v33 = vunpack.i.l.bf16 %v7981_v61 }
 0x3ad   :  { %v875_v34 = vpop.permute.xlu1 %874 }
 0x3ae   :  { %v893_v43 = vsel %vm639_vm5, %v889_v40, %v7982_v33  ;;  %v892_v44 = vsel %vm639_vm5, %v888_v37, %v7983_v32  ;;  %v901_v49 = vsel %vm289_vm12, %v828_v22, %v875_v34  ;;  %v1285_v22 = vlaneseq }
 0x3af   :  { %v7986_v35 = vpop.permute.xlu0 %7985 }
 0x3b0   :  { %v7988_v38 = vunpack.i.h.bf16 %v7986_v35  ;;  %v7987_v39 = vunpack.i.l.bf16 %v7986_v35  ;;  %v9051_v23 = vshrl.u32 %v1285_v22, 7 }
 0x3b1   :  { %v854_v42 = vpop.permute.xlu1 %853 }
 0x3b2   :  { %v894_v19 = vsel %vm639_vm5, %v890_v41, %v854_v42  ;;  %v898_v14 = vsel %vm896_vm8, %v893_v43, %v7987_v39  ;;  %v897_v45 = vsel %vm896_vm8, %v892_v44, %v7988_v38  ;;  %v6200_v43 = vld [vmem:[%s10496_s12] ss:$0 sm:$0xff] }
 0x3b3   :  { %1033 = vmatprep.mubr.f32.mxu0 %v898_v14  ;;  %v843_v46 = vpop.permute.xlu0 %842  ;;  %6801 = vmatprep.mubr.msk.f32.mxu1 %vm896_vm8, %v894_v19 }
 0x3b4   :  { %v891_v47 = vsel %vm289_vm12, %v803_v12, %v843_v46  ;;  %1034 = vmatmul.mubr.f32.vlgmr.msra.gmra.mrb[4].mxu0 %v897_v45  ;;  %v9049_v12 = vpack.c.bf16 %v1417_v21, %v1416_v20 }
 0x3b5   :  { %v856_v26 = vpop.permute.xlu1 %855 }
 0x3b6   :  { %v895_v48 = vsel %vm639_vm5, %v891_v47, %v856_v26  ;;  %v6201_v26 = vld [vmem:[%s10497_s13] ss:$0 sm:$0xff] }
 0x3b7   :  { %v879_v50 = vpop.permute.xlu0 %878  ;;  %6802 = vmatmul.mubr.msk.f32.vlgmr.msra.gmra.mrb[4].mxu1 %vm896_vm8, %v895_v48 }
 0x3b8   :  { %v902_v51 = vsel %vm639_vm5, %v901_v49, %v879_v50  ;;  %6808 = vmatpush3.msra.mxu1 %v8937_v60  ;;  %v6207_v49 = vld [vmem:[%s10500_s16] ss:$0 sm:$0xff] }
 0x3b9   :  { %v886_v54 = vpop.permute.xlu1 %885  ;;  %6804 = vmatprep.mubr.msk.f32.mxu1 %vm896_vm8, %v902_v51  ;;  %7540 = vmatprep.subr.bf16.mxu1 %v8293_v15 }
 0x3ba   :  { %v905_v55 = vsel %vm639_vm5, %v904_v53, %v886_v54 }
 0x3bb   :  { %v867_v56 = vpop.permute.xlu0 %866  ;;  %6805 = vmatmul.mubr.msk.f32.gmra.mrb[6].mxu1 %vm896_vm8, %v905_v55 }
 0x3bc   :  { %6809 = vmatprep.mubr.msk.f32.mxu1 %vm259_vm6, %v8600_v7  ;;  %v899_v57 = vsel %vm896_vm8, %v894_v19, %v867_v56  ;;  %v1292_v7 = vld [vmem:[%s10501_s17 + $0x8] sm:$0xff] }
 0x3bd   :  { %1038 = vmatprep.mubr.f32.mxu0 %v899_v57  ;;  %v869_v58 = vpop.permute.xlu1 %868 }
 0x3be   :  { %1039 = vmatmul.mubr.f32.gmra.mrb[6].mxu0 %v898_v14  ;;  %v900_v59 = vsel %vm896_vm8, %v895_v48, %v869_v58  ;;  %v6206_v14 = vld [vmem:[%s10499_s15] ss:$0 sm:$0xff]  ;;  %s10533_s15 = sld [smem:[#allocation8_spill]] }
 0x3bf   :  { %v883_v60 = vpop.permute.xlu0 %882  ;;  %1043 = vmatprep.mubr.f32.mxu0 %v900_v59  ;;  %6810 = vmatmul.mubr.msk.f32.vlgmr.msra.gmra.mrb[8].mxu1 %vm259_vm6, %v8598_v6  ;;  %v1294_v6 = vld [vmem:[%s10501_s17 + $0x18] sm:$0xff] }
 0x3c0   :  { %6812 = vmatprep.mubr.msk.f32.mxu1 %vm259_vm6, %v8647_v31  ;;  %v903_v62 = vsel %vm896_vm8, %v902_v51, %v883_v60  ;;  %v1291_v31 = vld [vmem:[%s10501_s17] sm:$0xff]  ;;  %v7532_v0 = vpack.c.bf16 %v1294_v6, %v1292_v7  ;;  %7542 = vmatpush3.bf16.msra.mxu1 %v9027_v13 }
 0x3c1   :  { %7543 = vmatprep.subr.bf16.mxu1 %v8293_v15 }
 0x3c2   :  { %1044 = vmatmul.mubr.f32.gmra.mrb[8].mxu0 %v899_v57  ;;  %7533 = vmatprep.subr.bf16.mxu0 %v7532_v0 }
 0x3c3   :  { %1048 = vmatprep.mubr.f32.mxu0 %v903_v62  ;;  %6813 = vmatmul.mubr.msk.f32.gmra.mrb[10].mxu1 %vm259_vm6, %v8636_v27  ;;  %v1293_v27 = vld [vmem:[%s10501_s17 + $0x10] sm:$0xff]  ;;  %vm1287_vm6 = vcmp.lt.s32.totalorder %v9051_v23, 2 }
 0x3c4   :  { %v7534_v3 = vpack.c.bf16 %v1293_v27, %v1291_v31  ;;  %7545 = vmatpush3.bf16.msra.mxu1 %v9039_v18  ;;  %6831 = vmatprep.mubr.msk.f32.mxu1 %vm8294_vm10, %v8275_v2  ;;  %v9067_v61 = vsel %vm1287_vm6, 1.0, %v8275_v2 }
 0x3c5   :  { %7546 = vmatprep.subr.bf16.mxu1 %v8293_v15  ;;  %v9070_v29 = vsub.f32 1.0, %v9067_v61  ;;  %v1431_v30 = vmul.f32 0.0, %v9067_v61 }
 0x3c6   :  { %1049 = vmatmul.mubr.f32.gmra.mrb[10].mxu0 %v900_v59 }
 0x3c7   :  { %1387 = vmatprep.mubr.f32.mxu0 %v8275_v2  ;;  %7535 = vmatpush1.bf16.msra.mxu0 %v7534_v3  ;;  %v1432_v32 = vmul.f32 0.0, %v9070_v29 }
 0x3c8   :  { %7537 = vmatprep.subr.bf16.mxu0 %v7536_v24  ;;  %7548 = vmatpush3.bf16.msra.mxu1 %v9049_v12 }
 0x3c9   :  { %7549 = vmatprep.subr.bf16.mxu1 %v8293_v15  ;;  %v9077_v33 = vsel %vm289_vm12, %v1431_v30, %v1432_v32 }
 0x3cb   :  { %7539 = vmatpush1.bf16.msra.mxu0 %v7538_v9 }
 0x3cc   :  { %7552 = vmatprep.subr.bf16.mxu0 %v8293_v15  ;;  %7551 = vmatpush3.bf16.msra.mxu1 %v9062_v17 }
 0x3cd   :  { %7564 = vmatprep.subr.bf16.mxu1 %v8293_v15 }
 0x3cf   :  { %6832 = vmatmul.mubr.msk.f32.vlgmr.msra.gmra.mrb[12].mxu1 %vm639_vm5, %v9077_v33 }
 0x3d0   :  { %7566 = vmatpush3.bf16.msra.mxu1 %v9027_v13  ;;  %6869 = vmatprep.mubr.msk.f32.mxu1 %vm8294_vm10, %v8275_v2 }
 0x3d1   :  { %7567 = vmatprep.subr.bf16.mxu1 %v8293_v15 }
 0x3d4   :  { %7569 = vmatpush3.bf16.msra.mxu1 %v9039_v18 }
 0x3d5   :  { %7570 = vmatprep.subr.bf16.mxu1 %v8293_v15 }
 0x3d8   :  { %7572 = vmatpush3.bf16.msra.mxu1 %v9049_v12 }
 0x3d9   :  { %7573 = vmatprep.subr.bf16.mxu1 %v8293_v15 }
 0x3dc   :  { %7575 = vmatpush3.bf16.msra.mxu1 %v9062_v17 }
 0x3dd   :  { %7588 = vmatprep.subr.bf16.mxu1 %v8293_v15 }
 0x487   :  { %v6401_v34 = vpop.f32.mrb[4].mxu0 }
 0x488   :  { %v6402_v35 = vpop.f32.mrb[5].mxu0 }
 0x489   :  { %v6403_v37 = vadd.f32 %v6402_v35, %v6401_v34 }
 0x48a   :  { %v6803_v38 = vpop.f32.mrb[4].mxu1 }
 0x48b   :  { %v1036_v39 = vadd.f32 %v6403_v37, %v6195_v36  ;;  %v1120_v40 = vpop.f32.mrb[5].mxu1 }
 0x48d   :  { %v1121_v41 = vadd.f32 %v1120_v40, %v1036_v39  ;;  %v1424_v39 = vld [vmem:[%s10533_s15] sm:$0x3]  ;;  %v6213_v40 = vld [vmem:[%s10533_s15 + $0x1e] sm:$0x3] }
 0x48e   :  { %v6806_v42 = vpop.f32.mrb[6].mxu1 }
 0x48f   :  { %v1130_v44 = vpop.f32.mrb[7].mxu1  ;;  %v1146_v45 = vmul.f32 %v6200_v43, %v1121_v41  ;;  %v8295_v41 = vmov 0  }
 0x490   :  { %7989 = vset.pattern.permute.xlu0 %v8295_v41  ;;  %7990 = vset.pattern.permute.xlu1 %v8295_v41 }
 0x491   :  { %v6404_v19 = vpop.f32.mrb[6].mxu0  ;;  %v1157_v54 = vadd.f32 %v6201_v26, %v1146_v45 }
 0x492   :  { %v6405_v46 = vpop.f32.mrb[7].mxu0  ;;  %v6811_v47 = vpop.f32.mrb[8].mxu1 }
 0x493   :  { %v6406_v48 = vadd.f32 %v6405_v46, %v6404_v19  ;;  %v1236_v50 = vpop.f32.mrb[9].mxu1  ;;  %v1263_v55 = vmul.f32 %v6811_v47, %v6206_v14  ;;  %v1299_v19 = vld [vmem:[%s10502_s18] sm:$0x3] }
 0x494   :  { %v1262_v51 = vmul.f32 %v6206_v14, %v1236_v50 }
 0x495   :  { %v1041_v52 = vadd.f32 %v6406_v48, %v6195_v36  ;;  %v6407_v53 = vpop.f32.mrb[8].mxu0  ;;  %v1274_v27 = vadd.f32 %v6207_v49, %v1263_v55 }
 0x496   :  { %v1273_v56 = vadd.f32 %v6207_v49, %v1262_v51  ;;  %v6408_v57 = vpop.f32.mrb[9].mxu0  ;;  %v6814_v58 = vpop.f32.mrb[10].mxu1 }
 0x497   :  { %v1126_v59 = vadd.f32 %v6803_v38, %v1041_v52  ;;  %v6409_v60 = vadd.f32 %v6408_v57, %v6407_v53  ;;  %v1246_v62 = vpop.f32.mrb[11].mxu1  ;;  %v1265_v16 = vmul.f32 %v6814_v58, %v6206_v14 }
 0x498   :  { %v1277_v7 = vadd.f32 %v1273_v56, %v1157_v54  ;;  %v1264_v63 = vmul.f32 %v6206_v14, %v1246_v62  ;;  %v1303_v14 = vsub.s32 0, %v9051_v23 }
 0x499   :  { %v1147_v6 = vmul.f32 %v6200_v43, %v1126_v59  ;;  %v1046_v31 = vadd.f32 %v6409_v60, %v6195_v36  ;;  %v6410_v0 = vpop.f32.mrb[10].mxu0  ;;  %v1276_v30 = vadd.f32 %v6207_v49, %v1265_v16 }
 0x49a   :  { %v1281_v3 = vmax.f32 %v1277_v7, 0.0  ;;  %v6411_v4 = vpop.f32.mrb[11].mxu0  ;;  %v1275_v21 = vadd.f32 %v6207_v49, %v1264_v63  ;;  %v1304_v46 = vrot.slane %v1299_v19, %v1303_v14 }
 0x49b   :  { %v1158_v5 = vadd.f32 %v6201_v26, %v1147_v6  ;;  %v1131_v24 = vadd.f32 %v1130_v44, %v1046_v31  ;;  %v6412_v8 = vadd.f32 %v6411_v4, %v6410_v0  ;;  %v1307_v44 = vsub.s32 1, %v9051_v23 }
 0x49c   :  { %6209 = vmatmul.mubr.msk.f32.vlgmr.msra.gmra.mrb[12].mxu0 %vm289_vm12, %v1281_v3 }
 0x49d   :  { %v1278_v9 = vadd.f32 %v1274_v27, %v1158_v5  ;;  %v1148_v10 = vmul.f32 %v6200_v43, %v1131_v24  ;;  %v1051_v11 = vadd.f32 %v6412_v8, %v6195_v36  ;;  %1393 = vmatprep.mubr.f32.mxu0 %v8275_v2  ;;  %7554 = vmatpush3.bf16.msra.mxu0 %v9027_v13 }
 0x49e   :  { %7555 = vmatprep.subr.bf16.mxu0 %v8293_v15  ;;  %v1308_v45 = vrot.slane %v1299_v19, %v1307_v44 }
 0x49f   :  { %v1282_v1 = vmax.f32 %v1278_v9, 0.0  ;;  %v1159_v20 = vadd.f32 %v6201_v26, %v1148_v10  ;;  %v1136_v22 = vadd.f32 %v6806_v42, %v1051_v11  ;;  %v1428_v42 = vrot.slane %v6213_v40, 6 }
 0x4a1   :  { %v1279_v25 = vadd.f32 %v1275_v21, %v1159_v20  ;;  %v1149_v28 = vmul.f32 %v6200_v43, %v1136_v22  ;;  %6210 = vmatmul.mubr.msk.f32.gmra.mrb[14].mxu0 %vm289_vm12, %v1282_v1  ;;  %v1430_v43 = vsel %vm88_vm2, %v1424_v39, %v1428_v42 }
 0x4a2   :  { %1399 = vmatprep.mubr.f32.mxu0 %v8275_v2  ;;  %7557 = vmatpush3.bf16.msra.mxu0 %v9039_v18  ;;  %v9123_v37 = vpop.f32.mrb[12].mxu1 }
 0x4a3   :  { %v1283_v32 = vmax.f32 %v1279_v25, 0.0  ;;  %v1160_v34 = vadd.f32 %v6201_v26, %v1149_v28  ;;  %7558 = vmatprep.subr.bf16.mxu0 %v8293_v15  ;;  %v6833_v38 = vpop.f32.mrb[13].mxu1  ;;  %1528 = vperm.xlu0 %7989, %v1430_v43  }
 0x4a5   :  { %6211 = vmatmul.mubr.msk.f32.gmra.mrb[16].mxu0 %vm289_vm12, %v1283_v32  ;;  %v1280_v35 = vadd.f32 %v1276_v30, %v1160_v34 }
 0x4a6   :  { %1405 = vmatprep.mubr.f32.mxu0 %v8275_v2  ;;  %7560 = vmatpush3.bf16.msra.mxu0 %v9049_v12 }
 0x4a7   :  { %v1284_v36 = vmax.f32 %v1280_v35, 0.0  ;;  %7561 = vmatprep.subr.bf16.mxu0 %v8293_v15 }
 0x4a9   :  { %6212 = vmatmul.mubr.msk.f32.gmra.mrb[18].mxu0 %vm289_vm12, %v1284_v36 }
 0x4aa   :  { %7563 = vmatpush3.bf16.msra.mxu0 %v9062_v17  ;;  %6850 = vmatprep.mubr.msk.f32.mxu0 %vm8294_vm10, %v8275_v2 }
 0x4ab   :  { %7576 = vmatprep.subr.bf16.mxu0 %v8293_v15 }
 0x56f   :  { %v1389_v47 = vpop.f32.mrb[12].mxu0 }
 0x570   :  { %v1391_v26 = vpop.f32.mrb[13].mxu0  ;;  %v1390_v49 = vadd.f32 %v1389_v47, %v1304_v46 }
 0x571   :  { %v1392_v48 = vadd.f32 %v1391_v26, %v1308_v45 }
 0x572   :  { %v1549_v54 = vrot.slane %v1390_v49, 2  ;;  %v1686_v55 = vrot.slane %v1390_v49, 4  ;;  %v1821_v57 = vrot.slane %v1390_v49, 6 }
 0x573   :  { %v3043_v59 = vrot.slane %v1392_v48, 4  ;;  %v3179_v60 = vrot.slane %v1392_v48, 2  ;;  %v3447_v0 = vrot.slane %v1392_v48, 6 }
 0x574   :  { %v1395_v50 = vpop.f32.mrb[14].mxu0 }
 0x575   :  { %v1396_v51 = vadd.f32 %v1395_v50, %v1304_v46  ;;  %v1397_v52 = vpop.f32.mrb[15].mxu0 }
 0x576   :  { %v1398_v53 = vadd.f32 %v1397_v52, %v1308_v45 }
 0x577   :  { %v2095_v6 = vrot.slane %v1396_v51, 2  ;;  %v2232_v31 = vrot.slane %v1396_v51, 4  ;;  %v2367_v3 = vrot.slane %v1396_v51, 6 }
 0x578   :  { %v1401_v56 = vpop.f32.mrb[16].mxu0  ;;  %v2505_v58 = vrot.slane %v1398_v53, 4  ;;  %v2641_v4 = vrot.slane %v1398_v53, 2  ;;  %v2909_v5 = vrot.slane %v1398_v53, 6 }
 0x579   :  { %v1402_v62 = vadd.f32 %v1401_v56, %v1304_v46  ;;  %v1403_v7 = vpop.f32.mrb[17].mxu0 }
 0x57a   :  { %v1404_v27 = vadd.f32 %v1403_v7, %v1308_v45 }
 0x57b   :  { %v9142_v24 = vsel %vm88_vm2, %v1402_v62, %v2505_v58  ;;  %v2639_v63 = vrot.slane %v1402_v62, 2  ;;  %v2774_v8 = vrot.slane %v1402_v62, 4  ;;  %v2907_v9 = vrot.slane %v1402_v62, 6 }
 0x57c   :  { %v1407_v10 = vpop.f32.mrb[18].mxu0  ;;  %v1959_v11 = vrot.slane %v1404_v27, 4  ;;  %v2097_v16 = vrot.slane %v1404_v27, 2  ;;  %v9145_v1 = vsel %vm88_vm2, %v2232_v31, %v1404_v27  ;;  %v2369_v20 = vrot.slane %v1404_v27, 6 }
 0x57d   :  { %v1408_v21 = vadd.f32 %v1407_v10, %v1304_v46  ;;  %v1409_v22 = vpop.f32.mrb[19].mxu0  ;;  %v9148_v25 = vsel %vm88_vm2, %v2639_v63, %v2641_v4  ;;  %v9151_v28 = vsel %vm88_vm2, %v2774_v8, %v1398_v53  ;;  %v9154_v30 = vsel %vm88_vm2, %v2907_v9, %v2909_v5  ;;  %v6216_v9 = vld [vmem:[%s10533_s15 + $0x2] sm:$0x3]  ;;  %v6217_v10 = vld [vmem:[%s10533_s15 + $0x1c] sm:$0x3] }
 0x57e   :  { %v1410_v32 = vadd.f32 %v1409_v22, %v1308_v45  ;;  %v9157_v34 = vsel %vm88_vm2, %v1396_v51, %v1959_v11  ;;  %v9160_v35 = vsel %vm88_vm2, %v2095_v6, %v2097_v16  ;;  %v9163_v36 = vsel %vm88_vm2, %v2367_v3, %v2369_v20 }
 0x57f   :  { %v9166_v38 = vsel %vm88_vm2, %v1408_v21, %v3043_v59  ;;  %v3177_v39 = vrot.slane %v1408_v21, 2  ;;  %v3312_v40 = vrot.slane %v1408_v21, 4  ;;  %v3445_v41 = vrot.slane %v1408_v21, 6 }
 0x580   :  { %v1421_v42 = vrot.slane %v1410_v32, 4  ;;  %v1551_v43 = vrot.slane %v1410_v32, 2  ;;  %v9169_v19 = vsel %vm88_vm2, %v1686_v55, %v1410_v32  ;;  %v1823_v45 = vrot.slane %v1410_v32, 6 }
 0x581   :  { %v9172_v46 = vsel %vm88_vm2, %v3177_v39, %v3179_v60  ;;  %v9175_v47 = vsel %vm88_vm2, %v3312_v40, %v1392_v48  ;;  %v9178_v26 = vsel %vm88_vm2, %v3445_v41, %v3447_v0  ;;  %v1559_v11 = vrot.slane %v6217_v10, 6 }
 0x582   :  { %v1423_v50 = vsel %vm88_vm2, %v1390_v49, %v1421_v42  ;;  %v1553_v51 = vsel %vm88_vm2, %v1549_v54, %v1551_v43  ;;  %v9183_v52 = vsel %vm88_vm2, %v1821_v57, %v1823_v45  ;;  %v1529_v57 = vpop.permute.xlu0 %1528 }
 0x583   :  { %v1507_v53 = vadd.f32 %v9123_v37, %v1423_v50  ;;  %v1561_v16 = vsel %vm88_vm2, %v6216_v9, %v1559_v11 }
 0x585   :  { %7991 = vtanh.f32 %v1507_v53  ;;  %v6215_v56 = vmul.f32 -1.442695, %v1507_v53 }
 0x587   :  { %7993 = vpow2.f32 %v6215_v56 }
 0x58f   :  { %v7992_v55 = vpop.eup %7991 }
 0x590   :  { %1517 = vrot.lane.b32.xlu1 %v7992_v55, %s8290_s3 }
 0x591   :  { %v7994_v48 = vpop.eup %7993 }
 0x592   :  { %v1511_v58 = vadd.f32 1.0, %v7994_v48 }
 0x594   :  { %7995 = vrcp.f32 %v1511_v58 }
 0x59e   :  { %v7996_v59 = vpop.eup %7995 }
 0x59f   :  { %v1515_v49 = vmul.f32 0.0, %v7996_v59 }
 0x602   :  { %v1518_v60 = vpop.permute.xlu1 %1517 }
 0x603   :  { %v1520_v62 = vmul.f32 %v7996_v59, %v1518_v60  ;;  %v6221_v60 = vld [vmem:[%s10533_s15 + $0x1a] sm:$0x3] }
 0x605   :  { %1522 = vrot.lane.b32.xlu1 %v1520_v62, %s8283_s9 }
 0x677   :  { %v1523_v54 = vpop.permute.xlu1 %1522 }
 0x678   :  { %v1525_v7 = vadd.f32 %v1523_v54, %v1515_v49  ;;  %v1694_v49 = vrot.slane %v6221_v60, 6 }
 0x67a   :  { %v1531_v6 = vmul.f32 %v1529_v57, %v1525_v7  ;;  %v6220_v7 = vld [vmem:[%s10533_s15 + $0x4] sm:$0x3] }
 0x67c   :  { %7997 = vtanh.f32 %v1531_v6 }
 0x686   :  { %v7998_v37 = vpop.eup %7997 }
 0x687   :  { %1534 = vrot.lane.b32.xlu1 %v7998_v37, %s8290_s3 }
 0x6f9   :  { %v1535_v31 = vpop.permute.xlu1 %1534 }
 0x6fa   :  { %v1537_v0 = vmul.f32 %v7996_v59, %v1535_v31 }
 0x6fc   :  { %v9189_v27 = vmul.f32 %v1537_v0, %v1529_v57 }
 0x6fe   :  { %v1563_v3 = vmul.f32 %v9189_v27, %v9070_v29  ;;  %v1562_v4 = vmul.f32 %v9067_v61, %v9189_v27 }
 0x700   :  { %1569 = vrot.lane.b32.xlu1 %v1563_v3, %s8290_s3  ;;  %1565 = vrot.lane.b32.xlu0 %v1562_v4, %s8283_s9 }
 0x704   :  { %1667 = vperm.xlu1 %7990, %v1561_v16  }
 0x772   :  { %v1570_v5 = vpop.permute.xlu1 %1569  ;;  %v1566_v63 = vpop.permute.xlu0 %1565 }
 0x773   :  { %v1572_v8 = vsel %vm289_vm12, %v1566_v63, %v1570_v5 }
 0x774   :  { %6851 = vmatmul.mubr.msk.f32.vlgmr.msra.gmra.mrb[20].mxu0 %vm639_vm5, %v1572_v8 }
 0x775   :  { %7578 = vmatpush3.bf16.msra.mxu0 %v9027_v13  ;;  %6888 = vmatprep.mubr.msk.f32.mxu0 %vm8294_vm10, %v8275_v2 }
 0x776   :  { %7579 = vmatprep.subr.bf16.mxu0 %v8293_v15 }
 0x779   :  { %7581 = vmatpush3.bf16.msra.mxu0 %v9039_v18 }
 0x77a   :  { %7582 = vmatprep.subr.bf16.mxu0 %v8293_v15 }
 0x77d   :  { %7584 = vmatpush3.bf16.msra.mxu0 %v9049_v12 }
 0x77e   :  { %7585 = vmatprep.subr.bf16.mxu0 %v8293_v15 }
 0x781   :  { %7587 = vmatpush3.bf16.msra.mxu0 %v9062_v17 }
 0x782   :  { %7600 = vmatprep.subr.bf16.mxu0 %v8293_v15 }
 0x783   :  { %v1668_v55 = vpop.permute.xlu1 %1667 }
 0x847   :  { %v1642_v20 = vpop.f32.mrb[20].mxu0 }
 0x848   :  { %v1646_v21 = vadd.f32 %v1642_v20, %v1553_v51  ;;  %v6852_v22 = vpop.f32.mrb[21].mxu0 }
 0x84a   :  { %7999 = vtanh.f32 %v1646_v21  ;;  %v6219_v39 = vmul.f32 -1.442695, %v1646_v21 }
 0x84c   :  { %8001 = vpow2.f32 %v6219_v39 }
 0x854   :  { %v8000_v32 = vpop.eup %7999 }
 0x855   :  { %1656 = vrot.lane.b32.xlu0 %v8000_v32, %s8290_s3 }
 0x856   :  { %v8002_v40 = vpop.eup %8001 }
 0x857   :  { %v1650_v41 = vadd.f32 1.0, %v8002_v40 }
 0x859   :  { %8003 = vrcp.f32 %v1650_v41 }
 0x863   :  { %v8004_v42 = vpop.eup %8003 }
 0x864   :  { %v1654_v50 = vmul.f32 %v8004_v42, %v1531_v6  ;;  %v1696_v6 = vsel %vm88_vm2, %v6220_v7, %v1694_v49 }
 0x8c7   :  { %v1657_v43 = vpop.permute.xlu0 %1656 }
 0x8c8   :  { %v1659_v45 = vmul.f32 %v8004_v42, %v1657_v43  ;;  %v6225_v43 = vld [vmem:[%s10533_s15 + $0x18] sm:$0x3] }
 0x8ca   :  { %1661 = vrot.lane.b32.xlu0 %v1659_v45, %s8283_s9 }
 0x93c   :  { %v1662_v53 = vpop.permute.xlu0 %1661 }
 0x93d   :  { %v1664_v56 = vadd.f32 %v1662_v53, %v1654_v50  ;;  %v1831_v50 = vrot.slane %v6225_v43, 6 }
 0x93f   :  { %v1670_v51 = vmul.f32 %v1668_v55, %v1664_v56  ;;  %v6224_v56 = vld [vmem:[%s10533_s15 + $0x6] sm:$0x3] }
 0x941   :  { %8005 = vtanh.f32 %v1670_v51 }
 0x94b   :  { %v8006_v48 = vpop.eup %8005 }
 0x94c   :  { %1673 = vrot.lane.b32.xlu1 %v8006_v48, %s8290_s3 }
 0x9be   :  { %v1674_v58 = vpop.permute.xlu1 %1673 }
 0x9bf   :  { %v1676_v59 = vmul.f32 %v8004_v42, %v1674_v58 }
 0x9c1   :  { %v9222_v62 = vmul.f32 %v1676_v59, %v1668_v55 }
 0x9c3   :  { %v1698_v54 = vmul.f32 %v9222_v62, %v9070_v29  ;;  %v1697_v57 = vmul.f32 %v9067_v61, %v9222_v62 }
 0x9c5   :  { %1704 = vrot.lane.b32.xlu1 %v1698_v54, %s8290_s3  ;;  %1700 = vrot.lane.b32.xlu0 %v1697_v57, %s8283_s9 }
 0x9c9   :  { %1802 = vperm.xlu1 %7990, %v1696_v6  }
 0xa37   :  { %v1705_v37 = vpop.permute.xlu1 %1704  ;;  %v1701_v31 = vpop.permute.xlu0 %1700 }
 0xa38   :  { %v1707_v0 = vsel %vm289_vm12, %v1701_v31, %v1705_v37 }
 0xa39   :  { %6870 = vmatmul.mubr.msk.f32.vlgmr.msra.gmra.mrb[14].mxu1 %vm639_vm5, %v1707_v0 }
 0xa3a   :  { %7590 = vmatpush3.bf16.msra.mxu1 %v9027_v13  ;;  %6907 = vmatprep.mubr.msk.f32.mxu1 %vm8294_vm10, %v8275_v2 }
 0xa3b   :  { %7591 = vmatprep.subr.bf16.mxu1 %v8293_v15 }
 0xa3e   :  { %7593 = vmatpush3.bf16.msra.mxu1 %v9039_v18 }
 0xa3f   :  { %7594 = vmatprep.subr.bf16.mxu1 %v8293_v15 }
 0xa42   :  { %7596 = vmatpush3.bf16.msra.mxu1 %v9049_v12 }
 0xa43   :  { %7597 = vmatprep.subr.bf16.mxu1 %v8293_v15 }
 0xa46   :  { %7599 = vmatpush3.bf16.msra.mxu1 %v9062_v17 }
 0xa47   :  { %7612 = vmatprep.subr.bf16.mxu1 %v8293_v15 }
 0xa48   :  { %v1803_v39 = vpop.permute.xlu1 %1802 }
 0xb0c   :  { %v1777_v3 = vpop.f32.mrb[14].mxu1 }
 0xb0d   :  { %v1781_v4 = vadd.f32 %v1777_v3, %v9169_v19  ;;  %v6871_v5 = vpop.f32.mrb[15].mxu1 }
 0xb0f   :  { %8007 = vtanh.f32 %v1781_v4  ;;  %v6223_v8 = vmul.f32 -1.442695, %v1781_v4 }
 0xb11   :  { %8009 = vpow2.f32 %v6223_v8 }
 0xb19   :  { %v8008_v63 = vpop.eup %8007 }
 0xb1a   :  { %1791 = vrot.lane.b32.xlu0 %v8008_v63, %s8290_s3 }
 0xb1b   :  { %v8010_v9 = vpop.eup %8009 }
 0xb1c   :  { %v1785_v10 = vadd.f32 1.0, %v8010_v9 }
 0xb1e   :  { %8011 = vrcp.f32 %v1785_v10 }
 0xb28   :  { %v8012_v11 = vpop.eup %8011 }
 0xb29   :  { %v1789_v21 = vmul.f32 %v8012_v11, %v1670_v51  ;;  %v1833_v51 = vsel %vm88_vm2, %v6224_v56, %v1831_v50 }
 0xb8c   :  { %v1792_v16 = vpop.permute.xlu0 %1791 }
 0xb8d   :  { %v1794_v20 = vmul.f32 %v8012_v11, %v1792_v16  ;;  %v6229_v16 = vld [vmem:[%s10533_s15 + $0x16] sm:$0x3] }
 0xb8f   :  { %1796 = vrot.lane.b32.xlu0 %v1794_v20, %s8283_s9 }
 0xc01   :  { %v1797_v22 = vpop.permute.xlu0 %1796 }
 0xc02   :  { %v1799_v32 = vadd.f32 %v1797_v22, %v1789_v21  ;;  %v1967_v21 = vrot.slane %v6229_v16, 6 }
 0xc04   :  { %v1805_v19 = vmul.f32 %v1803_v39, %v1799_v32 }
 0xc06   :  { %8013 = vtanh.f32 %v1805_v19 }
 0xc10   :  { %v8014_v40 = vpop.eup %8013 }
 0xc11   :  { %1808 = vrot.lane.b32.xlu1 %v8014_v40, %s8290_s3 }
 0xc83   :  { %v1809_v41 = vpop.permute.xlu1 %1808 }
 0xc84   :  { %v1811_v42 = vmul.f32 %v8012_v11, %v1809_v41 }
 0xc86   :  { %v9253_v45 = vmul.f32 %v1811_v42, %v1803_v39  ;;  %v6228_v39 = vld [vmem:[%s10533_s15 + $0x8] sm:$0x3] }
 0xc88   :  { %v1835_v53 = vmul.f32 %v9253_v45, %v9070_v29  ;;  %v1834_v55 = vmul.f32 %v9067_v61, %v9253_v45 }
 0xc8a   :  { %1841 = vrot.lane.b32.xlu1 %v1835_v53, %s8290_s3  ;;  %1837 = vrot.lane.b32.xlu0 %v1834_v55, %s8283_s9 }
 0xc8e   :  { %1939 = vperm.xlu1 %7990, %v1833_v51  }
 0xcfc   :  { %v1842_v48 = vpop.permute.xlu1 %1841  ;;  %v1838_v58 = vpop.permute.xlu0 %1837 }
 0xcfd   :  { %v1844_v59 = vsel %vm289_vm12, %v1838_v58, %v1842_v48 }
 0xcfe   :  { %6889 = vmatmul.mubr.msk.f32.vlgmr.msra.gmra.mrb[22].mxu0 %vm639_vm5, %v1844_v59 }
 0xcff   :  { %7602 = vmatpush3.bf16.msra.mxu0 %v9027_v13  ;;  %6926 = vmatprep.mubr.msk.f32.mxu0 %vm8294_vm10, %v8275_v2 }
 0xd00   :  { %7603 = vmatprep.subr.bf16.mxu0 %v8293_v15 }
 0xd03   :  { %7605 = vmatpush3.bf16.msra.mxu0 %v9039_v18 }
 0xd04   :  { %7606 = vmatprep.subr.bf16.mxu0 %v8293_v15 }
 0xd07   :  { %7608 = vmatpush3.bf16.msra.mxu0 %v9049_v12 }
 0xd08   :  { %7609 = vmatprep.subr.bf16.mxu0 %v8293_v15 }
 0xd0b   :  { %7611 = vmatpush3.bf16.msra.mxu0 %v9062_v17 }
 0xd0c   :  { %7624 = vmatprep.subr.bf16.mxu0 %v8293_v15 }
 0xd0d   :  { %v1940_v8 = vpop.permute.xlu1 %1939 }
 0xdd1   :  { %v1914_v60 = vpop.f32.mrb[22].mxu0 }
 0xdd2   :  { %v1918_v49 = vadd.f32 %v1914_v60, %v9183_v52  ;;  %v6890_v54 = vpop.f32.mrb[23].mxu0 }
 0xdd4   :  { %8015 = vtanh.f32 %v1918_v49  ;;  %v6227_v7 = vmul.f32 -1.442695, %v1918_v49 }
 0xdd6   :  { %8017 = vpow2.f32 %v6227_v7 }
 0xdde   :  { %v8016_v57 = vpop.eup %8015 }
 0xddf   :  { %1928 = vrot.lane.b32.xlu0 %v8016_v57, %s8290_s3 }
 0xde0   :  { %v8018_v6 = vpop.eup %8017 }
 0xde1   :  { %v1922_v37 = vadd.f32 1.0, %v8018_v6 }
 0xde3   :  { %8019 = vrcp.f32 %v1922_v37 }
 0xded   :  { %v8020_v31 = vpop.eup %8019 }
 0xdee   :  { %v1926_v4 = vmul.f32 %v8020_v31, %v1805_v19  ;;  %v1969_v19 = vsel %vm88_vm2, %v6228_v39, %v1967_v21 }
 0xe51   :  { %v1929_v0 = vpop.permute.xlu0 %1928 }
 0xe52   :  { %v1931_v3 = vmul.f32 %v8020_v31, %v1929_v0  ;;  %v6233_v0 = vld [vmem:[%s10533_s15 + $0x14] sm:$0x3] }
 0xe54   :  { %1933 = vrot.lane.b32.xlu0 %v1931_v3, %s8283_s9 }
 0xec6   :  { %v1934_v5 = vpop.permute.xlu0 %1933 }
 0xec7   :  { %v1936_v63 = vadd.f32 %v1934_v5, %v1926_v4  ;;  %v2105_v4 = vrot.slane %v6233_v0, 6 }
 0xec9   :  { %v1942_v52 = vmul.f32 %v1940_v8, %v1936_v63 }
 0xecb   :  { %8021 = vtanh.f32 %v1942_v52 }
 0xed5   :  { %v8022_v9 = vpop.eup %8021 }
 0xed6   :  { %1945 = vrot.lane.b32.xlu1 %v8022_v9, %s8290_s3 }
 0xf48   :  { %v1946_v10 = vpop.permute.xlu1 %1945 }
 0xf49   :  { %v1948_v11 = vmul.f32 %v8020_v31, %v1946_v10 }
 0xf4b   :  { %v9284_v20 = vmul.f32 %v1948_v11, %v1940_v8  ;;  %v6232_v8 = vld [vmem:[%s10533_s15 + $0xa] sm:$0x3] }
 0xf4d   :  { %v1971_v22 = vmul.f32 %v9284_v20, %v9070_v29  ;;  %v1970_v32 = vmul.f32 %v9067_v61, %v9284_v20 }
 0xf4f   :  { %1977 = vrot.lane.b32.xlu1 %v1971_v22, %s8290_s3  ;;  %1973 = vrot.lane.b32.xlu0 %v1970_v32, %s8283_s9 }
 0xf53   :  { %2075 = vperm.xlu1 %7990, %v1969_v19  }
 0xfc1   :  { %v1978_v40 = vpop.permute.xlu1 %1977  ;;  %v1974_v41 = vpop.permute.xlu0 %1973 }
 0xfc2   :  { %v1980_v42 = vsel %vm289_vm12, %v1974_v41, %v1978_v40 }
 0xfc3   :  { %6908 = vmatmul.mubr.msk.f32.vlgmr.msra.gmra.mrb[16].mxu1 %vm639_vm5, %v1980_v42 }
 0xfc4   :  { %7614 = vmatpush3.bf16.msra.mxu1 %v9027_v13  ;;  %6945 = vmatprep.mubr.msk.f32.mxu1 %vm8294_vm10, %v8275_v2 }
 0xfc5   :  { %7615 = vmatprep.subr.bf16.mxu1 %v8293_v15 }
 0xfc8   :  { %7617 = vmatpush3.bf16.msra.mxu1 %v9039_v18 }
 0xfc9   :  { %7618 = vmatprep.subr.bf16.mxu1 %v8293_v15 }
 0xfcc   :  { %7620 = vmatpush3.bf16.msra.mxu1 %v9049_v12 }
 0xfcd   :  { %7621 = vmatprep.subr.bf16.mxu1 %v8293_v15 }
 0xfd0   :  { %7623 = vmatpush3.bf16.msra.mxu1 %v9062_v17 }
 0xfd1   :  { %7636 = vmatprep.subr.bf16.mxu1 %v8293_v15 }
 0xfd2   :  { %v2076_v7 = vpop.permute.xlu1 %2075 }
0x1096   :  { %v2050_v43 = vpop.f32.mrb[16].mxu1 }
0x1097   :  { %v2054_v50 = vadd.f32 %v2050_v43, %v9157_v34  ;;  %v6909_v53 = vpop.f32.mrb[17].mxu1 }
0x1099   :  { %8023 = vtanh.f32 %v2054_v50  ;;  %v6231_v56 = vmul.f32 -1.442695, %v2054_v50 }
0x109b   :  { %8025 = vpow2.f32 %v6231_v56 }
0x10a3   :  { %v8024_v55 = vpop.eup %8023 }
0x10a4   :  { %2064 = vrot.lane.b32.xlu0 %v8024_v55, %s8290_s3 }
0x10a5   :  { %v8026_v51 = vpop.eup %8025 }
0x10a6   :  { %v2058_v48 = vadd.f32 1.0, %v8026_v51 }
0x10a8   :  { %8027 = vrcp.f32 %v2058_v48 }
0x10b2   :  { %v8028_v58 = vpop.eup %8027 }
0x10b3   :  { %v2062_v49 = vmul.f32 %v8028_v58, %v1942_v52  ;;  %v2107_v52 = vsel %vm88_vm2, %v6232_v8, %v2105_v4 }
0x1116   :  { %v2065_v59 = vpop.permute.xlu0 %2064 }
0x1117   :  { %v2067_v60 = vmul.f32 %v8028_v58, %v2065_v59  ;;  %v6237_v59 = vld [vmem:[%s10533_s15 + $0x12] sm:$0x3] }
0x1119   :  { %2069 = vrot.lane.b32.xlu0 %v2067_v60, %s8283_s9 }
0x118b   :  { %v2070_v54 = vpop.permute.xlu0 %2069 }
0x118c   :  { %v2072_v57 = vadd.f32 %v2070_v54, %v2062_v49  ;;  %v2240_v49 = vrot.slane %v6237_v59, 6 }
0x118e   :  { %v2078_v34 = vmul.f32 %v2076_v7, %v2072_v57 }
0x1190   :  { %8029 = vtanh.f32 %v2078_v34 }
0x119a   :  { %v8030_v6 = vpop.eup %8029 }
0x119b   :  { %2081 = vrot.lane.b32.xlu1 %v8030_v6, %s8290_s3 }
0x120d   :  { %v2082_v37 = vpop.permute.xlu1 %2081 }
0x120e   :  { %v2084_v31 = vmul.f32 %v8028_v58, %v2082_v37 }
0x1210   :  { %v9315_v3 = vmul.f32 %v2084_v31, %v2076_v7  ;;  %v6236_v7 = vld [vmem:[%s10533_s15 + $0xc] sm:$0x3] }
0x1212   :  { %v2109_v5 = vmul.f32 %v9315_v3, %v9070_v29  ;;  %v2108_v63 = vmul.f32 %v9067_v61, %v9315_v3 }
0x1214   :  { %2115 = vrot.lane.b32.xlu1 %v2109_v5, %s8290_s3  ;;  %2111 = vrot.lane.b32.xlu0 %v2108_v63, %s8283_s9 }
0x1218   :  { %2213 = vperm.xlu1 %7990, %v2107_v52  }
0x1286   :  { %v2116_v9 = vpop.permute.xlu1 %2115  ;;  %v2112_v10 = vpop.permute.xlu0 %2111 }
0x1287   :  { %v2118_v11 = vsel %vm289_vm12, %v2112_v10, %v2116_v9 }
0x1288   :  { %6927 = vmatmul.mubr.msk.f32.vlgmr.msra.gmra.mrb[24].mxu0 %vm639_vm5, %v2118_v11 }
0x1289   :  { %7626 = vmatpush3.bf16.msra.mxu0 %v9027_v13  ;;  %6964 = vmatprep.mubr.msk.f32.mxu0 %vm8294_vm10, %v8275_v2 }
0x128a   :  { %7627 = vmatprep.subr.bf16.mxu0 %v8293_v15 }
0x128d   :  { %7629 = vmatpush3.bf16.msra.mxu0 %v9039_v18 }
0x128e   :  { %7630 = vmatprep.subr.bf16.mxu0 %v8293_v15 }
0x1291   :  { %7632 = vmatpush3.bf16.msra.mxu0 %v9049_v12 }
0x1292   :  { %7633 = vmatprep.subr.bf16.mxu0 %v8293_v15 }
0x1295   :  { %7635 = vmatpush3.bf16.msra.mxu0 %v9062_v17 }
0x1296   :  { %7648 = vmatprep.subr.bf16.mxu0 %v8293_v15 }
0x1297   :  { %v2214_v56 = vpop.permute.xlu1 %2213 }
0x135b   :  { %v2188_v16 = vpop.f32.mrb[24].mxu0 }
0x135c   :  { %v2192_v21 = vadd.f32 %v2188_v16, %v9160_v35  ;;  %v6928_v22 = vpop.f32.mrb[25].mxu0 }
0x135e   :  { %8031 = vtanh.f32 %v2192_v21  ;;  %v6235_v39 = vmul.f32 -1.442695, %v2192_v21 }
0x1360   :  { %8033 = vpow2.f32 %v6235_v39 }
0x1368   :  { %v8032_v32 = vpop.eup %8031 }
0x1369   :  { %2202 = vrot.lane.b32.xlu0 %v8032_v32, %s8290_s3 }
0x136a   :  { %v8034_v19 = vpop.eup %8033 }
0x136b   :  { %v2196_v40 = vadd.f32 1.0, %v8034_v19 }
0x136d   :  { %8035 = vrcp.f32 %v2196_v40 }
0x1377   :  { %v8036_v41 = vpop.eup %8035 }
0x1378   :  { %v2200_v50 = vmul.f32 %v8036_v41, %v2078_v34  ;;  %v2242_v34 = vsel %vm88_vm2, %v6236_v7, %v2240_v49 }
0x13db   :  { %v2203_v42 = vpop.permute.xlu0 %2202 }
0x13dc   :  { %v2205_v43 = vmul.f32 %v8036_v41, %v2203_v42  ;;  %v6241_v42 = vld [vmem:[%s10533_s15 + $0x10] sm:$0x3] }
0x13de   :  { %2207 = vrot.lane.b32.xlu0 %v2205_v43, %s8283_s9 }
0x1450   :  { %v2208_v53 = vpop.permute.xlu0 %2207 }
0x1451   :  { %v2210_v55 = vadd.f32 %v2208_v53, %v2200_v50  ;;  %v2377_v50 = vrot.slane %v6241_v42, 6 }
0x1453   :  { %v2216_v35 = vmul.f32 %v2214_v56, %v2210_v55 }
0x1455   :  { %8037 = vtanh.f32 %v2216_v35 }
0x145f   :  { %v8038_v51 = vpop.eup %8037 }
0x1460   :  { %2219 = vrot.lane.b32.xlu1 %v8038_v51, %s8290_s3 }
0x14d2   :  { %v2220_v48 = vpop.permute.xlu1 %2219 }
0x14d3   :  { %v2222_v58 = vmul.f32 %v8036_v41, %v2220_v48 }
0x14d5   :  { %v9346_v60 = vmul.f32 %v2222_v58, %v2214_v56  ;;  %v6240_v56 = vld [vmem:[%s10533_s15 + $0xe] sm:$0x3] }
0x14d7   :  { %v2244_v54 = vmul.f32 %v9346_v60, %v9070_v29  ;;  %v2243_v57 = vmul.f32 %v9067_v61, %v9346_v60 }
0x14d9   :  { %2250 = vrot.lane.b32.xlu1 %v2244_v54, %s8290_s3  ;;  %2246 = vrot.lane.b32.xlu0 %v2243_v57, %s8283_s9 }
0x14dd   :  { %2348 = vperm.xlu1 %7990, %v2242_v34  }
0x154b   :  { %v2251_v6 = vpop.permute.xlu1 %2250  ;;  %v2247_v37 = vpop.permute.xlu0 %2246 }
0x154c   :  { %v2253_v31 = vsel %vm289_vm12, %v2247_v37, %v2251_v6 }
0x154d   :  { %6946 = vmatmul.mubr.msk.f32.vlgmr.msra.gmra.mrb[18].mxu1 %vm639_vm5, %v2253_v31 }
0x154e   :  { %7638 = vmatpush3.bf16.msra.mxu1 %v9027_v13  ;;  %6983 = vmatprep.mubr.msk.f32.mxu1 %vm8294_vm10, %v8275_v2 }
0x154f   :  { %7639 = vmatprep.subr.bf16.mxu1 %v8293_v15 }
0x1552   :  { %7641 = vmatpush3.bf16.msra.mxu1 %v9039_v18 }
0x1553   :  { %7642 = vmatprep.subr.bf16.mxu1 %v8293_v15 }
0x1556   :  { %7644 = vmatpush3.bf16.msra.mxu1 %v9049_v12 }
0x1557   :  { %7645 = vmatprep.subr.bf16.mxu1 %v8293_v15 }
0x155a   :  { %7647 = vmatpush3.bf16.msra.mxu1 %v9062_v17 }
0x155b   :  { %7660 = vmatprep.subr.bf16.mxu1 %v8293_v15 }
0x155c   :  { %v2349_v39 = vpop.permute.xlu1 %2348 }
0x1620   :  { %v2323_v0 = vpop.f32.mrb[18].mxu1 }
0x1621   :  { %v2327_v4 = vadd.f32 %v2323_v0, %v9145_v1  ;;  %v6947_v5 = vpop.f32.mrb[19].mxu1 }
0x1623   :  { %8039 = vtanh.f32 %v2327_v4  ;;  %v6239_v8 = vmul.f32 -1.442695, %v2327_v4 }
0x1625   :  { %8041 = vpow2.f32 %v6239_v8 }
0x162d   :  { %v8040_v63 = vpop.eup %8039 }
0x162e   :  { %2337 = vrot.lane.b32.xlu0 %v8040_v63, %s8290_s3 }
0x162f   :  { %v8042_v52 = vpop.eup %8041 }
0x1630   :  { %v2331_v9 = vadd.f32 1.0, %v8042_v52 }
0x1632   :  { %8043 = vrcp.f32 %v2331_v9 }
0x163c   :  { %v8044_v10 = vpop.eup %8043 }
0x163d   :  { %v2335_v21 = vmul.f32 %v8044_v10, %v2216_v35  ;;  %v2379_v35 = vsel %vm88_vm2, %v6240_v56, %v2377_v50 }
0x16a0   :  { %v2338_v11 = vpop.permute.xlu0 %2337 }
0x16a1   :  { %v2340_v16 = vmul.f32 %v8044_v10, %v2338_v11  ;;  %v6245_v11 = vld [vmem:[%s10533_s15 + $0xe] sm:$0x3] }
0x16a3   :  { %2342 = vrot.lane.b32.xlu0 %v2340_v16, %s8283_s9 }
0x1715   :  { %v2343_v22 = vpop.permute.xlu0 %2342 }
0x1716   :  { %v2345_v32 = vadd.f32 %v2343_v22, %v2335_v21  ;;  %v2511_v21 = vrot.slane %v6245_v11, 6 }
0x1718   :  { %v2351_v1 = vmul.f32 %v2349_v39, %v2345_v32 }
0x171a   :  { %8045 = vtanh.f32 %v2351_v1 }
0x1724   :  { %v8046_v19 = vpop.eup %8045 }
0x1725   :  { %2354 = vrot.lane.b32.xlu1 %v8046_v19, %s8290_s3 }
0x1797   :  { %v2355_v40 = vpop.permute.xlu1 %2354 }
0x1798   :  { %v2357_v41 = vmul.f32 %v8044_v10, %v2355_v40 }
0x179a   :  { %v9377_v43 = vmul.f32 %v2357_v41, %v2349_v39  ;;  %v6244_v39 = vld [vmem:[%s10533_s15 + $0x10] sm:$0x3] }
0x179c   :  { %v2381_v53 = vmul.f32 %v9377_v43, %v9070_v29  ;;  %v2380_v55 = vmul.f32 %v9067_v61, %v9377_v43 }
0x179e   :  { %2387 = vrot.lane.b32.xlu1 %v2381_v53, %s8290_s3  ;;  %2383 = vrot.lane.b32.xlu0 %v2380_v55, %s8283_s9 }
0x17a2   :  { %2485 = vperm.xlu1 %7990, %v2379_v35  }
0x1810   :  { %v2388_v51 = vpop.permute.xlu1 %2387  ;;  %v2384_v48 = vpop.permute.xlu0 %2383 }
0x1811   :  { %v2390_v58 = vsel %vm289_vm12, %v2384_v48, %v2388_v51 }
0x1812   :  { %6965 = vmatmul.mubr.msk.f32.vlgmr.msra.gmra.mrb[26].mxu0 %vm639_vm5, %v2390_v58 }
0x1813   :  { %7650 = vmatpush3.bf16.msra.mxu0 %v9027_v13  ;;  %7002 = vmatprep.mubr.msk.f32.mxu0 %vm8294_vm10, %v8275_v2 }
0x1814   :  { %7651 = vmatprep.subr.bf16.mxu0 %v8293_v15 }
0x1817   :  { %7653 = vmatpush3.bf16.msra.mxu0 %v9039_v18 }
0x1818   :  { %7654 = vmatprep.subr.bf16.mxu0 %v8293_v15 }
0x181b   :  { %7656 = vmatpush3.bf16.msra.mxu0 %v9049_v12 }
0x181c   :  { %7657 = vmatprep.subr.bf16.mxu0 %v8293_v15 }
0x181f   :  { %7659 = vmatpush3.bf16.msra.mxu0 %v9062_v17 }
0x1820   :  { %7672 = vmatprep.subr.bf16.mxu0 %v8293_v15 }
0x1821   :  { %v2486_v8 = vpop.permute.xlu1 %2485 }
0x18e5   :  { %v2460_v59 = vpop.f32.mrb[26].mxu0 }
0x18e6   :  { %v2464_v49 = vadd.f32 %v2460_v59, %v9163_v36  ;;  %v6966_v54 = vpop.f32.mrb[27].mxu0 }
0x18e8   :  { %8047 = vtanh.f32 %v2464_v49  ;;  %v6243_v7 = vmul.f32 -1.442695, %v2464_v49 }
0x18ea   :  { %8049 = vpow2.f32 %v6243_v7 }
0x18f2   :  { %v8048_v57 = vpop.eup %8047 }
0x18f3   :  { %2474 = vrot.lane.b32.xlu0 %v8048_v57, %s8290_s3 }
0x18f4   :  { %v8050_v34 = vpop.eup %8049 }
0x18f5   :  { %v2468_v6 = vadd.f32 1.0, %v8050_v34 }
0x18f7   :  { %8051 = vrcp.f32 %v2468_v6 }
0x1901   :  { %v8052_v37 = vpop.eup %8051 }
0x1902   :  { %v2472_v4 = vmul.f32 %v8052_v37, %v2351_v1  ;;  %v2513_v1 = vsel %vm88_vm2, %v6244_v39, %v2511_v21 }
0x1965   :  { %v2475_v31 = vpop.permute.xlu0 %2474 }
0x1966   :  { %v2477_v0 = vmul.f32 %v8052_v37, %v2475_v31  ;;  %v6249_v31 = vld [vmem:[%s10533_s15 + $0xc] sm:$0x3] }
0x1968   :  { %2479 = vrot.lane.b32.xlu0 %v2477_v0, %s8283_s9 }
0x19da   :  { %v2480_v5 = vpop.permute.xlu0 %2479 }
0x19db   :  { %v2482_v63 = vadd.f32 %v2480_v5, %v2472_v4  ;;  %v2647_v4 = vrot.slane %v6249_v31, 6 }
0x19dd   :  { %v2488_v36 = vmul.f32 %v2486_v8, %v2482_v63 }
0x19df   :  { %8053 = vtanh.f32 %v2488_v36 }
0x19e9   :  { %v8054_v52 = vpop.eup %8053 }
0x19ea   :  { %2491 = vrot.lane.b32.xlu1 %v8054_v52, %s8290_s3 }
0x1a5c   :  { %v2492_v9 = vpop.permute.xlu1 %2491 }
0x1a5d   :  { %v2494_v10 = vmul.f32 %v8052_v37, %v2492_v9 }
0x1a5f   :  { %v9408_v16 = vmul.f32 %v2494_v10, %v2486_v8  ;;  %v6248_v8 = vld [vmem:[%s10533_s15 + $0x12] sm:$0x3] }
0x1a61   :  { %v2515_v22 = vmul.f32 %v9408_v16, %v9070_v29  ;;  %v2514_v32 = vmul.f32 %v9067_v61, %v9408_v16 }
0x1a63   :  { %2521 = vrot.lane.b32.xlu1 %v2515_v22, %s8290_s3  ;;  %2517 = vrot.lane.b32.xlu0 %v2514_v32, %s8283_s9 }
0x1a67   :  { %2619 = vperm.xlu1 %7990, %v2513_v1  }
0x1ad5   :  { %v2522_v19 = vpop.permute.xlu1 %2521  ;;  %v2518_v40 = vpop.permute.xlu0 %2517 }
0x1ad6   :  { %v2524_v41 = vsel %vm289_vm12, %v2518_v40, %v2522_v19 }
0x1ad7   :  { %6984 = vmatmul.mubr.msk.f32.vlgmr.msra.gmra.mrb[20].mxu1 %vm639_vm5, %v2524_v41 }
0x1ad8   :  { %7662 = vmatpush3.bf16.msra.mxu1 %v9027_v13  ;;  %7021 = vmatprep.mubr.msk.f32.mxu1 %vm8294_vm10, %v8275_v2 }
0x1ad9   :  { %7663 = vmatprep.subr.bf16.mxu1 %v8293_v15 }
0x1adc   :  { %7665 = vmatpush3.bf16.msra.mxu1 %v9039_v18 }
0x1add   :  { %7666 = vmatprep.subr.bf16.mxu1 %v8293_v15 }
0x1ae0   :  { %7668 = vmatpush3.bf16.msra.mxu1 %v9049_v12 }
0x1ae1   :  { %7669 = vmatprep.subr.bf16.mxu1 %v8293_v15 }
0x1ae4   :  { %7671 = vmatpush3.bf16.msra.mxu1 %v9062_v17 }
0x1ae5   :  { %7684 = vmatprep.subr.bf16.mxu1 %v8293_v15 }
0x1ae6   :  { %v2620_v7 = vpop.permute.xlu1 %2619 }
0x1baa   :  { %v2594_v42 = vpop.f32.mrb[20].mxu1 }
0x1bab   :  { %v2598_v50 = vadd.f32 %v2594_v42, %v9142_v24  ;;  %v6985_v53 = vpop.f32.mrb[21].mxu1 }
0x1bad   :  { %8055 = vtanh.f32 %v2598_v50  ;;  %v6247_v56 = vmul.f32 -1.442695, %v2598_v50 }
0x1baf   :  { %8057 = vpow2.f32 %v6247_v56 }
0x1bb7   :  { %v8056_v55 = vpop.eup %8055 }
0x1bb8   :  { %2608 = vrot.lane.b32.xlu0 %v8056_v55, %s8290_s3 }
0x1bb9   :  { %v8058_v35 = vpop.eup %8057 }
0x1bba   :  { %v2602_v51 = vadd.f32 1.0, %v8058_v35 }
0x1bbc   :  { %8059 = vrcp.f32 %v2602_v51 }
0x1bc6   :  { %v8060_v48 = vpop.eup %8059 }
0x1bc7   :  { %v2606_v49 = vmul.f32 %v8060_v48, %v2488_v36  ;;  %v2649_v36 = vsel %vm88_vm2, %v6248_v8, %v2647_v4 }
0x1c2a   :  { %v2609_v58 = vpop.permute.xlu0 %2608 }
0x1c2b   :  { %v2611_v59 = vmul.f32 %v8060_v48, %v2609_v58  ;;  %v6253_v58 = vld [vmem:[%s10533_s15 + $0xa] sm:$0x3] }
0x1c2d   :  { %2613 = vrot.lane.b32.xlu0 %v2611_v59, %s8283_s9 }
0x1c9f   :  { %v2614_v54 = vpop.permute.xlu0 %2613 }
0x1ca0   :  { %v2616_v57 = vadd.f32 %v2614_v54, %v2606_v49  ;;  %v2780_v49 = vrot.slane %v6253_v58, 6 }
0x1ca2   :  { %v2622_v24 = vmul.f32 %v2620_v7, %v2616_v57 }
0x1ca4   :  { %8061 = vtanh.f32 %v2622_v24 }
0x1cae   :  { %v8062_v34 = vpop.eup %8061 }
0x1caf   :  { %2625 = vrot.lane.b32.xlu1 %v8062_v34, %s8290_s3 }
0x1d21   :  { %v2626_v6 = vpop.permute.xlu1 %2625 }
0x1d22   :  { %v2628_v37 = vmul.f32 %v8060_v48, %v2626_v6 }
0x1d24   :  { %v9439_v0 = vmul.f32 %v2628_v37, %v2620_v7  ;;  %v6252_v7 = vld [vmem:[%s10533_s15 + $0x14] sm:$0x3] }
0x1d26   :  { %v2651_v5 = vmul.f32 %v9439_v0, %v9070_v29  ;;  %v2650_v63 = vmul.f32 %v9067_v61, %v9439_v0 }
0x1d28   :  { %2657 = vrot.lane.b32.xlu1 %v2651_v5, %s8290_s3  ;;  %2653 = vrot.lane.b32.xlu0 %v2650_v63, %s8283_s9 }
0x1d2c   :  { %2755 = vperm.xlu1 %7990, %v2649_v36  }
0x1d9a   :  { %v2658_v52 = vpop.permute.xlu1 %2657  ;;  %v2654_v9 = vpop.permute.xlu0 %2653 }
0x1d9b   :  { %v2660_v10 = vsel %vm289_vm12, %v2654_v9, %v2658_v52 }
0x1d9c   :  { %7003 = vmatmul.mubr.msk.f32.vlgmr.msra.gmra.mrb[28].mxu0 %vm639_vm5, %v2660_v10 }
0x1d9d   :  { %7674 = vmatpush3.bf16.msra.mxu0 %v9027_v13  ;;  %7040 = vmatprep.mubr.msk.f32.mxu0 %vm8294_vm10, %v8275_v2 }
0x1d9e   :  { %7675 = vmatprep.subr.bf16.mxu0 %v8293_v15 }
0x1da1   :  { %7677 = vmatpush3.bf16.msra.mxu0 %v9039_v18 }
0x1da2   :  { %7678 = vmatprep.subr.bf16.mxu0 %v8293_v15 }
0x1da5   :  { %7680 = vmatpush3.bf16.msra.mxu0 %v9049_v12 }
0x1da6   :  { %7681 = vmatprep.subr.bf16.mxu0 %v8293_v15 }
0x1da9   :  { %7683 = vmatpush3.bf16.msra.mxu0 %v9062_v17 }
0x1daa   :  { %7696 = vmatprep.subr.bf16.mxu0 %v8293_v15 }
0x1dab   :  { %v2756_v56 = vpop.permute.xlu1 %2755 }
0x1e6f   :  { %v2730_v11 = vpop.f32.mrb[28].mxu0 }
0x1e70   :  { %v2734_v21 = vadd.f32 %v2730_v11, %v9148_v25  ;;  %v7004_v22 = vpop.f32.mrb[29].mxu0 }
0x1e72   :  { %8063 = vtanh.f32 %v2734_v21  ;;  %v6251_v39 = vmul.f32 -1.442695, %v2734_v21 }
0x1e74   :  { %8065 = vpow2.f32 %v6251_v39 }
0x1e7c   :  { %v8064_v32 = vpop.eup %8063 }
0x1e7d   :  { %2744 = vrot.lane.b32.xlu0 %v8064_v32, %s8290_s3 }
0x1e7e   :  { %v8066_v1 = vpop.eup %8065 }
0x1e7f   :  { %v2738_v19 = vadd.f32 1.0, %v8066_v1 }
0x1e81   :  { %8067 = vrcp.f32 %v2738_v19 }
0x1e8b   :  { %v8068_v40 = vpop.eup %8067 }
0x1e8c   :  { %v2742_v50 = vmul.f32 %v8068_v40, %v2622_v24  ;;  %v2782_v24 = vsel %vm88_vm2, %v6252_v7, %v2780_v49 }
0x1eef   :  { %v2745_v41 = vpop.permute.xlu0 %2744 }
0x1ef0   :  { %v2747_v42 = vmul.f32 %v8068_v40, %v2745_v41  ;;  %v6257_v41 = vld [vmem:[%s10533_s15 + $0x8] sm:$0x3] }
0x1ef2   :  { %2749 = vrot.lane.b32.xlu0 %v2747_v42, %s8283_s9 }
0x1f64   :  { %v2750_v53 = vpop.permute.xlu0 %2749 }
0x1f65   :  { %v2752_v55 = vadd.f32 %v2750_v53, %v2742_v50  ;;  %v2915_v50 = vrot.slane %v6257_v41, 6 }
0x1f67   :  { %v2758_v25 = vmul.f32 %v2756_v56, %v2752_v55 }
0x1f69   :  { %8069 = vtanh.f32 %v2758_v25 }
0x1f73   :  { %v8070_v35 = vpop.eup %8069 }
0x1f74   :  { %2761 = vrot.lane.b32.xlu1 %v8070_v35, %s8290_s3 }
0x1fe6   :  { %v2762_v51 = vpop.permute.xlu1 %2761 }
0x1fe7   :  { %v2764_v48 = vmul.f32 %v8068_v40, %v2762_v51 }
0x1fe9   :  { %v9470_v59 = vmul.f32 %v2764_v48, %v2756_v56  ;;  %v6256_v56 = vld [vmem:[%s10533_s15 + $0x16] sm:$0x3] }
0x1feb   :  { %v2784_v54 = vmul.f32 %v9470_v59, %v9070_v29  ;;  %v2783_v57 = vmul.f32 %v9067_v61, %v9470_v59 }
0x1fed   :  { %2790 = vrot.lane.b32.xlu1 %v2784_v54, %s8290_s3  ;;  %2786 = vrot.lane.b32.xlu0 %v2783_v57, %s8283_s9 }
0x1ff1   :  { %2888 = vperm.xlu1 %7990, %v2782_v24  }
0x205f   :  { %v2791_v34 = vpop.permute.xlu1 %2790  ;;  %v2787_v6 = vpop.permute.xlu0 %2786 }
0x2060   :  { %v2793_v37 = vsel %vm289_vm12, %v2787_v6, %v2791_v34 }
0x2061   :  { %7022 = vmatmul.mubr.msk.f32.vlgmr.msra.gmra.mrb[22].mxu1 %vm639_vm5, %v2793_v37 }
0x2062   :  { %7686 = vmatpush3.bf16.msra.mxu1 %v9027_v13  ;;  %7059 = vmatprep.mubr.msk.f32.mxu1 %vm8294_vm10, %v8275_v2 }
0x2063   :  { %7687 = vmatprep.subr.bf16.mxu1 %v8293_v15 }
0x2066   :  { %7689 = vmatpush3.bf16.msra.mxu1 %v9039_v18 }
0x2067   :  { %7690 = vmatprep.subr.bf16.mxu1 %v8293_v15 }
0x206a   :  { %7692 = vmatpush3.bf16.msra.mxu1 %v9049_v12 }
0x206b   :  { %7693 = vmatprep.subr.bf16.mxu1 %v8293_v15 }
0x206e   :  { %7695 = vmatpush3.bf16.msra.mxu1 %v9062_v17 }
0x206f   :  { %7708 = vmatprep.subr.bf16.mxu1 %v8293_v15 }
0x2070   :  { %v2889_v39 = vpop.permute.xlu1 %2888 }
0x2134   :  { %v2863_v31 = vpop.f32.mrb[22].mxu1 }
0x2135   :  { %v2867_v4 = vadd.f32 %v2863_v31, %v9151_v28  ;;  %v7023_v5 = vpop.f32.mrb[23].mxu1 }
0x2137   :  { %8071 = vtanh.f32 %v2867_v4  ;;  %v6255_v8 = vmul.f32 -1.442695, %v2867_v4 }
0x2139   :  { %8073 = vpow2.f32 %v6255_v8 }
0x2141   :  { %v8072_v63 = vpop.eup %8071 }
0x2142   :  { %2877 = vrot.lane.b32.xlu0 %v8072_v63, %s8290_s3 }
0x2143   :  { %v8074_v36 = vpop.eup %8073 }
0x2144   :  { %v2871_v52 = vadd.f32 1.0, %v8074_v36 }
0x2146   :  { %8075 = vrcp.f32 %v2871_v52 }
0x2150   :  { %v8076_v9 = vpop.eup %8075 }
0x2151   :  { %v2875_v21 = vmul.f32 %v8076_v9, %v2758_v25  ;;  %v2917_v25 = vsel %vm88_vm2, %v6256_v56, %v2915_v50 }
0x21b4   :  { %v2878_v10 = vpop.permute.xlu0 %2877 }
0x21b5   :  { %v2880_v11 = vmul.f32 %v8076_v9, %v2878_v10  ;;  %v6261_v10 = vld [vmem:[%s10533_s15 + $0x6] sm:$0x3] }
0x21b7   :  { %2882 = vrot.lane.b32.xlu0 %v2880_v11, %s8283_s9 }
0x2229   :  { %v2883_v22 = vpop.permute.xlu0 %2882 }
0x222a   :  { %v2885_v32 = vadd.f32 %v2883_v22, %v2875_v21  ;;  %v3049_v21 = vrot.slane %v6261_v10, 6 }
0x222c   :  { %v2891_v28 = vmul.f32 %v2889_v39, %v2885_v32 }
0x222e   :  { %8077 = vtanh.f32 %v2891_v28 }
0x2238   :  { %v8078_v1 = vpop.eup %8077 }
0x2239   :  { %2894 = vrot.lane.b32.xlu1 %v8078_v1, %s8290_s3 }
0x22ab   :  { %v2895_v19 = vpop.permute.xlu1 %2894 }
0x22ac   :  { %v2897_v40 = vmul.f32 %v8076_v9, %v2895_v19 }
0x22ae   :  { %v9501_v42 = vmul.f32 %v2897_v40, %v2889_v39  ;;  %v6260_v39 = vld [vmem:[%s10533_s15 + $0x18] sm:$0x3] }
0x22b0   :  { %v2919_v53 = vmul.f32 %v9501_v42, %v9070_v29  ;;  %v2918_v55 = vmul.f32 %v9067_v61, %v9501_v42 }
0x22b2   :  { %2925 = vrot.lane.b32.xlu1 %v2919_v53, %s8290_s3  ;;  %2921 = vrot.lane.b32.xlu0 %v2918_v55, %s8283_s9 }
0x22b6   :  { %3023 = vperm.xlu1 %7990, %v2917_v25  }
0x2324   :  { %v2926_v35 = vpop.permute.xlu1 %2925  ;;  %v2922_v51 = vpop.permute.xlu0 %2921 }
0x2325   :  { %v2928_v48 = vsel %vm289_vm12, %v2922_v51, %v2926_v35 }
0x2326   :  { %7041 = vmatmul.mubr.msk.f32.vlgmr.msra.gmra.mrb[30].mxu0 %vm639_vm5, %v2928_v48 }
0x2327   :  { %7698 = vmatpush3.bf16.msra.mxu0 %v9027_v13  ;;  %7078 = vmatprep.mubr.msk.f32.mxu0 %vm8294_vm10, %v8275_v2 }
0x2328   :  { %7699 = vmatprep.subr.bf16.mxu0 %v8293_v15 }
0x232b   :  { %7701 = vmatpush3.bf16.msra.mxu0 %v9039_v18 }
0x232c   :  { %7702 = vmatprep.subr.bf16.mxu0 %v8293_v15 }
0x232f   :  { %7704 = vmatpush3.bf16.msra.mxu0 %v9049_v12 }
0x2330   :  { %7705 = vmatprep.subr.bf16.mxu0 %v8293_v15 }
0x2333   :  { %7707 = vmatpush3.bf16.msra.mxu0 %v9062_v17 }
0x2334   :  { %7720 = vmatprep.subr.bf16.mxu0 %v8293_v15 }
0x2335   :  { %v3024_v8 = vpop.permute.xlu1 %3023 }
0x23f9   :  { %v2998_v58 = vpop.f32.mrb[30].mxu0 }
0x23fa   :  { %v3002_v49 = vadd.f32 %v2998_v58, %v9154_v30  ;;  %v7042_v54 = vpop.f32.mrb[31].mxu0 }
0x23fc   :  { %8079 = vtanh.f32 %v3002_v49  ;;  %v6259_v7 = vmul.f32 -1.442695, %v3002_v49 }
0x23fe   :  { %8081 = vpow2.f32 %v6259_v7 }
0x2406   :  { %v8080_v57 = vpop.eup %8079 }
0x2407   :  { %3012 = vrot.lane.b32.xlu0 %v8080_v57, %s8290_s3 }
0x2408   :  { %v8082_v24 = vpop.eup %8081 }
0x2409   :  { %v3006_v34 = vadd.f32 1.0, %v8082_v24 }
0x240b   :  { %8083 = vrcp.f32 %v3006_v34 }
0x2415   :  { %v8084_v6 = vpop.eup %8083 }
0x2416   :  { %v3010_v4 = vmul.f32 %v8084_v6, %v2891_v28  ;;  %v3051_v28 = vsel %vm88_vm2, %v6260_v39, %v3049_v21 }
0x2479   :  { %v3013_v37 = vpop.permute.xlu0 %3012 }
0x247a   :  { %v3015_v31 = vmul.f32 %v8084_v6, %v3013_v37  ;;  %v6265_v37 = vld [vmem:[%s10533_s15 + $0x4] sm:$0x3] }
0x247c   :  { %3017 = vrot.lane.b32.xlu0 %v3015_v31, %s8283_s9 }
0x24ee   :  { %v3018_v5 = vpop.permute.xlu0 %3017 }
0x24ef   :  { %v3020_v63 = vadd.f32 %v3018_v5, %v3010_v4  ;;  %v3185_v4 = vrot.slane %v6265_v37, 6 }
0x24f1   :  { %v3026_v30 = vmul.f32 %v3024_v8, %v3020_v63 }
0x24f3   :  { %8085 = vtanh.f32 %v3026_v30 }
0x24fd   :  { %v8086_v36 = vpop.eup %8085 }
0x24fe   :  { %3029 = vrot.lane.b32.xlu1 %v8086_v36, %s8290_s3 }
0x2570   :  { %v3030_v52 = vpop.permute.xlu1 %3029 }
0x2571   :  { %v3032_v9 = vmul.f32 %v8084_v6, %v3030_v52 }
0x2573   :  { %v9532_v11 = vmul.f32 %v3032_v9, %v3024_v8  ;;  %v6264_v8 = vld [vmem:[%s10533_s15 + $0x1a] sm:$0x3] }
0x2575   :  { %v3053_v22 = vmul.f32 %v9532_v11, %v9070_v29  ;;  %v3052_v32 = vmul.f32 %v9067_v61, %v9532_v11 }
0x2577   :  { %3059 = vrot.lane.b32.xlu1 %v3053_v22, %s8290_s3  ;;  %3055 = vrot.lane.b32.xlu0 %v3052_v32, %s8283_s9 }
0x257b   :  { %3157 = vperm.xlu1 %7990, %v3051_v28  }
0x25e9   :  { %v3060_v1 = vpop.permute.xlu1 %3059  ;;  %v3056_v19 = vpop.permute.xlu0 %3055 }
0x25ea   :  { %v3062_v40 = vsel %vm289_vm12, %v3056_v19, %v3060_v1 }
0x25eb   :  { %7060 = vmatmul.mubr.msk.f32.vlgmr.msra.gmra.mrb[24].mxu1 %vm639_vm5, %v3062_v40 }
0x25ec   :  { %7710 = vmatpush3.bf16.msra.mxu1 %v9027_v13  ;;  %7097 = vmatprep.mubr.msk.f32.mxu1 %vm8294_vm10, %v8275_v2 }
0x25ed   :  { %7711 = vmatprep.subr.bf16.mxu1 %v8293_v15 }
0x25f0   :  { %7713 = vmatpush3.bf16.msra.mxu1 %v9039_v18 }
0x25f1   :  { %7714 = vmatprep.subr.bf16.mxu1 %v8293_v15 }
0x25f4   :  { %7716 = vmatpush3.bf16.msra.mxu1 %v9049_v12 }
0x25f5   :  { %7717 = vmatprep.subr.bf16.mxu1 %v8293_v15 }
0x25f8   :  { %7719 = vmatpush3.bf16.msra.mxu1 %v9062_v17 }
0x25fa   :  { %v3158_v7 = vpop.permute.xlu1 %3157 }
0x26be   :  { %v3132_v41 = vpop.f32.mrb[24].mxu1 }
0x26bf   :  { %v3136_v50 = vadd.f32 %v3132_v41, %v9166_v38  ;;  %v7061_v53 = vpop.f32.mrb[25].mxu1 }
0x26c1   :  { %8087 = vtanh.f32 %v3136_v50  ;;  %v6263_v56 = vmul.f32 -1.442695, %v3136_v50 }
0x26c3   :  { %8089 = vpow2.f32 %v6263_v56  ;;  %v6269_v56 = vld [vmem:[%s10533_s15 + $0x2] sm:$0x3] }
0x26cb   :  { %v8088_v55 = vpop.eup %8087 }
0x26cc   :  { %3146 = vrot.lane.b32.xlu0 %v8088_v55, %s8290_s3 }
0x26cd   :  { %v8090_v25 = vpop.eup %8089 }
0x26ce   :  { %v3140_v35 = vadd.f32 1.0, %v8090_v25 }
0x26d0   :  { %8091 = vrcp.f32 %v3140_v35  ;;  %v3318_v35 = vrot.slane %v6269_v56, 6 }
0x26da   :  { %v8092_v51 = vpop.eup %8091 }
0x26db   :  { %v3144_v49 = vmul.f32 %v8092_v51, %v3026_v30  ;;  %v3187_v30 = vsel %vm88_vm2, %v6264_v8, %v3185_v4 }
0x273e   :  { %v3147_v48 = vpop.permute.xlu0 %3146 }
0x273f   :  { %v3149_v58 = vmul.f32 %v8092_v51, %v3147_v48 }
0x2741   :  { %3151 = vrot.lane.b32.xlu0 %v3149_v58, %s8283_s9  ;;  %v6268_v58 = vld [vmem:[%s10533_s15 + $0x1c] sm:$0x3] }
0x27b3   :  { %v3152_v54 = vpop.permute.xlu0 %3151 }
0x27b4   :  { %v3154_v57 = vadd.f32 %v3152_v54, %v3144_v49  ;;  %v3320_v49 = vsel %vm88_vm2, %v6268_v58, %v3318_v35 }
0x27b6   :  { %v3160_v38 = vmul.f32 %v3158_v7, %v3154_v57 }
0x27b8   :  { %8093 = vtanh.f32 %v3160_v38 }
0x27c2   :  { %v8094_v24 = vpop.eup %8093 }
0x27c3   :  { %3163 = vrot.lane.b32.xlu1 %v8094_v24, %s8290_s3 }
0x2835   :  { %v3164_v34 = vpop.permute.xlu1 %3163 }
0x2836   :  { %v3166_v6 = vmul.f32 %v8092_v51, %v3164_v34 }
0x2838   :  { %v9562_v31 = vmul.f32 %v3166_v6, %v3158_v7 }
0x283a   :  { %v3189_v5 = vmul.f32 %v9562_v31, %v9070_v29  ;;  %v3188_v63 = vmul.f32 %v9067_v61, %v9562_v31 }
0x283c   :  { %3195 = vrot.lane.b32.xlu1 %v3189_v5, %s8290_s3  ;;  %3191 = vrot.lane.b32.xlu0 %v3188_v63, %s8283_s9 }
0x2840   :  { %3293 = vperm.xlu1 %7990, %v3187_v30  }
0x28ae   :  { %v3196_v36 = vpop.permute.xlu1 %3195  ;;  %v3192_v52 = vpop.permute.xlu0 %3191 }
0x28af   :  { %v3198_v9 = vsel %vm289_vm12, %v3192_v52, %v3196_v36 }
0x28b0   :  { %7079 = vmatmul.mubr.msk.f32.vlgmr.msra.gmra.mrb[32].mxu0 %vm639_vm5, %v3198_v9 }
0x28b1   :  { %7722 = vmatpush3.bf16.msra.mxu0 %v9027_v13  ;;  %7116 = vmatprep.mubr.msk.f32.mxu0 %vm8294_vm10, %v8275_v2 }
0x28b2   :  { %7723 = vmatprep.subr.bf16.mxu0 %v8293_v15 }
0x28b5   :  { %7725 = vmatpush3.bf16.msra.mxu0 %v9039_v18 }
0x28b6   :  { %7726 = vmatprep.subr.bf16.mxu0 %v8293_v15 }
0x28b9   :  { %7728 = vmatpush3.bf16.msra.mxu0 %v9049_v12 }
0x28ba   :  { %7729 = vmatprep.subr.bf16.mxu0 %v8293_v15 }
0x28bd   :  { %7731 = vmatpush3.bf16.msra.mxu0 %v9062_v17 }
0x28be   :  { %7748 = vmatprep.subr.bf16.mxu0 %v8293_v15 }
0x28bf   :  { %v3294_v41 = vpop.permute.xlu1 %3293 }
0x2983   :  { %v3268_v10 = vpop.f32.mrb[32].mxu0 }
0x2984   :  { %v3272_v13 = vadd.f32 %v3268_v10, %v9172_v46  ;;  %v7080_v21 = vpop.f32.mrb[33].mxu0 }
0x2986   :  { %8095 = vtanh.f32 %v3272_v13  ;;  %v6267_v32 = vmul.f32 -1.442695, %v3272_v13 }
0x2988   :  { %8097 = vpow2.f32 %v6267_v32  ;;  %v3451_v32 = vld [vmem:[%s10533_s15] sm:$0x3] }
0x2990   :  { %v8096_v22 = vpop.eup %8095 }
0x2991   :  { %3282 = vrot.lane.b32.xlu0 %v8096_v22, %s8290_s3 }
0x2992   :  { %v8098_v18 = vpop.eup %8097 }
0x2993   :  { %v3276_v39 = vadd.f32 1.0, %v8098_v18 }
0x2995   :  { %8099 = vrcp.f32 %v3276_v39  ;;  %v3453_v39 = vrot.slane %v3451_v32, 6  ;;  %v3734_v32 = vld [vmem:[%s10504_s20 + $0x38] sm:$0xff] }
0x299f   :  { %v8100_v12 = vpop.eup %8099 }
0x29a0   :  { %v3280_v17 = vmul.f32 %v8100_v12, %v3160_v38 }
0x2a03   :  { %v3283_v28 = vpop.permute.xlu0 %3282 }
0x2a04   :  { %v3285_v1 = vmul.f32 %v8100_v12, %v3283_v28 }
0x2a06   :  { %3287 = vrot.lane.b32.xlu0 %v3285_v1, %s8283_s9  ;;  %v6272_v1 = vld [vmem:[%s10533_s15 + $0x1e] sm:$0x3] }
0x2a78   :  { %v3288_v19 = vpop.permute.xlu0 %3287 }
0x2a79   :  { %v3290_v40 = vadd.f32 %v3288_v19, %v3280_v17  ;;  %v3455_v17 = vsel %vm88_vm2, %v6272_v1, %v3453_v39  ;;  %v3733_v39 = vld [vmem:[%s10504_s20 + $0x30] sm:$0xff]  ;;  %v3736_v1 = vld [vmem:[%s10504_s20 + $0x48] sm:$0xff] }
0x2a7b   :  { %v3296_v46 = vmul.f32 %v3294_v41, %v3290_v40 }
0x2a7d   :  { %8101 = vtanh.f32 %v3296_v46 }
0x2a87   :  { %v8102_v50 = vpop.eup %8101 }
0x2a88   :  { %3299 = vrot.lane.b32.xlu1 %v8102_v50, %s8290_s3 }
0x2afa   :  { %v3300_v53 = vpop.permute.xlu1 %3299 }
0x2afb   :  { %v3302_v55 = vmul.f32 %v8100_v12, %v3300_v53 }
0x2afd   :  { %v9593_v25 = vmul.f32 %v3302_v55, %v3294_v41 }
0x2aff   :  { %v3322_v51 = vmul.f32 %v9593_v25, %v9070_v29  ;;  %v3321_v48 = vmul.f32 %v9067_v61, %v9593_v25 }
0x2b01   :  { %3328 = vrot.lane.b32.xlu1 %v3322_v51, %s8290_s3  ;;  %3324 = vrot.lane.b32.xlu0 %v3321_v48, %s8283_s9 }
0x2b05   :  { %3426 = vperm.xlu1 %7990, %v3320_v49  }
0x2b73   :  { %v3329_v54 = vpop.permute.xlu1 %3328  ;;  %v3325_v57 = vpop.permute.xlu0 %3324 }
0x2b74   :  { %v3331_v7 = vsel %vm289_vm12, %v3325_v57, %v3329_v54 }
0x2b75   :  { %7098 = vmatmul.mubr.msk.f32.vlgmr.msra.gmra.mrb[26].mxu1 %vm639_vm5, %v3331_v7 }
0x2b76   :  { %3831 = vmatprep.mubr.f32.mxu1 %v8275_v2 }
0x2b84   :  { %v3427_v10 = vpop.permute.xlu1 %3426 }
0x2c48   :  { %v3401_v38 = vpop.f32.mrb[26].mxu1 }
0x2c49   :  { %v3405_v24 = vadd.f32 %v3401_v38, %v9175_v47  ;;  %v7099_v34 = vpop.f32.mrb[27].mxu1 }
0x2c4b   :  { %8103 = vtanh.f32 %v3405_v24  ;;  %v6271_v37 = vmul.f32 -1.442695, %v3405_v24 }
0x2c4d   :  { %8105 = vpow2.f32 %v6271_v37 }
0x2c55   :  { %v8104_v6 = vpop.eup %8103 }
0x2c56   :  { %3415 = vrot.lane.b32.xlu0 %v8104_v6, %s8290_s3 }
0x2c57   :  { %v8106_v4 = vpop.eup %8105 }
0x2c58   :  { %v3409_v5 = vadd.f32 1.0, %v8106_v4 }
0x2c5a   :  { %8107 = vrcp.f32 %v3409_v5 }
0x2c64   :  { %v8108_v63 = vpop.eup %8107 }
0x2c65   :  { %v3413_v36 = vmul.f32 %v8108_v63, %v3296_v46 }
0x2cc8   :  { %v3416_v8 = vpop.permute.xlu0 %3415 }
0x2cc9   :  { %v3418_v30 = vmul.f32 %v8108_v63, %v3416_v8 }
0x2ccb   :  { %3420 = vrot.lane.b32.xlu0 %v3418_v30, %s8283_s9  ;;  %v3728_v30 = vld [vmem:[%s10504_s20 + $0x8] sm:$0xff] }
0x2d3d   :  { %v3421_v52 = vpop.permute.xlu0 %3420 }
0x2d3e   :  { %v3423_v9 = vadd.f32 %v3421_v52, %v3413_v36  ;;  %v3727_v36 = vld [vmem:[%s10504_s20] sm:$0xff] }
0x2d40   :  { %v3429_v47 = vmul.f32 %v3427_v10, %v3423_v9 }
0x2d42   :  { %8109 = vtanh.f32 %v3429_v47 }
0x2d4c   :  { %v8110_v13 = vpop.eup %8109 }
0x2d4d   :  { %3432 = vrot.lane.b32.xlu1 %v8110_v13, %s8290_s3 }
0x2dbf   :  { %v3433_v21 = vpop.permute.xlu1 %3432 }
0x2dc0   :  { %v3435_v22 = vmul.f32 %v8108_v63, %v3433_v21 }
0x2dc2   :  { %v3436_v18 = vmul.f32 %v3435_v22, %v3427_v10 }
0x2dc4   :  { %v3457_v12 = vmul.f32 %v3436_v18, %v9070_v29  ;;  %v3456_v28 = vmul.f32 %v9067_v61, %v3436_v18 }
0x2dc6   :  { %3463 = vrot.lane.b32.xlu1 %v3457_v12, %s8290_s3  ;;  %3459 = vrot.lane.b32.xlu0 %v3456_v28, %s8283_s9 }
0x2dca   :  { %3561 = vperm.xlu1 %7990, %v3455_v17   ;;  %v3738_v17 = vld [vmem:[%s10504_s20 + $0x58] sm:$0xff] }
0x2e38   :  { %v3464_v19 = vpop.permute.xlu1 %3463  ;;  %v3460_v40 = vpop.permute.xlu0 %3459 }
0x2e39   :  { %v3466_v41 = vsel %vm289_vm12, %v3460_v40, %v3464_v19 }
0x2e3a   :  { %7117 = vmatmul.mubr.msk.f32.vlgmr.msra.gmra.mrb[34].mxu0 %vm639_vm5, %v3466_v41  ;;  %v7740_v41 = vpack.c.bf16 %v3738_v17, %v3736_v1 }
0x2e3b   :  { %7135 = vmatprep.mubr.msk.f32.mxu0 %vm8294_vm10, %v8275_v2 }
0x2e49   :  { %v3562_v57 = vpop.permute.xlu1 %3561 }
0x2f0d   :  { %v3536_v46 = vpop.f32.mrb[34].mxu0 }
0x2f0e   :  { %v3540_v50 = vadd.f32 %v3536_v46, %v9178_v26  ;;  %v7118_v53 = vpop.f32.mrb[35].mxu0  ;;  %v3735_v46 = vld [vmem:[%s10504_s20 + $0x40] sm:$0xff] }
0x2f0f   :  { %v3740_v53 = vld [vmem:[%s10504_s20 + $0x68] sm:$0xff] }
0x2f10   :  { %8111 = vtanh.f32 %v3540_v50  ;;  %v6274_v56 = vmul.f32 -1.442695, %v3540_v50  ;;  %v3737_v50 = vld [vmem:[%s10504_s20 + $0x50] sm:$0xff] }
0x2f12   :  { %8113 = vpow2.f32 %v6274_v56  ;;  %v7742_v56 = vpack.c.bf16 %v3737_v50, %v3735_v46  ;;  %v3868_v46 = vld [vmem:[%s10533_s15] sm:$0x3] }
0x2f1a   :  { %v8112_v55 = vpop.eup %8111 }
0x2f1b   :  { %3550 = vrot.lane.b32.xlu0 %v8112_v55, %s8290_s3  ;;  %v3742_v55 = vld [vmem:[%s10504_s20 + $0x78] sm:$0xff] }
0x2f1c   :  { %v8114_v35 = vpop.eup %8113 }
0x2f1d   :  { %v3544_v51 = vadd.f32 1.0, %v8114_v35  ;;  %v7744_v35 = vpack.c.bf16 %v3742_v55, %v3740_v53 }
0x2f1f   :  { %8115 = vrcp.f32 %v3544_v51  ;;  %v3739_v51 = vld [vmem:[%s10504_s20 + $0x60] sm:$0xff] }
0x2f29   :  { %v8116_v48 = vpop.eup %8115 }
0x2f2a   :  { %v3548_v26 = vmul.f32 %v8116_v48, %v3429_v47  ;;  %v3732_v47 = vld [vmem:[%s10504_s20 + $0x28] sm:$0xff] }
0x2f2b   :  { %v7736_v28 = vpack.c.bf16 %v3734_v32, %v3732_v47 }
0x2f8d   :  { %v3551_v58 = vpop.permute.xlu0 %3550 }
0x2f8e   :  { %v3553_v49 = vmul.f32 %v8116_v48, %v3551_v58 }
0x2f90   :  { %3555 = vrot.lane.b32.xlu0 %v3553_v49, %s8283_s9 }
0x2f94   :  { %3438 = vrot.lane.b32.xlu0 %v3436_v18, %s8283_s9  ;;  %v3731_v18 = vld [vmem:[%s10504_s20 + $0x20] sm:$0xff] }
0x2f95   :  { %v7738_v40 = vpack.c.bf16 %v3733_v39, %v3731_v18  ;;  %v6279_v39 = vld [vmem:[%s10533_s15 + $0x1e] sm:$0x3] }
0x2f98   :  { %3169 = vrot.lane.b32.xlu0 %v9562_v31, %s8283_s9 }
0x2f9c   :  { %2900 = vrot.lane.b32.xlu0 %v9501_v42, %s8283_s9 }
0x2fa0   :  { %2631 = vrot.lane.b32.xlu0 %v9439_v0, %s8283_s9 }
0x2fa4   :  { %2360 = vrot.lane.b32.xlu0 %v9377_v43, %s8283_s9 }
0x2fa8   :  { %2087 = vrot.lane.b32.xlu0 %v9315_v3, %s8283_s9 }
0x2fac   :  { %1814 = vrot.lane.b32.xlu0 %v9253_v45, %s8283_s9 }
0x2fb0   :  { %1540 = vrot.lane.b32.xlu0 %v9189_v27, %s8283_s9 }
0x3002   :  { %v3556_v31 = vpop.permute.xlu0 %3555 }
0x3003   :  { %v3558_v54 = vadd.f32 %v3556_v31, %v3548_v26  ;;  %v3856_v26 = vld [vmem:[%s10506_s22] sm:$0xff]  ;;  %v3857_v31 = vld [vmem:[%s10506_s22 + $0x8] sm:$0xff] }
0x3005   :  { %v3564_v42 = vmul.f32 %v3562_v57, %v3558_v54  ;;  %v9746_v54 = vpack.c.bf16 %v3857_v31, %v3856_v26 }
0x3006   :  { %v3439_v0 = vpop.permute.xlu0 %3438 }
0x3007   :  { %8117 = vtanh.f32 %v3564_v42  ;;  %3442 = vst.msk [vmem:[#allocation2 + $0x1c] sm:$0x3] %vm1543_vm13, %v3439_v0  ;;  %7750 = vmatpush3.bf16.msra.mxu0 %v9746_v54 }
0x3008   :  { %3444 = vst.msk [vmem:[#allocation3] sm:$0xc] %vm1546_vm14, %v3439_v0  ;;  %7751 = vmatprep.subr.bf16.mxu0 %v8293_v15  ;;  %v3858_v0 = vld [vmem:[%s10506_s22 + $0x10] sm:$0xff] }
0x300a   :  { %v3170_v3 = vpop.permute.xlu0 %3169 }
0x300b   :  { %3173 = vst.msk [vmem:[#allocation2 + $0x18] sm:$0x3] %vm1543_vm13, %v3170_v3 }
0x300c   :  { %3175 = vst.msk [vmem:[#allocation3 + $0x4] sm:$0xc] %vm1546_vm14, %v3170_v3  ;;  %v3859_v3 = vld [vmem:[%s10506_s22 + $0x18] sm:$0xff] }
0x300e   :  { %v2901_v45 = vpop.permute.xlu0 %2900 }
0x300f   :  { %2904 = vst.msk [vmem:[#allocation2 + $0x14] sm:$0x3] %vm1543_vm13, %v2901_v45  ;;  %v3644_v42 = vld [vmem:[#allocation3 + $0x2] sm:$0x3] }
0x3010   :  { %2906 = vst.msk [vmem:[#allocation3 + $0x8] sm:$0xc] %vm1546_vm14, %v2901_v45 }
0x3011   :  { %v8118_v27 = vpop.eup %8117 }
0x3012   :  { %v2632_v43 = vpop.permute.xlu0 %2631  ;;  %3567 = vrot.lane.b32.xlu1 %v8118_v27, %s8290_s3  ;;  %v9758_v27 = vpack.c.bf16 %v3859_v3, %v3858_v0 }
0x3013   :  { %2635 = vst.msk [vmem:[#allocation2 + $0x10] sm:$0x3] %vm1543_vm13, %v2632_v43 }
0x3014   :  { %2637 = vst.msk [vmem:[#allocation3 + $0xc] sm:$0xc] %vm1546_vm14, %v2632_v43  ;;  %v3646_v43 = vld [vmem:[#allocation3 + $0x6] sm:$0x3]  ;;  %7753 = vmatpush3.bf16.msra.mxu0 %v9758_v27 }
0x3015   :  { %7754 = vmatprep.subr.bf16.mxu0 %v8293_v15 }
0x3016   :  { %v2361_v7 = vpop.permute.xlu0 %2360  ;;  %3305 = vrot.lane.b32.xlu1 %v9593_v25, %s8283_s9 }
0x3017   :  { %2364 = vst.msk [vmem:[#allocation2 + $0xc] sm:$0x3] %vm1543_vm13, %v2361_v7  ;;  %v3648_v5 = vld [vmem:[#allocation3 + $0xa] sm:$0x3] }
0x3018   :  { %2366 = vst.msk [vmem:[#allocation3 + $0x10] sm:$0xc] %vm1546_vm14, %v2361_v7  ;;  %v3660_v7 = vrot.slane %v3644_v42, 6 }
0x301a   :  { %v2088_v38 = vpop.permute.xlu0 %2087  ;;  %2767 = vrot.lane.b32.xlu1 %v9470_v59, %s8283_s9 }
0x301b   :  { %2091 = vst.msk [vmem:[#allocation2 + $0x8] sm:$0x3] %vm1543_vm13, %v2088_v38  ;;  %v3650_v8 = vld [vmem:[#allocation3 + $0xe] sm:$0x3] }
0x301c   :  { %2093 = vst.msk [vmem:[#allocation3 + $0x14] sm:$0xc] %vm1546_vm14, %v2088_v38  ;;  %v3675_v13 = vrot.slane %v3650_v8, 2 }
0x301e   :  { %v1815_v24 = vpop.permute.xlu0 %1814  ;;  %3035 = vrot.lane.b32.xlu1 %v9532_v11, %s8283_s9  ;;  %v3585_v0 = vld [vmem:[#allocation2 + $0xc] sm:$0x3] }
0x301f   :  { %1818 = vst.msk [vmem:[#allocation2 + $0x4] sm:$0x3] %vm1543_vm13, %v1815_v24  ;;  %v3652_v38 = vld [vmem:[#allocation3 + $0x12] sm:$0x3] }
0x3020   :  { %1820 = vst.msk [vmem:[#allocation3 + $0x18] sm:$0xc] %vm1546_vm14, %v1815_v24 }
0x3022   :  { %v1541_v25 = vpop.permute.xlu0 %1540  ;;  %2225 = vrot.lane.b32.xlu1 %v9346_v60, %s8283_s9  ;;  %v3583_v3 = vld [vmem:[#allocation2 + $0x8] sm:$0x3] }
0x3023   :  { %1544 = vst.msk [vmem:[#allocation2] sm:$0x3] %vm1543_vm13, %v1541_v25 }
0x3024   :  { %1547 = vst.msk [vmem:[#allocation3 + $0x1c] sm:$0xc] %vm1546_vm14, %v1541_v25 }
0x302b   :  { %v3658_v18 = vld [vmem:[#allocation3 + $0x1e] sm:$0x3] }
0x302c   :  { %v3693_v17 = vrot.slane %v3658_v18, 2 }
0x3084   :  { %v3568_v59 = vpop.permute.xlu1 %3567 }
0x3085   :  { %v3570_v34 = vmul.f32 %v8116_v48, %v3568_v59  ;;  %v3741_v48 = vld [vmem:[%s10504_s20 + $0x70] sm:$0xff] }
0x3086   :  { %v7746_v58 = vpack.c.bf16 %v3741_v48, %v3739_v51  ;;  %v3581_v51 = vld [vmem:[#allocation2 + $0x4] sm:$0x3]  ;;  %v3579_v48 = vld [vmem:[#allocation2] sm:$0x3] }
0x3087   :  { %v3571_v6 = vmul.f32 %v3570_v34, %v3562_v57  ;;  %v3860_v34 = vld [vmem:[%s10506_s22 + $0x20] sm:$0xff] }
0x3088   :  { %v3306_v37 = vpop.permute.xlu1 %3305 }
0x3089   :  { %3309 = vst.msk [vmem:[#allocation2 + $0x1a] sm:$0x3] %vm1543_vm13, %v3306_v37  ;;  %3573 = vrot.lane.b32.xlu1 %v3571_v6, %s8283_s9  ;;  %v3861_v6 = vld [vmem:[%s10506_s22 + $0x28] sm:$0xff] }
0x308a   :  { %3311 = vst.msk [vmem:[#allocation3 + $0x2] sm:$0xc] %vm1546_vm14, %v3306_v37  ;;  %v3666_v37 = vrot.slane %v3646_v43, 2 }
0x308c   :  { %v2768_v11 = vpop.permute.xlu1 %2767 }
0x308d   :  { %2771 = vst.msk [vmem:[#allocation2 + $0x12] sm:$0x3] %vm1543_vm13, %v2768_v11  ;;  %2497 = vrot.lane.b32.xlu1 %v9408_v16, %s8283_s9  ;;  %v3669_v16 = vrot.slane %v3648_v5, 6 }
0x308e   :  { %2773 = vst.msk [vmem:[#allocation3 + $0xa] sm:$0xc] %vm1546_vm14, %v2768_v11 }
0x3090   :  { %v3036_v60 = vpop.permute.xlu1 %3035 }
0x3091   :  { %3039 = vst.msk [vmem:[#allocation2 + $0x16] sm:$0x3] %vm1543_vm13, %v3036_v60  ;;  %1679 = vrot.lane.b32.xlu1 %v9222_v62, %s8283_s9  ;;  %v3730_v62 = vld [vmem:[%s10504_s20 + $0x18] sm:$0xff]  ;;  %v3645_v45 = vld [vmem:[#allocation3 + $0x4] sm:$0x3] }
0x3092   :  { %3041 = vst.msk [vmem:[#allocation3 + $0x6] sm:$0xc] %vm1546_vm14, %v3036_v60  ;;  %v7732_v10 = vpack.c.bf16 %v3730_v62, %v3728_v30  ;;  %v3663_v59 = vrot.slane %v3645_v45, 4 }
0x3094   :  { %v2226_v4 = vpop.permute.xlu1 %2225  ;;  %7733 = vmatprep.subr.bf16.mxu1 %v7732_v10  ;;  %v3588_v42 = vld [vmem:[#allocation2 + $0x12] sm:$0x3] }
0x3095   :  { %2229 = vst.msk [vmem:[#allocation2 + $0xa] sm:$0x3] %vm1543_vm13, %v2226_v4  ;;  %1951 = vrot.lane.b32.xlu1 %v9284_v20, %s8283_s9  ;;  %v3649_v63 = vld [vmem:[#allocation3 + $0xc] sm:$0x3]  ;;  %v3729_v20 = vld [vmem:[%s10504_s20 + $0x10] sm:$0xff] }
0x3096   :  { %2231 = vst.msk [vmem:[#allocation3 + $0x12] sm:$0xc] %vm1546_vm14, %v2226_v4  ;;  %v3672_v9 = vrot.slane %v3649_v63, 4  ;;  %v7734_v22 = vpack.c.bf16 %v3729_v20, %v3727_v36  ;;  %v9771_v4 = vpack.c.bf16 %v3861_v6, %v3860_v34  ;;  %v3654_v63 = vld [vmem:[#allocation3 + $0x16] sm:$0x3]  ;;  %v3863_v20 = vld [vmem:[%s10506_s22 + $0x38] sm:$0xff] }
0x3098   :  { %7735 = vmatpush1.bf16.msra.mxu1 %v7734_v22  ;;  %7756 = vmatpush3.bf16.msra.mxu0 %v9771_v4  ;;  %v3656_v22 = vld [vmem:[#allocation3 + $0x1a] sm:$0x3]  ;;  %v3590_v6 = vld [vmem:[#allocation2 + $0x16] sm:$0x3] }
0x3099   :  { %v3647_v52 = vld [vmem:[#allocation3 + $0x8] sm:$0x3]  ;;  %7737 = vmatprep.subr.bf16.mxu1 %v7736_v28  ;;  %7757 = vmatprep.subr.bf16.mxu0 %v8293_v15 }
0x309a   :  { %v3698_v21 = vsel %vm88_vm2, %v3647_v52, %v3669_v16  ;;  %v3678_v16 = vrot.slane %v3652_v38, 6  ;;  %v3862_v52 = vld [vmem:[%s10506_s22 + $0x30] sm:$0xff] }
0x309b   :  { %v3699_v12 = vsel %vm109_vm1, %v3698_v21, %v3672_v9  ;;  %v3684_v9 = vrot.slane %v3654_v63, 2  ;;  %v3587_v63 = vld [vmem:[#allocation2 + $0x10] sm:$0x3] }
0x309c   :  { %v3700_v19 = vsel %vm99_vm0, %v3699_v12, %v3675_v13  ;;  %7739 = vmatpush1.bf16.msra.mxu1 %v7738_v40  ;;  %v9788_v13 = vpack.c.bf16 %v3863_v20, %v3862_v52  ;;  %v3687_v12 = vrot.slane %v3656_v22, 6  ;;  %v3871_v40 = vrot.slane %v6279_v39, 6  ;;  %v3593_v20 = vld [vmem:[#allocation2 + $0x1c] sm:$0x3] }
0x309d   :  { %3713 = vrot.lane.b32.xlu1 %v3700_v19, %s8283_s9  ;;  %7741 = vmatprep.subr.bf16.mxu1 %v7740_v41  ;;  %v3653_v60 = vld [vmem:[#allocation3 + $0x14] sm:$0x3] }
0x309e   :  { %v3681_v36 = vrot.slane %v3653_v60, 4  ;;  %7759 = vmatpush3.bf16.msra.mxu0 %v9788_v13  ;;  %v3873_v50 = vsel %vm88_vm2, %v3868_v46, %v3871_v40  ;;  %v3589_v60 = vld [vmem:[#allocation2 + $0x14] sm:$0x3]  ;;  %v3743_v46 = vld [vmem:[%s10505_s21] sm:$0x3]  ;;  %s6172_s21 = sshll.u32 %s8296_s28, 4  ;;  %s6173_s21 = int_to_ptr.vmem [resolvable:$true] %s6172_s21 }
0x309f   :  { %7772 = vmatprep.subr.bf16.mxu0 %v8293_v15  ;;  %v3617_v52 = vrot.slane %v3589_v60, 4  ;;  %s8251_s10 = scalar_lea.vmem %s6173_s21, 32  ;;  %p8256_p1 = scmp.lt.s32.totalorder %s6173_s21, %s6173_s21 }
0x30a0   :  { %7743 = vmatpush1.bf16.msra.mxu1 %v7742_v56  ;;  %v3584_v56 = vld [vmem:[#allocation2 + $0xa] sm:$0x3]  ;;  %p8252_p0 = scmp.ne.s32.totalorder %s6173_s21, %s8251_s10  ;;  %p8257_p2 = scmp.lt.s32.totalorder %s8251_s10, %s8251_s10 }
0x30a1   :  { %7745 = vmatprep.subr.bf16.mxu1 %v7744_v35  ;;  %7136 = vmatmul.mubr.msk.f32.vlgmr.msra.gmra.mrb[36].mxu0 %vm639_vm5, %v9077_v33 }
0x30a2   :  { %7774 = vmatpush3.bf16.msra.mxu0 %v9746_v54  ;;  %7173 = vmatprep.mubr.msk.f32.mxu0 %vm8294_vm10, %v8275_v2  ;;  %p8258_p3 = por %p8257_p2, %p8256_p1 }
0x30a3   :  { %7775 = vmatprep.subr.bf16.mxu0 %v8293_v15 }
0x30a4   :  { %7747 = vmatpush1.bf16.msra.mxu1 %v7746_v58  ;;  %v3605_v58 = vrot.slane %v3584_v56, 6  ;;  %p8259_p4 = pnand %p8258_p3, %p8252_p0 }
0x30a5   :  { %7760 = vmatprep.subr.bf16.mxu1 %v8293_v15 }
0x30a6   :  { %7777 = vmatpush3.bf16.msra.mxu0 %v9758_v27 }
0x30a7   :  { %7778 = vmatprep.subr.bf16.mxu0 %v8293_v15 }
0x30aa   :  { %7780 = vmatpush3.bf16.msra.mxu0 %v9771_v4 }
0x30ab   :  { %7781 = vmatprep.subr.bf16.mxu0 %v8293_v15 }
0x30ae   :  { %7783 = vmatpush3.bf16.msra.mxu0 %v9788_v13 }
0x30af   :  { %7796 = vmatprep.subr.bf16.mxu0 %v8293_v15 }
0x30fb   :  { %v3574_v49 = vpop.permute.xlu1 %3573 }
0x30fc   :  { %3577 = vst.msk [vmem:[#allocation2 + $0x1e] sm:$0x3] %vm1543_vm13, %v3574_v49 }
0x30fd   :  { %3578 = vst.msk [vmem:[#allocation3 - $0x2] sm:$0xc] %vm1546_vm14, %v3574_v49 }
0x30ff   :  { %v2498_v57 = vpop.permute.xlu1 %2497 }
0x3100   :  { %2501 = vst.msk [vmem:[#allocation2 + $0xe] sm:$0x3] %vm1543_vm13, %v2498_v57 }
0x3101   :  { %2503 = vst.msk [vmem:[#allocation3 + $0xe] sm:$0xc] %vm1546_vm14, %v2498_v57  ;;  %v3599_v57 = vrot.slane %v3581_v51, 4 }
0x3103   :  { %v1680_v24 = vpop.permute.xlu1 %1679 }
0x3104   :  { %v3643_v25 = vld [vmem:[#allocation3] sm:$0x3]  ;;  %1683 = vst.msk [vmem:[#allocation2 + $0x2] sm:$0x3] %vm1543_vm13, %v1680_v24 }
0x3105   :  { %1685 = vst.msk [vmem:[#allocation3 + $0x1a] sm:$0xc] %vm1546_vm14, %v1680_v24  ;;  %v3695_v11 = vsel %vm88_vm2, %v3643_v25, %v3660_v7  ;;  %v3634_v7 = vsel %vm88_vm2, %v3583_v3, %v3605_v58  ;;  %v3614_v25 = vrot.slane %v3588_v42, 6 }
0x3106   :  { %v3696_v5 = vsel %vm109_vm1, %v3695_v11, %v3663_v59  ;;  %v3608_v59 = vrot.slane %v3585_v0, 4 }
0x3107   :  { %v3697_v8 = vsel %vm99_vm0, %v3696_v5, %v3666_v37  ;;  %v1952_v30 = vpop.permute.xlu1 %1951  ;;  %v3586_v31 = vld [vmem:[#allocation2 + $0xe] sm:$0x3]  ;;  %v3592_v37 = vld [vmem:[#allocation2 + $0x1a] sm:$0x3] }
0x3108   :  { %3711 = vrot.lane.b32.xlu0 %v3697_v8, %s8283_s9  ;;  %v3651_v62 = vld [vmem:[#allocation3 + $0x10] sm:$0x3]  ;;  %1955 = vst.msk [vmem:[#allocation2 + $0x6] sm:$0x3] %vm1543_vm13, %v1952_v30  ;;  %v3611_v43 = vrot.slane %v3586_v31, 2  ;;  %v3635_v5 = vsel %vm109_vm1, %v3634_v7, %v3608_v59 }
0x3109   :  { %1957 = vst.msk [vmem:[#allocation3 + $0x16] sm:$0xc] %vm1546_vm14, %v1952_v30  ;;  %v3701_v10 = vsel %vm88_vm2, %v3651_v62, %v3678_v16  ;;  %v3620_v16 = vrot.slane %v3590_v6, 2  ;;  %v3637_v30 = vsel %vm88_vm2, %v3587_v63, %v3614_v25  ;;  %v3623_v62 = vrot.slane %v3592_v37, 6 }
0x310a   :  { %v3702_v47 = vsel %vm109_vm1, %v3701_v10, %v3681_v36  ;;  %v3636_v8 = vsel %vm99_vm0, %v3635_v5, %v3611_v43 }
0x310b   :  { %v3703_v21 = vsel %vm99_vm0, %v3702_v47, %v3684_v9  ;;  %v3580_v53 = vld [vmem:[#allocation2 + $0x2] sm:$0x3]  ;;  %v3594_v9 = vld [vmem:[#allocation2 + $0x1e] sm:$0x3]  ;;  %v3638_v47 = vsel %vm109_vm1, %v3637_v30, %v3617_v52 }
0x310c   :  { %3715 = vrot.lane.b32.xlu0 %v3703_v21, %s8283_s9  ;;  %v3657_v32 = vld [vmem:[#allocation3 + $0x1c] sm:$0x3]  ;;  %v3596_v55 = vrot.slane %v3580_v53, 6  ;;  %v3591_v21 = vld [vmem:[#allocation2 + $0x18] sm:$0x3]  ;;  %v3639_v22 = vsel %vm99_vm0, %v3638_v47, %v3620_v16 }
0x310d   :  { %v3690_v1 = vrot.slane %v3657_v32, 4  ;;  %v3629_v32 = vrot.slane %v3594_v9, 2  ;;  %v3640_v18 = vsel %vm88_vm2, %v3591_v21, %v3623_v62 }
0x310e   :  { %v3631_v26 = vsel %vm88_vm2, %v3579_v48, %v3596_v55 }
0x310f   :  { %v3582_v35 = vld [vmem:[#allocation2 + $0x6] sm:$0x3]  ;;  %v3632_v45 = vsel %vm109_vm1, %v3631_v26, %v3599_v57  ;;  %v3714_v11 = vpop.permute.xlu1 %3713 }
0x3110   :  { %v3655_v28 = vld [vmem:[#allocation3 + $0x18] sm:$0x3]  ;;  %v3602_v49 = vrot.slane %v3582_v35, 2  ;;  %v3724_v36 = vsel %vm289_vm12, %v3636_v8, %v3714_v11 }
0x3111   :  { %v3704_v19 = vsel %vm88_vm2, %v3655_v28, %v3687_v12  ;;  %v3626_v12 = vrot.slane %v3593_v20, 4 }
0x3112   :  { %v3705_v41 = vsel %vm109_vm1, %v3704_v19, %v3690_v1  ;;  %v3633_v24 = vsel %vm99_vm0, %v3632_v45, %v3602_v49 }
0x3113   :  { %v3706_v33 = vsel %vm99_vm0, %v3705_v41, %v3693_v17  ;;  %v3641_v28 = vsel %vm109_vm1, %v3640_v18, %v3626_v12 }
0x3114   :  { %3717 = vrot.lane.b32.xlu1 %v3706_v33, %s8283_s9  ;;  %v3642_v1 = vsel %vm99_vm0, %v3641_v28, %v3629_v32  ;;  %v3752_v33 = vrot.slane %v3743_v46, %v1307_v44  ;;  %vm6164_vm0 = vcmask 25600  }
0x3118   :  { %3965 = vperm.xlu1 %7990, %v3873_v50   ;;  %v3748_v50 = vrot.slane %v3743_v46, %v1303_v14 }
0x3174   :  { %v3940_v40 = vpop.f32.mrb[36].mxu0 }
0x3175   :  { %v7137_v41 = vpop.f32.mrb[37].mxu0 }
0x317a   :  { %v3712_v38 = vpop.permute.xlu0 %3711 }
0x317b   :  { %v3723_v34 = vsel %vm289_vm12, %v3633_v24, %v3712_v38 }
0x317c   :  { %6275 = vmatmul.mubr.msk.f32.vlgmr.msra.gmra.mrb[28].mxu1 %vm639_vm5, %v3723_v34 }
0x317d   :  { %3837 = vmatprep.mubr.f32.mxu1 %v8275_v2  ;;  %7762 = vmatpush3.bf16.msra.mxu1 %v9746_v54 }
0x317e   :  { %7763 = vmatprep.subr.bf16.mxu1 %v8293_v15  ;;  %v3716_v10 = vpop.permute.xlu0 %3715 }
0x317f   :  { %v3725_v39 = vsel %vm289_vm12, %v3639_v22, %v3716_v10 }
0x3180   :  { %6276 = vmatmul.mubr.msk.f32.gmra.mrb[30].mxu1 %vm639_vm5, %v3724_v36 }
0x3181   :  { %3843 = vmatprep.mubr.f32.mxu1 %v8275_v2  ;;  %7765 = vmatpush3.bf16.msra.mxu1 %v9758_v27 }
0x3182   :  { %7766 = vmatprep.subr.bf16.mxu1 %v8293_v15 }
0x3184   :  { %6277 = vmatmul.mubr.msk.f32.gmra.mrb[32].mxu1 %vm639_vm5, %v3725_v39 }
0x3185   :  { %3849 = vmatprep.mubr.f32.mxu1 %v8275_v2  ;;  %7768 = vmatpush3.bf16.msra.mxu1 %v9771_v4 }
0x3186   :  { %v3718_v17 = vpop.permute.xlu1 %3717  ;;  %7769 = vmatprep.subr.bf16.mxu1 %v8293_v15 }
0x3187   :  { %v3726_v19 = vsel %vm289_vm12, %v3642_v1, %v3718_v17 }
0x3188   :  { %6278 = vmatmul.mubr.msk.f32.gmra.mrb[34].mxu1 %vm639_vm5, %v3726_v19 }
0x3189   :  { %7771 = vmatpush3.bf16.msra.mxu1 %v9788_v13  ;;  %7154 = vmatprep.mubr.msk.f32.mxu1 %vm8294_vm10, %v8275_v2 }
0x318a   :  { %7784 = vmatprep.subr.bf16.mxu1 %v8293_v15 }
0x324f   :  { %v3833_v53 = vpop.f32.mrb[28].mxu1 }
0x3250   :  { %v3835_v55 = vpop.f32.mrb[29].mxu1  ;;  %v3834_v35 = vadd.f32 %v3833_v53, %v3748_v50 }
0x3251   :  { %v3836_v56 = vadd.f32 %v3835_v55, %v3752_v33 }
0x3252   :  { %v3983_v26 = vrot.slane %v3834_v35, 2  ;;  %v4116_v31 = vrot.slane %v3834_v35, 4  ;;  %v4247_v42 = vrot.slane %v3834_v35, 6 }
0x3253   :  { %v3839_v51 = vpop.f32.mrb[30].mxu1  ;;  %v5441_v3 = vrot.slane %v3836_v56, 4  ;;  %v5575_v45 = vrot.slane %v3836_v56, 2  ;;  %v5839_v14 = vrot.slane %v3836_v56, 6 }
0x3254   :  { %v3840_v48 = vadd.f32 %v3839_v51, %v3748_v50  ;;  %v3841_v58 = vpop.f32.mrb[31].mxu1 }
0x3255   :  { %v3842_v49 = vadd.f32 %v3841_v58, %v3752_v33 }
0x3256   :  { %v4513_v7 = vrot.slane %v3840_v48, 2  ;;  %v4646_v23 = vrot.slane %v3840_v48, 4  ;;  %v4777_v24 = vrot.slane %v3840_v48, 6 }
0x3257   :  { %v3845_v57 = vpop.f32.mrb[32].mxu1  ;;  %v4911_v0 = vrot.slane %v3842_v49, 4  ;;  %v5045_v25 = vrot.slane %v3842_v49, 2  ;;  %v5309_v59 = vrot.slane %v3842_v49, 6 }
0x3258   :  { %v3846_v43 = vadd.f32 %v3845_v57, %v3748_v50  ;;  %v3847_v44 = vpop.f32.mrb[33].mxu1 }
0x3259   :  { %v3848_v38 = vadd.f32 %v3847_v44, %v3752_v33  ;;  %v6283_v44 = vld [vmem:[%s10533_s15 + $0x1c] sm:$0x3] }
0x325a   :  { %v9858_v34 = vsel %vm88_vm2, %v3846_v43, %v4911_v0  ;;  %v5043_v6 = vrot.slane %v3846_v43, 2  ;;  %v5176_v37 = vrot.slane %v3846_v43, 4  ;;  %v5307_v11 = vrot.slane %v3846_v43, 6 }
0x325b   :  { %v3851_v60 = vpop.f32.mrb[34].mxu1  ;;  %v4381_v5 = vrot.slane %v3848_v38, 4  ;;  %v4515_v63 = vrot.slane %v3848_v38, 2  ;;  %v9861_v8 = vsel %vm88_vm2, %v4646_v23, %v3848_v38  ;;  %v4779_v16 = vrot.slane %v3848_v38, 6 }
0x325c   :  { %v3852_v30 = vadd.f32 %v3851_v60, %v3748_v50  ;;  %v3853_v62 = vpop.f32.mrb[35].mxu1  ;;  %v9864_v36 = vsel %vm88_vm2, %v5043_v6, %v5045_v25  ;;  %v9867_v52 = vsel %vm88_vm2, %v5176_v37, %v3842_v49  ;;  %v9870_v9 = vsel %vm88_vm2, %v5307_v11, %v5309_v59 }
0x325d   :  { %v3854_v10 = vadd.f32 %v3853_v62, %v3752_v33  ;;  %v9873_v20 = vsel %vm88_vm2, %v3840_v48, %v4381_v5  ;;  %v9876_v47 = vsel %vm88_vm2, %v4513_v7, %v4515_v63  ;;  %v9879_v21 = vsel %vm88_vm2, %v4777_v24, %v4779_v16  ;;  %v6282_v24 = vld [vmem:[%s10533_s15 + $0x2] sm:$0x3] }
0x325e   :  { %v9882_v22 = vsel %vm88_vm2, %v3852_v30, %v5441_v3  ;;  %v5573_v32 = vrot.slane %v3852_v30, 2  ;;  %v5706_v18 = vrot.slane %v3852_v30, 4  ;;  %v5837_v39 = vrot.slane %v3852_v30, 6 }
0x325f   :  { %v3865_v12 = vrot.slane %v3854_v10, 4  ;;  %v3985_v28 = vrot.slane %v3854_v10, 2  ;;  %v9885_v1 = vsel %vm88_vm2, %v4116_v31, %v3854_v10  ;;  %v4249_v17 = vrot.slane %v3854_v10, 6 }
0x3260   :  { %v9888_v19 = vsel %vm88_vm2, %v5573_v32, %v5575_v45  ;;  %v9891_v41 = vsel %vm88_vm2, %v5706_v18, %v3836_v56  ;;  %v9894_v46 = vsel %vm88_vm2, %v5837_v39, %v5839_v14  ;;  %v3991_v23 = vrot.slane %v6283_v44, 6 }
0x3261   :  { %v3867_v33 = vsel %vm88_vm2, %v3834_v35, %v3865_v12  ;;  %v3987_v50 = vsel %vm88_vm2, %v3983_v26, %v3985_v28  ;;  %v9899_v53 = vsel %vm88_vm2, %v4247_v42, %v4249_v17  ;;  %v3966_v42 = vpop.permute.xlu1 %3965 }
0x3262   :  { %v3944_v55 = vadd.f32 %v3940_v40, %v3867_v33  ;;  %v3993_v25 = vsel %vm88_vm2, %v6282_v24, %v3991_v23 }
0x3264   :  { %8119 = vtanh.f32 %v3944_v55  ;;  %v6281_v48 = vmul.f32 -1.442695, %v3944_v55 }
0x3266   :  { %8121 = vpow2.f32 %v6281_v48  ;;  %v6287_v48 = vld [vmem:[%s10533_s15 + $0x1a] sm:$0x3] }
0x326e   :  { %v8120_v51 = vpop.eup %8119 }
0x326f   :  { %3954 = vrot.lane.b32.xlu0 %v8120_v51, %s8290_s3 }
0x3270   :  { %v8122_v58 = vpop.eup %8121 }
0x3271   :  { %v3948_v56 = vadd.f32 1.0, %v8122_v58 }
0x3273   :  { %8123 = vrcp.f32 %v3948_v56  ;;  %v4122_v56 = vrot.slane %v6287_v48, 6 }
0x327d   :  { %v8124_v49 = vpop.eup %8123 }
0x327e   :  { %v3952_v35 = vmul.f32 0.0, %v8124_v49 }
0x32e1   :  { %v3955_v31 = vpop.permute.xlu0 %3954 }
0x32e2   :  { %v3957_v57 = vmul.f32 %v8124_v49, %v3955_v31 }
0x32e4   :  { %3959 = vrot.lane.b32.xlu0 %v3957_v57, %s8283_s9  ;;  %v6286_v57 = vld [vmem:[%s10533_s15 + $0x4] sm:$0x3] }
0x3356   :  { %v3960_v26 = vpop.permute.xlu0 %3959 }
0x3357   :  { %v3962_v0 = vadd.f32 %v3960_v26, %v3952_v35  ;;  %v4124_v35 = vsel %vm88_vm2, %v6286_v57, %v4122_v56 }
0x3359   :  { %v3968_v3 = vmul.f32 %v3966_v42, %v3962_v0 }
0x335b   :  { %8125 = vtanh.f32 %v3968_v3 }
0x3365   :  { %v8126_v40 = vpop.eup %8125 }
0x3366   :  { %3971 = vrot.lane.b32.xlu1 %v8126_v40, %s8290_s3 }
0x33d8   :  { %v3972_v45 = vpop.permute.xlu1 %3971 }
0x33d9   :  { %v3974_v43 = vmul.f32 %v8124_v49, %v3972_v45 }
0x33db   :  { %v9907_v7 = vmul.f32 %v3974_v43, %v3966_v42 }
0x33dd   :  { %v3995_v14 = vmul.f32 %v9907_v7, %v9070_v29  ;;  %v3994_v38 = vmul.f32 %v9067_v61, %v9907_v7 }
0x33df   :  { %4001 = vrot.lane.b32.xlu1 %v3995_v14, %s8290_s3  ;;  %3997 = vrot.lane.b32.xlu0 %v3994_v38, %s8283_s9 }
0x33e3   :  { %4099 = vperm.xlu1 %7990, %v3993_v25  }
0x3451   :  { %v4002_v59 = vpop.permute.xlu1 %4001  ;;  %v3998_v6 = vpop.permute.xlu0 %3997 }
0x3452   :  { %v4004_v37 = vsel %vm289_vm12, %v3998_v6, %v4002_v59 }
0x3453   :  { %7155 = vmatmul.mubr.msk.f32.vlgmr.msra.gmra.mrb[36].mxu1 %vm639_vm5, %v4004_v37 }
0x3454   :  { %7786 = vmatpush3.bf16.msra.mxu1 %v9746_v54  ;;  %7192 = vmatprep.mubr.msk.f32.mxu1 %vm8294_vm10, %v8275_v2 }
0x3455   :  { %7787 = vmatprep.subr.bf16.mxu1 %v8293_v15 }
0x3458   :  { %7789 = vmatpush3.bf16.msra.mxu1 %v9758_v27 }
0x3459   :  { %7790 = vmatprep.subr.bf16.mxu1 %v8293_v15 }
0x345c   :  { %7792 = vmatpush3.bf16.msra.mxu1 %v9771_v4 }
0x345d   :  { %7793 = vmatprep.subr.bf16.mxu1 %v8293_v15 }
0x3460   :  { %7795 = vmatpush3.bf16.msra.mxu1 %v9788_v13 }
0x3461   :  { %7808 = vmatprep.subr.bf16.mxu1 %v8293_v15 }
0x3462   :  { %v4100_v17 = vpop.permute.xlu1 %4099 }
0x3526   :  { %v4074_v11 = vpop.f32.mrb[36].mxu1 }
0x3527   :  { %v4078_v60 = vadd.f32 %v4074_v11, %v3987_v50  ;;  %v7156_v5 = vpop.f32.mrb[37].mxu1 }
0x3529   :  { %8127 = vtanh.f32 %v4078_v60  ;;  %v6285_v16 = vmul.f32 -1.442695, %v4078_v60 }
0x352b   :  { %8129 = vpow2.f32 %v6285_v16  ;;  %v6291_v16 = vld [vmem:[%s10533_s15 + $0x18] sm:$0x3] }
0x3533   :  { %v8128_v63 = vpop.eup %8127 }
0x3534   :  { %4088 = vrot.lane.b32.xlu0 %v8128_v63, %s8290_s3 }
0x3535   :  { %v8130_v30 = vpop.eup %8129 }
0x3536   :  { %v4082_v62 = vadd.f32 1.0, %v8130_v30 }
0x3538   :  { %8131 = vrcp.f32 %v4082_v62  ;;  %v4255_v62 = vrot.slane %v6291_v16, 6 }
0x3542   :  { %v8132_v10 = vpop.eup %8131 }
0x3543   :  { %v4086_v39 = vmul.f32 %v8132_v10, %v3968_v3 }
0x35a6   :  { %v4089_v32 = vpop.permute.xlu0 %4088 }
0x35a7   :  { %v4091_v18 = vmul.f32 %v8132_v10, %v4089_v32 }
0x35a9   :  { %4093 = vrot.lane.b32.xlu0 %v4091_v18, %s8283_s9  ;;  %v6290_v18 = vld [vmem:[%s10533_s15 + $0x6] sm:$0x3] }
0x361b   :  { %v4094_v12 = vpop.permute.xlu0 %4093 }
0x361c   :  { %v4096_v28 = vadd.f32 %v4094_v12, %v4086_v39  ;;  %v4257_v39 = vsel %vm88_vm2, %v6290_v18, %v4255_v62 }
0x361e   :  { %v4102_v33 = vmul.f32 %v4100_v17, %v4096_v28 }
0x3620   :  { %8133 = vtanh.f32 %v4102_v33 }
0x362a   :  { %v8134_v50 = vpop.eup %8133 }
0x362b   :  { %4105 = vrot.lane.b32.xlu1 %v8134_v50, %s8290_s3 }
0x369d   :  { %v4106_v55 = vpop.permute.xlu1 %4105 }
0x369e   :  { %v4108_v51 = vmul.f32 %v8132_v10, %v4106_v55 }
0x36a0   :  { %v9937_v58 = vmul.f32 %v4108_v51, %v4100_v17 }
0x36a2   :  { %v4126_v49 = vmul.f32 %v9937_v58, %v9070_v29  ;;  %v4125_v31 = vmul.f32 %v9067_v61, %v9937_v58 }
0x36a4   :  { %4132 = vrot.lane.b32.xlu1 %v4126_v49, %s8290_s3  ;;  %4128 = vrot.lane.b32.xlu0 %v4125_v31, %s8283_s9 }
0x36a8   :  { %4230 = vperm.xlu1 %7990, %v4124_v35  }
0x3716   :  { %v4133_v26 = vpop.permute.xlu1 %4132  ;;  %v4129_v0 = vpop.permute.xlu0 %4128 }
0x3717   :  { %v4135_v42 = vsel %vm289_vm12, %v4129_v0, %v4133_v26 }
0x3718   :  { %7174 = vmatmul.mubr.msk.f32.vlgmr.msra.gmra.mrb[38].mxu0 %vm639_vm5, %v4135_v42 }
0x3719   :  { %7798 = vmatpush3.bf16.msra.mxu0 %v9746_v54  ;;  %7211 = vmatprep.mubr.msk.f32.mxu0 %vm8294_vm10, %v8275_v2 }
0x371a   :  { %7799 = vmatprep.subr.bf16.mxu0 %v8293_v15 }
0x371d   :  { %7801 = vmatpush3.bf16.msra.mxu0 %v9758_v27 }
0x371e   :  { %7802 = vmatprep.subr.bf16.mxu0 %v8293_v15 }
0x3721   :  { %7804 = vmatpush3.bf16.msra.mxu0 %v9771_v4 }
0x3722   :  { %7805 = vmatprep.subr.bf16.mxu0 %v8293_v15 }
0x3725   :  { %7807 = vmatpush3.bf16.msra.mxu0 %v9788_v13 }
0x3726   :  { %7820 = vmatprep.subr.bf16.mxu0 %v8293_v15 }
0x3727   :  { %v4231_v11 = vpop.permute.xlu1 %4230 }
0x37eb   :  { %v4205_v3 = vpop.f32.mrb[38].mxu0 }
0x37ec   :  { %v4209_v40 = vadd.f32 %v4205_v3, %v9885_v1  ;;  %v7175_v45 = vpop.f32.mrb[39].mxu0 }
0x37ee   :  { %8135 = vtanh.f32 %v4209_v40  ;;  %v6289_v44 = vmul.f32 -1.442695, %v4209_v40 }
0x37f0   :  { %8137 = vpow2.f32 %v6289_v44  ;;  %v6295_v44 = vld [vmem:[%s10533_s15 + $0x16] sm:$0x3] }
0x37f8   :  { %v8136_v43 = vpop.eup %8135 }
0x37f9   :  { %4219 = vrot.lane.b32.xlu0 %v8136_v43, %s8290_s3 }
0x37fa   :  { %v8138_v23 = vpop.eup %8137 }
0x37fb   :  { %v4213_v14 = vadd.f32 1.0, %v8138_v23 }
0x37fd   :  { %8139 = vrcp.f32 %v4213_v14  ;;  %v4387_v14 = vrot.slane %v6295_v44, 6 }
0x3807   :  { %v8140_v38 = vpop.eup %8139 }
0x3808   :  { %v4217_v59 = vmul.f32 %v8140_v38, %v4102_v33 }
0x386b   :  { %v4220_v24 = vpop.permute.xlu0 %4219 }
0x386c   :  { %v4222_v25 = vmul.f32 %v8140_v38, %v4220_v24 }
0x386e   :  { %4224 = vrot.lane.b32.xlu0 %v4222_v25, %s8283_s9  ;;  %v6294_v25 = vld [vmem:[%s10533_s15 + $0x8] sm:$0x3] }
0x38e0   :  { %v4225_v6 = vpop.permute.xlu0 %4224 }
0x38e1   :  { %v4227_v37 = vadd.f32 %v4225_v6, %v4217_v59  ;;  %v4389_v59 = vsel %vm88_vm2, %v6294_v25, %v4387_v14 }
0x38e3   :  { %v4233_v1 = vmul.f32 %v4231_v11, %v4227_v37 }
0x38e5   :  { %8141 = vtanh.f32 %v4233_v1 }
0x38ef   :  { %v8142_v60 = vpop.eup %8141 }
0x38f0   :  { %4236 = vrot.lane.b32.xlu1 %v8142_v60, %s8290_s3 }
0x3962   :  { %v4237_v5 = vpop.permute.xlu1 %4236 }
0x3963   :  { %v4239_v63 = vmul.f32 %v8140_v38, %v4237_v5 }
0x3965   :  { %v9968_v30 = vmul.f32 %v4239_v63, %v4231_v11 }
0x3967   :  { %v4258_v10 = vmul.f32 %v9067_v61, %v9968_v30  ;;  %v4259_v32 = vmul.f32 %v9968_v30, %v9070_v29 }
0x3969   :  { %4265 = vrot.lane.b32.xlu1 %v4259_v32, %s8290_s3  ;;  %4261 = vrot.lane.b32.xlu0 %v4258_v10, %s8283_s9 }
0x396d   :  { %4363 = vperm.xlu1 %7990, %v4257_v39  }
0x39db   :  { %v4266_v12 = vpop.permute.xlu1 %4265  ;;  %v4262_v28 = vpop.permute.xlu0 %4261 }
0x39dc   :  { %v4268_v17 = vsel %vm289_vm12, %v4262_v28, %v4266_v12 }
0x39dd   :  { %7193 = vmatmul.mubr.msk.f32.vlgmr.msra.gmra.mrb[38].mxu1 %vm639_vm5, %v4268_v17 }
0x39de   :  { %7810 = vmatpush3.bf16.msra.mxu1 %v9746_v54  ;;  %7230 = vmatprep.mubr.msk.f32.mxu1 %vm8294_vm10, %v8275_v2 }
0x39df   :  { %7811 = vmatprep.subr.bf16.mxu1 %v8293_v15 }
0x39e2   :  { %7813 = vmatpush3.bf16.msra.mxu1 %v9758_v27 }
0x39e3   :  { %7814 = vmatprep.subr.bf16.mxu1 %v8293_v15 }
0x39e6   :  { %7816 = vmatpush3.bf16.msra.mxu1 %v9771_v4 }
0x39e7   :  { %7817 = vmatprep.subr.bf16.mxu1 %v8293_v15 }
0x39ea   :  { %7819 = vmatpush3.bf16.msra.mxu1 %v9788_v13 }
0x39eb   :  { %7832 = vmatprep.subr.bf16.mxu1 %v8293_v15 }
0x39ec   :  { %v4364_v3 = vpop.permute.xlu1 %4363 }
0x3ab0   :  { %v4338_v33 = vpop.f32.mrb[38].mxu1 }
0x3ab1   :  { %v4342_v50 = vadd.f32 %v4338_v33, %v9899_v53  ;;  %v7194_v55 = vpop.f32.mrb[39].mxu1 }
0x3ab3   :  { %8143 = vtanh.f32 %v4342_v50  ;;  %v6293_v48 = vmul.f32 -1.442695, %v4342_v50 }
0x3ab5   :  { %8145 = vpow2.f32 %v6293_v48  ;;  %v6299_v48 = vld [vmem:[%s10533_s15 + $0x14] sm:$0x3] }
0x3abd   :  { %v8144_v51 = vpop.eup %8143 }
0x3abe   :  { %4352 = vrot.lane.b32.xlu0 %v8144_v51, %s8290_s3 }
0x3abf   :  { %v8146_v56 = vpop.eup %8145 }
0x3ac0   :  { %v4346_v49 = vadd.f32 1.0, %v8146_v56 }
0x3ac2   :  { %8147 = vrcp.f32 %v4346_v49  ;;  %v4521_v49 = vrot.slane %v6299_v48, 6 }
0x3acc   :  { %v8148_v31 = vpop.eup %8147 }
0x3acd   :  { %v4350_v26 = vmul.f32 %v8148_v31, %v4233_v1 }
0x3b30   :  { %v4353_v57 = vpop.permute.xlu0 %4352 }
0x3b31   :  { %v4355_v35 = vmul.f32 %v8148_v31, %v4353_v57 }
0x3b33   :  { %4357 = vrot.lane.b32.xlu0 %v4355_v35, %s8283_s9  ;;  %v6298_v35 = vld [vmem:[%s10533_s15 + $0xa] sm:$0x3] }
0x3ba5   :  { %v4358_v0 = vpop.permute.xlu0 %4357 }
0x3ba6   :  { %v4360_v42 = vadd.f32 %v4358_v0, %v4350_v26  ;;  %v4523_v26 = vsel %vm88_vm2, %v6298_v35, %v4521_v49 }
0x3ba8   :  { %v4366_v53 = vmul.f32 %v4364_v3, %v4360_v42 }
0x3baa   :  { %8149 = vtanh.f32 %v4366_v53 }
0x3bb4   :  { %v8150_v40 = vpop.eup %8149 }
0x3bb5   :  { %4369 = vrot.lane.b32.xlu1 %v8150_v40, %s8290_s3 }
0x3c27   :  { %v4370_v45 = vpop.permute.xlu1 %4369 }
0x3c28   :  { %v4372_v43 = vmul.f32 %v8148_v31, %v4370_v45 }
0x3c2a   :  { %v9999_v23 = vmul.f32 %v4372_v43, %v4364_v3 }
0x3c2c   :  { %v4390_v38 = vmul.f32 %v9067_v61, %v9999_v23  ;;  %v4391_v24 = vmul.f32 %v9999_v23, %v9070_v29 }
0x3c2e   :  { %4397 = vrot.lane.b32.xlu1 %v4391_v24, %s8290_s3  ;;  %4393 = vrot.lane.b32.xlu0 %v4390_v38, %s8283_s9 }
0x3c32   :  { %4495 = vperm.xlu1 %7990, %v4389_v59  }
0x3ca0   :  { %v4398_v6 = vpop.permute.xlu1 %4397  ;;  %v4394_v37 = vpop.permute.xlu0 %4393 }
0x3ca1   :  { %v4400_v11 = vsel %vm289_vm12, %v4394_v37, %v4398_v6 }
0x3ca2   :  { %7212 = vmatmul.mubr.msk.f32.vlgmr.msra.gmra.mrb[40].mxu0 %vm639_vm5, %v4400_v11 }
0x3ca3   :  { %7822 = vmatpush3.bf16.msra.mxu0 %v9746_v54  ;;  %7249 = vmatprep.mubr.msk.f32.mxu0 %vm8294_vm10, %v8275_v2 }
0x3ca4   :  { %7823 = vmatprep.subr.bf16.mxu0 %v8293_v15 }
0x3ca7   :  { %7825 = vmatpush3.bf16.msra.mxu0 %v9758_v27 }
0x3ca8   :  { %7826 = vmatprep.subr.bf16.mxu0 %v8293_v15 }
0x3cab   :  { %7828 = vmatpush3.bf16.msra.mxu0 %v9771_v4 }
0x3cac   :  { %7829 = vmatprep.subr.bf16.mxu0 %v8293_v15 }
0x3caf   :  { %7831 = vmatpush3.bf16.msra.mxu0 %v9788_v13 }
0x3cb0   :  { %7844 = vmatprep.subr.bf16.mxu0 %v8293_v15 }
0x3cb1   :  { %v4496_v33 = vpop.permute.xlu1 %4495 }
0x3d75   :  { %v4470_v1 = vpop.f32.mrb[40].mxu0 }
0x3d76   :  { %v4474_v60 = vadd.f32 %v4470_v1, %v9873_v20  ;;  %v7213_v5 = vpop.f32.mrb[41].mxu0 }
0x3d78   :  { %8151 = vtanh.f32 %v4474_v60  ;;  %v6297_v16 = vmul.f32 -1.442695, %v4474_v60 }
0x3d7a   :  { %8153 = vpow2.f32 %v6297_v16  ;;  %v6303_v16 = vld [vmem:[%s10533_s15 + $0x12] sm:$0x3] }
0x3d82   :  { %v8152_v63 = vpop.eup %8151 }
0x3d83   :  { %4484 = vrot.lane.b32.xlu0 %v8152_v63, %s8290_s3 }
0x3d84   :  { %v8154_v62 = vpop.eup %8153 }
0x3d85   :  { %v4478_v10 = vadd.f32 1.0, %v8154_v62 }
0x3d87   :  { %8155 = vrcp.f32 %v4478_v10  ;;  %v4652_v10 = vrot.slane %v6303_v16, 6 }
0x3d91   :  { %v8156_v32 = vpop.eup %8155 }
0x3d92   :  { %v4482_v12 = vmul.f32 %v8156_v32, %v4366_v53 }
0x3df5   :  { %v4485_v18 = vpop.permute.xlu0 %4484 }
0x3df6   :  { %v4487_v39 = vmul.f32 %v8156_v32, %v4485_v18 }
0x3df8   :  { %4489 = vrot.lane.b32.xlu0 %v4487_v39, %s8283_s9  ;;  %v6302_v39 = vld [vmem:[%s10533_s15 + $0xc] sm:$0x3] }
0x3e6a   :  { %v4490_v28 = vpop.permute.xlu0 %4489 }
0x3e6b   :  { %v4492_v17 = vadd.f32 %v4490_v28, %v4482_v12  ;;  %v4654_v12 = vsel %vm88_vm2, %v6302_v39, %v4652_v10 }
0x3e6d   :  { %v4498_v20 = vmul.f32 %v4496_v33, %v4492_v17 }
0x3e6f   :  { %8157 = vtanh.f32 %v4498_v20 }
0x3e79   :  { %v8158_v50 = vpop.eup %8157 }
0x3e7a   :  { %4501 = vrot.lane.b32.xlu1 %v8158_v50, %s8290_s3 }
0x3eec   :  { %v4502_v55 = vpop.permute.xlu1 %4501 }
0x3eed   :  { %v4504_v51 = vmul.f32 %v8156_v32, %v4502_v55 }
0x3eef   :  { %v10030_v56 = vmul.f32 %v4504_v51, %v4496_v33 }
0x3ef1   :  { %v4524_v31 = vmul.f32 %v9067_v61, %v10030_v56  ;;  %v4525_v57 = vmul.f32 %v10030_v56, %v9070_v29 }
0x3ef3   :  { %4531 = vrot.lane.b32.xlu1 %v4525_v57, %s8290_s3  ;;  %4527 = vrot.lane.b32.xlu0 %v4524_v31, %s8283_s9 }
0x3ef7   :  { %4629 = vperm.xlu1 %7990, %v4523_v26  }
0x3f65   :  { %v4532_v0 = vpop.permute.xlu1 %4531  ;;  %v4528_v42 = vpop.permute.xlu0 %4527 }
0x3f66   :  { %v4534_v3 = vsel %vm289_vm12, %v4528_v42, %v4532_v0 }
0x3f67   :  { %7231 = vmatmul.mubr.msk.f32.vlgmr.msra.gmra.mrb[40].mxu1 %vm639_vm5, %v4534_v3 }
0x3f68   :  { %7834 = vmatpush3.bf16.msra.mxu1 %v9746_v54  ;;  %7268 = vmatprep.mubr.msk.f32.mxu1 %vm8294_vm10, %v8275_v2 }
0x3f69   :  { %7835 = vmatprep.subr.bf16.mxu1 %v8293_v15 }
0x3f6c   :  { %7837 = vmatpush3.bf16.msra.mxu1 %v9758_v27 }
0x3f6d   :  { %7838 = vmatprep.subr.bf16.mxu1 %v8293_v15 }
0x3f70   :  { %7840 = vmatpush3.bf16.msra.mxu1 %v9771_v4 }
0x3f71   :  { %7841 = vmatprep.subr.bf16.mxu1 %v8293_v15 }
0x3f74   :  { %7843 = vmatpush3.bf16.msra.mxu1 %v9788_v13 }
0x3f75   :  { %7856 = vmatprep.subr.bf16.mxu1 %v8293_v15 }
0x3f76   :  { %v4630_v1 = vpop.permute.xlu1 %4629 }
0x403a   :  { %v4604_v53 = vpop.f32.mrb[40].mxu1 }
0x403b   :  { %v4608_v40 = vadd.f32 %v4604_v53, %v9876_v47  ;;  %v7232_v45 = vpop.f32.mrb[41].mxu1 }
0x403d   :  { %8159 = vtanh.f32 %v4608_v40  ;;  %v6301_v44 = vmul.f32 -1.442695, %v4608_v40 }
0x403f   :  { %8161 = vpow2.f32 %v6301_v44  ;;  %v6307_v44 = vld [vmem:[%s10533_s15 + $0x10] sm:$0x3] }
0x4047   :  { %v8160_v43 = vpop.eup %8159 }
0x4048   :  { %4618 = vrot.lane.b32.xlu0 %v8160_v43, %s8290_s3 }
0x4049   :  { %v8162_v14 = vpop.eup %8161 }
0x404a   :  { %v4612_v38 = vadd.f32 1.0, %v8162_v14 }
0x404c   :  { %8163 = vrcp.f32 %v4612_v38  ;;  %v4785_v38 = vrot.slane %v6307_v44, 6 }
0x4056   :  { %v8164_v24 = vpop.eup %8163 }
0x4057   :  { %v4616_v6 = vmul.f32 %v8164_v24, %v4498_v20 }
0x40ba   :  { %v4619_v25 = vpop.permute.xlu0 %4618 }
0x40bb   :  { %v4621_v59 = vmul.f32 %v8164_v24, %v4619_v25 }
0x40bd   :  { %4623 = vrot.lane.b32.xlu0 %v4621_v59, %s8283_s9  ;;  %v6306_v59 = vld [vmem:[%s10533_s15 + $0xe] sm:$0x3] }
0x412f   :  { %v4624_v37 = vpop.permute.xlu0 %4623 }
0x4130   :  { %v4626_v11 = vadd.f32 %v4624_v37, %v4616_v6  ;;  %v4787_v6 = vsel %vm88_vm2, %v6306_v59, %v4785_v38 }
0x4132   :  { %v4632_v47 = vmul.f32 %v4630_v1, %v4626_v11 }
0x4134   :  { %8165 = vtanh.f32 %v4632_v47 }
0x413e   :  { %v8166_v60 = vpop.eup %8165 }
0x413f   :  { %4635 = vrot.lane.b32.xlu1 %v8166_v60, %s8290_s3 }
0x41b1   :  { %v4636_v5 = vpop.permute.xlu1 %4635 }
0x41b2   :  { %v4638_v63 = vmul.f32 %v8164_v24, %v4636_v5 }
0x41b4   :  { %v10061_v62 = vmul.f32 %v4638_v63, %v4630_v1 }
0x41b6   :  { %v4655_v32 = vmul.f32 %v9067_v61, %v10061_v62  ;;  %v4656_v18 = vmul.f32 %v10061_v62, %v9070_v29 }
0x41b8   :  { %4662 = vrot.lane.b32.xlu1 %v4656_v18, %s8290_s3  ;;  %4658 = vrot.lane.b32.xlu0 %v4655_v32, %s8283_s9 }
0x41bc   :  { %4760 = vperm.xlu1 %7990, %v4654_v12  }
0x422a   :  { %v4663_v28 = vpop.permute.xlu1 %4662  ;;  %v4659_v17 = vpop.permute.xlu0 %4658 }
0x422b   :  { %v4665_v33 = vsel %vm289_vm12, %v4659_v17, %v4663_v28 }
0x422c   :  { %7250 = vmatmul.mubr.msk.f32.vlgmr.msra.gmra.mrb[42].mxu0 %vm639_vm5, %v4665_v33 }
0x422d   :  { %7846 = vmatpush3.bf16.msra.mxu0 %v9746_v54  ;;  %7287 = vmatprep.mubr.msk.f32.mxu0 %vm8294_vm10, %v8275_v2 }
0x422e   :  { %7847 = vmatprep.subr.bf16.mxu0 %v8293_v15 }
0x4231   :  { %7849 = vmatpush3.bf16.msra.mxu0 %v9758_v27 }
0x4232   :  { %7850 = vmatprep.subr.bf16.mxu0 %v8293_v15 }
0x4235   :  { %7852 = vmatpush3.bf16.msra.mxu0 %v9771_v4 }
0x4236   :  { %7853 = vmatprep.subr.bf16.mxu0 %v8293_v15 }
0x4239   :  { %7855 = vmatpush3.bf16.msra.mxu0 %v9788_v13 }
0x423a   :  { %7868 = vmatprep.subr.bf16.mxu0 %v8293_v15 }
0x423b   :  { %v4761_v53 = vpop.permute.xlu1 %4760 }
0x42ff   :  { %v4735_v20 = vpop.f32.mrb[42].mxu0 }
0x4300   :  { %v4739_v50 = vadd.f32 %v4735_v20, %v9861_v8  ;;  %v7251_v55 = vpop.f32.mrb[43].mxu0 }
0x4302   :  { %8167 = vtanh.f32 %v4739_v50  ;;  %v6305_v48 = vmul.f32 -1.442695, %v4739_v50 }
0x4304   :  { %8169 = vpow2.f32 %v6305_v48  ;;  %v6311_v48 = vld [vmem:[%s10533_s15 + $0xe] sm:$0x3] }
0x430c   :  { %v8168_v51 = vpop.eup %8167 }
0x430d   :  { %4749 = vrot.lane.b32.xlu0 %v8168_v51, %s8290_s3 }
0x430e   :  { %v8170_v49 = vpop.eup %8169 }
0x430f   :  { %v4743_v31 = vadd.f32 1.0, %v8170_v49 }
0x4311   :  { %8171 = vrcp.f32 %v4743_v31  ;;  %v4917_v31 = vrot.slane %v6311_v48, 6 }
0x431b   :  { %v8172_v57 = vpop.eup %8171 }
0x431c   :  { %v4747_v0 = vmul.f32 %v8172_v57, %v4632_v47 }
0x437f   :  { %v4750_v35 = vpop.permute.xlu0 %4749 }
0x4380   :  { %v4752_v26 = vmul.f32 %v8172_v57, %v4750_v35 }
0x4382   :  { %4754 = vrot.lane.b32.xlu0 %v4752_v26, %s8283_s9  ;;  %v6310_v26 = vld [vmem:[%s10533_s15 + $0x10] sm:$0x3] }
0x43f4   :  { %v4755_v42 = vpop.permute.xlu0 %4754 }
0x43f5   :  { %v4757_v3 = vadd.f32 %v4755_v42, %v4747_v0  ;;  %v4919_v0 = vsel %vm88_vm2, %v6310_v26, %v4917_v31 }
0x43f7   :  { %v4763_v8 = vmul.f32 %v4761_v53, %v4757_v3 }
0x43f9   :  { %8173 = vtanh.f32 %v4763_v8 }
0x4403   :  { %v8174_v40 = vpop.eup %8173 }
0x4404   :  { %4766 = vrot.lane.b32.xlu1 %v8174_v40, %s8290_s3 }
0x4476   :  { %v4767_v45 = vpop.permute.xlu1 %4766 }
0x4477   :  { %v4769_v43 = vmul.f32 %v8172_v57, %v4767_v45 }
0x4479   :  { %v10092_v14 = vmul.f32 %v4769_v43, %v4761_v53 }
0x447b   :  { %v4788_v24 = vmul.f32 %v9067_v61, %v10092_v14  ;;  %v4789_v25 = vmul.f32 %v10092_v14, %v9070_v29 }
0x447d   :  { %4795 = vrot.lane.b32.xlu1 %v4789_v25, %s8290_s3  ;;  %4791 = vrot.lane.b32.xlu0 %v4788_v24, %s8283_s9 }
0x4481   :  { %4893 = vperm.xlu1 %7990, %v4787_v6  }
0x44ef   :  { %v4796_v37 = vpop.permute.xlu1 %4795  ;;  %v4792_v11 = vpop.permute.xlu0 %4791 }
0x44f0   :  { %v4798_v1 = vsel %vm289_vm12, %v4792_v11, %v4796_v37 }
0x44f1   :  { %7269 = vmatmul.mubr.msk.f32.vlgmr.msra.gmra.mrb[42].mxu1 %vm639_vm5, %v4798_v1 }
0x44f2   :  { %7858 = vmatpush3.bf16.msra.mxu1 %v9746_v54  ;;  %7306 = vmatprep.mubr.msk.f32.mxu1 %vm8294_vm10, %v8275_v2 }
0x44f3   :  { %7859 = vmatprep.subr.bf16.mxu1 %v8293_v15 }
0x44f6   :  { %7861 = vmatpush3.bf16.msra.mxu1 %v9758_v27 }
0x44f7   :  { %7862 = vmatprep.subr.bf16.mxu1 %v8293_v15 }
0x44fa   :  { %7864 = vmatpush3.bf16.msra.mxu1 %v9771_v4 }
0x44fb   :  { %7865 = vmatprep.subr.bf16.mxu1 %v8293_v15 }
0x44fe   :  { %7867 = vmatpush3.bf16.msra.mxu1 %v9788_v13 }
0x44ff   :  { %7880 = vmatprep.subr.bf16.mxu1 %v8293_v15 }
0x4500   :  { %v4894_v20 = vpop.permute.xlu1 %4893 }
0x45c4   :  { %v4868_v47 = vpop.f32.mrb[42].mxu1 }
0x45c5   :  { %v4872_v60 = vadd.f32 %v4868_v47, %v9879_v21  ;;  %v7270_v5 = vpop.f32.mrb[43].mxu1 }
0x45c7   :  { %8175 = vtanh.f32 %v4872_v60  ;;  %v6309_v16 = vmul.f32 -1.442695, %v4872_v60 }
0x45c9   :  { %8177 = vpow2.f32 %v6309_v16  ;;  %v6315_v16 = vld [vmem:[%s10533_s15 + $0xc] sm:$0x3] }
0x45d1   :  { %v8176_v63 = vpop.eup %8175 }
0x45d2   :  { %4882 = vrot.lane.b32.xlu0 %v8176_v63, %s8290_s3 }
0x45d3   :  { %v8178_v10 = vpop.eup %8177 }
0x45d4   :  { %v4876_v32 = vadd.f32 1.0, %v8178_v10 }
0x45d6   :  { %8179 = vrcp.f32 %v4876_v32  ;;  %v5051_v32 = vrot.slane %v6315_v16, 6 }
0x45e0   :  { %v8180_v18 = vpop.eup %8179 }
0x45e1   :  { %v4880_v28 = vmul.f32 %v8180_v18, %v4763_v8 }
0x4644   :  { %v4883_v39 = vpop.permute.xlu0 %4882 }
0x4645   :  { %v4885_v12 = vmul.f32 %v8180_v18, %v4883_v39 }
0x4647   :  { %4887 = vrot.lane.b32.xlu0 %v4885_v12, %s8283_s9  ;;  %v6314_v12 = vld [vmem:[%s10533_s15 + $0x12] sm:$0x3] }
0x46b9   :  { %v4888_v17 = vpop.permute.xlu0 %4887 }
0x46ba   :  { %v4890_v33 = vadd.f32 %v4888_v17, %v4880_v28  ;;  %v5053_v28 = vsel %vm88_vm2, %v6314_v12, %v5051_v32 }
0x46bc   :  { %v4896_v21 = vmul.f32 %v4894_v20, %v4890_v33 }
0x46be   :  { %8181 = vtanh.f32 %v4896_v21 }
0x46c8   :  { %v8182_v50 = vpop.eup %8181 }
0x46c9   :  { %4899 = vrot.lane.b32.xlu1 %v8182_v50, %s8290_s3 }
0x473b   :  { %v4900_v55 = vpop.permute.xlu1 %4899 }
0x473c   :  { %v4902_v51 = vmul.f32 %v8180_v18, %v4900_v55 }
0x473e   :  { %v10123_v49 = vmul.f32 %v4902_v51, %v4894_v20 }
0x4740   :  { %v4920_v57 = vmul.f32 %v9067_v61, %v10123_v49  ;;  %v4921_v35 = vmul.f32 %v10123_v49, %v9070_v29 }
0x4742   :  { %4927 = vrot.lane.b32.xlu1 %v4921_v35, %s8290_s3  ;;  %4923 = vrot.lane.b32.xlu0 %v4920_v57, %s8283_s9 }
0x4746   :  { %5025 = vperm.xlu1 %7990, %v4919_v0  }
0x47b4   :  { %v4928_v42 = vpop.permute.xlu1 %4927  ;;  %v4924_v3 = vpop.permute.xlu0 %4923 }
0x47b5   :  { %v4930_v53 = vsel %vm289_vm12, %v4924_v3, %v4928_v42 }
0x47b6   :  { %7288 = vmatmul.mubr.msk.f32.vlgmr.msra.gmra.mrb[44].mxu0 %vm639_vm5, %v4930_v53 }
0x47b7   :  { %7870 = vmatpush3.bf16.msra.mxu0 %v9746_v54  ;;  %7325 = vmatprep.mubr.msk.f32.mxu0 %vm8294_vm10, %v8275_v2 }
0x47b8   :  { %7871 = vmatprep.subr.bf16.mxu0 %v8293_v15 }
0x47bb   :  { %7873 = vmatpush3.bf16.msra.mxu0 %v9758_v27 }
0x47bc   :  { %7874 = vmatprep.subr.bf16.mxu0 %v8293_v15 }
0x47bf   :  { %7876 = vmatpush3.bf16.msra.mxu0 %v9771_v4 }
0x47c0   :  { %7877 = vmatprep.subr.bf16.mxu0 %v8293_v15 }
0x47c3   :  { %7879 = vmatpush3.bf16.msra.mxu0 %v9788_v13 }
0x47c4   :  { %7892 = vmatprep.subr.bf16.mxu0 %v8293_v15 }
0x47c5   :  { %v5026_v47 = vpop.permute.xlu1 %5025 }
0x4889   :  { %v5000_v8 = vpop.f32.mrb[44].mxu0 }
0x488a   :  { %v5004_v40 = vadd.f32 %v5000_v8, %v9858_v34  ;;  %v7289_v45 = vpop.f32.mrb[45].mxu0 }
0x488c   :  { %8183 = vtanh.f32 %v5004_v40  ;;  %v6313_v44 = vmul.f32 -1.442695, %v5004_v40 }
0x488e   :  { %8185 = vpow2.f32 %v6313_v44  ;;  %v6319_v44 = vld [vmem:[%s10533_s15 + $0xa] sm:$0x3] }
0x4896   :  { %v8184_v43 = vpop.eup %8183 }
0x4897   :  { %5014 = vrot.lane.b32.xlu0 %v8184_v43, %s8290_s3 }
0x4898   :  { %v8186_v38 = vpop.eup %8185 }
0x4899   :  { %v5008_v24 = vadd.f32 1.0, %v8186_v38 }
0x489b   :  { %8187 = vrcp.f32 %v5008_v24  ;;  %v5182_v24 = vrot.slane %v6319_v44, 6 }
0x48a5   :  { %v8188_v25 = vpop.eup %8187 }
0x48a6   :  { %v5012_v37 = vmul.f32 %v8188_v25, %v4896_v21 }
0x4909   :  { %v5015_v59 = vpop.permute.xlu0 %5014 }
0x490a   :  { %v5017_v6 = vmul.f32 %v8188_v25, %v5015_v59 }
0x490c   :  { %5019 = vrot.lane.b32.xlu0 %v5017_v6, %s8283_s9  ;;  %v6318_v6 = vld [vmem:[%s10533_s15 + $0x14] sm:$0x3] }
0x497e   :  { %v5020_v11 = vpop.permute.xlu0 %5019 }
0x497f   :  { %v5022_v1 = vadd.f32 %v5020_v11, %v5012_v37  ;;  %v5184_v37 = vsel %vm88_vm2, %v6318_v6, %v5182_v24 }
0x4981   :  { %v5028_v34 = vmul.f32 %v5026_v47, %v5022_v1 }
0x4983   :  { %8189 = vtanh.f32 %v5028_v34 }
0x498d   :  { %v8190_v60 = vpop.eup %8189 }
0x498e   :  { %5031 = vrot.lane.b32.xlu1 %v8190_v60, %s8290_s3 }
0x4a00   :  { %v5032_v5 = vpop.permute.xlu1 %5031 }
0x4a01   :  { %v5034_v63 = vmul.f32 %v8188_v25, %v5032_v5 }
0x4a03   :  { %v10154_v10 = vmul.f32 %v5034_v63, %v5026_v47 }
0x4a05   :  { %v5054_v18 = vmul.f32 %v9067_v61, %v10154_v10  ;;  %v5055_v39 = vmul.f32 %v10154_v10, %v9070_v29 }
0x4a07   :  { %5061 = vrot.lane.b32.xlu1 %v5055_v39, %s8290_s3  ;;  %5057 = vrot.lane.b32.xlu0 %v5054_v18, %s8283_s9 }
0x4a0b   :  { %5159 = vperm.xlu1 %7990, %v5053_v28  }
0x4a79   :  { %v5062_v17 = vpop.permute.xlu1 %5061  ;;  %v5058_v33 = vpop.permute.xlu0 %5057 }
0x4a7a   :  { %v5064_v20 = vsel %vm289_vm12, %v5058_v33, %v5062_v17 }
0x4a7b   :  { %7307 = vmatmul.mubr.msk.f32.vlgmr.msra.gmra.mrb[44].mxu1 %vm639_vm5, %v5064_v20 }
0x4a7c   :  { %7882 = vmatpush3.bf16.msra.mxu1 %v9746_v54  ;;  %7344 = vmatprep.mubr.msk.f32.mxu1 %vm8294_vm10, %v8275_v2 }
0x4a7d   :  { %7883 = vmatprep.subr.bf16.mxu1 %v8293_v15 }
0x4a80   :  { %7885 = vmatpush3.bf16.msra.mxu1 %v9758_v27 }
0x4a81   :  { %7886 = vmatprep.subr.bf16.mxu1 %v8293_v15 }
0x4a84   :  { %7888 = vmatpush3.bf16.msra.mxu1 %v9771_v4 }
0x4a85   :  { %7889 = vmatprep.subr.bf16.mxu1 %v8293_v15 }
0x4a88   :  { %7891 = vmatpush3.bf16.msra.mxu1 %v9788_v13 }
0x4a89   :  { %7904 = vmatprep.subr.bf16.mxu1 %v8293_v15 }
0x4a8a   :  { %v5160_v8 = vpop.permute.xlu1 %5159 }
0x4b4e   :  { %v5134_v21 = vpop.f32.mrb[44].mxu1 }
0x4b4f   :  { %v5138_v50 = vadd.f32 %v5134_v21, %v9864_v36  ;;  %v7308_v55 = vpop.f32.mrb[45].mxu1 }
0x4b51   :  { %8191 = vtanh.f32 %v5138_v50  ;;  %v6317_v48 = vmul.f32 -1.442695, %v5138_v50 }
0x4b53   :  { %8193 = vpow2.f32 %v6317_v48  ;;  %v6323_v48 = vld [vmem:[%s10533_s15 + $0x8] sm:$0x3] }
0x4b5b   :  { %v8192_v51 = vpop.eup %8191 }
0x4b5c   :  { %5148 = vrot.lane.b32.xlu0 %v8192_v51, %s8290_s3 }
0x4b5d   :  { %v8194_v31 = vpop.eup %8193 }
0x4b5e   :  { %v5142_v57 = vadd.f32 1.0, %v8194_v31 }
0x4b60   :  { %8195 = vrcp.f32 %v5142_v57  ;;  %v5315_v57 = vrot.slane %v6323_v48, 6 }
0x4b6a   :  { %v8196_v35 = vpop.eup %8195 }
0x4b6b   :  { %v5146_v42 = vmul.f32 %v8196_v35, %v5028_v34 }
0x4bce   :  { %v5149_v26 = vpop.permute.xlu0 %5148 }
0x4bcf   :  { %v5151_v0 = vmul.f32 %v8196_v35, %v5149_v26 }
0x4bd1   :  { %5153 = vrot.lane.b32.xlu0 %v5151_v0, %s8283_s9  ;;  %v6322_v0 = vld [vmem:[%s10533_s15 + $0x16] sm:$0x3] }
0x4c43   :  { %v5154_v3 = vpop.permute.xlu0 %5153 }
0x4c44   :  { %v5156_v53 = vadd.f32 %v5154_v3, %v5146_v42  ;;  %v5317_v42 = vsel %vm88_vm2, %v6322_v0, %v5315_v57 }
0x4c46   :  { %v5162_v36 = vmul.f32 %v5160_v8, %v5156_v53 }
0x4c48   :  { %8197 = vtanh.f32 %v5162_v36 }
0x4c52   :  { %v8198_v40 = vpop.eup %8197 }
0x4c53   :  { %5165 = vrot.lane.b32.xlu1 %v8198_v40, %s8290_s3 }
0x4cc5   :  { %v5166_v45 = vpop.permute.xlu1 %5165 }
0x4cc6   :  { %v5168_v43 = vmul.f32 %v8196_v35, %v5166_v45 }
0x4cc8   :  { %v10185_v38 = vmul.f32 %v5168_v43, %v5160_v8 }
0x4cca   :  { %v5185_v25 = vmul.f32 %v9067_v61, %v10185_v38  ;;  %v5186_v59 = vmul.f32 %v10185_v38, %v9070_v29 }
0x4ccc   :  { %5192 = vrot.lane.b32.xlu1 %v5186_v59, %s8290_s3  ;;  %5188 = vrot.lane.b32.xlu0 %v5185_v25, %s8283_s9 }
0x4cd0   :  { %5290 = vperm.xlu1 %7990, %v5184_v37  }
0x4d3e   :  { %v5193_v11 = vpop.permute.xlu1 %5192  ;;  %v5189_v1 = vpop.permute.xlu0 %5188 }
0x4d3f   :  { %v5195_v47 = vsel %vm289_vm12, %v5189_v1, %v5193_v11 }
0x4d40   :  { %7326 = vmatmul.mubr.msk.f32.vlgmr.msra.gmra.mrb[46].mxu0 %vm639_vm5, %v5195_v47 }
0x4d41   :  { %7894 = vmatpush3.bf16.msra.mxu0 %v9746_v54  ;;  %7363 = vmatprep.mubr.msk.f32.mxu0 %vm8294_vm10, %v8275_v2 }
0x4d42   :  { %7895 = vmatprep.subr.bf16.mxu0 %v8293_v15 }
0x4d45   :  { %7897 = vmatpush3.bf16.msra.mxu0 %v9758_v27 }
0x4d46   :  { %7898 = vmatprep.subr.bf16.mxu0 %v8293_v15 }
0x4d49   :  { %7900 = vmatpush3.bf16.msra.mxu0 %v9771_v4 }
0x4d4a   :  { %7901 = vmatprep.subr.bf16.mxu0 %v8293_v15 }
0x4d4d   :  { %7903 = vmatpush3.bf16.msra.mxu0 %v9788_v13 }
0x4d4e   :  { %7916 = vmatprep.subr.bf16.mxu0 %v8293_v15 }
0x4d4f   :  { %v5291_v21 = vpop.permute.xlu1 %5290 }
0x4e13   :  { %v5265_v34 = vpop.f32.mrb[46].mxu0 }
0x4e14   :  { %v5269_v60 = vadd.f32 %v5265_v34, %v9867_v52  ;;  %v7327_v5 = vpop.f32.mrb[47].mxu0 }
0x4e16   :  { %8199 = vtanh.f32 %v5269_v60  ;;  %v6321_v16 = vmul.f32 -1.442695, %v5269_v60 }
0x4e18   :  { %8201 = vpow2.f32 %v6321_v16  ;;  %v6327_v16 = vld [vmem:[%s10533_s15 + $0x6] sm:$0x3] }
0x4e20   :  { %v8200_v63 = vpop.eup %8199 }
0x4e21   :  { %5279 = vrot.lane.b32.xlu0 %v8200_v63, %s8290_s3 }
0x4e22   :  { %v8202_v32 = vpop.eup %8201 }
0x4e23   :  { %v5273_v18 = vadd.f32 1.0, %v8202_v32 }
0x4e25   :  { %8203 = vrcp.f32 %v5273_v18  ;;  %v5447_v18 = vrot.slane %v6327_v16, 6 }
0x4e2f   :  { %v8204_v39 = vpop.eup %8203 }
0x4e30   :  { %v5277_v17 = vmul.f32 %v8204_v39, %v5162_v36 }
0x4e93   :  { %v5280_v12 = vpop.permute.xlu0 %5279 }
0x4e94   :  { %v5282_v28 = vmul.f32 %v8204_v39, %v5280_v12 }
0x4e96   :  { %5284 = vrot.lane.b32.xlu0 %v5282_v28, %s8283_s9  ;;  %v6326_v28 = vld [vmem:[%s10533_s15 + $0x18] sm:$0x3] }
0x4f08   :  { %v5285_v33 = vpop.permute.xlu0 %5284 }
0x4f09   :  { %v5287_v20 = vadd.f32 %v5285_v33, %v5277_v17  ;;  %v5449_v17 = vsel %vm88_vm2, %v6326_v28, %v5447_v18 }
0x4f0b   :  { %v5293_v52 = vmul.f32 %v5291_v21, %v5287_v20 }
0x4f0d   :  { %8205 = vtanh.f32 %v5293_v52 }
0x4f17   :  { %v8206_v50 = vpop.eup %8205 }
0x4f18   :  { %5296 = vrot.lane.b32.xlu1 %v8206_v50, %s8290_s3 }
0x4f8a   :  { %v5297_v55 = vpop.permute.xlu1 %5296 }
0x4f8b   :  { %v5299_v51 = vmul.f32 %v8204_v39, %v5297_v55 }
0x4f8d   :  { %v10216_v31 = vmul.f32 %v5299_v51, %v5291_v21 }
0x4f8f   :  { %v5318_v35 = vmul.f32 %v9067_v61, %v10216_v31  ;;  %v5319_v26 = vmul.f32 %v10216_v31, %v9070_v29 }
0x4f91   :  { %5325 = vrot.lane.b32.xlu1 %v5319_v26, %s8290_s3  ;;  %5321 = vrot.lane.b32.xlu0 %v5318_v35, %s8283_s9 }
0x4f95   :  { %5423 = vperm.xlu1 %7990, %v5317_v42  }
0x5003   :  { %v5326_v3 = vpop.permute.xlu1 %5325  ;;  %v5322_v53 = vpop.permute.xlu0 %5321 }
0x5004   :  { %v5328_v8 = vsel %vm289_vm12, %v5322_v53, %v5326_v3 }
0x5005   :  { %7345 = vmatmul.mubr.msk.f32.vlgmr.msra.gmra.mrb[46].mxu1 %vm639_vm5, %v5328_v8 }
0x5006   :  { %7906 = vmatpush3.bf16.msra.mxu1 %v9746_v54  ;;  %7382 = vmatprep.mubr.msk.f32.mxu1 %vm8294_vm10, %v8275_v2 }
0x5007   :  { %7907 = vmatprep.subr.bf16.mxu1 %v8293_v15 }
0x500a   :  { %7909 = vmatpush3.bf16.msra.mxu1 %v9758_v27 }
0x500b   :  { %7910 = vmatprep.subr.bf16.mxu1 %v8293_v15 }
0x500e   :  { %7912 = vmatpush3.bf16.msra.mxu1 %v9771_v4 }
0x500f   :  { %7913 = vmatprep.subr.bf16.mxu1 %v8293_v15 }
0x5012   :  { %7915 = vmatpush3.bf16.msra.mxu1 %v9788_v13 }
0x5013   :  { %7928 = vmatprep.subr.bf16.mxu1 %v8293_v15 }
0x5014   :  { %v5424_v34 = vpop.permute.xlu1 %5423 }
0x50d8   :  { %v5398_v36 = vpop.f32.mrb[46].mxu1 }
0x50d9   :  { %v5402_v40 = vadd.f32 %v5398_v36, %v9870_v9  ;;  %v7346_v45 = vpop.f32.mrb[47].mxu1 }
0x50db   :  { %8207 = vtanh.f32 %v5402_v40  ;;  %v6325_v44 = vmul.f32 -1.442695, %v5402_v40 }
0x50dd   :  { %8209 = vpow2.f32 %v6325_v44  ;;  %v6331_v44 = vld [vmem:[%s10533_s15 + $0x4] sm:$0x3] }
0x50e5   :  { %v8208_v43 = vpop.eup %8207 }
0x50e6   :  { %5412 = vrot.lane.b32.xlu0 %v8208_v43, %s8290_s3 }
0x50e7   :  { %v8210_v24 = vpop.eup %8209 }
0x50e8   :  { %v5406_v25 = vadd.f32 1.0, %v8210_v24 }
0x50ea   :  { %8211 = vrcp.f32 %v5406_v25  ;;  %v5581_v25 = vrot.slane %v6331_v44, 6 }
0x50f4   :  { %v8212_v59 = vpop.eup %8211 }
0x50f5   :  { %v5410_v11 = vmul.f32 %v8212_v59, %v5293_v52 }
0x5158   :  { %v5413_v6 = vpop.permute.xlu0 %5412 }
0x5159   :  { %v5415_v37 = vmul.f32 %v8212_v59, %v5413_v6 }
0x515b   :  { %5417 = vrot.lane.b32.xlu0 %v5415_v37, %s8283_s9  ;;  %v6330_v37 = vld [vmem:[%s10533_s15 + $0x1a] sm:$0x3] }
0x51cd   :  { %v5418_v1 = vpop.permute.xlu0 %5417 }
0x51ce   :  { %v5420_v47 = vadd.f32 %v5418_v1, %v5410_v11  ;;  %v5583_v11 = vsel %vm88_vm2, %v6330_v37, %v5581_v25 }
0x51d0   :  { %v5426_v9 = vmul.f32 %v5424_v34, %v5420_v47 }
0x51d2   :  { %8213 = vtanh.f32 %v5426_v9 }
0x51dc   :  { %v8214_v60 = vpop.eup %8213 }
0x51dd   :  { %5429 = vrot.lane.b32.xlu1 %v8214_v60, %s8290_s3 }
0x524f   :  { %v5430_v5 = vpop.permute.xlu1 %5429 }
0x5250   :  { %v5432_v63 = vmul.f32 %v8212_v59, %v5430_v5 }
0x5252   :  { %v10247_v32 = vmul.f32 %v5432_v63, %v5424_v34 }
0x5254   :  { %v5450_v39 = vmul.f32 %v9067_v61, %v10247_v32  ;;  %v5451_v12 = vmul.f32 %v10247_v32, %v9070_v29 }
0x5256   :  { %5457 = vrot.lane.b32.xlu1 %v5451_v12, %s8290_s3  ;;  %5453 = vrot.lane.b32.xlu0 %v5450_v39, %s8283_s9 }
0x525a   :  { %5555 = vperm.xlu1 %7990, %v5449_v17  }
0x52c8   :  { %v5458_v33 = vpop.permute.xlu1 %5457  ;;  %v5454_v20 = vpop.permute.xlu0 %5453 }
0x52c9   :  { %v5460_v21 = vsel %vm289_vm12, %v5454_v20, %v5458_v33 }
0x52ca   :  { %7364 = vmatmul.mubr.msk.f32.vlgmr.msra.gmra.mrb[48].mxu0 %vm639_vm5, %v5460_v21 }
0x52cb   :  { %7918 = vmatpush3.bf16.msra.mxu0 %v9746_v54  ;;  %7401 = vmatprep.mubr.msk.f32.mxu0 %vm8294_vm10, %v8275_v2 }
0x52cc   :  { %7919 = vmatprep.subr.bf16.mxu0 %v8293_v15 }
0x52cf   :  { %7921 = vmatpush3.bf16.msra.mxu0 %v9758_v27 }
0x52d0   :  { %7922 = vmatprep.subr.bf16.mxu0 %v8293_v15 }
0x52d3   :  { %7924 = vmatpush3.bf16.msra.mxu0 %v9771_v4 }
0x52d4   :  { %7925 = vmatprep.subr.bf16.mxu0 %v8293_v15 }
0x52d7   :  { %7927 = vmatpush3.bf16.msra.mxu0 %v9788_v13 }
0x52d8   :  { %7940 = vmatprep.subr.bf16.mxu0 %v8293_v15 }
0x52d9   :  { %v5556_v36 = vpop.permute.xlu1 %5555 }
0x539d   :  { %v5530_v52 = vpop.f32.mrb[48].mxu0 }
0x539e   :  { %v5534_v50 = vadd.f32 %v5530_v52, %v9882_v22  ;;  %v7365_v55 = vpop.f32.mrb[49].mxu0  ;;  %v6335_v52 = vld [vmem:[%s10533_s15 + $0x2] sm:$0x3] }
0x539f   :  { %v5712_v55 = vrot.slane %v6335_v52, 6 }
0x53a0   :  { %8215 = vtanh.f32 %v5534_v50  ;;  %v6329_v48 = vmul.f32 -1.442695, %v5534_v50 }
0x53a2   :  { %8217 = vpow2.f32 %v6329_v48 }
0x53aa   :  { %v8216_v51 = vpop.eup %8215 }
0x53ab   :  { %5544 = vrot.lane.b32.xlu0 %v8216_v51, %s8290_s3 }
0x53ac   :  { %v8218_v57 = vpop.eup %8217 }
0x53ad   :  { %v5538_v35 = vadd.f32 1.0, %v8218_v57  ;;  %v6334_v57 = vld [vmem:[%s10533_s15 + $0x1c] sm:$0x3] }
0x53af   :  { %8219 = vrcp.f32 %v5538_v35  ;;  %v5714_v35 = vsel %vm88_vm2, %v6334_v57, %v5712_v55 }
0x53b9   :  { %v8220_v26 = vpop.eup %8219 }
0x53ba   :  { %v5542_v3 = vmul.f32 %v8220_v26, %v5426_v9 }
0x541d   :  { %v5545_v0 = vpop.permute.xlu0 %5544 }
0x541e   :  { %v5547_v42 = vmul.f32 %v8220_v26, %v5545_v0 }
0x5420   :  { %5549 = vrot.lane.b32.xlu0 %v5547_v42, %s8283_s9 }
0x5492   :  { %v5550_v53 = vpop.permute.xlu0 %5549 }
0x5493   :  { %v5552_v8 = vadd.f32 %v5550_v53, %v5542_v3 }
0x5495   :  { %v5558_v22 = vmul.f32 %v5556_v36, %v5552_v8 }
0x5497   :  { %8221 = vtanh.f32 %v5558_v22 }
0x54a1   :  { %v8222_v40 = vpop.eup %8221 }
0x54a2   :  { %5561 = vrot.lane.b32.xlu1 %v8222_v40, %s8290_s3 }
0x5514   :  { %v5562_v45 = vpop.permute.xlu1 %5561 }
0x5515   :  { %v5564_v43 = vmul.f32 %v8220_v26, %v5562_v45 }
0x5517   :  { %v10278_v24 = vmul.f32 %v5564_v43, %v5556_v36 }
0x5519   :  { %v5584_v59 = vmul.f32 %v9067_v61, %v10278_v24  ;;  %v5585_v6 = vmul.f32 %v10278_v24, %v9070_v29 }
0x551b   :  { %5591 = vrot.lane.b32.xlu1 %v5585_v6, %s8290_s3  ;;  %5587 = vrot.lane.b32.xlu0 %v5584_v59, %s8283_s9 }
0x551f   :  { %5689 = vperm.xlu1 %7990, %v5583_v11  }
0x558d   :  { %v5592_v1 = vpop.permute.xlu1 %5591  ;;  %v5588_v47 = vpop.permute.xlu0 %5587 }
0x558e   :  { %v5594_v34 = vsel %vm289_vm12, %v5588_v47, %v5592_v1 }
0x558f   :  { %7383 = vmatmul.mubr.msk.f32.vlgmr.msra.gmra.mrb[48].mxu1 %vm639_vm5, %v5594_v34  ;;  %v5843_v34 = vld [vmem:[%s10533_s15] sm:$0x3] }
0x5590   :  { %7930 = vmatpush3.bf16.msra.mxu1 %v9746_v54  ;;  %7420 = vmatprep.mubr.msk.f32.mxu1 %vm8294_vm10, %v8275_v2 }
0x5591   :  { %7931 = vmatprep.subr.bf16.mxu1 %v8293_v15 }
0x5594   :  { %7933 = vmatpush3.bf16.msra.mxu1 %v9758_v27 }
0x5595   :  { %7934 = vmatprep.subr.bf16.mxu1 %v8293_v15 }
0x5598   :  { %7936 = vmatpush3.bf16.msra.mxu1 %v9771_v4 }
0x5599   :  { %7937 = vmatprep.subr.bf16.mxu1 %v8293_v15 }
0x559c   :  { %7939 = vmatpush3.bf16.msra.mxu1 %v9788_v13 }
0x559e   :  { %v5690_v17 = vpop.permute.xlu1 %5689 }
0x5662   :  { %v5664_v9 = vpop.f32.mrb[48].mxu1 }
0x5663   :  { %v5668_v60 = vadd.f32 %v5664_v9, %v9888_v19  ;;  %v7384_v5 = vpop.f32.mrb[49].mxu1 }
0x5665   :  { %8223 = vtanh.f32 %v5668_v60  ;;  %v6333_v63 = vmul.f32 -1.442695, %v5668_v60  ;;  %v5845_v60 = vrot.slane %v5843_v34, 6 }
0x5667   :  { %8225 = vpow2.f32 %v6333_v63  ;;  %v6338_v63 = vld [vmem:[%s10533_s15 + $0x1e] sm:$0x3] }
0x566f   :  { %v8224_v54 = vpop.eup %8223 }
0x5670   :  { %5678 = vrot.lane.b32.xlu0 %v8224_v54, %s8290_s3 }
0x5671   :  { %v8226_v16 = vpop.eup %8225 }
0x5672   :  { %v5672_v27 = vadd.f32 1.0, %v8226_v16  ;;  %v5847_v16 = vsel %vm88_vm2, %v6338_v63, %v5845_v60 }
0x5674   :  { %8227 = vrcp.f32 %v5672_v27 }
0x567e   :  { %v8228_v18 = vpop.eup %8227 }
0x567f   :  { %v5676_v12 = vmul.f32 %v8228_v18, %v5558_v22 }
0x56e2   :  { %v5679_v39 = vpop.permute.xlu0 %5678 }
0x56e3   :  { %v5681_v4 = vmul.f32 %v8228_v18, %v5679_v39 }
0x56e5   :  { %5683 = vrot.lane.b32.xlu0 %v5681_v4, %s8283_s9 }
0x5757   :  { %v5684_v13 = vpop.permute.xlu0 %5683 }
0x5758   :  { %v5686_v28 = vadd.f32 %v5684_v13, %v5676_v12 }
0x575a   :  { %v5692_v19 = vmul.f32 %v5690_v17, %v5686_v28 }
0x575c   :  { %8229 = vtanh.f32 %v5692_v19 }
0x5766   :  { %v8230_v33 = vpop.eup %8229 }
0x5767   :  { %5695 = vrot.lane.b32.xlu1 %v8230_v33, %s8290_s3 }
0x57d9   :  { %v5696_v20 = vpop.permute.xlu1 %5695 }
0x57da   :  { %v5698_v21 = vmul.f32 %v8228_v18, %v5696_v20 }
0x57dc   :  { %v10308_v50 = vmul.f32 %v5698_v21, %v5690_v17 }
0x57de   :  { %v5715_v51 = vmul.f32 %v9067_v61, %v10308_v50  ;;  %v5716_v48 = vmul.f32 %v10308_v50, %v9070_v29 }
0x57e0   :  { %5722 = vrot.lane.b32.xlu1 %v5716_v48, %s8290_s3  ;;  %5718 = vrot.lane.b32.xlu0 %v5715_v51, %s8283_s9 }
0x57e4   :  { %5820 = vperm.xlu1 %7990, %v5714_v35  }
0x5852   :  { %v5723_v26 = vpop.permute.xlu1 %5722  ;;  %v5719_v0 = vpop.permute.xlu0 %5718 }
0x5853   :  { %v5725_v42 = vsel %vm289_vm12, %v5719_v0, %v5723_v26 }
0x5854   :  { %7402 = vmatmul.mubr.msk.f32.vlgmr.msra.gmra.mrb[50].mxu0 %vm639_vm5, %v5725_v42  ;;  %v6070_v42 = vld [vmem:[%s10507_s23] sm:$0xff] }
0x5855   :  { %7439 = vmatprep.mubr.msk.f32.mxu0 %vm8294_vm10, %v8275_v2 }
0x5863   :  { %v5821_v37 = vpop.permute.xlu1 %5820 }
0x5927   :  { %v5795_v3 = vpop.f32.mrb[50].mxu0 }
0x5928   :  { %v5799_v53 = vadd.f32 %v5795_v3, %v9891_v41  ;;  %v7403_v8 = vpop.f32.mrb[51].mxu0  ;;  %v6075_v3 = vld [vmem:[%s10507_s23 + $0x28] sm:$0xff] }
0x592a   :  { %8231 = vtanh.f32 %v5799_v53  ;;  %v6337_v22 = vmul.f32 -1.442695, %v5799_v53 }
0x592c   :  { %8233 = vpow2.f32 %v6337_v22 }
0x5934   :  { %v8232_v36 = vpop.eup %8231 }
0x5935   :  { %5809 = vrot.lane.b32.xlu0 %v8232_v36, %s8290_s3 }
0x5936   :  { %v8234_v40 = vpop.eup %8233 }
0x5937   :  { %v5803_v45 = vadd.f32 1.0, %v8234_v40 }
0x5939   :  { %8235 = vrcp.f32 %v5803_v45 }
0x5943   :  { %v8236_v43 = vpop.eup %8235 }
0x5944   :  { %v5807_v59 = vmul.f32 %v8236_v43, %v5692_v19 }
0x59a7   :  { %v5810_v44 = vpop.permute.xlu0 %5809 }
0x59a8   :  { %v5812_v25 = vmul.f32 %v8236_v43, %v5810_v44 }
0x59aa   :  { %5814 = vrot.lane.b32.xlu0 %v5812_v25, %s8283_s9 }
0x5a1c   :  { %v5815_v2 = vpop.permute.xlu0 %5814 }
0x5a1d   :  { %v5817_v6 = vadd.f32 %v5815_v2, %v5807_v59 }
0x5a1f   :  { %v5823_v41 = vmul.f32 %v5821_v37, %v5817_v6 }
0x5a21   :  { %8237 = vtanh.f32 %v5823_v41 }
0x5a2b   :  { %v8238_v11 = vpop.eup %8237 }
0x5a2c   :  { %5826 = vrot.lane.b32.xlu1 %v8238_v11, %s8290_s3 }
0x5a9e   :  { %v5827_v1 = vpop.permute.xlu1 %5826 }
0x5a9f   :  { %v5829_v47 = vmul.f32 %v8236_v43, %v5827_v1 }
0x5aa1   :  { %v5830_v9 = vmul.f32 %v5829_v47, %v5821_v37 }
0x5aa3   :  { %v5848_v5 = vmul.f32 %v9067_v61, %v5830_v9  ;;  %v5849_v54 = vmul.f32 %v5830_v9, %v9070_v29 }
0x5aa5   :  { %5855 = vrot.lane.b32.xlu1 %v5849_v54, %s8290_s3  ;;  %5851 = vrot.lane.b32.xlu0 %v5848_v5, %s8283_s9 }
0x5aa9   :  { %5953 = vperm.xlu1 %7990, %v5847_v16  }
0x5b17   :  { %v5856_v27 = vpop.permute.xlu1 %5855  ;;  %v5852_v18 = vpop.permute.xlu0 %5851 }
0x5b18   :  { %v5858_v39 = vsel %vm289_vm12, %v5852_v18, %v5856_v27 }
0x5b19   :  { %7421 = vmatmul.mubr.msk.f32.vlgmr.msra.gmra.mrb[50].mxu1 %vm639_vm5, %v5858_v39 }
0x5bec   :  { %v5928_v61 = vpop.f32.mrb[50].mxu1 }
0x5bed   :  { %v5932_v29 = vadd.f32 %v5928_v61, %v9894_v46  ;;  %v7422_v4 = vpop.f32.mrb[51].mxu1 }
0x5bef   :  { %8239 = vtanh.f32 %v5932_v29  ;;  %v6340_v13 = vmul.f32 -1.442695, %v5932_v29 }
0x5bf1   :  { %8241 = vpow2.f32 %v6340_v13 }
0x5bf9   :  { %v8240_v12 = vpop.eup %8239 }
0x5bfa   :  { %5942 = vrot.lane.b32.xlu0 %v8240_v12, %s8290_s3 }
0x5bfb   :  { %v8242_v28 = vpop.eup %8241 }
0x5bfc   :  { %v5936_v17 = vadd.f32 1.0, %v8242_v28 }
0x5bfe   :  { %8243 = vrcp.f32 %v5936_v17 }
0x5c08   :  { %v8244_v19 = vpop.eup %8243 }
0x5c09   :  { %v5940_v46 = vmul.f32 %v8244_v19, %v5823_v41 }
0x5c6c   :  { %v5943_v33 = vpop.permute.xlu0 %5942 }
0x5c6d   :  { %v5945_v20 = vmul.f32 %v8244_v19, %v5943_v33 }
0x5c6f   :  { %5947 = vrot.lane.b32.xlu0 %v5945_v20, %s8283_s9 }
0x5c73   :  { %5832 = vrot.lane.b32.xlu0 %v5830_v9, %s8283_s9 }
0x5c77   :  { %5701 = vrot.lane.b32.xlu0 %v10308_v50, %s8283_s9  ;;  %v5954_v50 = vpop.permute.xlu1 %5953 }
0x5c7b   :  { %5435 = vrot.lane.b32.xlu0 %v10247_v32, %s8283_s9 }
0x5c7f   :  { %5171 = vrot.lane.b32.xlu0 %v10185_v38, %s8283_s9 }
0x5c83   :  { %4905 = vrot.lane.b32.xlu0 %v10123_v49, %s8283_s9 }
0x5c87   :  { %4641 = vrot.lane.b32.xlu0 %v10061_v62, %s8283_s9 }
0x5c8b   :  { %4375 = vrot.lane.b32.xlu0 %v9999_v23, %s8283_s9 }
0x5c8f   :  { %4111 = vrot.lane.b32.xlu0 %v9937_v58, %s8283_s9 }
0x5ce1   :  { %v5948_v21 = vpop.permute.xlu0 %5947 }
0x5ce2   :  { %v5950_v52 = vadd.f32 %v5948_v21, %v5940_v46 }
0x5ce4   :  { %v5956_v32 = vmul.f32 %v5954_v50, %v5950_v52 }
0x5ce5   :  { %v5833_v55 = vpop.permute.xlu0 %5832 }
0x5ce6   :  { %8245 = vtanh.f32 %v5956_v32  ;;  %5835 = vst.msk [vmem:[#allocation2 + $0x1c] sm:$0x3] %vm1543_vm13, %v5833_v55  ;;  %v6076_v32 = vld [vmem:[%s10507_s23 + $0x30] sm:$0xff] }
0x5ce7   :  { %5836 = vst.msk [vmem:[#allocation3] sm:$0xc] %vm1546_vm14, %v5833_v55 }
0x5ce9   :  { %v5702_v49 = vpop.permute.xlu0 %5701 }
0x5cea   :  { %5704 = vst.msk [vmem:[#allocation2 + $0x1a] sm:$0x3] %vm1543_vm13, %v5702_v49 }
0x5ceb   :  { %5705 = vst.msk [vmem:[#allocation3 + $0x2] sm:$0xc] %vm1546_vm14, %v5702_v49  ;;  %v6077_v49 = vld [vmem:[%s10507_s23 + $0x38] sm:$0xff] }
0x5ced   :  { %v5436_v23 = vpop.permute.xlu0 %5435 }
0x5cee   :  { %5438 = vst.msk [vmem:[#allocation2 + $0x16] sm:$0x3] %vm1543_vm13, %v5436_v23  ;;  %v6018_v36 = vld [vmem:[#allocation3 + $0x2] sm:$0x3] }
0x5cef   :  { %5439 = vst.msk [vmem:[#allocation3 + $0x6] sm:$0xc] %vm1546_vm14, %v5436_v23  ;;  %v6034_v43 = vsel %vm1543_vm13, %v6018_v36, 0.0 }
0x5cf0   :  { %v8246_v58 = vpop.eup %8245 }
0x5cf1   :  { %v5172_v62 = vpop.permute.xlu0 %5171  ;;  %5959 = vrot.lane.b32.xlu1 %v8246_v58, %s8290_s3  ;;  %v7950_v58 = vpack.c.bf16 %v6077_v49, %v6076_v32  ;;  %v6341_v49 = vld [vmem:[%s10508_s24] ss:$0 sm:$0xff] }
0x5cf2   :  { %5174 = vst.msk [vmem:[#allocation2 + $0x12] sm:$0x3] %vm1543_vm13, %v5172_v62  ;;  %v6019_v45 = vld [vmem:[#allocation3 + $0x4] sm:$0x3] }
0x5cf3   :  { %5175 = vst.msk [vmem:[#allocation3 + $0xa] sm:$0xc] %vm1546_vm14, %v5172_v62  ;;  %v6036_v25 = vsel %vm1543_vm13, %v6019_v45, 0.0 }
0x5cf5   :  { %v4906_v38 = vpop.permute.xlu0 %4905 }
0x5cf6   :  { %4908 = vst.msk [vmem:[#allocation2 + $0xe] sm:$0x3] %vm1543_vm13, %v4906_v38  ;;  %v6021_v6 = vld [vmem:[#allocation3 + $0x8] sm:$0x3] }
0x5cf7   :  { %4909 = vst.msk [vmem:[#allocation3 + $0xe] sm:$0xc] %vm1546_vm14, %v4906_v38  ;;  %v6040_v1 = vsel %vm1543_vm13, %v6021_v6, 0.0 }
0x5cf9   :  { %v4642_v51 = vpop.permute.xlu0 %4641 }
0x5cfa   :  { %4644 = vst.msk [vmem:[#allocation2 + $0xa] sm:$0x3] %vm1543_vm13, %v4642_v51  ;;  %v6023_v9 = vld [vmem:[#allocation3 + $0xc] sm:$0x3] }
0x5cfb   :  { %4645 = vst.msk [vmem:[#allocation3 + $0x12] sm:$0xc] %vm1546_vm14, %v4642_v51  ;;  %v6044_v63 = vsel %vm1543_vm13, %v6023_v9, 0.0  ;;  %v5979_v9 = vld [vmem:[#allocation2 + $0x12] sm:$0x3] }
0x5cfd   :  { %v4376_v48 = vpop.permute.xlu0 %4375 }
0x5cfe   :  { %4378 = vst.msk [vmem:[#allocation2 + $0x6] sm:$0x3] %vm1543_vm13, %v4376_v48  ;;  %v6025_v18 = vld [vmem:[#allocation3 + $0x10] sm:$0x3] }
0x5cff   :  { %4379 = vst.msk [vmem:[#allocation3 + $0x16] sm:$0xc] %vm1546_vm14, %v4376_v48  ;;  %v6048_v4 = vsel %vm1543_vm13, %v6025_v18, 0.0 }
0x5d01   :  { %v4112_v57 = vpop.permute.xlu0 %4111 }
0x5d02   :  { %4114 = vst.msk [vmem:[#allocation2 + $0x2] sm:$0x3] %vm1543_vm13, %v4112_v57  ;;  %v6027_v28 = vld [vmem:[#allocation3 + $0x14] sm:$0x3] }
0x5d03   :  { %4115 = vst.msk [vmem:[#allocation3 + $0x1a] sm:$0xc] %vm1546_vm14, %v4112_v57  ;;  %v6052_v20 = vsel %vm1543_vm13, %v6027_v28, 0.0 }
0x5d06   :  { %v6029_v52 = vld [vmem:[#allocation3 + $0x18] sm:$0x3] }
0x5d07   :  { %v6056_v62 = vsel %vm1543_vm13, %v6029_v52, 0.0 }
0x5d0a   :  { %v6031_v51 = vld [vmem:[#allocation3 + $0x1c] sm:$0x3] }
0x5d63   :  { %v5960_v35 = vpop.permute.xlu1 %5959 }
0x5d64   :  { %v5962_v26 = vmul.f32 %v8244_v19, %v5960_v35 }
0x5d66   :  { %v5963_v0 = vmul.f32 %v5962_v26, %v5954_v50  ;;  %v6060_v26 = vsel %vm1543_vm13, %v6031_v51, 0.0 }
0x5d68   :  { %5965 = vrot.lane.b32.xlu1 %v5963_v0, %s8283_s9 }
0x5d6c   :  { %5567 = vrot.lane.b32.xlu1 %v10278_v24, %s8283_s9 }
0x5d70   :  { %5302 = vrot.lane.b32.xlu1 %v10216_v31, %s8283_s9  ;;  %v6071_v31 = vld [vmem:[%s10507_s23 + $0x8] sm:$0xff] }
0x5d71   :  { %v7941_v24 = vpack.c.bf16 %v6071_v31, %v6070_v42 }
0x5d73   :  { %7942 = vmatpush3.bf16.msra.mxu0 %v7941_v24 }
0x5d74   :  { %5037 = vrot.lane.b32.xlu1 %v10154_v10, %s8283_s9  ;;  %v6072_v10 = vld [vmem:[%s10507_s23 + $0x10] sm:$0xff]  ;;  %7943 = vmatprep.subr.bf16.mxu0 %v8293_v15 }
0x5d78   :  { %4772 = vrot.lane.b32.xlu1 %v10092_v14, %s8283_s9  ;;  %v6074_v14 = vld [vmem:[%s10507_s23 + $0x20] sm:$0xff] }
0x5d79   :  { %v7947_v53 = vpack.c.bf16 %v6075_v3, %v6074_v14 }
0x5d7c   :  { %4507 = vrot.lane.b32.xlu1 %v10030_v56, %s8283_s9  ;;  %v6073_v56 = vld [vmem:[%s10507_s23 + $0x18] sm:$0xff] }
0x5d80   :  { %4242 = vrot.lane.b32.xlu1 %v9968_v30, %s8283_s9  ;;  %v7944_v30 = vpack.c.bf16 %v6073_v56, %v6072_v10  ;;  %v5971_v56 = vld [vmem:[#allocation2 + $0x2] sm:$0x3] }
0x5d81   :  { %v5987_v14 = vsel %vm1543_vm13, %v5971_v56, 0.0 }
0x5d82   :  { %7945 = vmatpush3.bf16.msra.mxu0 %v7944_v30 }
0x5d83   :  { %7946 = vmatprep.subr.bf16.mxu0 %v8293_v15 }
0x5d84   :  { %3977 = vrot.lane.b32.xlu1 %v9907_v7, %s8283_s9 }
0x5d86   :  { %7948 = vmatpush3.bf16.msra.mxu0 %v7947_v53 }
0x5d87   :  { %7949 = vmatprep.subr.bf16.mxu0 %v8293_v15 }
0x5d8a   :  { %7951 = vmatpush3.bf16.msra.mxu0 %v7950_v58 }
0x5dda   :  { %v5966_v7 = vpop.permute.xlu1 %5965 }
0x5ddb   :  { %5968 = vst.msk [vmem:[#allocation2 + $0x1e] sm:$0x3] %vm1543_vm13, %v5966_v7 }
0x5ddc   :  { %5969 = vst.msk [vmem:[#allocation3 - $0x2] sm:$0xc] %vm1546_vm14, %v5966_v7 }
0x5dde   :  { %v5568_v8 = vpop.permute.xlu1 %5567 }
0x5ddf   :  { %5570 = vst.msk [vmem:[#allocation2 + $0x18] sm:$0x3] %vm1543_vm13, %v5568_v8 }
0x5de0   :  { %5571 = vst.msk [vmem:[#allocation3 + $0x4] sm:$0xc] %vm1546_vm14, %v5568_v8  ;;  %v5973_v8 = vld [vmem:[#allocation2 + $0x6] sm:$0x3] }
0x5de2   :  { %v5303_v40 = vpop.permute.xlu1 %5302 }
0x5de3   :  { %v6017_v22 = vld [vmem:[#allocation3] sm:$0x3]  ;;  %5305 = vst.msk [vmem:[#allocation2 + $0x14] sm:$0x3] %vm1543_vm13, %v5303_v40 }
0x5de4   :  { %5306 = vst.msk [vmem:[#allocation3 + $0x8] sm:$0xc] %vm1546_vm14, %v5303_v40  ;;  %v6033_v15 = vsel %vm1543_vm13, %v6017_v22, 0.0  ;;  %v5991_v22 = vsel %vm1543_vm13, %v5973_v8, 0.0 }
0x5de5   :  { %v6035_v44 = vadd.f32 %v6034_v43, %v6033_v15  ;;  %v5975_v43 = vld [vmem:[#allocation2 + $0xa] sm:$0x3] }
0x5de6   :  { %v5038_v59 = vpop.permute.xlu1 %5037 }
0x5de7   :  { %v6020_v2 = vld [vmem:[#allocation3 + $0x6] sm:$0x3]  ;;  %v6037_v37 = vadd.f32 %v6036_v25, %v6035_v44  ;;  %5040 = vst.msk [vmem:[#allocation2 + $0x10] sm:$0x3] %vm1543_vm13, %v5038_v59  ;;  %v5995_v25 = vsel %vm1543_vm13, %v5975_v43, 0.0 }
0x5de8   :  { %5041 = vst.msk [vmem:[#allocation3 + $0xc] sm:$0xc] %vm1546_vm14, %v5038_v59  ;;  %v6038_v41 = vsel %vm1543_vm13, %v6020_v2, 0.0 }
0x5de9   :  { %v6039_v11 = vadd.f32 %v6038_v41, %v6037_v37  ;;  %v5977_v37 = vld [vmem:[#allocation2 + $0xe] sm:$0x3] }
0x5dea   :  { %v4773_v47 = vpop.permute.xlu1 %4772 }
0x5deb   :  { %v6022_v34 = vld [vmem:[#allocation3 + $0xa] sm:$0x3]  ;;  %v6041_v60 = vadd.f32 %v6040_v1, %v6039_v11  ;;  %4775 = vst.msk [vmem:[#allocation2 + $0xc] sm:$0x3] %vm1543_vm13, %v4773_v47  ;;  %v5999_v11 = vsel %vm1543_vm13, %v5977_v37, 0.0 }
0x5dec   :  { %4776 = vst.msk [vmem:[#allocation3 + $0x10] sm:$0xc] %vm1546_vm14, %v4773_v47  ;;  %v6042_v5 = vsel %vm1543_vm13, %v6022_v34, 0.0 }
0x5ded   :  { %v6043_v54 = vadd.f32 %v6042_v5, %v6041_v60  ;;  %v6003_v5 = vsel %vm1543_vm13, %v5979_v9, 0.0 }
0x5dee   :  { %v4508_v16 = vpop.permute.xlu1 %4507  ;;  %v5978_v1 = vld [vmem:[#allocation2 + $0x10] sm:$0x3] }
0x5def   :  { %v6024_v27 = vld [vmem:[#allocation3 + $0xe] sm:$0x3]  ;;  %v6045_v39 = vadd.f32 %v6044_v63, %v6043_v54  ;;  %4510 = vst.msk [vmem:[#allocation2 + $0x8] sm:$0x3] %vm1543_vm13, %v4508_v16  ;;  %v6001_v34 = vsel %vm1543_vm13, %v5978_v1, 0.0 }
0x5df0   :  { %4511 = vst.msk [vmem:[#allocation3 + $0x14] sm:$0xc] %vm1546_vm14, %v4508_v16  ;;  %v6046_v61 = vsel %vm1543_vm13, %v6024_v27, 0.0  ;;  %v5980_v54 = vld [vmem:[#allocation2 + $0x14] sm:$0x3] }
0x5df1   :  { %v6047_v29 = vadd.f32 %v6046_v61, %v6045_v39  ;;  %v6005_v16 = vsel %vm1543_vm13, %v5980_v54, 0.0  ;;  %v5981_v27 = vld [vmem:[#allocation2 + $0x16] sm:$0x3]  ;;  %v5982_v61 = vld [vmem:[#allocation2 + $0x18] sm:$0x3] }
0x5df2   :  { %v4243_v12 = vpop.permute.xlu1 %4242  ;;  %v5976_v59 = vld [vmem:[#allocation2 + $0xc] sm:$0x3]  ;;  %v6007_v39 = vsel %vm1543_vm13, %v5981_v27, 0.0 }
0x5df3   :  { %v6026_v13 = vld [vmem:[#allocation3 + $0x12] sm:$0x3]  ;;  %v6049_v17 = vadd.f32 %v6048_v4, %v6047_v29  ;;  %4245 = vst.msk [vmem:[#allocation2 + $0x4] sm:$0x3] %vm1543_vm13, %v4243_v12  ;;  %v5997_v6 = vsel %vm1543_vm13, %v5976_v59, 0.0  ;;  %v6009_v4 = vsel %vm1543_vm13, %v5982_v61, 0.0 }
0x5df4   :  { %4246 = vst.msk [vmem:[#allocation3 + $0x18] sm:$0xc] %vm1546_vm14, %v4243_v12  ;;  %v6050_v19 = vsel %vm1543_vm13, %v6026_v13, 0.0  ;;  %v5983_v12 = vld [vmem:[#allocation2 + $0x1a] sm:$0x3] }
0x5df5   :  { %v6051_v33 = vadd.f32 %v6050_v19, %v6049_v17  ;;  %v6011_v28 = vsel %vm1543_vm13, %v5983_v12, 0.0  ;;  %v5984_v17 = vld [vmem:[#allocation2 + $0x1c] sm:$0x3] }
0x5df6   :  { %v3978_v46 = vpop.permute.xlu1 %3977  ;;  %v5974_v40 = vld [vmem:[#allocation2 + $0x8] sm:$0x3] }
0x5df7   :  { %v6028_v21 = vld [vmem:[#allocation3 + $0x16] sm:$0x3]  ;;  %v6053_v50 = vadd.f32 %v6052_v20, %v6051_v33  ;;  %3980 = vst.msk [vmem:[#allocation2] sm:$0x3] %vm1543_vm13, %v3978_v46  ;;  %v5993_v15 = vsel %vm1543_vm13, %v5974_v40, 0.0  ;;  %v6013_v33 = vsel %vm1543_vm13, %v5984_v17, 0.0 }
0x5df8   :  { %3981 = vst.msk [vmem:[#allocation3 + $0x1c] sm:$0xc] %vm1546_vm14, %v3978_v46  ;;  %v6054_v55 = vsel %vm1543_vm13, %v6028_v21, 0.0  ;;  %v5985_v20 = vld [vmem:[#allocation2 + $0x1e] sm:$0x3] }
0x5df9   :  { %v6055_v23 = vadd.f32 %v6054_v55, %v6053_v50  ;;  %v6015_v21 = vsel %vm1543_vm13, %v5985_v20, 0.0 }
0x5dfa   :  { %v5972_v3 = vld [vmem:[#allocation2 + $0x4] sm:$0x3] }
0x5dfb   :  { %v6030_v38 = vld [vmem:[#allocation3 + $0x1a] sm:$0x3]  ;;  %v6057_v48 = vadd.f32 %v6056_v62, %v6055_v23  ;;  %v5989_v7 = vsel %vm1543_vm13, %v5972_v3, 0.0 }
0x5dfc   :  { %v6058_v57 = vsel %vm1543_vm13, %v6030_v38, 0.0 }
0x5dfd   :  { %v6059_v35 = vadd.f32 %v6058_v57, %v6057_v48 }
0x5dfe   :  { %v5970_v24 = vld [vmem:[#allocation2] sm:$0x3] }
0x5dff   :  { %v6032_v0 = vld [vmem:[#allocation3 + $0x1e] sm:$0x3]  ;;  %v6061_v42 = vadd.f32 %v6060_v26, %v6059_v35  ;;  %v5986_v30 = vsel %vm1543_vm13, %v5970_v24, 0.0 }
0x5e00   :  { %v6062_v31 = vsel %vm1543_vm13, %v6032_v0, 0.0  ;;  %v5988_v53 = vadd.f32 %v5987_v14, %v5986_v30 }
0x5e01   :  { %v6063_v10 = vadd.f32 %v6062_v31, %v6061_v42 }
0x5e02   :  { %v5990_v36 = vadd.f32 %v5989_v7, %v5988_v53 }
0x5e03   :  { %6065 = vrot.lane.b32.xlu0 %v6063_v10, %s8283_s9 }
0x5e04   :  { %v5992_v45 = vadd.f32 %v5991_v22, %v5990_v36 }
0x5e06   :  { %v5994_v44 = vadd.f32 %v5993_v15, %v5992_v45 }
0x5e08   :  { %v5996_v2 = vadd.f32 %v5995_v25, %v5994_v44 }
0x5e0a   :  { %v5998_v41 = vadd.f32 %v5997_v6, %v5996_v2 }
0x5e0c   :  { %v6000_v47 = vadd.f32 %v5999_v11, %v5998_v41 }
0x5e0e   :  { %v6002_v60 = vadd.f32 %v6001_v34, %v6000_v47 }
0x5e10   :  { %v6004_v63 = vadd.f32 %v6003_v5, %v6002_v60 }
0x5e12   :  { %v6006_v18 = vadd.f32 %v6005_v16, %v6004_v63 }
0x5e14   :  { %v6008_v29 = vadd.f32 %v6007_v39, %v6006_v18 }
0x5e16   :  { %v6010_v13 = vadd.f32 %v6009_v4, %v6008_v29 }
0x5e18   :  { %v6012_v19 = vadd.f32 %v6011_v28, %v6010_v13 }
0x5e1a   :  { %v6014_v46 = vadd.f32 %v6013_v33, %v6012_v19 }
0x5e1c   :  { %v6016_v52 = vadd.f32 %v6015_v21, %v6014_v46 }
0x5e75   :  { %v6066_v50 = vpop.permute.xlu0 %6065 }
0x5e76   :  { %v6068_v32 = vsel %vm289_vm12, %v6016_v52, %v6066_v50 }
0x5e77   :  { %v6069_v55 = vmul.f32 0.0625, %v6068_v32 }
0x5e79   :  { %7440 = vmatmul.mubr.msk.f32.vlgmr.msra.gmra.mrb[52].mxu0 %vm639_vm5, %v6069_v55 }
0x5f4c   :  { %v6154_v23 = vpop.f32.mrb[52].mxu0 }
0x5f4d   :  { %v6155_v58 = vadd.f32 %v6341_v49, %v6154_v23  ;;  %v7441_v62 = vpop.f32.mrb[53].mxu0 }
0x5f4f   :  { %v6343_v38 = vmul.f32 -1.442695, %v6155_v58 }
0x5f51   :  { %8247 = vpow2.f32 %v6343_v38 }
0x5f5b   :  { %v8248_v51 = vpop.eup %8247 }
0x5f5c   :  { %v6161_v48 = vadd.f32 1.0, %v8248_v51 }
0x5f5e   :  { %8249 = vrcp.f32 %v6161_v48 }
0x5f68   :  { %v8250_v57 = vpop.eup %8249 }
0x5f69   :  { %6165 = vst.msk [vmem:[#allocation4] sm:$0x3] %vm6164_vm0, %v8250_v57 }
0x5f6a   :  { %8262 = shalt.err (!%p8259_p4)
}
0x5f6b   :  { %s8263_s14 = scalar_lea.hbm %s10509_s25, 32 }
0x5f6c   :  { %p8264_p5 = scmp.ne.s32.totalorder %s10509_s25, %s8263_s14  ;;  %p8267_p6 = scmp.lt.u32.totalorder %s8263_s14, %s10509_s25 }
0x5f6e   :  { %p8269_p7 = pnand %p8267_p6, %p8264_p5 }
0x5f70   :  { %8272 = shalt.err (!%p8269_p7)
}
0x5f71   :  { %6175 = dma.vmem_to_hbm [thread:$0]  %s6173_s21, 32, %s10509_s25, [#allocation5]  }
0x5f72   :  { %8273 = dma.done.wait [#allocation5], 32  }
0x5f73   :  { %8274 = vsyncadd [#allocation5], 4294967264 }
0x5f74   :  { %6179 = vsyncpa [#allocation5], 1 }

</bundles_post_ra>
